<compile_context>
chip_gen: v6e
topology: v6e:2x2x1
jax: 0.10.0
libtpu: 0.0.40
codegen_flags: <defaults>
</compile_context>

<pallas_src>
import jax
import jax.numpy as jnp
from jax.experimental import pallas as pl
from jax.experimental.pallas import tpu as pltpu


def _round_up(x, m):
    return (x + m - 1) // m * m


# ---------------------------------------------------------------------------
# Fused conv(GEMM) + bias [+ InstanceNorm] [+ LeakyReLU] kernel
# ---------------------------------------------------------------------------
def _make_conv_kernel(use_norm, use_act, valid_rows):
    def kernel(p_ref, w_ref, b_ref, o_ref):
        # p_ref: (P_pad, K) bf16, w_ref: (K, TN) bf16, b_ref: (1, TN) f32
        y = jnp.dot(p_ref[...], w_ref[...],
                    preferred_element_type=jnp.float32)
        y = y + b_ref[...]                                  # bias broadcast

        if use_norm:
            p_pad = y.shape[0]
            inv_p = 1.0 / float(valid_rows)
            if valid_rows == p_pad:
                mean = jnp.sum(y, axis=0, keepdims=True) * inv_p
                cent = y - mean
                var = jnp.sum(cent * cent, axis=0, keepdims=True) * inv_p
            else:
                # spatial extent was padded up to a multiple of 8; mask the
                # padded rows out of the per-channel statistics.
                rows = jax.lax.broadcasted_iota(jnp.int32, y.shape, 0)
                valid = rows < valid_rows
                mean = jnp.sum(jnp.where(valid, y, 0.0), axis=0,
                               keepdims=True) * inv_p
                cent = y - mean
                var = jnp.sum(jnp.where(valid, cent * cent, 0.0), axis=0,
                              keepdims=True) * inv_p
            y = cent * jax.lax.rsqrt(var + 1e-5)

        if use_act:
            y = jnp.where(y >= 0, y, 0.2 * y)               # LeakyReLU(0.2)

        o_ref[...] = y.astype(o_ref.dtype)

    return kernel


def conv_block(patches, w, b, *, use_norm, use_act, out_dtype):
    """patches: [B, P, K] bf16; w: [K, N] bf16 (N % 128 == 0); b: [1, N] f32.

    Single-K-step GEMM per (batch, channel-tile) block with bias / norm / act
    fused in the epilogue.  P (per-image spatial extent) must fit one block.
    """
    B, P, K = patches.shape
    N = w.shape[1]

    P_pad = _round_up(P, 8)                      # sublane-aligned M
    if P_pad != P:
        patches = jnp.pad(patches, ((0, 0), (0, P_pad - P), (0, 0)))

    TN = min(256, N)                             # lane-dense N tile
    assert N % TN == 0 and N % 128 == 0

    grid = (B, N // TN)
    bytes_accessed = ((B * P_pad * K + K * N) * 2
                      + B * P_pad * N * jnp.dtype(out_dtype).itemsize)

    out = pl.pallas_call(
        _make_conv_kernel(use_norm, use_act, P),
        out_shape=jax.ShapeDtypeStruct((B, P_pad, N), out_dtype),
        grid_spec=pltpu.PrefetchScalarGridSpec(
            num_scalar_prefetch=0,
            grid=grid,
            in_specs=[pl.BlockSpec((None, P_pad, K), lambda bi, j: (bi, 0, 0)),
                      pl.BlockSpec((K, TN), lambda bi, j: (0, j)),
                      pl.BlockSpec((1, TN), lambda bi, j: (0, j))],
            out_specs=pl.BlockSpec((None, P_pad, TN),
                                   lambda bi, j: (bi, 0, j))),
        compiler_params=pltpu.CompilerParams(
            dimension_semantics=("parallel", "parallel"),
            vmem_limit_bytes=32 * 1024 * 1024),
        cost_estimate=pl.CostEstimate(flops=2 * B * P_pad * K * N,
                                      transcendentals=0,
                                      bytes_accessed=bytes_accessed),
    )(patches, w, b)

    if P_pad != P:
        out = out[:, :P]
    return out


# ---------------------------------------------------------------------------
# im2col (NHWC, channel-fastest K) — pure data-movement glue in XLA
# ---------------------------------------------------------------------------
def _im2col_nhwc(x, kh, kw, stride, pad):
    B, H, W, C = x.shape
    xp = jnp.pad(x, ((0, 0), (pad, pad), (pad, pad), (0, 0)))
    Ho = (H + 2 * pad - kh) // stride + 1
    Wo = (W + 2 * pad - kw) // stride + 1
    cols = []
    for i in range(kh):
        for j in range(kw):
            cols.append(xp[:, i:i + stride * Ho:stride,
                               j:j + stride * Wo:stride, :])
    p = jnp.stack(cols, axis=3)                     # [B, Ho, Wo, kh*kw, C]
    p = p.reshape(B, Ho * Wo, kh * kw * C)          # K = (i*kw + j)*C + c
    return p, Ho, Wo


# ---------------------------------------------------------------------------
# Parameters (mirrors Discriminator.__init__), preprocessed for the kernels
# ---------------------------------------------------------------------------
def init_discriminator_params(key, in_ch, num_layers=4):
    specs = [dict(cin=in_ch, cout=64, k=4, stride=2, pad=1,
                  use_norm=False, use_act=True)]             # Conv + LeakyReLU
    for i in range(1, num_layers):
        in_chs = 64 * 2 ** (i - 1)
        out_chs = in_chs * 2
        stride = 1 if i == num_layers - 1 else 2
        specs.append(dict(cin=in_chs, cout=out_chs, k=4, stride=stride, pad=1,
                          use_norm=True, use_act=True))      # Convlayer
    specs.append(dict(cin=64 * 2 ** (num_layers - 1), cout=1, k=4, stride=1,
                      pad=1, use_norm=False, use_act=False)) # final Conv2d

    params = []
    for s in specs:
        key, kw_, kb_ = jax.random.split(key, 3)
        w = jax.random.normal(kw_, (s['cout'], s['cin'], s['k'], s['k']),
                              jnp.float32) * 0.05
        b = jax.random.normal(kb_, (s['cout'],), jnp.float32) * 0.01

        cout_pad = _round_up(s['cout'], 128)      # lane-dense output slab
        cin_pad = _round_up(s['cin'], 8)          # only layer 1 pads (3 -> 8)
        # pad torch-layout weight [Cout, Cin, kh, kw] with zeros
        w_p = jnp.zeros((cout_pad, cin_pad, s['k'], s['k']), jnp.float32)
        w_p = w_p.at[:s['cout'], :s['cin']].set(w)
        # flatten to [K, N] with K = (i*kw + j)*cin_pad + c (matches im2col)
        w2d = jnp.transpose(w_p, (2, 3, 1, 0)).reshape(
            s['k'] * s['k'] * cin_pad, cout_pad).astype(jnp.bfloat16)
        b2d = jnp.zeros((1, cout_pad), jnp.float32).at[0, :s['cout']].set(b)

        params.append(dict(w2d=w2d, b2d=b2d, k=s['k'], stride=s['stride'],
                           pad=s['pad'], use_norm=s['use_norm'],
                           use_act=s['use_act'], cin_pad=cin_pad,
                           cout=s['cout'], cout_pad=cout_pad))
    return params


# ---------------------------------------------------------------------------
# Forward pass (NCHW in / NCHW out, matching the torch module)
# ---------------------------------------------------------------------------
def discriminator_forward(x_nchw, params):
    x = jnp.transpose(x_nchw, (0, 2, 3, 1)).astype(jnp.bfloat16)  # NHWC bf16
    c0 = params[0]['cin_pad']
    if x.shape[-1] < c0:                      # lane-friendly Cin pad (3 -> 8)
        x = jnp.pad(x, ((0, 0), (0, 0), (0, 0), (0, c0 - x.shape[-1])))

    n_layers = len(params)
    for li, p in enumerate(params):
        if x.shape[-1] > p['cin_pad']:
            x = x[..., :p['cin_pad']]         # drop zero-padded channels
        B = x.shape[0]
        patches, Ho, Wo = _im2col_nhwc(x, p['k'], p['k'], p['stride'], p['pad'])
        out_dtype = jnp.float32 if li == n_layers - 1 else jnp.bfloat16
        y = conv_block(patches, p['w2d'], p['b2d'],
                       use_norm=p['use_norm'], use_act=p['use_act'],
                       out_dtype=out_dtype)
        x = y.reshape(B, Ho, Wo, p['cout_pad'])

    out = x[..., :params[-1]['cout']].astype(jnp.float32)   # drop padded chans
    return jnp.transpose(out, (0, 3, 1, 2))                  # back to NCHW


if __name__ == "__main__":
    key = jax.random.PRNGKey(0)
    kx, kp = jax.random.split(key)
    # 32x32 is the smallest spatial size that survives the 3 stride-2 convs
    # and two stride-1 k=4 convs (final output is 2x2).
    B, in_ch, H, W = 2, 3, 32, 32
    x = jax.random.normal(kx, (B, in_ch, H, W), jnp.float32)
    params = init_discriminator_params(kp, in_ch, num_layers=4)

    fwd = jax.jit(lambda inp: discriminator_forward(inp, params))
    out = fwd(x)
    jax.block_until_ready(out)
    assert out.shape == (B, 1, 2, 2), out.shape
    assert bool(jnp.all(jnp.isfinite(out)))
    print("KERNEL_OK")
</pallas_src>

<mosaic_0001>
module attributes {stable_mosaic.version = 11 : i64} {
  func.func @kernel(%arg0: i32, %arg1: i32, %arg2: memref<1x256x128xbf16, #tpu.memory_space<vmem>>, %arg3: memref<128x128xbf16, #tpu.memory_space<vmem>>, %arg4: memref<1x128xf32, #tpu.memory_space<vmem>>, %arg5: memref<1x256x128xbf16, #tpu.memory_space<vmem>>) attributes {dimension_semantics = [#tpu.dimension_semantics<parallel>, #tpu.dimension_semantics<parallel>], iteration_bounds = array<i64: 2, 1>, scalar_prefetch = 0 : i64, scratch_operands = 0 : i64, tpu.core_type = #tpu.core_type<tc>, window_params = [{transform_indices = @transform_0, window_bounds = array<i64: 1, 256, 128>}, {transform_indices = @transform_1, window_bounds = array<i64: 128, 128>}, {transform_indices = @transform_2, window_bounds = array<i64: 1, 128>}, {transform_indices = @transform_3, window_bounds = array<i64: 1, 256, 128>}]} {
    %c0 = arith.constant 0 : index
    %c0_0 = arith.constant 0 : index
    %c0_1 = arith.constant 0 : index
    %0 = vector.load %arg2[%c0, %c0_0, %c0_1] : memref<1x256x128xbf16, #tpu.memory_space<vmem>>, vector<1x256x128xbf16>
    %1 = vector.shape_cast %0 : vector<1x256x128xbf16> to vector<256x128xbf16>
    %c0_2 = arith.constant 0 : index
    %c0_3 = arith.constant 0 : index
    %2 = vector.load %arg3[%c0_2, %c0_3] : memref<128x128xbf16, #tpu.memory_space<vmem>>, vector<128x128xbf16>
    %cst = arith.constant dense<0.000000e+00> : vector<256x128xf32>
    %3 = tpu.matmul %1, %2, %cst {dimension_numbers = #tpu.dot_dimension_numbers<[1], [0], [0], [1], [0, 0, 1, 1], [], []>} : vector<256x128xbf16>, vector<128x128xbf16>, vector<256x128xf32> -> vector<256x128xf32>
    %c0_4 = arith.constant 0 : index
    %c0_5 = arith.constant 0 : index
    %4 = vector.load %arg4[%c0_4, %c0_5] : memref<1x128xf32, #tpu.memory_space<vmem>>, vector<1x128xf32>
    %5 = vector.broadcast %4 : vector<1x128xf32> to vector<256x128xf32>
    %6 = arith.addf %3, %5 : vector<256x128xf32>
    %cst_6 = arith.constant 0.000000e+00 : f32
    %7 = vector.broadcast %cst_6 : f32 to vector<256x128xf32>
    %8 = arith.cmpf oge, %6, %7 : vector<256x128xf32>
    %cst_7 = arith.constant 2.000000e-01 : f32
    %9 = vector.broadcast %cst_7 : f32 to vector<256x128xf32>
    %10 = arith.mulf %9, %6 : vector<256x128xf32>
    %11 = arith.select %8, %6, %10 : vector<256x128xi1>, vector<256x128xf32>
    %12 = arith.truncf %11 : vector<256x128xf32> to vector<256x128xbf16>
    %c0_8 = arith.constant 0 : index
    %c0_9 = arith.constant 0 : index
    %c0_10 = arith.constant 0 : index
    %13 = vector.load %arg5[%c0_8, %c0_9, %c0_10] : memref<1x256x128xbf16, #tpu.memory_space<vmem>>, vector<1x256x128xbf16>
    %14 = vector.shape_cast %13 : vector<1x256x128xbf16> to vector<256x128xbf16>
    %15 = vector.shape_cast %12 : vector<256x128xbf16> to vector<1x256x128xbf16>
    tpu.vector_store %arg5[%c0_8, %c0_9, %c0_10], %15 {strides = array<i32>} : memref<1x256x128xbf16, #tpu.memory_space<vmem>>, vector<1x256x128xbf16>,
    return
  }
  func.func @transform_0(%arg0: i32, %arg1: i32) -> (i32, i32, i32) {
    %c0_i32 = arith.constant 0 : i32
    %c0_i32_0 = arith.constant 0 : i32
    %c0_i32_1 = arith.constant 0 : i32
    return %arg0, %c0_i32, %c0_i32_0 : i32, i32, i32
  }
  func.func @transform_1(%arg0: i32, %arg1: i32) -> (i32, i32) {
    %c0_i32 = arith.constant 0 : i32
    %c0_i32_0 = arith.constant 0 : i32
    return %c0_i32, %arg1 : i32, i32
  }
  func.func @transform_2(%arg0: i32, %arg1: i32) -> (i32, i32) {
    %c0_i32 = arith.constant 0 : i32
    %c0_i32_0 = arith.constant 0 : i32
    return %c0_i32, %arg1 : i32, i32
  }
  func.func @transform_3(%arg0: i32, %arg1: i32) -> (i32, i32, i32) {
    %c0_i32 = arith.constant 0 : i32
    %c0_i32_0 = arith.constant 0 : i32
    return %arg0, %c0_i32, %arg1 : i32, i32, i32
  }
}

module attributes {stable_mosaic.version = 11 : i64} {
  func.func @kernel(%arg0: i32, %arg1: i32, %arg2: memref<1x64x1024xbf16, #tpu.memory_space<vmem>>, %arg3: memref<1024x128xbf16, #tpu.memory_space<vmem>>, %arg4: memref<1x128xf32, #tpu.memory_space<vmem>>, %arg5: memref<1x64x128xbf16, #tpu.memory_space<vmem>>) attributes {dimension_semantics = [#tpu.dimension_semantics<parallel>, #tpu.dimension_semantics<parallel>], iteration_bounds = array<i64: 2, 1>, scalar_prefetch = 0 : i64, scratch_operands = 0 : i64, tpu.core_type = #tpu.core_type<tc>, window_params = [{transform_indices = @transform_0, window_bounds = array<i64: 1, 64, 1024>}, {transform_indices = @transform_1, window_bounds = array<i64: 1024, 128>}, {transform_indices = @transform_2, window_bounds = array<i64: 1, 128>}, {transform_indices = @transform_3, window_bounds = array<i64: 1, 64, 128>}]} {
    %c0 = arith.constant 0 : index
    %c0_0 = arith.constant 0 : index
    %c0_1 = arith.constant 0 : index
    %0 = vector.load %arg2[%c0, %c0_0, %c0_1] : memref<1x64x1024xbf16, #tpu.memory_space<vmem>>, vector<1x64x1024xbf16>
    %1 = vector.shape_cast %0 : vector<1x64x1024xbf16> to vector<64x1024xbf16>
    %c0_2 = arith.constant 0 : index
    %c0_3 = arith.constant 0 : index
    %2 = vector.load %arg3[%c0_2, %c0_3] : memref<1024x128xbf16, #tpu.memory_space<vmem>>, vector<1024x128xbf16>
    %cst = arith.constant dense<0.000000e+00> : vector<64x128xf32>
    %3 = tpu.matmul %1, %2, %cst {dimension_numbers = #tpu.dot_dimension_numbers<[1], [0], [0], [1], [0, 0, 1, 1], [], []>} : vector<64x1024xbf16>, vector<1024x128xbf16>, vector<64x128xf32> -> vector<64x128xf32>
    %c0_4 = arith.constant 0 : index
    %c0_5 = arith.constant 0 : index
    %4 = vector.load %arg4[%c0_4, %c0_5] : memref<1x128xf32, #tpu.memory_space<vmem>>, vector<1x128xf32>
    %5 = vector.broadcast %4 : vector<1x128xf32> to vector<64x128xf32>
    %6 = arith.addf %3, %5 : vector<64x128xf32>
    %cst_6 = arith.constant dense<0.000000e+00> : vector<128xf32>
    %7 = vector.multi_reduction <add>, %6, %cst_6 [0] : vector<64x128xf32> to vector<128xf32>
    %8 = vector.shape_cast %7 : vector<128xf32> to vector<1x128xf32>
    %cst_7 = arith.constant 1.562500e-02 : f32
    %9 = vector.broadcast %cst_7 : f32 to vector<1x128xf32>
    %10 = arith.mulf %8, %9 : vector<1x128xf32>
    %11 = vector.broadcast %10 : vector<1x128xf32> to vector<64x128xf32>
    %12 = arith.subf %6, %11 : vector<64x128xf32>
    %13 = arith.mulf %12, %12 : vector<64x128xf32>
    %cst_8 = arith.constant dense<0.000000e+00> : vector<128xf32>
    %14 = vector.multi_reduction <add>, %13, %cst_8 [0] : vector<64x128xf32> to vector<128xf32>
    %15 = vector.shape_cast %14 : vector<128xf32> to vector<1x128xf32>
    %cst_9 = arith.constant 1.562500e-02 : f32
    %16 = vector.broadcast %cst_9 : f32 to vector<1x128xf32>
    %17 = arith.mulf %15, %16 : vector<1x128xf32>
    %cst_10 = arith.constant 9.99999974E-6 : f32
    %18 = vector.broadcast %cst_10 : f32 to vector<1x128xf32>
    %19 = arith.addf %17, %18 : vector<1x128xf32>
    %20 = math.rsqrt %19 : vector<1x128xf32>
    %21 = vector.broadcast %20 : vector<1x128xf32> to vector<64x128xf32>
    %22 = arith.mulf %12, %21 : vector<64x128xf32>
    %cst_11 = arith.constant 0.000000e+00 : f32
    %23 = vector.broadcast %cst_11 : f32 to vector<64x128xf32>
    %24 = arith.cmpf oge, %22, %23 : vector<64x128xf32>
    %cst_12 = arith.constant 2.000000e-01 : f32
    %25 = vector.broadcast %cst_12 : f32 to vector<64x128xf32>
    %26 = arith.mulf %25, %22 : vector<64x128xf32>
    %27 = arith.select %24, %22, %26 : vector<64x128xi1>, vector<64x128xf32>
    %28 = arith.truncf %27 : vector<64x128xf32> to vector<64x128xbf16>
    %c0_13 = arith.constant 0 : index
    %c0_14 = arith.constant 0 : index
    %c0_15 = arith.constant 0 : index
    %29 = vector.load %arg5[%c0_13, %c0_14, %c0_15] : memref<1x64x128xbf16, #tpu.memory_space<vmem>>, vector<1x64x128xbf16>
    %30 = vector.shape_cast %29 : vector<1x64x128xbf16> to vector<64x128xbf16>
    %31 = vector.shape_cast %28 : vector<64x128xbf16> to vector<1x64x128xbf16>
    tpu.vector_store %arg5[%c0_13, %c0_14, %c0_15], %31 {strides = array<i32>} : memref<1x64x128xbf16, #tpu.memory_space<vmem>>, vector<1x64x128xbf16>,
    return
  }
  func.func @transform_0(%arg0: i32, %arg1: i32) -> (i32, i32, i32) {
    %c0_i32 = arith.constant 0 : i32
    %c0_i32_0 = arith.constant 0 : i32
    %c0_i32_1 = arith.constant 0 : i32
    return %arg0, %c0_i32, %c0_i32_0 : i32, i32, i32
  }
  func.func @transform_1(%arg0: i32, %arg1: i32) -> (i32, i32) {
    %c0_i32 = arith.constant 0 : i32
    %c0_i32_0 = arith.constant 0 : i32
    return %c0_i32, %arg1 : i32, i32
  }
  func.func @transform_2(%arg0: i32, %arg1: i32) -> (i32, i32) {
    %c0_i32 = arith.constant 0 : i32
    %c0_i32_0 = arith.constant 0 : i32
    return %c0_i32, %arg1 : i32, i32
  }
  func.func @transform_3(%arg0: i32, %arg1: i32) -> (i32, i32, i32) {
    %c0_i32 = arith.constant 0 : i32
    %c0_i32_0 = arith.constant 0 : i32
    return %arg0, %c0_i32, %arg1 : i32, i32, i32
  }
}

module attributes {stable_mosaic.version = 11 : i64} {
  func.func @kernel(%arg0: i32, %arg1: i32, %arg2: memref<1x16x2048xbf16, #tpu.memory_space<vmem>>, %arg3: memref<2048x256xbf16, #tpu.memory_space<vmem>>, %arg4: memref<1x256xf32, #tpu.memory_space<vmem>>, %arg5: memref<1x16x256xbf16, #tpu.memory_space<vmem>>) attributes {dimension_semantics = [#tpu.dimension_semantics<parallel>, #tpu.dimension_semantics<parallel>], iteration_bounds = array<i64: 2, 1>, scalar_prefetch = 0 : i64, scratch_operands = 0 : i64, tpu.core_type = #tpu.core_type<tc>, window_params = [{transform_indices = @transform_0, window_bounds = array<i64: 1, 16, 2048>}, {transform_indices = @transform_1, window_bounds = array<i64: 2048, 256>}, {transform_indices = @transform_2, window_bounds = array<i64: 1, 256>}, {transform_indices = @transform_3, window_bounds = array<i64: 1, 16, 256>}]} {
    %c0 = arith.constant 0 : index
    %c0_0 = arith.constant 0 : index
    %c0_1 = arith.constant 0 : index
    %0 = vector.load %arg2[%c0, %c0_0, %c0_1] : memref<1x16x2048xbf16, #tpu.memory_space<vmem>>, vector<1x16x2048xbf16>
    %1 = vector.shape_cast %0 : vector<1x16x2048xbf16> to vector<16x2048xbf16>
    %c0_2 = arith.constant 0 : index
    %c0_3 = arith.constant 0 : index
    %2 = vector.load %arg3[%c0_2, %c0_3] : memref<2048x256xbf16, #tpu.memory_space<vmem>>, vector<2048x256xbf16>
    %cst = arith.constant dense<0.000000e+00> : vector<16x256xf32>
    %3 = tpu.matmul %1, %2, %cst {dimension_numbers = #tpu.dot_dimension_numbers<[1], [0], [0], [1], [0, 0, 1, 1], [], []>} : vector<16x2048xbf16>, vector<2048x256xbf16>, vector<16x256xf32> -> vector<16x256xf32>
    %c0_4 = arith.constant 0 : index
    %c0_5 = arith.constant 0 : index
    %4 = vector.load %arg4[%c0_4, %c0_5] : memref<1x256xf32, #tpu.memory_space<vmem>>, vector<1x256xf32>
    %5 = vector.broadcast %4 : vector<1x256xf32> to vector<16x256xf32>
    %6 = arith.addf %3, %5 : vector<16x256xf32>
    %cst_6 = arith.constant dense<0.000000e+00> : vector<256xf32>
    %7 = vector.multi_reduction <add>, %6, %cst_6 [0] : vector<16x256xf32> to vector<256xf32>
    %8 = vector.shape_cast %7 : vector<256xf32> to vector<1x256xf32>
    %cst_7 = arith.constant 6.250000e-02 : f32
    %9 = vector.broadcast %cst_7 : f32 to vector<1x256xf32>
    %10 = arith.mulf %8, %9 : vector<1x256xf32>
    %11 = vector.broadcast %10 : vector<1x256xf32> to vector<16x256xf32>
    %12 = arith.subf %6, %11 : vector<16x256xf32>
    %13 = arith.mulf %12, %12 : vector<16x256xf32>
    %cst_8 = arith.constant dense<0.000000e+00> : vector<256xf32>
    %14 = vector.multi_reduction <add>, %13, %cst_8 [0] : vector<16x256xf32> to vector<256xf32>
    %15 = vector.shape_cast %14 : vector<256xf32> to vector<1x256xf32>
    %cst_9 = arith.constant 6.250000e-02 : f32
    %16 = vector.broadcast %cst_9 : f32 to vector<1x256xf32>
    %17 = arith.mulf %15, %16 : vector<1x256xf32>
    %cst_10 = arith.constant 9.99999974E-6 : f32
    %18 = vector.broadcast %cst_10 : f32 to vector<1x256xf32>
    %19 = arith.addf %17, %18 : vector<1x256xf32>
    %20 = math.rsqrt %19 : vector<1x256xf32>
    %21 = vector.broadcast %20 : vector<1x256xf32> to vector<16x256xf32>
    %22 = arith.mulf %12, %21 : vector<16x256xf32>
    %cst_11 = arith.constant 0.000000e+00 : f32
    %23 = vector.broadcast %cst_11 : f32 to vector<16x256xf32>
    %24 = arith.cmpf oge, %22, %23 : vector<16x256xf32>
    %cst_12 = arith.constant 2.000000e-01 : f32
    %25 = vector.broadcast %cst_12 : f32 to vector<16x256xf32>
    %26 = arith.mulf %25, %22 : vector<16x256xf32>
    %27 = arith.select %24, %22, %26 : vector<16x256xi1>, vector<16x256xf32>
    %28 = arith.truncf %27 : vector<16x256xf32> to vector<16x256xbf16>
    %c0_13 = arith.constant 0 : index
    %c0_14 = arith.constant 0 : index
    %c0_15 = arith.constant 0 : index
    %29 = vector.load %arg5[%c0_13, %c0_14, %c0_15] : memref<1x16x256xbf16, #tpu.memory_space<vmem>>, vector<1x16x256xbf16>
    %30 = vector.shape_cast %29 : vector<1x16x256xbf16> to vector<16x256xbf16>
    %31 = vector.shape_cast %28 : vector<16x256xbf16> to vector<1x16x256xbf16>
    tpu.vector_store %arg5[%c0_13, %c0_14, %c0_15], %31 {strides = array<i32>} : memref<1x16x256xbf16, #tpu.memory_space<vmem>>, vector<1x16x256xbf16>,
    return
  }
  func.func @transform_0(%arg0: i32, %arg1: i32) -> (i32, i32, i32) {
    %c0_i32 = arith.constant 0 : i32
    %c0_i32_0 = arith.constant 0 : i32
    %c0_i32_1 = arith.constant 0 : i32
    return %arg0, %c0_i32, %c0_i32_0 : i32, i32, i32
  }
  func.func @transform_1(%arg0: i32, %arg1: i32) -> (i32, i32) {
    %c0_i32 = arith.constant 0 : i32
    %c0_i32_0 = arith.constant 0 : i32
    return %c0_i32, %arg1 : i32, i32
  }
  func.func @transform_2(%arg0: i32, %arg1: i32) -> (i32, i32) {
    %c0_i32 = arith.constant 0 : i32
    %c0_i32_0 = arith.constant 0 : i32
    return %c0_i32, %arg1 : i32, i32
  }
  func.func @transform_3(%arg0: i32, %arg1: i32) -> (i32, i32, i32) {
    %c0_i32 = arith.constant 0 : i32
    %c0_i32_0 = arith.constant 0 : i32
    return %arg0, %c0_i32, %arg1 : i32, i32, i32
  }
}

module attributes {stable_mosaic.version = 11 : i64} {
  func.func @kernel(%arg0: i32, %arg1: i32, %arg2: memref<1x16x4096xbf16, #tpu.memory_space<vmem>>, %arg3: memref<4096x256xbf16, #tpu.memory_space<vmem>>, %arg4: memref<1x256xf32, #tpu.memory_space<vmem>>, %arg5: memref<1x16x256xbf16, #tpu.memory_space<vmem>>) attributes {dimension_semantics = [#tpu.dimension_semantics<parallel>, #tpu.dimension_semantics<parallel>], iteration_bounds = array<i64: 2, 2>, scalar_prefetch = 0 : i64, scratch_operands = 0 : i64, tpu.core_type = #tpu.core_type<tc>, window_params = [{transform_indices = @transform_0, window_bounds = array<i64: 1, 16, 4096>}, {transform_indices = @transform_1, window_bounds = array<i64: 4096, 256>}, {transform_indices = @transform_2, window_bounds = array<i64: 1, 256>}, {transform_indices = @transform_3, window_bounds = array<i64: 1, 16, 256>}]} {
    %c0 = arith.constant 0 : index
    %c0_0 = arith.constant 0 : index
    %c0_1 = arith.constant 0 : index
    %0 = vector.load %arg2[%c0, %c0_0, %c0_1] : memref<1x16x4096xbf16, #tpu.memory_space<vmem>>, vector<1x16x4096xbf16>
    %1 = vector.shape_cast %0 : vector<1x16x4096xbf16> to vector<16x4096xbf16>
    %c0_2 = arith.constant 0 : index
    %c0_3 = arith.constant 0 : index
    %2 = vector.load %arg3[%c0_2, %c0_3] : memref<4096x256xbf16, #tpu.memory_space<vmem>>, vector<4096x256xbf16>
    %cst = arith.constant dense<0.000000e+00> : vector<16x256xf32>
    %3 = tpu.matmul %1, %2, %cst {dimension_numbers = #tpu.dot_dimension_numbers<[1], [0], [0], [1], [0, 0, 1, 1], [], []>} : vector<16x4096xbf16>, vector<4096x256xbf16>, vector<16x256xf32> -> vector<16x256xf32>
    %c0_4 = arith.constant 0 : index
    %c0_5 = arith.constant 0 : index
    %4 = vector.load %arg4[%c0_4, %c0_5] : memref<1x256xf32, #tpu.memory_space<vmem>>, vector<1x256xf32>
    %5 = vector.broadcast %4 : vector<1x256xf32> to vector<16x256xf32>
    %6 = arith.addf %3, %5 : vector<16x256xf32>
    %7 = tpu.iota {dimensions = array<i32: 0>} : vector<16x256xi32>
    %c9_i32 = arith.constant 9 : i32
    %8 = vector.broadcast %c9_i32 : i32 to vector<16x256xi32>
    %9 = arith.cmpi slt, %7, %8 : vector<16x256xi32>
    %cst_6 = arith.constant 0.000000e+00 : f32
    %10 = vector.broadcast %cst_6 : f32 to vector<16x256xf32>
    %11 = arith.select %9, %6, %10 : vector<16x256xi1>, vector<16x256xf32>
    %cst_7 = arith.constant dense<0.000000e+00> : vector<256xf32>
    %12 = vector.multi_reduction <add>, %11, %cst_7 [0] : vector<16x256xf32> to vector<256xf32>
    %13 = vector.shape_cast %12 : vector<256xf32> to vector<1x256xf32>
    %cst_8 = arith.constant 0.111111112 : f32
    %14 = vector.broadcast %cst_8 : f32 to vector<1x256xf32>
    %15 = arith.mulf %13, %14 : vector<1x256xf32>
    %16 = vector.broadcast %15 : vector<1x256xf32> to vector<16x256xf32>
    %17 = arith.subf %6, %16 : vector<16x256xf32>
    %18 = arith.mulf %17, %17 : vector<16x256xf32>
    %cst_9 = arith.constant 0.000000e+00 : f32
    %19 = vector.broadcast %cst_9 : f32 to vector<16x256xf32>
    %20 = arith.select %9, %18, %19 : vector<16x256xi1>, vector<16x256xf32>
    %cst_10 = arith.constant dense<0.000000e+00> : vector<256xf32>
    %21 = vector.multi_reduction <add>, %20, %cst_10 [0] : vector<16x256xf32> to vector<256xf32>
    %22 = vector.shape_cast %21 : vector<256xf32> to vector<1x256xf32>
    %cst_11 = arith.constant 0.111111112 : f32
    %23 = vector.broadcast %cst_11 : f32 to vector<1x256xf32>
    %24 = arith.mulf %22, %23 : vector<1x256xf32>
    %cst_12 = arith.constant 9.99999974E-6 : f32
    %25 = vector.broadcast %cst_12 : f32 to vector<1x256xf32>
    %26 = arith.addf %24, %25 : vector<1x256xf32>
    %27 = math.rsqrt %26 : vector<1x256xf32>
    %28 = vector.broadcast %27 : vector<1x256xf32> to vector<16x256xf32>
    %29 = arith.mulf %17, %28 : vector<16x256xf32>
    %cst_13 = arith.constant 0.000000e+00 : f32
    %30 = vector.broadcast %cst_13 : f32 to vector<16x256xf32>
    %31 = arith.cmpf oge, %29, %30 : vector<16x256xf32>
    %cst_14 = arith.constant 2.000000e-01 : f32
    %32 = vector.broadcast %cst_14 : f32 to vector<16x256xf32>
    %33 = arith.mulf %32, %29 : vector<16x256xf32>
    %34 = arith.select %31, %29, %33 : vector<16x256xi1>, vector<16x256xf32>
    %35 = arith.truncf %34 : vector<16x256xf32> to vector<16x256xbf16>
    %c0_15 = arith.constant 0 : index
    %c0_16 = arith.constant 0 : index
    %c0_17 = arith.constant 0 : index
    %36 = vector.load %arg5[%c0_15, %c0_16, %c0_17] : memref<1x16x256xbf16, #tpu.memory_space<vmem>>, vector<1x16x256xbf16>
    %37 = vector.shape_cast %36 : vector<1x16x256xbf16> to vector<16x256xbf16>
    %38 = vector.shape_cast %35 : vector<16x256xbf16> to vector<1x16x256xbf16>
    tpu.vector_store %arg5[%c0_15, %c0_16, %c0_17], %38 {strides = array<i32>} : memref<1x16x256xbf16, #tpu.memory_space<vmem>>, vector<1x16x256xbf16>,
    return
  }
  func.func @transform_0(%arg0: i32, %arg1: i32) -> (i32, i32, i32) {
    %c0_i32 = arith.constant 0 : i32
    %c0_i32_0 = arith.constant 0 : i32
    %c0_i32_1 = arith.constant 0 : i32
    return %arg0, %c0_i32, %c0_i32_0 : i32, i32, i32
  }
  func.func @transform_1(%arg0: i32, %arg1: i32) -> (i32, i32) {
    %c0_i32 = arith.constant 0 : i32
    %c0_i32_0 = arith.constant 0 : i32
    return %c0_i32, %arg1 : i32, i32
  }
  func.func @transform_2(%arg0: i32, %arg1: i32) -> (i32, i32) {
    %c0_i32 = arith.constant 0 : i32
    %c0_i32_0 = arith.constant 0 : i32
    return %c0_i32, %arg1 : i32, i32
  }
  func.func @transform_3(%arg0: i32, %arg1: i32) -> (i32, i32, i32) {
    %c0_i32 = arith.constant 0 : i32
    %c0_i32_0 = arith.constant 0 : i32
    return %arg0, %c0_i32, %arg1 : i32, i32, i32
  }
}

module attributes {stable_mosaic.version = 11 : i64} {
  func.func @kernel(%arg0: i32, %arg1: i32, %arg2: memref<1x8x8192xbf16, #tpu.memory_space<vmem>>, %arg3: memref<8192x128xbf16, #tpu.memory_space<vmem>>, %arg4: memref<1x128xf32, #tpu.memory_space<vmem>>, %arg5: memref<1x8x128xf32, #tpu.memory_space<vmem>>) attributes {dimension_semantics = [#tpu.dimension_semantics<parallel>, #tpu.dimension_semantics<parallel>], iteration_bounds = array<i64: 2, 1>, scalar_prefetch = 0 : i64, scratch_operands = 0 : i64, tpu.core_type = #tpu.core_type<tc>, window_params = [{transform_indices = @transform_0, window_bounds = array<i64: 1, 8, 8192>}, {transform_indices = @transform_1, window_bounds = array<i64: 8192, 128>}, {transform_indices = @transform_2, window_bounds = array<i64: 1, 128>}, {transform_indices = @transform_3, window_bounds = array<i64: 1, 8, 128>}]} {
    %c0 = arith.constant 0 : index
    %c0_0 = arith.constant 0 : index
    %c0_1 = arith.constant 0 : index
    %0 = vector.load %arg2[%c0, %c0_0, %c0_1] : memref<1x8x8192xbf16, #tpu.memory_space<vmem>>, vector<1x8x8192xbf16>
    %1 = vector.shape_cast %0 : vector<1x8x8192xbf16> to vector<8x8192xbf16>
    %c0_2 = arith.constant 0 : index
    %c0_3 = arith.constant 0 : index
    %2 = vector.load %arg3[%c0_2, %c0_3] : memref<8192x128xbf16, #tpu.memory_space<vmem>>, vector<8192x128xbf16>
    %cst = arith.constant dense<0.000000e+00> : vector<8x128xf32>
    %3 = tpu.matmul %1, %2, %cst {dimension_numbers = #tpu.dot_dimension_numbers<[1], [0], [0], [1], [0, 0, 1, 1], [], []>} : vector<8x8192xbf16>, vector<8192x128xbf16>, vector<8x128xf32> -> vector<8x128xf32>
    %c0_4 = arith.constant 0 : index
    %c0_5 = arith.constant 0 : index
    %4 = vector.load %arg4[%c0_4, %c0_5] : memref<1x128xf32, #tpu.memory_space<vmem>>, vector<1x128xf32>
    %5 = vector.broadcast %4 : vector<1x128xf32> to vector<8x128xf32>
    %6 = arith.addf %3, %5 : vector<8x128xf32>
    %c0_6 = arith.constant 0 : index
    %c0_7 = arith.constant 0 : index
    %c0_8 = arith.constant 0 : index
    %7 = vector.load %arg5[%c0_6, %c0_7, %c0_8] : memref<1x8x128xf32, #tpu.memory_space<vmem>>, vector<1x8x128xf32>
    %8 = vector.shape_cast %7 : vector<1x8x128xf32> to vector<8x128xf32>
    %9 = vector.shape_cast %6 : vector<8x128xf32> to vector<1x8x128xf32>
    tpu.vector_store %arg5[%c0_6, %c0_7, %c0_8], %9 {strides = array<i32>} : memref<1x8x128xf32, #tpu.memory_space<vmem>>, vector<1x8x128xf32>,
    return
  }
  func.func @transform_0(%arg0: i32, %arg1: i32) -> (i32, i32, i32) {
    %c0_i32 = arith.constant 0 : i32
    %c0_i32_0 = arith.constant 0 : i32
    %c0_i32_1 = arith.constant 0 : i32
    return %arg0, %c0_i32, %c0_i32_0 : i32, i32, i32
  }
  func.func @transform_1(%arg0: i32, %arg1: i32) -> (i32, i32) {
    %c0_i32 = arith.constant 0 : i32
    %c0_i32_0 = arith.constant 0 : i32
    return %c0_i32, %arg1 : i32, i32
  }
  func.func @transform_2(%arg0: i32, %arg1: i32) -> (i32, i32) {
    %c0_i32 = arith.constant 0 : i32
    %c0_i32_0 = arith.constant 0 : i32
    return %c0_i32, %arg1 : i32, i32
  }
  func.func @transform_3(%arg0: i32, %arg1: i32) -> (i32, i32, i32) {
    %c0_i32 = arith.constant 0 : i32
    %c0_i32_0 = arith.constant 0 : i32
    return %arg0, %c0_i32, %arg1 : i32, i32, i32
  }
}

</mosaic_0001>

<bundles_post_ra>
// kernel: _lambda_.5
= control target key start
LH: loop header
LB: loop body
LE: loop exit
PB: predicated region body
PF: predicated region fallthrough
CT: control target
= control target key end

     0   :  { %s1323_s12 = smov 0   ;;  %s1325_s13 = smov 0   ;;  %s1464_s0 = inlined_call_operand.vmem [shape: bf16[2,256,128], index: 0, kind: input, shape index: {}]   ;;  %s1465_s1 = inlined_call_operand.vmem [shape: bf16[128,128], index: 1, kind: input, shape index: {}]   ;;  %s1466_s2 = inlined_call_operand.vmem [shape: f32[1,128], index: 2, kind: input, shape index: {}]   ;;  %s1467_s3 = inlined_call_operand.vmem [shape: bf16[2,256,128], index: 3, kind: output, shape index: {}]  }
   0x1   :  { %s1327_s14 = smov 0  }
   0x2 LB: > { %s25_s15 = sadd.s32 1, %s1297_s13  ;;  %p950_p0 = scmp.ge.s32.totalorder %s1301_s14, 1  ;;  %s1301_s14 = sphi %s1327_s14, %s13_s14   ;;  %s1297_s13 = sphi %s1325_s13, %s1469_s13   ;;  %s1293_s12 = sphi %s1323_s12, %s1468_s12  }
   0x3   : > { %p27_p1 = scmp.ge.s32.totalorder %s25_s15, 2  ;;  %p168_p2 = scmp.lt.s32.totalorder %s1301_s14, 3 }
   0x5   : > { %s1471_s15 = smov (%p27_p1, %s25_s15), 0  ;;  %p169_p3 = pnand %p950_p0, %p168_p2 }
   0x6   : > { %p202_p4 = scmp.lt.s32.totalorder (!%p169_p3), %s1293_s12, 1 }
   0x7   : > { %172 = sbr.rel (%p169_p3) target bundleno = 280 (0x118), region = 32 }
   0xc   : > { %v1255_v0 = vld [vmem:[%s1465_s1 + $0x38] sm:$0xff]   ;;  %v1256_v1 = vld [vmem:[%s1465_s1 + $0x30] sm:$0xff]   ;;  %s1473_s12 = smov (!%p202_p4, %s1293_s12), 1  ;;  %v1257_v2 = vld [vmem:[%s1465_s1 + $0x28] sm:$0xff]  }
   0xd   : > { %1167 = vmatprep.subr.bf16.mxu0 %v1255_v0  ;;  %1215 = vmatprep.subr.bf16.mxu1 %v1255_v0  ;;  %s1014_s22 = sshll.u32 %s1473_s12, 7  ;;  %v1258_v3 = vld [vmem:[%s1465_s1 + $0x20] sm:$0xff]   ;;  %v1259_v6 = vld [vmem:[%s1465_s1 + $0x18] sm:$0xff]   ;;  %v1260_v7 = vld [vmem:[%s1465_s1 + $0x10] sm:$0xff]  }
   0xe   : > { %1168 = vmatpush3.bf16.msra.mxu0 %v1255_v0  ;;  %1223 = vmatpush3.bf16.msra.mxu1 %v1255_v0  ;;  %s1358_s25 = scalar_lea.vmem %s1464_s0, %s1014_s22  ;;  %v1261_v8 = vld [vmem:[%s1465_s1 + $0x8] sm:$0xff]   ;;  %v1262_v9 = vld [vmem:[%s1465_s1] sm:$0xff]   ;;  %s1409_s17 = scalar_lea.vmem %s1467_s3, %s1014_s22 }
   0xf   : > { %1169 = vmatprep.subr.bf16.mxu0 %v1256_v1  ;;  %1216 = vmatprep.subr.bf16.mxu1 %v1256_v1  ;;  %v1263_v4 = vld [vmem:[%s1358_s25] sm:$0xff]   ;;  %v1265_v10 = vld [vmem:[%s1358_s25 + $0x8] sm:$0xff]   ;;  %v1267_v12 = vld [vmem:[%s1358_s25 + $0x10] sm:$0xff]  }
  0x10   : > { %v1264_v5 = vld [vmem:[%s1358_s25 + $0x40] sm:$0xff]   ;;  %1183 = vmatprep.mubr.bf16.mxu0 %v1263_v4  ;;  %v1266_v11 = vld [vmem:[%s1358_s25 + $0x48] sm:$0xff]   ;;  %v1268_v13 = vld [vmem:[%s1358_s25 + $0x50] sm:$0xff]  }
  0x11   : > { %1199 = vmatprep.mubr.bf16.mxu1 %v1264_v5  ;;  %v1269_v14 = vld [vmem:[%s1358_s25 + $0x18] sm:$0xff]   ;;  %v1271_v16 = vld [vmem:[%s1358_s25 + $0x20] sm:$0xff]   ;;  %v1273_v18 = vld [vmem:[%s1358_s25 + $0x28] sm:$0xff]  }
  0x12   : > { %1170 = vmatpush3.bf16.msra.mxu0 %v1256_v1  ;;  %1224 = vmatpush3.bf16.msra.mxu1 %v1256_v1  ;;  %v1270_v15 = vld [vmem:[%s1358_s25 + $0x58] sm:$0xff]   ;;  %v1272_v17 = vld [vmem:[%s1358_s25 + $0x60] sm:$0xff]   ;;  %v1274_v19 = vld [vmem:[%s1358_s25 + $0x68] sm:$0xff]  }
  0x13   : > { %1171 = vmatprep.subr.bf16.mxu0 %v1257_v2  ;;  %1217 = vmatprep.subr.bf16.mxu1 %v1257_v2  ;;  %v1275_v20 = vld [vmem:[%s1358_s25 + $0x30] sm:$0xff]   ;;  %v1277_v22 = vld [vmem:[%s1358_s25 + $0x38] sm:$0xff]   ;;  %v1394_v24 = vld [vmem:[%s1466_s2] ss:$0 sm:$0xff] }
  0x14   : > { %v1276_v21 = vld [vmem:[%s1358_s25 + $0x70] sm:$0xff]   ;;  %v1278_v23 = vld [vmem:[%s1358_s25 + $0x78] sm:$0xff]  }
  0x16   : > { %1172 = vmatpush3.bf16.msra.mxu0 %v1257_v2  ;;  %1225 = vmatpush3.bf16.msra.mxu1 %v1257_v2 }
  0x17   : > { %1173 = vmatprep.subr.bf16.mxu0 %v1258_v3  ;;  %1218 = vmatprep.subr.bf16.mxu1 %v1258_v3 }
  0x1a   : > { %1174 = vmatpush3.bf16.msra.mxu0 %v1258_v3  ;;  %1226 = vmatpush3.bf16.msra.mxu1 %v1258_v3 }
  0x1b   : > { %1175 = vmatprep.subr.bf16.mxu0 %v1259_v6  ;;  %1219 = vmatprep.subr.bf16.mxu1 %v1259_v6 }
  0x1e   : > { %1176 = vmatpush3.bf16.msra.mxu0 %v1259_v6  ;;  %1227 = vmatpush3.bf16.msra.mxu1 %v1259_v6 }
  0x1f   : > { %1177 = vmatprep.subr.bf16.mxu0 %v1260_v7  ;;  %1220 = vmatprep.subr.bf16.mxu1 %v1260_v7 }
  0x22   : > { %1178 = vmatpush3.bf16.msra.mxu0 %v1260_v7  ;;  %1228 = vmatpush3.bf16.msra.mxu1 %v1260_v7 }
  0x23   : > { %1179 = vmatprep.subr.bf16.mxu0 %v1261_v8  ;;  %1221 = vmatprep.subr.bf16.mxu1 %v1261_v8 }
  0x26   : > { %1180 = vmatpush3.bf16.msra.mxu0 %v1261_v8  ;;  %1229 = vmatpush3.bf16.msra.mxu1 %v1261_v8 }
  0x27   : > { %1181 = vmatprep.subr.bf16.mxu0 %v1262_v9  ;;  %1222 = vmatprep.subr.bf16.mxu1 %v1262_v9 }
  0x2a   : > { %1182 = vmatpush3.bf16.msra.mxu0 %v1262_v9  ;;  %1230 = vmatpush3.bf16.msra.mxu1 %v1262_v9 }
  0x2d   : > { %1184 = vmatmul.mubr.bf16.vlgmr.msra.gmra.mxu0 %v1265_v10  ;;  %1200 = vmatmul.mubr.bf16.vlgmr.msra.gmra.mxu1 %v1266_v11 }
  0x2e   : > { %1187 = vmatprep.mubr.bf16.mxu0 %v1267_v12  ;;  %1203 = vmatprep.mubr.bf16.mxu1 %v1268_v13 }
  0x35   : > { %1188 = vmatmul.mubr.bf16.gmra.mxu0 %v1269_v14  ;;  %1204 = vmatmul.mubr.bf16.gmra.mxu1 %v1270_v15 }
  0x36   : > { %1191 = vmatprep.mubr.bf16.mxu0 %v1271_v16  ;;  %1207 = vmatprep.mubr.bf16.mxu1 %v1272_v17 }
  0x3d   : > { %1192 = vmatmul.mubr.bf16.gmra.mxu0 %v1273_v18  ;;  %1208 = vmatmul.mubr.bf16.gmra.mxu1 %v1274_v19 }
  0x3e   : > { %1195 = vmatprep.mubr.bf16.mxu0 %v1275_v20  ;;  %1211 = vmatprep.mubr.bf16.mxu1 %v1276_v21 }
  0x45   : > { %1196 = vmatmul.mubr.bf16.gmra.mxu0 %v1277_v22  ;;  %1212 = vmatmul.mubr.bf16.gmra.mxu1 %v1278_v23 }
  0xed   : > { %v1185_v25 = vpop.f32.mrf.mxu0  ;;  %v1201_v26 = vpop.f32.mrf.mxu1 }
  0xee   : > { %v465_v27 = vadd.f32 %v1185_v25, %v1394_v24  ;;  %v529_v28 = vadd.f32 %v1201_v26, %v1394_v24 }
  0xef   : > { %v456_v29 = vpop.f32.mrf.mxu0  ;;  %v520_v30 = vpop.f32.mrf.mxu1 }
  0xf0   : > { %vm585_vm0 = vcmp.ge.f32.partialorder %v465_v27, 0.0  ;;  %v617_v31 = vmul.f32 0.2, %v465_v27  ;;  %vm601_vm1 = vcmp.ge.f32.partialorder %v529_v28, 0.0  ;;  %v633_v32 = vmul.f32 0.2, %v529_v28 }
  0xf1   : > { %v457_v33 = vadd.f32 %v1394_v24, %v456_v29  ;;  %v521_v34 = vadd.f32 %v1394_v24, %v520_v30  ;;  %v1186_v35 = vpop.f32.mrf.mxu0  ;;  %v1202_v36 = vpop.f32.mrf.mxu1 }
  0xf2   : > { %v649_v37 = vsel %vm585_vm0, %v465_v27, %v617_v31  ;;  %v468_v38 = vadd.f32 %v1186_v35, %v1394_v24  ;;  %v532_v39 = vadd.f32 %v1202_v36, %v1394_v24  ;;  %v665_v40 = vsel %vm601_vm1, %v529_v28, %v633_v32 }
  0xf3   : > { %vm583_vm2 = vcmp.ge.f32.partialorder %v457_v33, 0.0  ;;  %v615_v41 = vmul.f32 0.2, %v457_v33  ;;  %vm599_vm3 = vcmp.ge.f32.partialorder %v521_v34, 0.0  ;;  %v459_v42 = vpop.f32.mrf.mxu0  ;;  %v523_v43 = vpop.f32.mrf.mxu1  ;;  %v631_v47 = vmul.f32 0.2, %v521_v34 }
  0xf4   : > { %vm586_vm4 = vcmp.ge.f32.partialorder %v468_v38, 0.0  ;;  %v618_v44 = vmul.f32 0.2, %v468_v38  ;;  %vm602_vm5 = vcmp.ge.f32.partialorder %v532_v39, 0.0  ;;  %v634_v45 = vmul.f32 0.2, %v532_v39 }
  0xf5   : > { %v647_v46 = vsel %vm583_vm2, %v457_v33, %v615_v41  ;;  %v460_v48 = vadd.f32 %v1394_v24, %v459_v42  ;;  %v524_v49 = vadd.f32 %v1394_v24, %v523_v43  ;;  %v1189_v50 = vpop.f32.mrf.mxu0  ;;  %v1205_v51 = vpop.f32.mrf.mxu1  ;;  %v663_v63 = vsel %vm599_vm3, %v521_v34, %v631_v47 }
  0xf6   : > { %v650_v52 = vsel %vm586_vm4, %v468_v38, %v618_v44  ;;  %v666_v53 = vsel %vm602_vm5, %v532_v39, %v634_v45  ;;  %v481_v54 = vadd.f32 %v1189_v50, %v1394_v24  ;;  %v545_v55 = vadd.f32 %v1205_v51, %v1394_v24 }
  0xf7   : > { %v1056_v56 = vpack.c.bf16 %v650_v52, %v649_v37  ;;  %v1096_v57 = vpack.c.bf16 %v666_v53, %v665_v40  ;;  %vm584_vm6 = vcmp.ge.f32.partialorder %v460_v48, 0.0  ;;  %v616_v58 = vmul.f32 0.2, %v460_v48  ;;  %v472_v59 = vpop.f32.mrf.mxu0  ;;  %v536_v60 = vpop.f32.mrf.mxu1 }
  0xf8   : > { %vm600_vm7 = vcmp.ge.f32.partialorder %v524_v49, 0.0  ;;  %v632_v61 = vmul.f32 0.2, %v524_v49  ;;  %vm589_vm8 = vcmp.ge.f32.partialorder %v481_v54, 0.0  ;;  %v621_v62 = vmul.f32 0.2, %v481_v54 }
  0xf9   : > { %1128 = vst [vmem:[%s1409_s17 + $0x8] sm:$0xff] %v1056_v56   ;;  %1136 = vst [vmem:[%s1409_s17 + $0x48] sm:$0xff] %v1096_v57   ;;  %v648_v0 = vsel %vm584_vm6, %v460_v48, %v616_v58  ;;  %v637_v1 = vmul.f32 0.2, %v545_v55  ;;  %v473_v2 = vadd.f32 %v1394_v24, %v472_v59  ;;  %v1190_v3 = vpop.f32.mrf.mxu0  ;;  %v1206_v4 = vpop.f32.mrf.mxu1  ;;  %vm605_vm9 = vcmp.ge.f32.partialorder %v545_v55, 0.0 }
  0xfa   : > { %v1051_v5 = vpack.c.bf16 %v648_v0, %v647_v46  ;;  %v664_v6 = vsel %vm600_vm7, %v524_v49, %v632_v61  ;;  %v537_v7 = vadd.f32 %v1394_v24, %v536_v60  ;;  %v653_v9 = vsel %vm589_vm8, %v481_v54, %v621_v62 }
  0xfb   : > { %v1091_v8 = vpack.c.bf16 %v664_v6, %v663_v63  ;;  %vm587_vm10 = vcmp.ge.f32.partialorder %v473_v2, 0.0  ;;  %v619_v10 = vmul.f32 0.2, %v473_v2  ;;  %v475_v11 = vpop.f32.mrf.mxu0  ;;  %v539_v12 = vpop.f32.mrf.mxu1  ;;  %v484_v14 = vadd.f32 %v1190_v3, %v1394_v24 }
  0xfc   : > { %1052 = vst [vmem:[%s1409_s17] sm:$0xff] %v1051_v5   ;;  %vm603_vm11 = vcmp.ge.f32.partialorder %v537_v7, 0.0  ;;  %v635_v13 = vmul.f32 0.2, %v537_v7  ;;  %v548_v15 = vadd.f32 %v1206_v4, %v1394_v24  ;;  %v669_v16 = vsel %vm605_vm9, %v545_v55, %v637_v1 }
  0xfd   : > { %1135 = vst [vmem:[%s1409_s17 + $0x40] sm:$0xff] %v1091_v8   ;;  %v651_v17 = vsel %vm587_vm10, %v473_v2, %v619_v10  ;;  %v476_v18 = vadd.f32 %v1394_v24, %v475_v11  ;;  %v540_v19 = vadd.f32 %v1394_v24, %v539_v12  ;;  %v1193_v20 = vpop.f32.mrf.mxu0  ;;  %v1209_v21 = vpop.f32.mrf.mxu1  ;;  %vm590_vm12 = vcmp.ge.f32.partialorder %v484_v14, 0.0 }
  0xfe   : > { %v667_v22 = vsel %vm603_vm11, %v537_v7, %v635_v13  ;;  %v622_v23 = vmul.f32 0.2, %v484_v14  ;;  %vm606_vm13 = vcmp.ge.f32.partialorder %v548_v15, 0.0  ;;  %v638_v25 = vmul.f32 0.2, %v548_v15 }
  0xff   : > { %vm588_vm14 = vcmp.ge.f32.partialorder %v476_v18, 0.0  ;;  %v620_v26 = vmul.f32 0.2, %v476_v18  ;;  %vm604_vm15 = vcmp.ge.f32.partialorder %v540_v19, 0.0  ;;  %v488_v27 = vpop.f32.mrf.mxu0  ;;  %v552_v28 = vpop.f32.mrf.mxu1  ;;  %v636_v30 = vmul.f32 0.2, %v540_v19 }
 0x100   : > { %v654_v29 = vsel %vm590_vm12, %v484_v14, %v622_v23  ;;  %v497_v31 = vadd.f32 %v1193_v20, %v1394_v24  ;;  %v561_v32 = vadd.f32 %v1209_v21, %v1394_v24  ;;  %v670_v34 = vsel %vm606_vm13, %v548_v15, %v638_v25 }
 0x101   : > { %v1066_v33 = vpack.c.bf16 %v654_v29, %v653_v9  ;;  %v652_v35 = vsel %vm588_vm14, %v476_v18, %v620_v26  ;;  %v489_v36 = vadd.f32 %v1394_v24, %v488_v27  ;;  %v1194_v37 = vpop.f32.mrf.mxu0  ;;  %v1210_v38 = vpop.f32.mrf.mxu1  ;;  %v1106_v39 = vpack.c.bf16 %v670_v34, %v669_v16 }
 0x102   : > { %v1061_v40 = vpack.c.bf16 %v652_v35, %v651_v17  ;;  %v668_v41 = vsel %vm604_vm15, %v540_v19, %v636_v30  ;;  %vm593_vm0 = vcmp.ge.f32.partialorder %v497_v31, 0.0  ;;  %v625_v43 = vmul.f32 0.2, %v497_v31 }
 0x103   : > { %1130 = vst [vmem:[%s1409_s17 + $0x18] sm:$0xff] %v1066_v33   ;;  %v1101_v42 = vpack.c.bf16 %v668_v41, %v667_v22  ;;  %vm609_vm1 = vcmp.ge.f32.partialorder %v561_v32, 0.0  ;;  %v641_v44 = vmul.f32 0.2, %v561_v32  ;;  %v491_v45 = vpop.f32.mrf.mxu0  ;;  %v555_v46 = vpop.f32.mrf.mxu1  ;;  %1138 = vst [vmem:[%s1409_s17 + $0x58] sm:$0xff] %v1106_v39   ;;  %vm591_vm2 = vcmp.ge.f32.partialorder %v489_v36, 0.0 }
 0x104   : > { %1129 = vst [vmem:[%s1409_s17 + $0x10] sm:$0xff] %v1061_v40   ;;  %v623_v47 = vmul.f32 0.2, %v489_v36  ;;  %v553_v48 = vadd.f32 %v1394_v24, %v552_v28  ;;  %v500_v49 = vadd.f32 %v1194_v37, %v1394_v24  ;;  %v657_v50 = vsel %vm593_vm0, %v497_v31, %v625_v43 }
 0x105   : > { %1137 = vst [vmem:[%s1409_s17 + $0x50] sm:$0xff] %v1101_v42   ;;  %v564_v51 = vadd.f32 %v1210_v38, %v1394_v24  ;;  %v492_v52 = vadd.f32 %v1394_v24, %v491_v45  ;;  %v1197_v53 = vpop.f32.mrf.mxu0  ;;  %v1213_v54 = vpop.f32.mrf.mxu1  ;;  %v673_v55 = vsel %vm609_vm1, %v561_v32, %v641_v44  ;;  %v556_v63 = vadd.f32 %v1394_v24, %v555_v46 }
 0x106   : > { %v655_v56 = vsel %vm591_vm2, %v489_v36, %v623_v47  ;;  %vm607_vm3 = vcmp.ge.f32.partialorder %v553_v48, 0.0  ;;  %vm594_vm4 = vcmp.ge.f32.partialorder %v500_v49, 0.0  ;;  %v626_v57 = vmul.f32 0.2, %v500_v49 }
 0x107   : > { %vm610_vm5 = vcmp.ge.f32.partialorder %v564_v51, 0.0  ;;  %v642_v58 = vmul.f32 0.2, %v564_v51  ;;  %vm592_vm6 = vcmp.ge.f32.partialorder %v492_v52, 0.0  ;;  %v504_v59 = vpop.f32.mrf.mxu0  ;;  %v568_v60 = vpop.f32.mrf.mxu1  ;;  %v639_v61 = vmul.f32 0.2, %v553_v48 }
 0x108   : > { %v624_v62 = vmul.f32 0.2, %v492_v52  ;;  %v513_v0 = vadd.f32 %v1197_v53, %v1394_v24  ;;  %v658_v1 = vsel %vm594_vm4, %v500_v49, %v626_v57  ;;  %v577_v3 = vadd.f32 %v1213_v54, %v1394_v24 }
 0x109   : > { %v674_v2 = vsel %vm610_vm5, %v564_v51, %v642_v58  ;;  %v505_v4 = vadd.f32 %v1394_v24, %v504_v59  ;;  %v1198_v5 = vpop.f32.mrf.mxu0  ;;  %v1214_v6 = vpop.f32.mrf.mxu1  ;;  %v1076_v7 = vpack.c.bf16 %v658_v1, %v657_v50  ;;  %vm608_vm7 = vcmp.ge.f32.partialorder %v556_v63, 0.0 }
 0x10a   : > { %v1116_v8 = vpack.c.bf16 %v674_v2, %v673_v55  ;;  %v656_v9 = vsel %vm592_vm6, %v492_v52, %v624_v62  ;;  %v640_v11 = vmul.f32 0.2, %v556_v63  ;;  %v629_v12 = vmul.f32 0.2, %v513_v0 }
 0x10b   : > { %v1071_v10 = vpack.c.bf16 %v656_v9, %v655_v56  ;;  %v671_v13 = vsel %vm607_vm3, %v553_v48, %v639_v61  ;;  %1132 = vst [vmem:[%s1409_s17 + $0x28] sm:$0xff] %v1076_v7   ;;  %vm597_vm8 = vcmp.ge.f32.partialorder %v513_v0, 0.0  ;;  %v645_v15 = vmul.f32 0.2, %v577_v3  ;;  %v507_v18 = vpop.f32.mrf.mxu0  ;;  %v571_v19 = vpop.f32.mrf.mxu1 }
 0x10c   : > { %1140 = vst [vmem:[%s1409_s17 + $0x68] sm:$0xff] %v1116_v8   ;;  %v672_v14 = vsel %vm608_vm7, %v556_v63, %v640_v11  ;;  %v569_v16 = vadd.f32 %v1394_v24, %v568_v60  ;;  %v516_v17 = vadd.f32 %v1198_v5, %v1394_v24  ;;  %vm613_vm9 = vcmp.ge.f32.partialorder %v577_v3, 0.0 }
 0x10d   : > { %1131 = vst [vmem:[%s1409_s17 + $0x20] sm:$0xff] %v1071_v10   ;;  %v1111_v20 = vpack.c.bf16 %v672_v14, %v671_v13  ;;  %vm595_vm10 = vcmp.ge.f32.partialorder %v505_v4, 0.0  ;;  %v580_v21 = vadd.f32 %v1214_v6, %v1394_v24  ;;  %v661_v22 = vsel %vm597_vm8, %v513_v0, %v629_v12 }
 0x10e   : > { %v627_v23 = vmul.f32 0.2, %v505_v4  ;;  %vm598_vm11 = vcmp.ge.f32.partialorder %v516_v17, 0.0  ;;  %v630_v25 = vmul.f32 0.2, %v516_v17  ;;  %v508_v27 = vadd.f32 %v1394_v24, %v507_v18 }
 0x10f   : > { %1139 = vst [vmem:[%s1409_s17 + $0x60] sm:$0xff] %v1111_v20   ;;  %vm614_vm12 = vcmp.ge.f32.partialorder %v580_v21, 0.0  ;;  %v646_v26 = vmul.f32 0.2, %v580_v21  ;;  %v572_v28 = vadd.f32 %v1394_v24, %v571_v19  ;;  %v677_v29 = vsel %vm613_vm9, %v577_v3, %v645_v15 }
 0x110   : > { %vm611_vm13 = vcmp.ge.f32.partialorder %v569_v16, 0.0  ;;  %v643_v30 = vmul.f32 0.2, %v569_v16  ;;  %v662_v31 = vsel %vm598_vm11, %v516_v17, %v630_v25  ;;  %vm596_vm14 = vcmp.ge.f32.partialorder %v508_v27, 0.0 }
 0x111   : > { %v1086_v32 = vpack.c.bf16 %v662_v31, %v661_v22  ;;  %v678_v33 = vsel %vm614_vm12, %v580_v21, %v646_v26  ;;  %v628_v34 = vmul.f32 0.2, %v508_v27  ;;  %vm612_vm15 = vcmp.ge.f32.partialorder %v572_v28, 0.0 }
 0x112   : > { %v1126_v35 = vpack.c.bf16 %v678_v33, %v677_v29  ;;  %v644_v36 = vmul.f32 0.2, %v572_v28  ;;  %v659_v37 = vsel %vm595_vm10, %v505_v4, %v627_v23  ;;  %v675_v39 = vsel %vm611_vm13, %v569_v16, %v643_v30 }
 0x113   : > { %1134 = vst [vmem:[%s1409_s17 + $0x38] sm:$0xff] %v1086_v32   ;;  %v660_v38 = vsel %vm596_vm14, %v508_v27, %v628_v34 }
 0x114   : > { %1142 = vst [vmem:[%s1409_s17 + $0x78] sm:$0xff] %v1126_v35   ;;  %v1081_v24 = vpack.c.bf16 %v660_v38, %v659_v37  ;;  %v676_v40 = vsel %vm612_vm15, %v572_v28, %v644_v36 }
 0x115   : > { %v1121_v41 = vpack.c.bf16 %v676_v40, %v675_v39 }
 0x116   : > { %1133 = vst [vmem:[%s1409_s17 + $0x30] sm:$0xff] %v1081_v24  }
 0x117   : > { %1141 = vst [vmem:[%s1409_s17 + $0x70] sm:$0xff] %v1121_v41  }
 0x118 PF: > { %s13_s14 = sadd.s32 1, %s1301_s14   ;;  %s1468_s12 = smov %s1297_s13 }
 0x119   : > { %p10_p5 = scmp.ge.s32.totalorder %s13_s14, 4   ;;  %s1469_s13 = smov %s1471_s15 }
 0x11b   :  { %12 = sbr.rel (!%p10_p5) target bundleno = 2 (0x2), region = 68 }

// kernel: _lambda_.6
= control target key start
LH: loop header
LB: loop body
LE: loop exit
PB: predicated region body
PF: predicated region fallthrough
CT: control target
= control target key end

     0   :  { %s1862_s12 = smov 0   ;;  %s1864_s13 = smov 0   ;;  %s2171_s0 = inlined_call_operand.vmem [shape: bf16[2,64,1024], index: 0, kind: input, shape index: {}]   ;;  %s2172_s1 = inlined_call_operand.vmem [shape: bf16[1024,128], index: 1, kind: input, shape index: {}]   ;;  %s2173_s2 = inlined_call_operand.vmem [shape: f32[1,128], index: 2, kind: input, shape index: {}]   ;;  %s2174_s3 = inlined_call_operand.vmem [shape: bf16[2,64,128], index: 3, kind: output, shape index: {}]  }
   0x1   :  { %s1866_s14 = smov 0  }
   0x2 LB: > { %s25_s15 = sadd.s32 1, %s1836_s13  ;;  %p1423_p0 = scmp.ge.s32.totalorder %s1840_s14, 1  ;;  %s1840_s14 = sphi %s1866_s14, %s13_s14   ;;  %s1836_s13 = sphi %s1864_s13, %s2176_s13   ;;  %s1832_s12 = sphi %s1862_s12, %s2175_s12  }
   0x3   : > { %p27_p1 = scmp.ge.s32.totalorder %s25_s15, 2  ;;  %p168_p2 = scmp.lt.s32.totalorder %s1840_s14, 3 }
   0x5   : > { %s2178_s15 = smov (%p27_p1, %s25_s15), 0  ;;  %p169_p3 = pnand %p1423_p0, %p168_p2 }
   0x6   : > { %p202_p4 = scmp.lt.s32.totalorder (!%p169_p3), %s1832_s12, 1 }
   0x7   : > { %172 = sbr.rel (%p169_p3) target bundleno = 383 (0x17f), region = 32 }
   0xc   : > { %v1752_v0 = vld [vmem:[%s2172_s1 + $0x78] sm:$0xff]   ;;  %v1756_v4 = vld [vmem:[%s2172_s1 + $0x70] sm:$0xff]   ;;  %v1760_v8 = vld [vmem:[%s2172_s1 + $0x68] sm:$0xff]   ;;  %s2180_s12 = smov (!%p202_p4, %s1832_s12), 1 }
   0xd   : > { %v1753_v1 = vld [vmem:[%s2172_s1 + $0xf8] sm:$0xff]   ;;  %1568 = vmatprep.subr.bf16.mxu0 %v1752_v0  ;;  %v1757_v5 = vld [vmem:[%s2172_s1 + $0xf0] sm:$0xff]   ;;  %v1761_v9 = vld [vmem:[%s2172_s1 + $0xe8] sm:$0xff]   ;;  %s1535_s24 = sshll.u32 %s2180_s12, 8  ;;  %s1536_s10 = sshll.u32 %s2180_s12, 5 }
   0xe   : > { %v1754_v2 = vld [vmem:[%s2172_s1 + $0x38] sm:$0xff]   ;;  %1608 = vmatprep.subr.bf16.mxu1 %v1753_v1  ;;  %v1758_v6 = vld [vmem:[%s2172_s1 + $0x30] sm:$0xff]   ;;  %v1762_v10 = vld [vmem:[%s2172_s1 + $0x28] sm:$0xff]   ;;  %s1980_s6 = scalar_lea.vmem %s2171_s0, %s1535_s24  ;;  %s221_s12 = scalar_lea.vmem %s2174_s3, %s1536_s10 }
   0xf   : > { %v1755_v3 = vld [vmem:[%s2172_s1 + $0xb8] sm:$0xff]   ;;  %1569 = vmatpush3.bf16.msra.mxu0 %v1754_v2  ;;  %v1759_v7 = vld [vmem:[%s2172_s1 + $0xb0] sm:$0xff]   ;;  %v1763_v11 = vld [vmem:[%s2172_s1 + $0xa8] sm:$0xff]  }
  0x10   : > { %1609 = vmatpush3.bf16.msra.mxu1 %v1755_v3  ;;  %1570 = vmatprep.subr.bf16.mxu0 %v1756_v4  ;;  %v1764_v12 = vld [vmem:[%s2172_s1 + $0x60] sm:$0xff]   ;;  %v1768_v16 = vld [vmem:[%s2172_s1 + $0x58] sm:$0xff]   ;;  %v1772_v20 = vld [vmem:[%s2172_s1 + $0x50] sm:$0xff]  }
  0x11   : > { %1610 = vmatprep.subr.bf16.mxu1 %v1757_v5  ;;  %v1765_v13 = vld [vmem:[%s2172_s1 + $0xe0] sm:$0xff]   ;;  %v1769_v17 = vld [vmem:[%s2172_s1 + $0xd8] sm:$0xff]   ;;  %v1773_v21 = vld [vmem:[%s2172_s1 + $0xd0] sm:$0xff]  }
  0x12   : > { %v1766_v14 = vld [vmem:[%s2172_s1 + $0x20] sm:$0xff]   ;;  %v1770_v18 = vld [vmem:[%s2172_s1 + $0x18] sm:$0xff]   ;;  %v1774_v22 = vld [vmem:[%s2172_s1 + $0x10] sm:$0xff]  }
  0x13   : > { %1571 = vmatpush3.bf16.msra.mxu0 %v1758_v6  ;;  %v1767_v15 = vld [vmem:[%s2172_s1 + $0xa0] sm:$0xff]   ;;  %v1771_v19 = vld [vmem:[%s2172_s1 + $0x98] sm:$0xff]   ;;  %v1775_v23 = vld [vmem:[%s2172_s1 + $0x90] sm:$0xff]  }
  0x14   : > { %1611 = vmatpush3.bf16.msra.mxu1 %v1759_v7  ;;  %1572 = vmatprep.subr.bf16.mxu0 %v1760_v8  ;;  %v1776_v24 = vld [vmem:[%s2172_s1 + $0x48] sm:$0xff]   ;;  %v1780_v28 = vld [vmem:[%s2172_s1 + $0x40] sm:$0xff]   ;;  %v1784_v40 = vld [vmem:[%s2172_s1 + $0x178] sm:$0xff]  }
  0x15   : > { %1612 = vmatprep.subr.bf16.mxu1 %v1761_v9  ;;  %v1777_v25 = vld [vmem:[%s2172_s1 + $0xc8] sm:$0xff]   ;;  %v1781_v29 = vld [vmem:[%s2172_s1 + $0xc0] sm:$0xff]   ;;  %v1785_v41 = vld [vmem:[%s2172_s1 + $0x1f8] sm:$0xff]  }
  0x16   : > { %v1778_v26 = vld [vmem:[%s2172_s1 + $0x8] sm:$0xff]   ;;  %v1782_v30 = vld [vmem:[%s2172_s1] sm:$0xff]   ;;  %v1786_v42 = vld [vmem:[%s2172_s1 + $0x138] sm:$0xff]  }
  0x17   : > { %1573 = vmatpush3.bf16.msra.mxu0 %v1762_v10  ;;  %v1779_v27 = vld [vmem:[%s2172_s1 + $0x88] sm:$0xff]   ;;  %v1783_v31 = vld [vmem:[%s2172_s1 + $0x80] sm:$0xff]   ;;  %v1787_v43 = vld [vmem:[%s2172_s1 + $0x1b8] sm:$0xff]  }
  0x18   : > { %1613 = vmatpush3.bf16.msra.mxu1 %v1763_v11  ;;  %1574 = vmatprep.subr.bf16.mxu0 %v1764_v12  ;;  %v223_v32 = vld [vmem:[%s1980_s6] sm:$0xff]  ;;  %v224_v34 = vld [vmem:[%s1980_s6 + $0x8] sm:$0xff]  ;;  %v1788_v44 = vld [vmem:[%s2172_s1 + $0x170] sm:$0xff]  }
  0x19   : > { %1614 = vmatprep.subr.bf16.mxu1 %v1765_v13  ;;  %v227_v33 = vld [vmem:[%s1980_s6 + $0x20] sm:$0xff]  ;;  %v228_v37 = vld [vmem:[%s1980_s6 + $0x28] sm:$0xff]  ;;  %v1789_v45 = vld [vmem:[%s2172_s1 + $0x1f0] sm:$0xff]  }
  0x1a   : > { %v1429_v35 = vcombine.low %v223_v32, %v227_v33  ;;  %v1430_v36 = vcombine.high %v223_v32, %v227_v33  ;;  %v1431_v38 = vcombine.low %v224_v34, %v228_v37  ;;  %v1432_v39 = vcombine.high %v224_v34, %v228_v37  ;;  %v1790_v46 = vld [vmem:[%s2172_s1 + $0x130] sm:$0xff]   ;;  %v231_v48 = vld [vmem:[%s1980_s6 + $0x40] sm:$0xff]  ;;  %v232_v51 = vld [vmem:[%s1980_s6 + $0x48] sm:$0xff] }
  0x1b   : > { %1575 = vmatpush3.bf16.msra.mxu0 %v1766_v14  ;;  %v1791_v47 = vld [vmem:[%s2172_s1 + $0x1b0] sm:$0xff]   ;;  %v235_v49 = vld [vmem:[%s1980_s6 + $0x60] sm:$0xff]  ;;  %v236_v52 = vld [vmem:[%s1980_s6 + $0x68] sm:$0xff] }
  0x1c   : > { %1615 = vmatpush3.bf16.msra.mxu1 %v1767_v15  ;;  %1576 = vmatprep.subr.bf16.mxu0 %v1768_v16  ;;  %v1438_v50 = vcombine.high %v231_v48, %v235_v49  ;;  %v1437_v53 = vcombine.low %v231_v48, %v235_v49  ;;  %v1440_v54 = vcombine.high %v232_v51, %v236_v52  ;;  %v1792_v56 = vld [vmem:[%s2172_s1 + $0x168] sm:$0xff]   ;;  %v1796_v60 = vld [vmem:[%s2172_s1 + $0x160] sm:$0xff]   ;;  %v1800_v8 = vld [vmem:[%s2172_s1 + $0x158] sm:$0xff]  }
  0x1d   : > { %1616 = vmatprep.subr.bf16.mxu1 %v1769_v17  ;;  %966 = vmatprep.mubr.bf16.mxu0 %v1430_v36  ;;  %v1439_v55 = vcombine.low %v232_v51, %v236_v52  ;;  %v1793_v57 = vld [vmem:[%s2172_s1 + $0x1e8] sm:$0xff]   ;;  %v1797_v61 = vld [vmem:[%s2172_s1 + $0x1e0] sm:$0xff]   ;;  %v1801_v9 = vld [vmem:[%s2172_s1 + $0x1d8] sm:$0xff]  }
  0x1e   : > { %1031 = vmatprep.mubr.bf16.mxu1 %v1432_v39  ;;  %v1794_v58 = vld [vmem:[%s2172_s1 + $0x128] sm:$0xff]   ;;  %v1798_v62 = vld [vmem:[%s2172_s1 + $0x120] sm:$0xff]   ;;  %v1802_v10 = vld [vmem:[%s2172_s1 + $0x118] sm:$0xff]  }
  0x1f   : > { %1577 = vmatpush3.bf16.msra.mxu0 %v1770_v18  ;;  %v1795_v59 = vld [vmem:[%s2172_s1 + $0x1a8] sm:$0xff]   ;;  %v1799_v63 = vld [vmem:[%s2172_s1 + $0x1a0] sm:$0xff]   ;;  %v1803_v11 = vld [vmem:[%s2172_s1 + $0x198] sm:$0xff]  }
  0x20   : > { %1617 = vmatpush3.bf16.msra.mxu1 %v1771_v19  ;;  %1578 = vmatprep.subr.bf16.mxu0 %v1772_v20  ;;  %v239_v0 = vld [vmem:[%s1980_s6 + $0x80] sm:$0xff]  ;;  %v240_v2 = vld [vmem:[%s1980_s6 + $0x88] sm:$0xff]  ;;  %v1804_v12 = vld [vmem:[%s2172_s1 + $0x150] sm:$0xff]  }
  0x21   : > { %1618 = vmatprep.subr.bf16.mxu1 %v1773_v21  ;;  %v243_v1 = vld [vmem:[%s1980_s6 + $0xa0] sm:$0xff]  ;;  %v244_v3 = vld [vmem:[%s1980_s6 + $0xa8] sm:$0xff]  ;;  %v1805_v13 = vld [vmem:[%s2172_s1 + $0x1d0] sm:$0xff]  }
  0x22   : > { %v1446_v4 = vcombine.high %v239_v0, %v243_v1  ;;  %v1448_v5 = vcombine.high %v240_v2, %v244_v3  ;;  %v1445_v6 = vcombine.low %v239_v0, %v243_v1  ;;  %v1447_v7 = vcombine.low %v240_v2, %v244_v3  ;;  %v1806_v14 = vld [vmem:[%s2172_s1 + $0x110] sm:$0xff]   ;;  %v247_v16 = vld [vmem:[%s1980_s6 + $0xc0] sm:$0xff]  ;;  %v248_v18 = vld [vmem:[%s1980_s6 + $0xc8] sm:$0xff] }
  0x23   : > { %1579 = vmatpush3.bf16.msra.mxu0 %v1774_v22  ;;  %v1807_v15 = vld [vmem:[%s2172_s1 + $0x190] sm:$0xff]   ;;  %v251_v17 = vld [vmem:[%s1980_s6 + $0xe0] sm:$0xff]  ;;  %v252_v20 = vld [vmem:[%s1980_s6 + $0xe8] sm:$0xff] }
  0x24   : > { %1619 = vmatpush3.bf16.msra.mxu1 %v1775_v23  ;;  %1580 = vmatprep.subr.bf16.mxu0 %v1776_v24  ;;  %v1454_v19 = vcombine.high %v247_v16, %v251_v17  ;;  %v1453_v21 = vcombine.low %v247_v16, %v251_v17  ;;  %v1456_v22 = vcombine.high %v248_v18, %v252_v20  ;;  %v1808_v24 = vld [vmem:[%s2172_s1 + $0x148] sm:$0xff]   ;;  %v225_v32 = vld [vmem:[%s1980_s6 + $0x10] sm:$0xff]  ;;  %v226_v36 = vld [vmem:[%s1980_s6 + $0x18] sm:$0xff] }
  0x25   : > { %1620 = vmatprep.subr.bf16.mxu1 %v1777_v25  ;;  %v1455_v23 = vcombine.low %v248_v18, %v252_v20  ;;  %v1809_v25 = vld [vmem:[%s2172_s1 + $0x1c8] sm:$0xff]   ;;  %v229_v33 = vld [vmem:[%s1980_s6 + $0x30] sm:$0xff]  ;;  %v230_v37 = vld [vmem:[%s1980_s6 + $0x38] sm:$0xff] }
  0x26   : > { %v1433_v34 = vcombine.low %v225_v32, %v229_v33  ;;  %v1435_v39 = vcombine.low %v226_v36, %v230_v37  ;;  %v242_v48 = vld [vmem:[%s1980_s6 + $0x98] sm:$0xff] }
  0x27   : > { %1581 = vmatpush3.bf16.msra.mxu0 %v1778_v26  ;;  %v1810_v26 = vld [vmem:[%s2172_s1 + $0x108] sm:$0xff]   ;;  %v246_v49 = vld [vmem:[%s1980_s6 + $0xb8] sm:$0xff] }
  0x28   : > { %1621 = vmatpush3.bf16.msra.mxu1 %v1779_v27  ;;  %1582 = vmatprep.subr.bf16.mxu0 %v1780_v28  ;;  %v1811_v27 = vld [vmem:[%s2172_s1 + $0x188] sm:$0xff]   ;;  %v1812_v28 = vld [vmem:[%s2172_s1 + $0x140] sm:$0xff]  }
  0x29   : > { %1622 = vmatprep.subr.bf16.mxu1 %v1781_v29  ;;  %v1813_v29 = vld [vmem:[%s2172_s1 + $0x1c0] sm:$0xff]  }
  0x2b   : > { %1583 = vmatpush3.bf16.msra.mxu0 %v1782_v30  ;;  %v1814_v30 = vld [vmem:[%s2172_s1 + $0x100] sm:$0xff]  }
  0x2c   : > { %1623 = vmatpush3.bf16.msra.mxu1 %v1783_v31  ;;  %1648 = vmatprep.subr.bf16.mxu0 %v1784_v40  ;;  %v1815_v31 = vld [vmem:[%s2172_s1 + $0x180] sm:$0xff]   ;;  %v1436_v40 = vcombine.high %v226_v36, %v230_v37 }
  0x2d   : > { %1688 = vmatprep.subr.bf16.mxu1 %v1785_v41  ;;  %v237_v41 = vld [vmem:[%s1980_s6 + $0x70] sm:$0xff] }
  0x2e   : > { %967 = vmatmul.mubr.bf16.vlgmr.msra.gmra.mxu0 %v1429_v35  ;;  %v1434_v35 = vcombine.high %v225_v32, %v229_v33 }
  0x2f   : > { %1032 = vmatmul.mubr.bf16.vlgmr.msra.gmra.mxu1 %v1431_v38  ;;  %1649 = vmatpush3.bf16.msra.mxu0 %v1786_v42  ;;  %v233_v38 = vld [vmem:[%s1980_s6 + $0x50] sm:$0xff]  ;;  %v234_v42 = vld [vmem:[%s1980_s6 + $0x58] sm:$0xff] }
  0x30   : > { %1689 = vmatpush3.bf16.msra.mxu1 %v1787_v43  ;;  %1650 = vmatprep.subr.bf16.mxu0 %v1788_v44  ;;  %v238_v43 = vld [vmem:[%s1980_s6 + $0x78] sm:$0xff]  ;;  %v1442_v44 = vcombine.high %v233_v38, %v237_v41 }
  0x31   : > { %1690 = vmatprep.subr.bf16.mxu1 %v1789_v45  ;;  %974 = vmatprep.mubr.bf16.mxu0 %v1438_v50  ;;  %v1444_v45 = vcombine.high %v234_v42, %v238_v43  ;;  %v1441_v50 = vcombine.low %v233_v38, %v237_v41  ;;  %v1443_v51 = vcombine.low %v234_v42, %v238_v43  ;;  %v2133_v43 = vld [vmem:[%s2173_s2] ss:$0 sm:$0xff] }
  0x32   : > { %1039 = vmatprep.mubr.bf16.mxu1 %v1440_v54  ;;  %v249_v54 = vld [vmem:[%s1980_s6 + $0xd0] sm:$0xff] }
  0x33   : > { %1651 = vmatpush3.bf16.msra.mxu0 %v1790_v46  ;;  %v241_v46 = vld [vmem:[%s1980_s6 + $0x90] sm:$0xff] }
  0x34   : > { %1691 = vmatpush3.bf16.msra.mxu1 %v1791_v47  ;;  %1652 = vmatprep.subr.bf16.mxu0 %v1792_v56  ;;  %v245_v47 = vld [vmem:[%s1980_s6 + $0xb0] sm:$0xff]  ;;  %v250_v56 = vld [vmem:[%s1980_s6 + $0xd8] sm:$0xff] }
  0x35   : > { %1692 = vmatprep.subr.bf16.mxu1 %v1793_v57  ;;  %v1450_v52 = vcombine.high %v241_v46, %v245_v47  ;;  %v254_v57 = vld [vmem:[%s1980_s6 + $0xf8] sm:$0xff] }
  0x36   : > { %975 = vmatmul.mubr.bf16.gmra.mxu0 %v1437_v53  ;;  %v1452_v53 = vcombine.high %v242_v48, %v246_v49 }
  0x37   : > { %1040 = vmatmul.mubr.bf16.gmra.mxu1 %v1439_v55  ;;  %1653 = vmatpush3.bf16.msra.mxu0 %v1794_v58  ;;  %v253_v55 = vld [vmem:[%s1980_s6 + $0xf0] sm:$0xff]  ;;  %v1449_v58 = vcombine.low %v241_v46, %v245_v47 }
  0x38   : > { %1693 = vmatpush3.bf16.msra.mxu1 %v1795_v59  ;;  %1654 = vmatprep.subr.bf16.mxu0 %v1796_v60  ;;  %v1451_v59 = vcombine.low %v242_v48, %v246_v49  ;;  %v1458_v60 = vcombine.high %v249_v54, %v253_v55 }
  0x39   : > { %1694 = vmatprep.subr.bf16.mxu1 %v1797_v61  ;;  %982 = vmatprep.mubr.bf16.mxu0 %v1446_v4  ;;  %v1460_v61 = vcombine.high %v250_v56, %v254_v57 }
  0x3a   : > { %1047 = vmatprep.mubr.bf16.mxu1 %v1448_v5 }
  0x3b   : > { %1655 = vmatpush3.bf16.msra.mxu0 %v1798_v62  ;;  %v1457_v62 = vcombine.low %v249_v54, %v253_v55 }
  0x3c   : > { %1695 = vmatpush3.bf16.msra.mxu1 %v1799_v63  ;;  %1656 = vmatprep.subr.bf16.mxu0 %v1800_v8  ;;  %v1459_v63 = vcombine.low %v250_v56, %v254_v57 }
  0x3d   : > { %1696 = vmatprep.subr.bf16.mxu1 %v1801_v9 }
  0x3e   : > { %983 = vmatmul.mubr.bf16.gmra.mxu0 %v1445_v6 }
  0x3f   : > { %1048 = vmatmul.mubr.bf16.gmra.mxu1 %v1447_v7  ;;  %1657 = vmatpush3.bf16.msra.mxu0 %v1802_v10 }
  0x40   : > { %1697 = vmatpush3.bf16.msra.mxu1 %v1803_v11  ;;  %1658 = vmatprep.subr.bf16.mxu0 %v1804_v12 }
  0x41   : > { %1698 = vmatprep.subr.bf16.mxu1 %v1805_v13  ;;  %990 = vmatprep.mubr.bf16.mxu0 %v1454_v19 }
  0x42   : > { %1055 = vmatprep.mubr.bf16.mxu1 %v1456_v22 }
  0x43   : > { %1659 = vmatpush3.bf16.msra.mxu0 %v1806_v14 }
  0x44   : > { %1699 = vmatpush3.bf16.msra.mxu1 %v1807_v15  ;;  %1660 = vmatprep.subr.bf16.mxu0 %v1808_v24 }
  0x45   : > { %1700 = vmatprep.subr.bf16.mxu1 %v1809_v25 }
  0x46   : > { %991 = vmatmul.mubr.bf16.gmra.mxu0 %v1453_v21 }
  0x47   : > { %1056 = vmatmul.mubr.bf16.gmra.mxu1 %v1455_v23  ;;  %1661 = vmatpush3.bf16.msra.mxu0 %v1810_v26 }
  0x48   : > { %1701 = vmatpush3.bf16.msra.mxu1 %v1811_v27  ;;  %1662 = vmatprep.subr.bf16.mxu0 %v1812_v28 }
  0x49   : > { %1702 = vmatprep.subr.bf16.mxu1 %v1813_v29  ;;  %1096 = vmatprep.mubr.bf16.mxu0 %v1434_v35 }
  0x4a   : > { %1161 = vmatprep.mubr.bf16.mxu1 %v1436_v40 }
  0x4b   : > { %1663 = vmatpush3.bf16.msra.mxu0 %v1814_v30 }
  0x4c   : > { %1703 = vmatpush3.bf16.msra.mxu1 %v1815_v31 }
  0x4e   : > { %1097 = vmatmul.mubr.bf16.vlgmr.msra.gmra.mxu0 %v1433_v34 }
  0x4f   : > { %1162 = vmatmul.mubr.bf16.vlgmr.msra.gmra.mxu1 %v1435_v39  ;;  %1104 = vmatprep.mubr.bf16.mxu0 %v1442_v44 }
  0x50   : > { %1169 = vmatprep.mubr.bf16.mxu1 %v1444_v45 }
  0x56   : > { %1105 = vmatmul.mubr.bf16.gmra.mxu0 %v1441_v50 }
  0x57   : > { %1170 = vmatmul.mubr.bf16.gmra.mxu1 %v1443_v51  ;;  %1112 = vmatprep.mubr.bf16.mxu0 %v1450_v52 }
  0x58   : > { %1177 = vmatprep.mubr.bf16.mxu1 %v1452_v53 }
  0x5e   : > { %1113 = vmatmul.mubr.bf16.gmra.mxu0 %v1449_v58 }
  0x5f   : > { %1178 = vmatmul.mubr.bf16.gmra.mxu1 %v1451_v59  ;;  %1120 = vmatprep.mubr.bf16.mxu0 %v1458_v60 }
  0x60   : > { %1185 = vmatprep.mubr.bf16.mxu1 %v1460_v61 }
  0x66   : > { %1121 = vmatmul.mubr.bf16.gmra.mxu0 %v1457_v62 }
  0x67   : > { %1186 = vmatmul.mubr.bf16.gmra.mxu1 %v1459_v63 }
  0xee   : > { %v1584_v0 = vpop.f32.mrf.mxu0 }
  0xef   : > { %v1624_v1 = vpop.f32.mrf.mxu1 }
  0xf0   : > { %v1585_v2 = vpop.f32.mrf.mxu0 }
  0xf1   : > { %v1625_v3 = vpop.f32.mrf.mxu1  ;;  %v1586_v41 = vadd.f32 %v1585_v2, %v1584_v0 }
  0xf2   : > { %v1587_v4 = vpop.f32.mrf.mxu0  ;;  %v1626_v57 = vadd.f32 %v1625_v3, %v1624_v1 }
  0xf3   : > { %v1627_v5 = vpop.f32.mrf.mxu1  ;;  %v969_v50 = vadd.f32 %v1586_v41, %v2133_v43 }
  0xf4   : > { %v1588_v6 = vpop.f32.mrf.mxu0 }
  0xf5   : > { %v1628_v7 = vpop.f32.mrf.mxu1  ;;  %v1589_v39 = vadd.f32 %v1588_v6, %v1587_v4  ;;  %v1034_v4 = vadd.f32 %v1626_v57, %v969_v50 }
  0xf6   : > { %v1590_v8 = vpop.f32.mrf.mxu0  ;;  %v1629_v52 = vadd.f32 %v1628_v7, %v1627_v5 }
  0xf7   : > { %v1630_v9 = vpop.f32.mrf.mxu1  ;;  %v972_v48 = vadd.f32 %v1589_v39, %v2133_v43 }
  0xf8   : > { %v1591_v10 = vpop.f32.mrf.mxu0 }
  0xf9   : > { %v1631_v11 = vpop.f32.mrf.mxu1  ;;  %v1592_v44 = vadd.f32 %v1591_v10, %v1590_v8  ;;  %v1037_v62 = vadd.f32 %v1629_v52, %v972_v48 }
  0xfa   : > { %v1593_v12 = vpop.f32.mrf.mxu0  ;;  %v1632_v63 = vadd.f32 %v1631_v11, %v1630_v9 }
  0xfb   : > { %v1633_v13 = vpop.f32.mrf.mxu1  ;;  %v977_v53 = vadd.f32 %v1592_v44, %v2133_v43 }
  0xfc   : > { %v1594_v14 = vpop.f32.mrf.mxu0 }
  0xfd   : > { %v1634_v15 = vpop.f32.mrf.mxu1  ;;  %v1595_v46 = vadd.f32 %v1594_v14, %v1593_v12  ;;  %v1042_v10 = vadd.f32 %v1632_v63, %v977_v53 }
  0xfe   : > { %v1596_v16 = vpop.f32.mrf.mxu0  ;;  %v1635_v6 = vadd.f32 %v1634_v15, %v1633_v13 }
  0xff   : > { %v1636_v17 = vpop.f32.mrf.mxu1  ;;  %v980_v58 = vadd.f32 %v1595_v46, %v2133_v43 }
 0x100   : > { %v1597_v18 = vpop.f32.mrf.mxu0 }
 0x101   : > { %v1637_v19 = vpop.f32.mrf.mxu1  ;;  %v1598_v54 = vadd.f32 %v1597_v18, %v1596_v16  ;;  %v1045_v16 = vadd.f32 %v1635_v6, %v980_v58 }
 0x102   : > { %v1599_v20 = vpop.f32.mrf.mxu0 }
 0x103   : > { %v2116_v21 = vpop.f32.mrf.mxu1  ;;  %v985_v5 = vadd.f32 %v1598_v54, %v2133_v43 }
 0x104   : > { %v1600_v22 = vpop.f32.mrf.mxu0 }
 0x105   : > { %v1640_v23 = vpop.f32.mrf.mxu1  ;;  %v1601_v59 = vadd.f32 %v1600_v22, %v1599_v20  ;;  %v1638_v22 = vadd.f32 %v1637_v19, %v1636_v17 }
 0x106   : > { %v1602_v24 = vpop.f32.mrf.mxu0  ;;  %v1641_v13 = vadd.f32 %v1640_v23, %v2116_v21 }
 0x107   : > { %v2118_v25 = vpop.f32.mrf.mxu1  ;;  %v988_v1 = vadd.f32 %v1601_v59, %v2133_v43 }
 0x108   : > { %v1603_v26 = vpop.f32.mrf.mxu0 }
 0x109   : > { %v2120_v27 = vpop.f32.mrf.mxu1  ;;  %v1604_v3 = vadd.f32 %v1603_v26, %v1602_v24  ;;  %v1053_v46 = vadd.f32 %v1641_v13, %v988_v1 }
 0x10a   : > { %v2122_v28 = vpop.f32.mrf.mxu0  ;;  %v1644_v23 = vadd.f32 %v2120_v27, %v2118_v25 }
 0x10b   : > { %v2124_v29 = vpop.f32.mrf.mxu1 }
 0x10c   : > { %v2126_v30 = vpop.f32.mrf.mxu0 }
 0x10d   : > { %v2128_v31 = vpop.f32.mrf.mxu1  ;;  %v1607_v24 = vadd.f32 %v2126_v30, %v2122_v28 }
 0x10e   : > { %v1664_v32 = vpop.f32.mrf.mxu0  ;;  %v1647_v58 = vadd.f32 %v2128_v31, %v2124_v29 }
 0x10f   : > { %v1704_v33 = vpop.f32.mrf.mxu1  ;;  %v996_v53 = vadd.f32 %v1607_v24, %v2133_v43 }
 0x110   : > { %v1665_v34 = vpop.f32.mrf.mxu0 }
 0x111   : > { %v1705_v35 = vpop.f32.mrf.mxu1  ;;  %v1666_v60 = vadd.f32 %v1665_v34, %v1664_v32 }
 0x112   : > { %v1667_v36 = vpop.f32.mrf.mxu0  ;;  %v1706_v15 = vadd.f32 %v1705_v35, %v1704_v33 }
 0x113   : > { %v1707_v37 = vpop.f32.mrf.mxu1  ;;  %v1099_v18 = vadd.f32 %v1666_v60, %v1034_v4 }
 0x114   : > { %v1668_v38 = vpop.f32.mrf.mxu0 }
 0x115   : > { %v1708_v40 = vpop.f32.mrf.mxu1  ;;  %v1669_v55 = vadd.f32 %v1668_v38, %v1667_v36  ;;  %v1050_v38 = vadd.f32 %v1638_v22, %v985_v5  ;;  %v1164_v17 = vadd.f32 %v1706_v15, %v1099_v18 }
 0x116   : > { %v1670_v42 = vpop.f32.mrf.mxu0  ;;  %v1709_v32 = vadd.f32 %v1708_v40, %v1707_v37 }
 0x117   : > { %v1710_v45 = vpop.f32.mrf.mxu1  ;;  %v1102_v7 = vadd.f32 %v1669_v55, %v1037_v62 }
 0x118   : > { %v1671_v47 = vpop.f32.mrf.mxu0 }
 0x119   : > { %v1711_v49 = vpop.f32.mrf.mxu1  ;;  %v1672_v0 = vadd.f32 %v1671_v47, %v1670_v42  ;;  %v1167_v39 = vadd.f32 %v1709_v32, %v1102_v7  ;;  %v993_v47 = vadd.f32 %v1604_v3, %v2133_v43 }
 0x11a   : > { %v1673_v51 = vpop.f32.mrf.mxu0  ;;  %v1712_v41 = vadd.f32 %v1711_v49, %v1710_v45 }
 0x11b   : > { %v1713_v56 = vpop.f32.mrf.mxu1  ;;  %v1107_v9 = vadd.f32 %v1672_v0, %v1042_v10  ;;  %v1194_v35 = vadd.f32 %v1167_v39, %v1164_v17  ;;  %v1058_v52 = vadd.f32 %v1644_v23, %v993_v47  ;;  %v1061_v0 = vadd.f32 %v1647_v58, %v996_v53 }
 0x11c   : > { %v1674_v61 = vpop.f32.mrf.mxu0 }
 0x11d   : > { %v1714_v2 = vpop.f32.mrf.mxu1  ;;  %v1675_v12 = vadd.f32 %v1674_v61, %v1673_v51  ;;  %v1172_v26 = vadd.f32 %v1712_v41, %v1107_v9 }
 0x11e   : > { %v1676_v8 = vpop.f32.mrf.mxu0  ;;  %v1715_v37 = vadd.f32 %v1714_v2, %v1713_v56 }
 0x11f   : > { %v1716_v14 = vpop.f32.mrf.mxu1  ;;  %v1110_v42 = vadd.f32 %v1675_v12, %v1045_v16  ;;  %v1195_v30 = vadd.f32 %v1194_v35, %v1172_v26 }
 0x120   : > { %v1677_v20 = vpop.f32.mrf.mxu0 }
 0x121   : > { %v1678_v11 = vadd.f32 %v1677_v20, %v1676_v8  ;;  %v1717_v34 = vpop.f32.mrf.mxu1  ;;  %v1175_v45 = vadd.f32 %v1715_v37, %v1110_v42 }
 0x122   : > { %v1679_v36 = vpop.f32.mrf.mxu0  ;;  %v1718_v49 = vadd.f32 %v1717_v34, %v1716_v14 }
 0x123   : > { %v1719_v44 = vpop.f32.mrf.mxu1  ;;  %v1115_v40 = vadd.f32 %v1678_v11, %v1050_v38  ;;  %v1196_v25 = vadd.f32 %v1195_v30, %v1175_v45 }
 0x124   : > { %v1680_v19 = vpop.f32.mrf.mxu0 }
 0x125   : > { %v1681_v48 = vadd.f32 %v1680_v19, %v1679_v36  ;;  %v1720_v21 = vpop.f32.mrf.mxu1  ;;  %v1180_v54 = vadd.f32 %v1718_v49, %v1115_v40 }
 0x126   : > { %v1682_v33 = vpop.f32.mrf.mxu0  ;;  %v1721_v55 = vadd.f32 %v1720_v21, %v1719_v44 }
 0x127   : > { %v1118_v50 = vadd.f32 %v1681_v48, %v1053_v46  ;;  %v1722_v51 = vpop.f32.mrf.mxu1  ;;  %v1197_v2 = vadd.f32 %v1196_v25, %v1180_v54 }
 0x128   : > { %v1683_v28 = vpop.f32.mrf.mxu0 }
 0x129   : > { %v1684_v56 = vadd.f32 %v1683_v28, %v1682_v33  ;;  %v1723_v57 = vpop.f32.mrf.mxu1  ;;  %v1183_v27 = vadd.f32 %v1721_v55, %v1118_v50 }
 0x12a   : > { %v1685_v59 = vpop.f32.mrf.mxu0  ;;  %v1724_v61 = vadd.f32 %v1723_v57, %v1722_v51 }
 0x12b   : > { %v1123_v60 = vadd.f32 %v1684_v56, %v1058_v52  ;;  %v1725_v62 = vpop.f32.mrf.mxu1  ;;  %v1198_v8 = vadd.f32 %v1197_v2, %v1183_v27 }
 0x12c   : > { %v1686_v63 = vpop.f32.mrf.mxu0 }
 0x12d   : > { %v1188_v4 = vadd.f32 %v1724_v61, %v1123_v60  ;;  %v1687_v43 = vadd.f32 %v1686_v63, %v1685_v59  ;;  %v1726_v6 = vpop.f32.mrf.mxu1 }
 0x12e   : > { %v1727_v5 = vadd.f32 %v1726_v6, %v1725_v62 }
 0x12f   : > { %v1126_v10 = vadd.f32 %v1687_v43, %v1061_v0  ;;  %v1199_v7 = vadd.f32 %v1198_v8, %v1188_v4 }
 0x131   : > { %v1191_v12 = vadd.f32 %v1727_v5, %v1126_v10 }
 0x133   : > { %v1200_v14 = vadd.f32 %v1199_v7, %v1191_v12 }
 0x135   : > { %v1201_v16 = vrot.slane %v1200_v14, 4 }
 0x137   : > { %v1202_v29 = vadd.f32 %v1201_v16, %v1200_v14 }
 0x139   : > { %v1203_v31 = vrot.slane %v1202_v29, 2 }
 0x13b   : > { %v1204_v1 = vadd.f32 %v1203_v31, %v1202_v29 }
 0x13d   : > { %v1205_v3 = vrot.slane %v1204_v1, 1 }
 0x13f   : > { %v1206_v18 = vadd.f32 %v1205_v3, %v1204_v1 }
 0x141   : > { %v1207_v20 = vmul.f32 0.015625, %v1206_v18 }
 0x143   : > { %v1208_v22 = vsub.f32 %v1164_v17, %v1207_v20  ;;  %v1209_v32 = vsub.f32 %v1167_v39, %v1207_v20  ;;  %v1210_v9 = vsub.f32 %v1172_v26, %v1207_v20  ;;  %v1211_v11 = vsub.f32 %v1175_v45, %v1207_v20 }
 0x144   : > { %v1212_v15 = vsub.f32 %v1180_v54, %v1207_v20  ;;  %v1213_v41 = vsub.f32 %v1183_v27, %v1207_v20  ;;  %v1214_v46 = vsub.f32 %v1188_v4, %v1207_v20  ;;  %v1215_v19 = vsub.f32 %v1191_v12, %v1207_v20 }
 0x145   : > { %v1216_v34 = vmul.f32 %v1208_v22, %v1208_v22  ;;  %v1217_v13 = vmul.f32 %v1209_v32, %v1209_v32  ;;  %v1218_v36 = vmul.f32 %v1210_v9, %v1210_v9  ;;  %v1219_v42 = vmul.f32 %v1211_v11, %v1211_v11 }
 0x146   : > { %v1220_v47 = vmul.f32 %v1212_v15, %v1212_v15  ;;  %v1221_v37 = vmul.f32 %v1213_v41, %v1213_v41  ;;  %v1222_v48 = vmul.f32 %v1214_v46, %v1214_v46  ;;  %v1223_v17 = vmul.f32 %v1215_v19, %v1215_v19 }
 0x147   : > { %v1224_v38 = vadd.f32 %v1217_v13, %v1216_v34 }
 0x149   : > { %v1225_v44 = vadd.f32 %v1224_v38, %v1218_v36 }
 0x14b   : > { %v1226_v24 = vadd.f32 %v1225_v44, %v1219_v42 }
 0x14d   : > { %v1227_v40 = vadd.f32 %v1226_v24, %v1220_v47 }
 0x14f   : > { %v1228_v21 = vadd.f32 %v1227_v40, %v1221_v37 }
 0x151   : > { %v1229_v39 = vadd.f32 %v1228_v21, %v1222_v48 }
 0x153   : > { %v1230_v26 = vadd.f32 %v1229_v39, %v1223_v17 }
 0x155   : > { %v1231_v23 = vrot.slane %v1230_v26, 4 }
 0x157   : > { %v1232_v33 = vadd.f32 %v1231_v23, %v1230_v26 }
 0x159   : > { %v1233_v35 = vrot.slane %v1232_v33, 2 }
 0x15b   : > { %v1234_v45 = vadd.f32 %v1233_v35, %v1232_v33 }
 0x15d   : > { %v1235_v49 = vrot.slane %v1234_v45, 1 }
 0x15f   : > { %v1236_v50 = vadd.f32 %v1235_v49, %v1234_v45 }
 0x161   : > { %v1237_v51 = vmul.f32 0.015625, %v1236_v50 }
 0x163   : > { %v1238_v52 = vadd.f32 1e-05, %v1237_v51 }
 0x165   : > { %1816 = vrsqrt.f32 %v1238_v52 }
 0x172   : > { %v1817_v53 = vpop.eup %1816 }
 0x173   : > { %v1240_v28 = vmul.f32 %v1817_v53, %v1208_v22  ;;  %v1241_v30 = vmul.f32 %v1817_v53, %v1209_v32  ;;  %v1242_v54 = vmul.f32 %v1817_v53, %v1210_v9  ;;  %v1243_v55 = vmul.f32 %v1817_v53, %v1211_v11 }
 0x174   : > { %v1244_v56 = vmul.f32 %v1817_v53, %v1212_v15  ;;  %v1245_v57 = vmul.f32 %v1817_v53, %v1213_v41  ;;  %v1246_v58 = vmul.f32 %v1817_v53, %v1214_v46  ;;  %v1247_v59 = vmul.f32 %v1817_v53, %v1215_v19 }
 0x175   : > { %vm1248_vm0 = vcmp.ge.f32.partialorder %v1240_v28, 0.0  ;;  %vm1249_vm1 = vcmp.ge.f32.partialorder %v1241_v30, 0.0  ;;  %vm1250_vm2 = vcmp.ge.f32.partialorder %v1242_v54, 0.0  ;;  %vm1251_vm3 = vcmp.ge.f32.partialorder %v1243_v55, 0.0 }
 0x176   : > { %vm1252_vm4 = vcmp.ge.f32.partialorder %v1244_v56, 0.0  ;;  %vm1253_vm5 = vcmp.ge.f32.partialorder %v1245_v57, 0.0  ;;  %vm1254_vm6 = vcmp.ge.f32.partialorder %v1246_v58, 0.0  ;;  %vm1255_vm7 = vcmp.ge.f32.partialorder %v1247_v59, 0.0 }
 0x177   : > { %v1256_v25 = vmul.f32 0.2, %v1240_v28  ;;  %v1257_v27 = vmul.f32 0.2, %v1241_v30  ;;  %v1258_v60 = vmul.f32 0.2, %v1242_v54 }
 0x178   : > { %v1259_v61 = vmul.f32 0.2, %v1243_v55  ;;  %v1260_v62 = vmul.f32 0.2, %v1244_v56  ;;  %v1261_v63 = vmul.f32 0.2, %v1245_v57 }
 0x179   : > { %v1262_v0 = vmul.f32 0.2, %v1246_v58  ;;  %v1263_v2 = vmul.f32 0.2, %v1247_v59  ;;  %v1264_v4 = vsel %vm1248_vm0, %v1240_v28, %v1256_v25  ;;  %v1265_v43 = vsel %vm1249_vm1, %v1241_v30, %v1257_v27 }
 0x17a   : > { %v1266_v6 = vsel %vm1250_vm2, %v1242_v54, %v1258_v60  ;;  %v1267_v8 = vsel %vm1251_vm3, %v1243_v55, %v1259_v61  ;;  %v1268_v10 = vsel %vm1252_vm4, %v1244_v56, %v1260_v62  ;;  %v1269_v5 = vsel %vm1253_vm5, %v1245_v57, %v1261_v63 }
 0x17b   : > { %v1270_v7 = vsel %vm1254_vm6, %v1246_v58, %v1262_v0  ;;  %v1271_v12 = vsel %vm1255_vm7, %v1247_v59, %v1263_v2  ;;  %v1548_v14 = vpack.c.bf16 %v1265_v43, %v1264_v4  ;;  %v1553_v16 = vpack.c.bf16 %v1267_v8, %v1266_v6 }
 0x17c   : > { %v1558_v29 = vpack.c.bf16 %v1269_v5, %v1268_v10  ;;  %v1563_v31 = vpack.c.bf16 %v1271_v12, %v1270_v7 }
 0x17d   : > { %1549 = vst [vmem:[%s221_s12] sm:$0xff] %v1548_v14   ;;  %1565 = vst [vmem:[%s221_s12 + $0x8] sm:$0xff] %v1553_v16  }
 0x17e   : > { %1566 = vst [vmem:[%s221_s12 + $0x10] sm:$0xff] %v1558_v29   ;;  %1567 = vst [vmem:[%s221_s12 + $0x18] sm:$0xff] %v1563_v31  }
 0x17f PF: > { %s13_s14 = sadd.s32 1, %s1840_s14   ;;  %s2175_s12 = smov %s1836_s13 }
 0x180   : > { %p10_p5 = scmp.ge.s32.totalorder %s13_s14, 4   ;;  %s2176_s13 = smov %s2178_s15 }
 0x182   :  { %12 = sbr.rel (!%p10_p5) target bundleno = 2 (0x2), region = 68 }

// kernel: _lambda_.7
= control target key start
LH: loop header
LB: loop body
LE: loop exit
PB: predicated region body
PF: predicated region fallthrough
CT: control target
= control target key end

     0   :  { %s3152_s12 = smov 0   ;;  %s3154_s13 = smov 0   ;;  %s4030_s0 = inlined_call_operand.vmem [shape: bf16[2,16,2048], index: 0, kind: input, shape index: {}]   ;;  %s4031_s1 = inlined_call_operand.vmem [shape: bf16[2048,256], index: 1, kind: input, shape index: {}]   ;;  %s4032_s2 = inlined_call_operand.vmem [shape: f32[1,256], index: 2, kind: input, shape index: {}]   ;;  %s4033_s3 = inlined_call_operand.vmem [shape: bf16[2,16,256], index: 3, kind: output, shape index: {}]  }
   0x1   :  { %s3156_s14 = smov 0  }
   0x2 LB: > { %s25_s15 = sadd.s32 1, %s3126_s13  ;;  %p2411_p0 = scmp.ge.s32.totalorder %s3130_s14, 1  ;;  %s3130_s14 = sphi %s3156_s14, %s13_s14   ;;  %s3126_s13 = sphi %s3154_s13, %s4035_s13   ;;  %s3122_s12 = sphi %s3152_s12, %s4034_s12  }
   0x3   : > { %p27_p1 = scmp.ge.s32.totalorder %s25_s15, 2  ;;  %p172_p2 = scmp.lt.s32.totalorder %s3130_s14, 3 }
   0x5   : > { %s4037_s15 = smov (%p27_p1, %s25_s15), 0  ;;  %p173_p3 = pnand %p2411_p0, %p172_p2 }
   0x6   : > { %p209_p4 = scmp.lt.s32.totalorder (!%p173_p3), %s3122_s12, 1 }
   0x7   : > { %176 = sbr.rel (%p173_p3) target bundleno = 532 (0x214), region = 32 }
   0xc   : > { %v2720_v0 = vld [vmem:[%s4031_s1 + $0x74] ss:$8 sps:$4 sm:$0xff]   ;;  %v2724_v2 = vld [vmem:[%s4031_s1 + $0x70] ss:$8 sps:$4 sm:$0xff]   ;;  %v2726_v4 = vld [vmem:[%s4031_s1 + $0x64] ss:$8 sps:$4 sm:$0xff]  }
   0xd   : > { %v2722_v1 = vld [vmem:[%s4031_s1 + $0x174] ss:$8 sps:$4 sm:$0xff]   ;;  %1879 = vmatprep.subr.bf16.mxu0 %v2720_v0  ;;  %v2725_v3 = vld [vmem:[%s4031_s1 + $0x170] ss:$8 sps:$4 sm:$0xff]   ;;  %v2728_v5 = vld [vmem:[%s4031_s1 + $0x164] ss:$8 sps:$4 sm:$0xff]  }
   0xe   : > { %1922 = vmatprep.subr.bf16.mxu1 %v2722_v1  ;;  %1880 = vmatpush1.bf16.msra.mxu0 %v2724_v2  ;;  %v2730_v6 = vld [vmem:[%s4031_s1 + $0x60] ss:$8 sps:$4 sm:$0xff]   ;;  %v2732_v8 = vld [vmem:[%s4031_s1 + $0x54] ss:$8 sps:$4 sm:$0xff]   ;;  %v2736_v10 = vld [vmem:[%s4031_s1 + $0x50] ss:$8 sps:$4 sm:$0xff]  }
   0xf   : > { %1923 = vmatpush1.bf16.msra.mxu1 %v2725_v3  ;;  %1881 = vmatprep.subr.bf16.mxu0 %v2726_v4  ;;  %v2731_v7 = vld [vmem:[%s4031_s1 + $0x160] ss:$8 sps:$4 sm:$0xff]   ;;  %v2734_v9 = vld [vmem:[%s4031_s1 + $0x154] ss:$8 sps:$4 sm:$0xff]   ;;  %v2737_v11 = vld [vmem:[%s4031_s1 + $0x150] ss:$8 sps:$4 sm:$0xff]  }
  0x10   : > { %1924 = vmatprep.subr.bf16.mxu1 %v2728_v5  ;;  %v2738_v12 = vld [vmem:[%s4031_s1 + $0x44] ss:$8 sps:$4 sm:$0xff]   ;;  %v2742_v14 = vld [vmem:[%s4031_s1 + $0x40] ss:$8 sps:$4 sm:$0xff]   ;;  %v2744_v16 = vld [vmem:[%s4031_s1 + $0x34] ss:$8 sps:$4 sm:$0xff]  }
  0x11   : > { %v2740_v13 = vld [vmem:[%s4031_s1 + $0x144] ss:$8 sps:$4 sm:$0xff]   ;;  %v2743_v15 = vld [vmem:[%s4031_s1 + $0x140] ss:$8 sps:$4 sm:$0xff]   ;;  %v2746_v17 = vld [vmem:[%s4031_s1 + $0x134] ss:$8 sps:$4 sm:$0xff]  }
  0x12   : > { %1882 = vmatpush1.bf16.msra.mxu0 %v2730_v6  ;;  %v2748_v18 = vld [vmem:[%s4031_s1 + $0x30] ss:$8 sps:$4 sm:$0xff]   ;;  %v2750_v20 = vld [vmem:[%s4031_s1 + $0x24] ss:$8 sps:$4 sm:$0xff]   ;;  %v2754_v22 = vld [vmem:[%s4031_s1 + $0x20] ss:$8 sps:$4 sm:$0xff]  }
  0x13   : > { %1925 = vmatpush1.bf16.msra.mxu1 %v2731_v7  ;;  %1883 = vmatprep.subr.bf16.mxu0 %v2732_v8  ;;  %v2749_v19 = vld [vmem:[%s4031_s1 + $0x130] ss:$8 sps:$4 sm:$0xff]   ;;  %v2752_v21 = vld [vmem:[%s4031_s1 + $0x124] ss:$8 sps:$4 sm:$0xff]   ;;  %v2755_v23 = vld [vmem:[%s4031_s1 + $0x120] ss:$8 sps:$4 sm:$0xff]  }
  0x14   : > { %1926 = vmatprep.subr.bf16.mxu1 %v2734_v9  ;;  %v2756_v24 = vld [vmem:[%s4031_s1 + $0x14] ss:$8 sps:$4 sm:$0xff]   ;;  %v2760_v26 = vld [vmem:[%s4031_s1 + $0x10] ss:$8 sps:$4 sm:$0xff]   ;;  %v2762_v28 = vld [vmem:[%s4031_s1 + $0x4] ss:$8 sps:$4 sm:$0xff]  }
  0x15   : > { %v2758_v25 = vld [vmem:[%s4031_s1 + $0x114] ss:$8 sps:$4 sm:$0xff]   ;;  %v2761_v27 = vld [vmem:[%s4031_s1 + $0x110] ss:$8 sps:$4 sm:$0xff]   ;;  %v2764_v29 = vld [vmem:[%s4031_s1 + $0x104] ss:$8 sps:$4 sm:$0xff]  }
  0x16   : > { %1884 = vmatpush1.bf16.msra.mxu0 %v2736_v10  ;;  %v2766_v30 = vld [vmem:[%s4031_s1] ss:$8 sps:$4 sm:$0xff]   ;;  %v2768_v32 = vld [vmem:[%s4031_s1 + $0xf4] ss:$8 sps:$4 sm:$0xff]   ;;  %v2772_v34 = vld [vmem:[%s4031_s1 + $0xf0] ss:$8 sps:$4 sm:$0xff]  }
  0x17   : > { %1927 = vmatpush1.bf16.msra.mxu1 %v2737_v11  ;;  %1885 = vmatprep.subr.bf16.mxu0 %v2738_v12  ;;  %v2767_v31 = vld [vmem:[%s4031_s1 + $0x100] ss:$8 sps:$4 sm:$0xff]   ;;  %v2770_v33 = vld [vmem:[%s4031_s1 + $0x1f4] ss:$8 sps:$4 sm:$0xff]   ;;  %v2773_v35 = vld [vmem:[%s4031_s1 + $0x1f0] ss:$8 sps:$4 sm:$0xff]  }
  0x18   : > { %1928 = vmatprep.subr.bf16.mxu1 %v2740_v13  ;;  %v2774_v36 = vld [vmem:[%s4031_s1 + $0xe4] ss:$8 sps:$4 sm:$0xff]   ;;  %s4039_s12 = smov (!%p209_p4, %s3122_s12), 1  ;;  %v2778_v38 = vld [vmem:[%s4031_s1 + $0xe0] ss:$8 sps:$4 sm:$0xff]  }
  0x19   : > { %v2776_v37 = vld [vmem:[%s4031_s1 + $0x1e4] ss:$8 sps:$4 sm:$0xff]   ;;  %v2779_v39 = vld [vmem:[%s4031_s1 + $0x1e0] ss:$8 sps:$4 sm:$0xff]   ;;  %v2780_v40 = vld [vmem:[%s4031_s1 + $0xd4] ss:$8 sps:$4 sm:$0xff]  }
  0x1a   : > { %1886 = vmatpush1.bf16.msra.mxu0 %v2742_v14  ;;  %s2692_s29 = sshll.u32 %s4039_s12, 7  ;;  %v2782_v41 = vld [vmem:[%s4031_s1 + $0x1d4] ss:$8 sps:$4 sm:$0xff]   ;;  %v2784_v42 = vld [vmem:[%s4031_s1 + $0xd0] ss:$8 sps:$4 sm:$0xff]   ;;  %s2693_s18 = sshll.u32 %s4039_s12, 4 }
  0x1b   : > { %1929 = vmatpush1.bf16.msra.mxu1 %v2743_v15  ;;  %1887 = vmatprep.subr.bf16.mxu0 %v2744_v16  ;;  %v2785_v43 = vld [vmem:[%s4031_s1 + $0x1d0] ss:$8 sps:$4 sm:$0xff]   ;;  %s3312_s11 = scalar_lea.vmem %s4030_s0, %s2692_s29  ;;  %v2786_v44 = vld [vmem:[%s4031_s1 + $0xc4] ss:$8 sps:$4 sm:$0xff]   ;;  %v2790_v46 = vld [vmem:[%s4031_s1 + $0xc0] ss:$8 sps:$4 sm:$0xff]   ;;  %s233_s21 = scalar_lea.vmem %s4033_s3, %s2693_s18 }
  0x1c   : > { %1930 = vmatprep.subr.bf16.mxu1 %v2746_v17  ;;  %v2788_v45 = vld [vmem:[%s4031_s1 + $0x1c4] ss:$8 sps:$4 sm:$0xff]   ;;  %v2791_v47 = vld [vmem:[%s4031_s1 + $0x1c0] ss:$8 sps:$4 sm:$0xff]   ;;  %v2792_v52 = vld [vmem:[%s4031_s1 + $0xb4] ss:$8 sps:$4 sm:$0xff]  }
  0x1d   : > { %v235_v48 = vld [vmem:[%s3312_s11] sm:$0xff]  ;;  %v236_v50 = vld [vmem:[%s3312_s11 + $0x8] sm:$0xff]  ;;  %v2794_v54 = vld [vmem:[%s4031_s1 + $0x1b4] ss:$8 sps:$4 sm:$0xff]  }
  0x1e   : > { %1888 = vmatpush1.bf16.msra.mxu0 %v2748_v18  ;;  %v243_v49 = vld [vmem:[%s3312_s11 + $0x40] sm:$0xff]  ;;  %v244_v51 = vld [vmem:[%s3312_s11 + $0x48] sm:$0xff]  ;;  %v2796_v56 = vld [vmem:[%s4031_s1 + $0xb0] ss:$8 sps:$4 sm:$0xff]  }
  0x1f   : > { %1931 = vmatpush1.bf16.msra.mxu1 %v2749_v19  ;;  %1889 = vmatprep.subr.bf16.mxu0 %v2750_v20  ;;  %v2417_v53 = vcombine.high %v235_v48, %v243_v49  ;;  %v2419_v55 = vcombine.high %v236_v50, %v244_v51  ;;  %v2797_v57 = vld [vmem:[%s4031_s1 + $0x1b0] ss:$8 sps:$4 sm:$0xff]   ;;  %v2798_v58 = vld [vmem:[%s4031_s1 + $0xa4] ss:$8 sps:$4 sm:$0xff]   ;;  %v2802_v60 = vld [vmem:[%s4031_s1 + $0xa0] ss:$8 sps:$4 sm:$0xff]   ;;  %v2416_v8 = vcombine.low %v235_v48, %v243_v49 }
  0x20   : > { %1932 = vmatprep.subr.bf16.mxu1 %v2752_v21  ;;  %v2800_v59 = vld [vmem:[%s4031_s1 + $0x1a4] ss:$8 sps:$4 sm:$0xff]   ;;  %v2803_v61 = vld [vmem:[%s4031_s1 + $0x1a0] ss:$8 sps:$4 sm:$0xff]   ;;  %v2804_v62 = vld [vmem:[%s4031_s1 + $0x94] ss:$8 sps:$4 sm:$0xff]   ;;  %v2418_v9 = vcombine.low %v236_v50, %v244_v51 }
  0x21   : > { %1911 = vmatprep.mubr.bf16.mxu0 %v2417_v53  ;;  %1954 = vmatprep.mubr.bf16.mxu1 %v2419_v55  ;;  %v2806_v63 = vld [vmem:[%s4031_s1 + $0x194] ss:$8 sps:$4 sm:$0xff]   ;;  %v2808_v0 = vld [vmem:[%s4031_s1 + $0x90] ss:$8 sps:$4 sm:$0xff]   ;;  %v2810_v2 = vld [vmem:[%s4031_s1 + $0x84] ss:$8 sps:$4 sm:$0xff]  }
  0x22   : > { %1890 = vmatpush1.bf16.msra.mxu0 %v2754_v22  ;;  %v2809_v1 = vld [vmem:[%s4031_s1 + $0x190] ss:$8 sps:$4 sm:$0xff]   ;;  %v2812_v3 = vld [vmem:[%s4031_s1 + $0x184] ss:$8 sps:$4 sm:$0xff]   ;;  %v2814_v4 = vld [vmem:[%s4031_s1 + $0x80] ss:$8 sps:$4 sm:$0xff]  }
  0x23   : > { %1933 = vmatpush1.bf16.msra.mxu1 %v2755_v23  ;;  %1891 = vmatprep.subr.bf16.mxu0 %v2756_v24  ;;  %v2815_v5 = vld [vmem:[%s4031_s1 + $0x180] ss:$8 sps:$4 sm:$0xff]   ;;  %v2818_v6 = vld [vmem:[%s4031_s1 + $0x274] ss:$8 sps:$4 sm:$0xff]   ;;  %v2816_v10 = vld [vmem:[%s4031_s1 + $0x270] ss:$8 sps:$4 sm:$0xff]  }
  0x24   : > { %1934 = vmatprep.subr.bf16.mxu1 %v2758_v25  ;;  %v2821_v7 = vld [vmem:[%s4031_s1 + $0x374] ss:$8 sps:$4 sm:$0xff]   ;;  %v2819_v11 = vld [vmem:[%s4031_s1 + $0x370] ss:$8 sps:$4 sm:$0xff]   ;;  %v2824_v12 = vld [vmem:[%s4031_s1 + $0x264] ss:$8 sps:$4 sm:$0xff]  }
  0x25   : > { %v2827_v13 = vld [vmem:[%s4031_s1 + $0x364] ss:$8 sps:$4 sm:$0xff]   ;;  %v2822_v14 = vld [vmem:[%s4031_s1 + $0x260] ss:$8 sps:$4 sm:$0xff]   ;;  %v2830_v16 = vld [vmem:[%s4031_s1 + $0x254] ss:$8 sps:$4 sm:$0xff]  }
  0x26   : > { %1892 = vmatpush1.bf16.msra.mxu0 %v2760_v26  ;;  %v2825_v15 = vld [vmem:[%s4031_s1 + $0x360] ss:$8 sps:$4 sm:$0xff]   ;;  %v2833_v17 = vld [vmem:[%s4031_s1 + $0x354] ss:$8 sps:$4 sm:$0xff]   ;;  %v2828_v18 = vld [vmem:[%s4031_s1 + $0x250] ss:$8 sps:$4 sm:$0xff]  }
  0x27   : > { %1935 = vmatpush1.bf16.msra.mxu1 %v2761_v27  ;;  %1893 = vmatprep.subr.bf16.mxu0 %v2762_v28  ;;  %v2831_v19 = vld [vmem:[%s4031_s1 + $0x350] ss:$8 sps:$4 sm:$0xff]   ;;  %v2836_v20 = vld [vmem:[%s4031_s1 + $0x244] ss:$8 sps:$4 sm:$0xff]   ;;  %v2834_v22 = vld [vmem:[%s4031_s1 + $0x240] ss:$8 sps:$4 sm:$0xff]  }
  0x28   : > { %1936 = vmatprep.subr.bf16.mxu1 %v2764_v29  ;;  %v2839_v21 = vld [vmem:[%s4031_s1 + $0x344] ss:$8 sps:$4 sm:$0xff]   ;;  %v2837_v23 = vld [vmem:[%s4031_s1 + $0x340] ss:$8 sps:$4 sm:$0xff]   ;;  %v2842_v24 = vld [vmem:[%s4031_s1 + $0x234] ss:$8 sps:$4 sm:$0xff]  }
  0x29   : > { %v2845_v25 = vld [vmem:[%s4031_s1 + $0x334] ss:$8 sps:$4 sm:$0xff]   ;;  %v2840_v26 = vld [vmem:[%s4031_s1 + $0x230] ss:$8 sps:$4 sm:$0xff]   ;;  %v2848_v28 = vld [vmem:[%s4031_s1 + $0x224] ss:$8 sps:$4 sm:$0xff]  }
  0x2a   : > { %1894 = vmatpush1.bf16.msra.mxu0 %v2766_v30  ;;  %v2843_v27 = vld [vmem:[%s4031_s1 + $0x330] ss:$8 sps:$4 sm:$0xff]   ;;  %v2851_v29 = vld [vmem:[%s4031_s1 + $0x324] ss:$8 sps:$4 sm:$0xff]   ;;  %v2846_v30 = vld [vmem:[%s4031_s1 + $0x220] ss:$8 sps:$4 sm:$0xff]  }
  0x2b   : > { %1937 = vmatpush1.bf16.msra.mxu1 %v2767_v31  ;;  %1895 = vmatprep.subr.bf16.mxu0 %v2768_v32  ;;  %v2849_v31 = vld [vmem:[%s4031_s1 + $0x320] ss:$8 sps:$4 sm:$0xff]   ;;  %v2854_v32 = vld [vmem:[%s4031_s1 + $0x214] ss:$8 sps:$4 sm:$0xff]   ;;  %v2864_v48 = vld [vmem:[%s4031_s1 + $0x2f0] ss:$8 sps:$4 sm:$0xff]  }
  0x2c   : > { %1938 = vmatprep.subr.bf16.mxu1 %v2770_v33  ;;  %v2857_v33 = vld [vmem:[%s4031_s1 + $0x314] ss:$8 sps:$4 sm:$0xff]   ;;  %v2867_v49 = vld [vmem:[%s4031_s1 + $0x3f0] ss:$8 sps:$4 sm:$0xff]   ;;  %v2872_v50 = vld [vmem:[%s4031_s1 + $0x2e4] ss:$8 sps:$4 sm:$0xff]  }
  0x2d   : > { %v2875_v51 = vld [vmem:[%s4031_s1 + $0x3e4] ss:$8 sps:$4 sm:$0xff]   ;;  %v2873_v53 = vld [vmem:[%s4031_s1 + $0x3e0] ss:$8 sps:$4 sm:$0xff]   ;;  %v2881_v55 = vld [vmem:[%s4031_s1 + $0x3d4] ss:$8 sps:$4 sm:$0xff]  }
  0x2e   : > { %1896 = vmatpush2.bf16.msra.mxu0 %v2772_v34  ;;  %v2852_v34 = vld [vmem:[%s4031_s1 + $0x210] ss:$8 sps:$4 sm:$0xff]  }
  0x2f   : > { %1939 = vmatpush2.bf16.msra.mxu1 %v2773_v35  ;;  %1897 = vmatprep.subr.bf16.mxu0 %v2774_v36  ;;  %v2855_v35 = vld [vmem:[%s4031_s1 + $0x310] ss:$8 sps:$4 sm:$0xff]  }
  0x30   : > { %1940 = vmatprep.subr.bf16.mxu1 %v2776_v37  ;;  %v3463_v36 = vld [vmem:[%s3312_s11 + $0x10] sm:$0xff] }
  0x31   : > { %v3466_v37 = vld [vmem:[%s3312_s11 + $0x50] sm:$0xff] }
  0x32   : > { %1898 = vmatpush2.bf16.msra.mxu0 %v2778_v38  ;;  %v3469_v38 = vld [vmem:[%s3312_s11 + $0x18] sm:$0xff] }
  0x33   : > { %1941 = vmatpush2.bf16.msra.mxu1 %v2779_v39  ;;  %1899 = vmatprep.subr.bf16.mxu0 %v2780_v40  ;;  %v3472_v39 = vld [vmem:[%s3312_s11 + $0x58] sm:$0xff]  ;;  %v2860_v40 = vld [vmem:[%s4031_s1 + $0x204] ss:$8 sps:$4 sm:$0xff]  }
  0x34   : > { %1942 = vmatprep.subr.bf16.mxu1 %v2782_v41  ;;  %v2421_v41 = vcombine.high %v3463_v36, %v3466_v37 }
  0x36   : > { %1900 = vmatpush2.bf16.msra.mxu0 %v2784_v42  ;;  %v2863_v42 = vld [vmem:[%s4031_s1 + $0x304] ss:$8 sps:$4 sm:$0xff]  }
  0x37   : > { %1943 = vmatpush2.bf16.msra.mxu1 %v2785_v43  ;;  %1901 = vmatprep.subr.bf16.mxu0 %v2786_v44  ;;  %v2423_v43 = vcombine.high %v3469_v38, %v3472_v39  ;;  %v2858_v44 = vld [vmem:[%s4031_s1 + $0x200] ss:$8 sps:$4 sm:$0xff]  }
  0x38   : > { %1944 = vmatprep.subr.bf16.mxu1 %v2788_v45  ;;  %v2861_v45 = vld [vmem:[%s4031_s1 + $0x300] ss:$8 sps:$4 sm:$0xff]  }
  0x3a   : > { %1902 = vmatpush2.bf16.msra.mxu0 %v2790_v46  ;;  %v2866_v46 = vld [vmem:[%s4031_s1 + $0x2f4] ss:$8 sps:$4 sm:$0xff]  }
  0x3b   : > { %1945 = vmatpush2.bf16.msra.mxu1 %v2791_v47  ;;  %1903 = vmatprep.subr.bf16.mxu0 %v2792_v52  ;;  %v2869_v47 = vld [vmem:[%s4031_s1 + $0x3f4] ss:$8 sps:$4 sm:$0xff]   ;;  %v2870_v52 = vld [vmem:[%s4031_s1 + $0x2e0] ss:$8 sps:$4 sm:$0xff]  }
  0x3c   : > { %1946 = vmatprep.subr.bf16.mxu1 %v2794_v54  ;;  %v2878_v54 = vld [vmem:[%s4031_s1 + $0x2d4] ss:$8 sps:$4 sm:$0xff]  }
  0x3e   : > { %1904 = vmatpush2.bf16.msra.mxu0 %v2796_v56  ;;  %v2876_v56 = vld [vmem:[%s4031_s1 + $0x2d0] ss:$8 sps:$4 sm:$0xff]  }
  0x3f   : > { %1947 = vmatpush2.bf16.msra.mxu1 %v2797_v57  ;;  %1905 = vmatprep.subr.bf16.mxu0 %v2798_v58  ;;  %v2879_v57 = vld [vmem:[%s4031_s1 + $0x3d0] ss:$8 sps:$4 sm:$0xff]   ;;  %v2884_v58 = vld [vmem:[%s4031_s1 + $0x2c4] ss:$8 sps:$4 sm:$0xff]  }
  0x40   : > { %1948 = vmatprep.subr.bf16.mxu1 %v2800_v59  ;;  %v2887_v59 = vld [vmem:[%s4031_s1 + $0x3c4] ss:$8 sps:$4 sm:$0xff]  }
  0x42   : > { %1906 = vmatpush2.bf16.msra.mxu0 %v2802_v60  ;;  %v2882_v60 = vld [vmem:[%s4031_s1 + $0x2c0] ss:$8 sps:$4 sm:$0xff]  }
  0x43   : > { %1949 = vmatpush2.bf16.msra.mxu1 %v2803_v61  ;;  %1907 = vmatprep.subr.bf16.mxu0 %v2804_v62  ;;  %v2885_v61 = vld [vmem:[%s4031_s1 + $0x3c0] ss:$8 sps:$4 sm:$0xff]   ;;  %v2890_v62 = vld [vmem:[%s4031_s1 + $0x2b4] ss:$8 sps:$4 sm:$0xff]  }
  0x44   : > { %1950 = vmatprep.subr.bf16.mxu1 %v2806_v63  ;;  %v2893_v63 = vld [vmem:[%s4031_s1 + $0x3b4] ss:$8 sps:$4 sm:$0xff]  }
  0x46   : > { %1908 = vmatpush2.bf16.msra.mxu0 %v2808_v0  ;;  %v2888_v0 = vld [vmem:[%s4031_s1 + $0x2b0] ss:$8 sps:$4 sm:$0xff]  }
  0x47   : > { %1951 = vmatpush2.bf16.msra.mxu1 %v2809_v1  ;;  %1909 = vmatprep.subr.bf16.mxu0 %v2810_v2  ;;  %v2891_v1 = vld [vmem:[%s4031_s1 + $0x3b0] ss:$8 sps:$4 sm:$0xff]   ;;  %v2896_v2 = vld [vmem:[%s4031_s1 + $0x2a4] ss:$8 sps:$4 sm:$0xff]  }
  0x48   : > { %1952 = vmatprep.subr.bf16.mxu1 %v2812_v3  ;;  %v2899_v3 = vld [vmem:[%s4031_s1 + $0x3a4] ss:$8 sps:$4 sm:$0xff]  }
  0x4a   : > { %1910 = vmatpush2.bf16.msra.mxu0 %v2814_v4  ;;  %v2894_v4 = vld [vmem:[%s4031_s1 + $0x2a0] ss:$8 sps:$4 sm:$0xff]  }
  0x4b   : > { %1953 = vmatpush2.bf16.msra.mxu1 %v2815_v5  ;;  %1965 = vmatprep.subr.bf16.mxu0 %v2818_v6  ;;  %v2897_v5 = vld [vmem:[%s4031_s1 + $0x3a0] ss:$8 sps:$4 sm:$0xff]   ;;  %v2902_v6 = vld [vmem:[%s4031_s1 + $0x294] ss:$8 sps:$4 sm:$0xff]  }
  0x4c   : > { %2008 = vmatprep.subr.bf16.mxu1 %v2821_v7  ;;  %v2905_v7 = vld [vmem:[%s4031_s1 + $0x394] ss:$8 sps:$4 sm:$0xff]  }
  0x4d   : > { %1912 = vmatmul.mubr.bf16.vlgmr.msra.gmra.mxu0 %v2416_v8  ;;  %v2900_v8 = vld [vmem:[%s4031_s1 + $0x290] ss:$8 sps:$4 sm:$0xff]  }
  0x4e   : > { %1955 = vmatmul.mubr.bf16.vlgmr.msra.gmra.mxu1 %v2418_v9  ;;  %1966 = vmatpush1.bf16.msra.mxu0 %v2816_v10  ;;  %v2903_v9 = vld [vmem:[%s4031_s1 + $0x390] ss:$8 sps:$4 sm:$0xff]   ;;  %v2908_v10 = vld [vmem:[%s4031_s1 + $0x284] ss:$8 sps:$4 sm:$0xff]  }
  0x4f   : > { %2009 = vmatpush1.bf16.msra.mxu1 %v2819_v11  ;;  %1967 = vmatprep.subr.bf16.mxu0 %v2824_v12  ;;  %v2911_v11 = vld [vmem:[%s4031_s1 + $0x384] ss:$8 sps:$4 sm:$0xff]   ;;  %v2906_v12 = vld [vmem:[%s4031_s1 + $0x280] ss:$8 sps:$4 sm:$0xff]  }
  0x50   : > { %2010 = vmatprep.subr.bf16.mxu1 %v2827_v13  ;;  %1997 = vmatprep.mubr.bf16.mxu0 %v2421_v41  ;;  %v2909_v13 = vld [vmem:[%s4031_s1 + $0x380] ss:$8 sps:$4 sm:$0xff]   ;;  %v2939_v41 = vld [vmem:[%s4031_s1 + $0x530] ss:$8 sps:$4 sm:$0xff]  }
  0x51   : > { %2040 = vmatprep.mubr.bf16.mxu1 %v2423_v43  ;;  %v2947_v43 = vld [vmem:[%s4031_s1 + $0x524] ss:$8 sps:$4 sm:$0xff]  }
  0x52   : > { %1968 = vmatpush1.bf16.msra.mxu0 %v2822_v14  ;;  %v2914_v14 = vld [vmem:[%s4031_s1 + $0x474] ss:$8 sps:$4 sm:$0xff]  }
  0x53   : > { %2011 = vmatpush1.bf16.msra.mxu1 %v2825_v15  ;;  %1969 = vmatprep.subr.bf16.mxu0 %v2830_v16  ;;  %v2917_v15 = vld [vmem:[%s4031_s1 + $0x574] ss:$8 sps:$4 sm:$0xff]   ;;  %v2420_v16 = vcombine.low %v3463_v36, %v3466_v37  ;;  %v2930_v36 = vld [vmem:[%s4031_s1 + $0x440] ss:$8 sps:$4 sm:$0xff]  }
  0x54   : > { %2012 = vmatprep.subr.bf16.mxu1 %v2833_v17  ;;  %v2422_v17 = vcombine.low %v3469_v38, %v3472_v39  ;;  %v2933_v37 = vld [vmem:[%s4031_s1 + $0x540] ss:$8 sps:$4 sm:$0xff]   ;;  %v2938_v38 = vld [vmem:[%s4031_s1 + $0x434] ss:$8 sps:$4 sm:$0xff]  }
  0x55   : > { %v2941_v39 = vld [vmem:[%s4031_s1 + $0x534] ss:$8 sps:$4 sm:$0xff]  }
  0x56   : > { %1970 = vmatpush1.bf16.msra.mxu0 %v2828_v18  ;;  %v2912_v18 = vld [vmem:[%s4031_s1 + $0x470] ss:$8 sps:$4 sm:$0xff]  }
  0x57   : > { %2013 = vmatpush1.bf16.msra.mxu1 %v2831_v19  ;;  %1971 = vmatprep.subr.bf16.mxu0 %v2836_v20  ;;  %v2915_v19 = vld [vmem:[%s4031_s1 + $0x570] ss:$8 sps:$4 sm:$0xff]   ;;  %v2920_v20 = vld [vmem:[%s4031_s1 + $0x464] ss:$8 sps:$4 sm:$0xff]  }
  0x58   : > { %2014 = vmatprep.subr.bf16.mxu1 %v2839_v21  ;;  %v2923_v21 = vld [vmem:[%s4031_s1 + $0x564] ss:$8 sps:$4 sm:$0xff]  }
  0x5a   : > { %1972 = vmatpush1.bf16.msra.mxu0 %v2834_v22  ;;  %v2918_v22 = vld [vmem:[%s4031_s1 + $0x460] ss:$8 sps:$4 sm:$0xff]  }
  0x5b   : > { %2015 = vmatpush1.bf16.msra.mxu1 %v2837_v23  ;;  %1973 = vmatprep.subr.bf16.mxu0 %v2842_v24  ;;  %v2921_v23 = vld [vmem:[%s4031_s1 + $0x560] ss:$8 sps:$4 sm:$0xff]  }
  0x5c   : > { %2016 = vmatprep.subr.bf16.mxu1 %v2845_v25  ;;  %v3615_v24 = vld [vmem:[%s3312_s11 + $0x20] sm:$0xff] }
  0x5d   : > { %v3618_v25 = vld [vmem:[%s3312_s11 + $0x60] sm:$0xff] }
  0x5e   : > { %1974 = vmatpush1.bf16.msra.mxu0 %v2840_v26  ;;  %v3621_v26 = vld [vmem:[%s3312_s11 + $0x28] sm:$0xff] }
  0x5f   : > { %2017 = vmatpush1.bf16.msra.mxu1 %v2843_v27  ;;  %1975 = vmatprep.subr.bf16.mxu0 %v2848_v28  ;;  %v3624_v27 = vld [vmem:[%s3312_s11 + $0x68] sm:$0xff]  ;;  %v2926_v28 = vld [vmem:[%s4031_s1 + $0x454] ss:$8 sps:$4 sm:$0xff]  }
  0x60   : > { %2018 = vmatprep.subr.bf16.mxu1 %v2851_v29  ;;  %v2425_v29 = vcombine.high %v3615_v24, %v3618_v25 }
  0x62   : > { %1976 = vmatpush1.bf16.msra.mxu0 %v2846_v30  ;;  %v2929_v30 = vld [vmem:[%s4031_s1 + $0x554] ss:$8 sps:$4 sm:$0xff]  }
  0x63   : > { %2019 = vmatpush1.bf16.msra.mxu1 %v2849_v31  ;;  %1977 = vmatprep.subr.bf16.mxu0 %v2854_v32  ;;  %v2427_v31 = vcombine.high %v3621_v26, %v3624_v27  ;;  %v2924_v32 = vld [vmem:[%s4031_s1 + $0x450] ss:$8 sps:$4 sm:$0xff]  }
  0x64   : > { %2020 = vmatprep.subr.bf16.mxu1 %v2857_v33  ;;  %v2927_v33 = vld [vmem:[%s4031_s1 + $0x550] ss:$8 sps:$4 sm:$0xff]  }
  0x66   : > { %1978 = vmatpush1.bf16.msra.mxu0 %v2852_v34  ;;  %v2932_v34 = vld [vmem:[%s4031_s1 + $0x444] ss:$8 sps:$4 sm:$0xff]  }
  0x67   : > { %2021 = vmatpush1.bf16.msra.mxu1 %v2855_v35  ;;  %1979 = vmatprep.subr.bf16.mxu0 %v2860_v40  ;;  %v2935_v35 = vld [vmem:[%s4031_s1 + $0x544] ss:$8 sps:$4 sm:$0xff]   ;;  %v2936_v40 = vld [vmem:[%s4031_s1 + $0x430] ss:$8 sps:$4 sm:$0xff]  }
  0x68   : > { %2022 = vmatprep.subr.bf16.mxu1 %v2863_v42  ;;  %v2944_v42 = vld [vmem:[%s4031_s1 + $0x424] ss:$8 sps:$4 sm:$0xff]  }
  0x6a   : > { %1980 = vmatpush1.bf16.msra.mxu0 %v2858_v44  ;;  %v2942_v44 = vld [vmem:[%s4031_s1 + $0x420] ss:$8 sps:$4 sm:$0xff]  }
  0x6b   : > { %2023 = vmatpush1.bf16.msra.mxu1 %v2861_v45  ;;  %1981 = vmatprep.subr.bf16.mxu0 %v2866_v46  ;;  %v2945_v45 = vld [vmem:[%s4031_s1 + $0x520] ss:$8 sps:$4 sm:$0xff]   ;;  %v2950_v46 = vld [vmem:[%s4031_s1 + $0x414] ss:$8 sps:$4 sm:$0xff]  }
  0x6c   : > { %2024 = vmatprep.subr.bf16.mxu1 %v2869_v47  ;;  %v2953_v47 = vld [vmem:[%s4031_s1 + $0x514] ss:$8 sps:$4 sm:$0xff]  }
  0x6e   : > { %1982 = vmatpush2.bf16.msra.mxu0 %v2864_v48  ;;  %v2948_v48 = vld [vmem:[%s4031_s1 + $0x410] ss:$8 sps:$4 sm:$0xff]  }
  0x6f   : > { %2025 = vmatpush2.bf16.msra.mxu1 %v2867_v49  ;;  %1983 = vmatprep.subr.bf16.mxu0 %v2872_v50  ;;  %v2951_v49 = vld [vmem:[%s4031_s1 + $0x510] ss:$8 sps:$4 sm:$0xff]   ;;  %v2956_v50 = vld [vmem:[%s4031_s1 + $0x404] ss:$8 sps:$4 sm:$0xff]  }
  0x70   : > { %2026 = vmatprep.subr.bf16.mxu1 %v2875_v51  ;;  %v2959_v51 = vld [vmem:[%s4031_s1 + $0x504] ss:$8 sps:$4 sm:$0xff]  }
  0x72   : > { %1984 = vmatpush2.bf16.msra.mxu0 %v2870_v52  ;;  %v2954_v52 = vld [vmem:[%s4031_s1 + $0x400] ss:$8 sps:$4 sm:$0xff]  }
  0x73   : > { %2027 = vmatpush2.bf16.msra.mxu1 %v2873_v53  ;;  %1985 = vmatprep.subr.bf16.mxu0 %v2878_v54  ;;  %v2957_v53 = vld [vmem:[%s4031_s1 + $0x500] ss:$8 sps:$4 sm:$0xff]   ;;  %v2962_v54 = vld [vmem:[%s4031_s1 + $0x4f4] ss:$8 sps:$4 sm:$0xff]  }
  0x74   : > { %2028 = vmatprep.subr.bf16.mxu1 %v2881_v55  ;;  %v2965_v55 = vld [vmem:[%s4031_s1 + $0x5f4] ss:$8 sps:$4 sm:$0xff]  }
  0x76   : > { %1986 = vmatpush2.bf16.msra.mxu0 %v2876_v56  ;;  %v2960_v56 = vld [vmem:[%s4031_s1 + $0x4f0] ss:$8 sps:$4 sm:$0xff]  }
  0x77   : > { %2029 = vmatpush2.bf16.msra.mxu1 %v2879_v57  ;;  %1987 = vmatprep.subr.bf16.mxu0 %v2884_v58  ;;  %v2963_v57 = vld [vmem:[%s4031_s1 + $0x5f0] ss:$8 sps:$4 sm:$0xff]   ;;  %v2968_v58 = vld [vmem:[%s4031_s1 + $0x4e4] ss:$8 sps:$4 sm:$0xff]  }
  0x78   : > { %2030 = vmatprep.subr.bf16.mxu1 %v2887_v59  ;;  %v2971_v59 = vld [vmem:[%s4031_s1 + $0x5e4] ss:$8 sps:$4 sm:$0xff]  }
  0x7a   : > { %1988 = vmatpush2.bf16.msra.mxu0 %v2882_v60  ;;  %v2966_v60 = vld [vmem:[%s4031_s1 + $0x4e0] ss:$8 sps:$4 sm:$0xff]  }
  0x7b   : > { %2031 = vmatpush2.bf16.msra.mxu1 %v2885_v61  ;;  %1989 = vmatprep.subr.bf16.mxu0 %v2890_v62  ;;  %v2969_v61 = vld [vmem:[%s4031_s1 + $0x5e0] ss:$8 sps:$4 sm:$0xff]   ;;  %v2974_v62 = vld [vmem:[%s4031_s1 + $0x4d4] ss:$8 sps:$4 sm:$0xff]  }
  0x7c   : > { %2032 = vmatprep.subr.bf16.mxu1 %v2893_v63  ;;  %v2977_v63 = vld [vmem:[%s4031_s1 + $0x5d4] ss:$8 sps:$4 sm:$0xff]  }
  0x7e   : > { %1990 = vmatpush2.bf16.msra.mxu0 %v2888_v0  ;;  %v2972_v0 = vld [vmem:[%s4031_s1 + $0x4d0] ss:$8 sps:$4 sm:$0xff]  }
  0x7f   : > { %2033 = vmatpush2.bf16.msra.mxu1 %v2891_v1  ;;  %1991 = vmatprep.subr.bf16.mxu0 %v2896_v2  ;;  %v2975_v1 = vld [vmem:[%s4031_s1 + $0x5d0] ss:$8 sps:$4 sm:$0xff]   ;;  %v2980_v2 = vld [vmem:[%s4031_s1 + $0x4c4] ss:$8 sps:$4 sm:$0xff]  }
  0x80   : > { %2034 = vmatprep.subr.bf16.mxu1 %v2899_v3  ;;  %v2983_v3 = vld [vmem:[%s4031_s1 + $0x5c4] ss:$8 sps:$4 sm:$0xff]  }
  0x82   : > { %1992 = vmatpush2.bf16.msra.mxu0 %v2894_v4  ;;  %v2978_v4 = vld [vmem:[%s4031_s1 + $0x4c0] ss:$8 sps:$4 sm:$0xff]  }
  0x83   : > { %2035 = vmatpush2.bf16.msra.mxu1 %v2897_v5  ;;  %1993 = vmatprep.subr.bf16.mxu0 %v2902_v6  ;;  %v2981_v5 = vld [vmem:[%s4031_s1 + $0x5c0] ss:$8 sps:$4 sm:$0xff]   ;;  %v2986_v6 = vld [vmem:[%s4031_s1 + $0x4b4] ss:$8 sps:$4 sm:$0xff]  }
  0x84   : > { %2036 = vmatprep.subr.bf16.mxu1 %v2905_v7  ;;  %v2989_v7 = vld [vmem:[%s4031_s1 + $0x5b4] ss:$8 sps:$4 sm:$0xff]  }
  0x86   : > { %1994 = vmatpush2.bf16.msra.mxu0 %v2900_v8  ;;  %v2984_v8 = vld [vmem:[%s4031_s1 + $0x4b0] ss:$8 sps:$4 sm:$0xff]  }
  0x87   : > { %2037 = vmatpush2.bf16.msra.mxu1 %v2903_v9  ;;  %1995 = vmatprep.subr.bf16.mxu0 %v2908_v10  ;;  %v2987_v9 = vld [vmem:[%s4031_s1 + $0x5b0] ss:$8 sps:$4 sm:$0xff]   ;;  %v2992_v10 = vld [vmem:[%s4031_s1 + $0x4a4] ss:$8 sps:$4 sm:$0xff]  }
  0x88   : > { %2038 = vmatprep.subr.bf16.mxu1 %v2911_v11  ;;  %v2995_v11 = vld [vmem:[%s4031_s1 + $0x5a4] ss:$8 sps:$4 sm:$0xff]  }
  0x8a   : > { %1996 = vmatpush2.bf16.msra.mxu0 %v2906_v12  ;;  %v2990_v12 = vld [vmem:[%s4031_s1 + $0x4a0] ss:$8 sps:$4 sm:$0xff]  }
  0x8b   : > { %2039 = vmatpush2.bf16.msra.mxu1 %v2909_v13  ;;  %2051 = vmatprep.subr.bf16.mxu0 %v2914_v14  ;;  %v2993_v13 = vld [vmem:[%s4031_s1 + $0x5a0] ss:$8 sps:$4 sm:$0xff]   ;;  %v2998_v14 = vld [vmem:[%s4031_s1 + $0x494] ss:$8 sps:$4 sm:$0xff]  }
  0x8c   : > { %2094 = vmatprep.subr.bf16.mxu1 %v2917_v15  ;;  %v3001_v15 = vld [vmem:[%s4031_s1 + $0x594] ss:$8 sps:$4 sm:$0xff]  }
  0x8d   : > { %1998 = vmatmul.mubr.bf16.vlgmr.msra.gmra.mxu0 %v2420_v16  ;;  %v2996_v16 = vld [vmem:[%s4031_s1 + $0x490] ss:$8 sps:$4 sm:$0xff]  }
  0x8e   : > { %2041 = vmatmul.mubr.bf16.vlgmr.msra.gmra.mxu1 %v2422_v17  ;;  %2052 = vmatpush1.bf16.msra.mxu0 %v2912_v18  ;;  %v2999_v17 = vld [vmem:[%s4031_s1 + $0x590] ss:$8 sps:$4 sm:$0xff]   ;;  %v3004_v18 = vld [vmem:[%s4031_s1 + $0x484] ss:$8 sps:$4 sm:$0xff]  }
  0x8f   : > { %2095 = vmatpush1.bf16.msra.mxu1 %v2915_v19  ;;  %2053 = vmatprep.subr.bf16.mxu0 %v2920_v20  ;;  %v3007_v19 = vld [vmem:[%s4031_s1 + $0x584] ss:$8 sps:$4 sm:$0xff]   ;;  %v3002_v20 = vld [vmem:[%s4031_s1 + $0x480] ss:$8 sps:$4 sm:$0xff]  }
  0x90   : > { %2096 = vmatprep.subr.bf16.mxu1 %v2923_v21  ;;  %2083 = vmatprep.mubr.bf16.mxu0 %v2425_v29  ;;  %v3005_v21 = vld [vmem:[%s4031_s1 + $0x580] ss:$8 sps:$4 sm:$0xff]   ;;  %v2424_v29 = vcombine.low %v3615_v24, %v3618_v25  ;;  %v3016_v24 = vld [vmem:[%s4031_s1 + $0x664] ss:$8 sps:$4 sm:$0xff]  }
  0x91   : > { %2126 = vmatprep.mubr.bf16.mxu1 %v2427_v31  ;;  %v3812_v31 = vld [vmem:[%s3312_s11 + $0x70] sm:$0xff]  ;;  %v3019_v25 = vld [vmem:[%s4031_s1 + $0x764] ss:$8 sps:$4 sm:$0xff]  }
  0x92   : > { %2054 = vmatpush1.bf16.msra.mxu0 %v2918_v22  ;;  %v3010_v22 = vld [vmem:[%s4031_s1 + $0x674] ss:$8 sps:$4 sm:$0xff]  }
  0x93   : > { %2097 = vmatpush1.bf16.msra.mxu1 %v2921_v23  ;;  %2055 = vmatprep.subr.bf16.mxu0 %v2926_v28  ;;  %v3013_v23 = vld [vmem:[%s4031_s1 + $0x774] ss:$8 sps:$4 sm:$0xff]  }
  0x94   : > { %2098 = vmatprep.subr.bf16.mxu1 %v2929_v30  ;;  %v3805_v28 = vld [vmem:[%s3312_s11 + $0x30] sm:$0xff]  ;;  %v2426_v30 = vcombine.low %v3621_v26, %v3624_v27 }
  0x95   : > { %v2429_v26 = vcombine.high %v3805_v28, %v3812_v31 }
  0x96   : > { %2056 = vmatpush1.bf16.msra.mxu0 %v2924_v32  ;;  %v3815_v32 = vld [vmem:[%s3312_s11 + $0x38] sm:$0xff] }
  0x97   : > { %2099 = vmatpush1.bf16.msra.mxu1 %v2927_v33  ;;  %2057 = vmatprep.subr.bf16.mxu0 %v2932_v34  ;;  %v3818_v33 = vld [vmem:[%s3312_s11 + $0x78] sm:$0xff] }
  0x98   : > { %2100 = vmatprep.subr.bf16.mxu1 %v2935_v35  ;;  %v3008_v34 = vld [vmem:[%s4031_s1 + $0x670] ss:$8 sps:$4 sm:$0xff]   ;;  %v2431_v27 = vcombine.high %v3815_v32, %v3818_v33 }
  0x99   : > { %v3011_v35 = vld [vmem:[%s4031_s1 + $0x770] ss:$8 sps:$4 sm:$0xff]  }
  0x9a   : > { %2058 = vmatpush1.bf16.msra.mxu0 %v2930_v36  ;;  %v3014_v36 = vld [vmem:[%s4031_s1 + $0x660] ss:$8 sps:$4 sm:$0xff]  }
  0x9b   : > { %2101 = vmatpush1.bf16.msra.mxu1 %v2933_v37  ;;  %2059 = vmatprep.subr.bf16.mxu0 %v2938_v38  ;;  %v3017_v37 = vld [vmem:[%s4031_s1 + $0x760] ss:$8 sps:$4 sm:$0xff]   ;;  %v3022_v38 = vld [vmem:[%s4031_s1 + $0x654] ss:$8 sps:$4 sm:$0xff]  }
  0x9c   : > { %2102 = vmatprep.subr.bf16.mxu1 %v2941_v39  ;;  %v3025_v39 = vld [vmem:[%s4031_s1 + $0x754] ss:$8 sps:$4 sm:$0xff]  }
  0x9e   : > { %2060 = vmatpush1.bf16.msra.mxu0 %v2936_v40  ;;  %v3020_v40 = vld [vmem:[%s4031_s1 + $0x650] ss:$8 sps:$4 sm:$0xff]  }
  0x9f   : > { %2103 = vmatpush1.bf16.msra.mxu1 %v2939_v41  ;;  %2061 = vmatprep.subr.bf16.mxu0 %v2944_v42  ;;  %v3023_v41 = vld [vmem:[%s4031_s1 + $0x750] ss:$8 sps:$4 sm:$0xff]   ;;  %v3028_v42 = vld [vmem:[%s4031_s1 + $0x644] ss:$8 sps:$4 sm:$0xff]  }
  0xa0   : > { %2104 = vmatprep.subr.bf16.mxu1 %v2947_v43  ;;  %v3031_v43 = vld [vmem:[%s4031_s1 + $0x744] ss:$8 sps:$4 sm:$0xff]  }
  0xa2   : > { %2062 = vmatpush1.bf16.msra.mxu0 %v2942_v44  ;;  %v3026_v44 = vld [vmem:[%s4031_s1 + $0x640] ss:$8 sps:$4 sm:$0xff]  }
  0xa3   : > { %2105 = vmatpush1.bf16.msra.mxu1 %v2945_v45  ;;  %2063 = vmatprep.subr.bf16.mxu0 %v2950_v46  ;;  %v3029_v45 = vld [vmem:[%s4031_s1 + $0x740] ss:$8 sps:$4 sm:$0xff]   ;;  %v3034_v46 = vld [vmem:[%s4031_s1 + $0x634] ss:$8 sps:$4 sm:$0xff]  }
  0xa4   : > { %2106 = vmatprep.subr.bf16.mxu1 %v2953_v47  ;;  %v3037_v47 = vld [vmem:[%s4031_s1 + $0x734] ss:$8 sps:$4 sm:$0xff]  }
  0xa6   : > { %2064 = vmatpush1.bf16.msra.mxu0 %v2948_v48  ;;  %v3032_v48 = vld [vmem:[%s4031_s1 + $0x630] ss:$8 sps:$4 sm:$0xff]  }
  0xa7   : > { %2107 = vmatpush1.bf16.msra.mxu1 %v2951_v49  ;;  %2065 = vmatprep.subr.bf16.mxu0 %v2956_v50  ;;  %v3035_v49 = vld [vmem:[%s4031_s1 + $0x730] ss:$8 sps:$4 sm:$0xff]   ;;  %v3040_v50 = vld [vmem:[%s4031_s1 + $0x624] ss:$8 sps:$4 sm:$0xff]  }
  0xa8   : > { %2108 = vmatprep.subr.bf16.mxu1 %v2959_v51  ;;  %v3043_v51 = vld [vmem:[%s4031_s1 + $0x724] ss:$8 sps:$4 sm:$0xff]  }
  0xaa   : > { %2066 = vmatpush1.bf16.msra.mxu0 %v2954_v52  ;;  %v3038_v52 = vld [vmem:[%s4031_s1 + $0x620] ss:$8 sps:$4 sm:$0xff]  }
  0xab   : > { %2109 = vmatpush1.bf16.msra.mxu1 %v2957_v53  ;;  %2067 = vmatprep.subr.bf16.mxu0 %v2962_v54  ;;  %v3041_v53 = vld [vmem:[%s4031_s1 + $0x720] ss:$8 sps:$4 sm:$0xff]   ;;  %v3046_v54 = vld [vmem:[%s4031_s1 + $0x614] ss:$8 sps:$4 sm:$0xff]  }
  0xac   : > { %2110 = vmatprep.subr.bf16.mxu1 %v2965_v55  ;;  %v3049_v55 = vld [vmem:[%s4031_s1 + $0x714] ss:$8 sps:$4 sm:$0xff]  }
  0xae   : > { %2068 = vmatpush2.bf16.msra.mxu0 %v2960_v56  ;;  %v3044_v56 = vld [vmem:[%s4031_s1 + $0x610] ss:$8 sps:$4 sm:$0xff]  }
  0xaf   : > { %2111 = vmatpush2.bf16.msra.mxu1 %v2963_v57  ;;  %2069 = vmatprep.subr.bf16.mxu0 %v2968_v58  ;;  %v3047_v57 = vld [vmem:[%s4031_s1 + $0x710] ss:$8 sps:$4 sm:$0xff]   ;;  %v3052_v58 = vld [vmem:[%s4031_s1 + $0x604] ss:$8 sps:$4 sm:$0xff]  }
  0xb0   : > { %2112 = vmatprep.subr.bf16.mxu1 %v2971_v59  ;;  %v3055_v59 = vld [vmem:[%s4031_s1 + $0x704] ss:$8 sps:$4 sm:$0xff]  }
  0xb2   : > { %2070 = vmatpush2.bf16.msra.mxu0 %v2966_v60  ;;  %v3050_v60 = vld [vmem:[%s4031_s1 + $0x600] ss:$8 sps:$4 sm:$0xff]  }
  0xb3   : > { %2113 = vmatpush2.bf16.msra.mxu1 %v2969_v61  ;;  %2071 = vmatprep.subr.bf16.mxu0 %v2974_v62  ;;  %v3053_v61 = vld [vmem:[%s4031_s1 + $0x700] ss:$8 sps:$4 sm:$0xff]   ;;  %v3058_v62 = vld [vmem:[%s4031_s1 + $0x6f4] ss:$8 sps:$4 sm:$0xff]  }
  0xb4   : > { %2114 = vmatprep.subr.bf16.mxu1 %v2977_v63  ;;  %v3061_v63 = vld [vmem:[%s4031_s1 + $0x7f4] ss:$8 sps:$4 sm:$0xff]  }
  0xb6   : > { %2072 = vmatpush2.bf16.msra.mxu0 %v2972_v0  ;;  %v3056_v0 = vld [vmem:[%s4031_s1 + $0x6f0] ss:$8 sps:$4 sm:$0xff]  }
  0xb7   : > { %2115 = vmatpush2.bf16.msra.mxu1 %v2975_v1  ;;  %2073 = vmatprep.subr.bf16.mxu0 %v2980_v2  ;;  %v3059_v1 = vld [vmem:[%s4031_s1 + $0x7f0] ss:$8 sps:$4 sm:$0xff]   ;;  %v3064_v2 = vld [vmem:[%s4031_s1 + $0x6e4] ss:$8 sps:$4 sm:$0xff]  }
  0xb8   : > { %2116 = vmatprep.subr.bf16.mxu1 %v2983_v3  ;;  %v3067_v3 = vld [vmem:[%s4031_s1 + $0x7e4] ss:$8 sps:$4 sm:$0xff]  }
  0xba   : > { %2074 = vmatpush2.bf16.msra.mxu0 %v2978_v4  ;;  %v3062_v4 = vld [vmem:[%s4031_s1 + $0x6e0] ss:$8 sps:$4 sm:$0xff]  }
  0xbb   : > { %2117 = vmatpush2.bf16.msra.mxu1 %v2981_v5  ;;  %2075 = vmatprep.subr.bf16.mxu0 %v2986_v6  ;;  %v3065_v5 = vld [vmem:[%s4031_s1 + $0x7e0] ss:$8 sps:$4 sm:$0xff]   ;;  %v3070_v6 = vld [vmem:[%s4031_s1 + $0x6d4] ss:$8 sps:$4 sm:$0xff]  }
  0xbc   : > { %2118 = vmatprep.subr.bf16.mxu1 %v2989_v7  ;;  %v3073_v7 = vld [vmem:[%s4031_s1 + $0x7d4] ss:$8 sps:$4 sm:$0xff]  }
  0xbe   : > { %2076 = vmatpush2.bf16.msra.mxu0 %v2984_v8  ;;  %v3068_v8 = vld [vmem:[%s4031_s1 + $0x6d0] ss:$8 sps:$4 sm:$0xff]  }
  0xbf   : > { %2119 = vmatpush2.bf16.msra.mxu1 %v2987_v9  ;;  %2077 = vmatprep.subr.bf16.mxu0 %v2992_v10  ;;  %v3071_v9 = vld [vmem:[%s4031_s1 + $0x7d0] ss:$8 sps:$4 sm:$0xff]   ;;  %v3076_v10 = vld [vmem:[%s4031_s1 + $0x6c4] ss:$8 sps:$4 sm:$0xff]  }
  0xc0   : > { %2120 = vmatprep.subr.bf16.mxu1 %v2995_v11  ;;  %v3079_v11 = vld [vmem:[%s4031_s1 + $0x7c4] ss:$8 sps:$4 sm:$0xff]  }
  0xc2   : > { %2078 = vmatpush2.bf16.msra.mxu0 %v2990_v12  ;;  %v3074_v12 = vld [vmem:[%s4031_s1 + $0x6c0] ss:$8 sps:$4 sm:$0xff]  }
  0xc3   : > { %2121 = vmatpush2.bf16.msra.mxu1 %v2993_v13  ;;  %2079 = vmatprep.subr.bf16.mxu0 %v2998_v14  ;;  %v3077_v13 = vld [vmem:[%s4031_s1 + $0x7c0] ss:$8 sps:$4 sm:$0xff]   ;;  %v3082_v14 = vld [vmem:[%s4031_s1 + $0x6b4] ss:$8 sps:$4 sm:$0xff]  }
  0xc4   : > { %2122 = vmatprep.subr.bf16.mxu1 %v3001_v15  ;;  %v3085_v15 = vld [vmem:[%s4031_s1 + $0x7b4] ss:$8 sps:$4 sm:$0xff]  }
  0xc6   : > { %2080 = vmatpush2.bf16.msra.mxu0 %v2996_v16  ;;  %v3080_v16 = vld [vmem:[%s4031_s1 + $0x6b0] ss:$8 sps:$4 sm:$0xff]  }
  0xc7   : > { %2123 = vmatpush2.bf16.msra.mxu1 %v2999_v17  ;;  %2081 = vmatprep.subr.bf16.mxu0 %v3004_v18  ;;  %v3083_v17 = vld [vmem:[%s4031_s1 + $0x7b0] ss:$8 sps:$4 sm:$0xff]   ;;  %v3088_v18 = vld [vmem:[%s4031_s1 + $0x6a4] ss:$8 sps:$4 sm:$0xff]  }
  0xc8   : > { %2124 = vmatprep.subr.bf16.mxu1 %v3007_v19  ;;  %v3091_v19 = vld [vmem:[%s4031_s1 + $0x7a4] ss:$8 sps:$4 sm:$0xff]  }
  0xca   : > { %2082 = vmatpush2.bf16.msra.mxu0 %v3002_v20  ;;  %v3086_v20 = vld [vmem:[%s4031_s1 + $0x6a0] ss:$8 sps:$4 sm:$0xff]  }
  0xcb   : > { %2125 = vmatpush2.bf16.msra.mxu1 %v3005_v21  ;;  %2137 = vmatprep.subr.bf16.mxu0 %v3010_v22  ;;  %v3089_v21 = vld [vmem:[%s4031_s1 + $0x7a0] ss:$8 sps:$4 sm:$0xff]   ;;  %v3094_v22 = vld [vmem:[%s4031_s1 + $0x694] ss:$8 sps:$4 sm:$0xff]  }
  0xcc   : > { %2180 = vmatprep.subr.bf16.mxu1 %v3013_v23  ;;  %v3097_v23 = vld [vmem:[%s4031_s1 + $0x794] ss:$8 sps:$4 sm:$0xff]  }
  0xcd   : > { %2084 = vmatmul.mubr.bf16.vlgmr.msra.gmra.mxu0 %v2424_v29  ;;  %v3092_v29 = vld [vmem:[%s4031_s1 + $0x690] ss:$8 sps:$4 sm:$0xff]  }
  0xce   : > { %2127 = vmatmul.mubr.bf16.vlgmr.msra.gmra.mxu1 %v2426_v30  ;;  %2138 = vmatpush1.bf16.msra.mxu0 %v3008_v34  ;;  %v3095_v30 = vld [vmem:[%s4031_s1 + $0x790] ss:$8 sps:$4 sm:$0xff]   ;;  %v3100_v34 = vld [vmem:[%s4031_s1 + $0x684] ss:$8 sps:$4 sm:$0xff]  }
  0xcf   : > { %2181 = vmatpush1.bf16.msra.mxu1 %v3011_v35  ;;  %2139 = vmatprep.subr.bf16.mxu0 %v3016_v24  ;;  %v3103_v35 = vld [vmem:[%s4031_s1 + $0x784] ss:$8 sps:$4 sm:$0xff]   ;;  %v3098_v24 = vld [vmem:[%s4031_s1 + $0x680] ss:$8 sps:$4 sm:$0xff]  }
  0xd0   : > { %2182 = vmatprep.subr.bf16.mxu1 %v3019_v25  ;;  %2169 = vmatprep.mubr.bf16.mxu0 %v2429_v26  ;;  %v3101_v25 = vld [vmem:[%s4031_s1 + $0x780] ss:$8 sps:$4 sm:$0xff]   ;;  %v2428_v26 = vcombine.low %v3805_v28, %v3812_v31 }
  0xd1   : > { %2212 = vmatprep.mubr.bf16.mxu1 %v2431_v27  ;;  %v2430_v27 = vcombine.low %v3815_v32, %v3818_v33  ;;  %v507_v32 = vld [vmem:[%s4032_s2] sm:$0x3] }
  0xd2   : > { %2140 = vmatpush1.bf16.msra.mxu0 %v3014_v36 }
  0xd3   : > { %2183 = vmatpush1.bf16.msra.mxu1 %v3017_v37  ;;  %2141 = vmatprep.subr.bf16.mxu0 %v3022_v38 }
  0xd4   : > { %2184 = vmatprep.subr.bf16.mxu1 %v3025_v39 }
  0xd6   : > { %2142 = vmatpush1.bf16.msra.mxu0 %v3020_v40 }
  0xd7   : > { %2185 = vmatpush1.bf16.msra.mxu1 %v3023_v41  ;;  %2143 = vmatprep.subr.bf16.mxu0 %v3028_v42  ;;  %v509_v42 = vlaneseq }
  0xd8   : > { %2186 = vmatprep.subr.bf16.mxu1 %v3031_v43 }
  0xda   : > { %2144 = vmatpush1.bf16.msra.mxu0 %v3026_v44 }
  0xdb   : > { %2187 = vmatpush1.bf16.msra.mxu1 %v3029_v45  ;;  %2145 = vmatprep.subr.bf16.mxu0 %v3034_v46 }
  0xdc   : > { %2188 = vmatprep.subr.bf16.mxu1 %v3037_v47  ;;  %v510_v47 = vshrl.u32 %v509_v42, 7 }
  0xde   : > { %2146 = vmatpush1.bf16.msra.mxu0 %v3032_v48  ;;  %v511_v48 = vsub.s32 0, %v510_v47  ;;  %v515_v33 = vsub.s32 1, %v510_v47 }
  0xdf   : > { %2189 = vmatpush1.bf16.msra.mxu1 %v3035_v49  ;;  %2147 = vmatprep.subr.bf16.mxu0 %v3040_v50 }
  0xe0   : > { %2190 = vmatprep.subr.bf16.mxu1 %v3043_v51  ;;  %v512_v51 = vrot.slane %v507_v32, %v511_v48 }
  0xe2   : > { %2148 = vmatpush1.bf16.msra.mxu0 %v3038_v52  ;;  %v516_v52 = vrot.slane %v507_v32, %v515_v33 }
  0xe3   : > { %2191 = vmatpush1.bf16.msra.mxu1 %v3041_v53  ;;  %2149 = vmatprep.subr.bf16.mxu0 %v3046_v54 }
  0xe4   : > { %2192 = vmatprep.subr.bf16.mxu1 %v3049_v55 }
  0xe6   : > { %2150 = vmatpush1.bf16.msra.mxu0 %v3044_v56 }
  0xe7   : > { %2193 = vmatpush1.bf16.msra.mxu1 %v3047_v57  ;;  %2151 = vmatprep.subr.bf16.mxu0 %v3052_v58 }
  0xe8   : > { %2194 = vmatprep.subr.bf16.mxu1 %v3055_v59 }
  0xea   : > { %2152 = vmatpush1.bf16.msra.mxu0 %v3050_v60 }
  0xeb   : > { %2195 = vmatpush1.bf16.msra.mxu1 %v3053_v61  ;;  %2153 = vmatprep.subr.bf16.mxu0 %v3058_v62 }
  0xec   : > { %2196 = vmatprep.subr.bf16.mxu1 %v3061_v63 }
  0xee   : > { %2154 = vmatpush2.bf16.msra.mxu0 %v3056_v0 }
  0xef   : > { %2197 = vmatpush2.bf16.msra.mxu1 %v3059_v1  ;;  %2155 = vmatprep.subr.bf16.mxu0 %v3064_v2 }
  0xf0   : > { %2198 = vmatprep.subr.bf16.mxu1 %v3067_v3 }
  0xf2   : > { %2156 = vmatpush2.bf16.msra.mxu0 %v3062_v4 }
  0xf3   : > { %2199 = vmatpush2.bf16.msra.mxu1 %v3065_v5  ;;  %2157 = vmatprep.subr.bf16.mxu0 %v3070_v6 }
  0xf4   : > { %2200 = vmatprep.subr.bf16.mxu1 %v3073_v7 }
  0xf6   : > { %2158 = vmatpush2.bf16.msra.mxu0 %v3068_v8 }
  0xf7   : > { %2201 = vmatpush2.bf16.msra.mxu1 %v3071_v9  ;;  %2159 = vmatprep.subr.bf16.mxu0 %v3076_v10 }
  0xf8   : > { %2202 = vmatprep.subr.bf16.mxu1 %v3079_v11 }
  0xfa   : > { %2160 = vmatpush2.bf16.msra.mxu0 %v3074_v12 }
  0xfb   : > { %2203 = vmatpush2.bf16.msra.mxu1 %v3077_v13  ;;  %2161 = vmatprep.subr.bf16.mxu0 %v3082_v14 }
  0xfc   : > { %2204 = vmatprep.subr.bf16.mxu1 %v3085_v15 }
  0xfe   : > { %2162 = vmatpush2.bf16.msra.mxu0 %v3080_v16 }
  0xff   : > { %2205 = vmatpush2.bf16.msra.mxu1 %v3083_v17  ;;  %2163 = vmatprep.subr.bf16.mxu0 %v3088_v18 }
 0x100   : > { %2206 = vmatprep.subr.bf16.mxu1 %v3091_v19 }
 0x102   : > { %2164 = vmatpush2.bf16.msra.mxu0 %v3086_v20 }
 0x103   : > { %2207 = vmatpush2.bf16.msra.mxu1 %v3089_v21  ;;  %2165 = vmatprep.subr.bf16.mxu0 %v3094_v22 }
 0x104   : > { %2208 = vmatprep.subr.bf16.mxu1 %v3097_v23 }
 0x106   : > { %2166 = vmatpush2.bf16.msra.mxu0 %v3092_v29 }
 0x107   : > { %2209 = vmatpush2.bf16.msra.mxu1 %v3095_v30  ;;  %2167 = vmatprep.subr.bf16.mxu0 %v3100_v34 }
 0x108   : > { %2210 = vmatprep.subr.bf16.mxu1 %v3103_v35 }
 0x10a   : > { %2168 = vmatpush2.bf16.msra.mxu0 %v3098_v24 }
 0x10b   : > { %2211 = vmatpush2.bf16.msra.mxu1 %v3101_v25 }
 0x10d   : > { %2170 = vmatmul.mubr.bf16.vlgmr.msra.gmra.mxu0 %v2428_v26  ;;  %v1913_v36 = vpop.f32.mrf.mxu0 }
 0x10e   : > { %2213 = vmatmul.mubr.bf16.vlgmr.msra.gmra.mxu1 %v2430_v27  ;;  %v1956_v37 = vpop.f32.mrf.mxu1  ;;  %v1914_v55 = vadd.f32 %v1913_v36, %v512_v51 }
 0x10f   : > { %v1915_v38 = vpop.f32.mrf.mxu0 }
 0x110   : > { %v1958_v39 = vpop.f32.mrf.mxu1  ;;  %v1916_v58 = vadd.f32 %v1915_v38, %v516_v52  ;;  %v1957_v60 = vadd.f32 %v1956_v37, %v1914_v55 }
 0x111   : > { %v1917_v40 = vpop.f32.mrf.mxu0 }
 0x112   : > { %v1960_v41 = vpop.f32.mrf.mxu1  ;;  %v1918_v59 = vadd.f32 %v1917_v40, %v512_v51  ;;  %v1959_v0 = vadd.f32 %v1958_v39, %v1916_v58 }
 0x113   : > { %v1919_v43 = vpop.f32.mrf.mxu0 }
 0x114   : > { %v1962_v44 = vpop.f32.mrf.mxu1  ;;  %v1920_v61 = vadd.f32 %v1919_v43, %v516_v52  ;;  %v1961_v1 = vadd.f32 %v1960_v41, %v1918_v59 }
 0x116   : > { %v1963_v3 = vadd.f32 %v1962_v44, %v1920_v61 }
 0x14d   : > { %v1999_v45 = vpop.f32.mrf.mxu0 }
 0x14e   : > { %v2042_v46 = vpop.f32.mrf.mxu1  ;;  %v2000_v2 = vadd.f32 %v1999_v45, %v1957_v60 }
 0x14f   : > { %v2001_v28 = vpop.f32.mrf.mxu0 }
 0x150   : > { %v2044_v31 = vpop.f32.mrf.mxu1  ;;  %v2002_v4 = vadd.f32 %v2001_v28, %v1959_v0  ;;  %v2043_v8 = vadd.f32 %v2042_v46, %v2000_v2 }
 0x151   : > { %v2003_v49 = vpop.f32.mrf.mxu0 }
 0x152   : > { %v2046_v50 = vpop.f32.mrf.mxu1  ;;  %v2004_v5 = vadd.f32 %v2003_v49, %v1961_v1  ;;  %v2045_v10 = vadd.f32 %v2044_v31, %v2002_v4 }
 0x153   : > { %v2005_v53 = vpop.f32.mrf.mxu0 }
 0x154   : > { %v2048_v54 = vpop.f32.mrf.mxu1  ;;  %v2006_v9 = vadd.f32 %v2005_v53, %v1963_v3  ;;  %v2047_v11 = vadd.f32 %v2046_v50, %v2004_v5 }
 0x156   : > { %v2049_v15 = vadd.f32 %v2048_v54, %v2006_v9 }
 0x18d   : > { %v2085_v56 = vpop.f32.mrf.mxu0 }
 0x18e   : > { %v2128_v57 = vpop.f32.mrf.mxu1  ;;  %v2086_v12 = vadd.f32 %v2085_v56, %v2043_v8 }
 0x18f   : > { %v2087_v62 = vpop.f32.mrf.mxu0 }
 0x190   : > { %v2130_v63 = vpop.f32.mrf.mxu1  ;;  %v2088_v16 = vadd.f32 %v2087_v62, %v2045_v10  ;;  %v2129_v20 = vadd.f32 %v2128_v57, %v2086_v12 }
 0x191   : > { %v2089_v6 = vpop.f32.mrf.mxu0 }
 0x192   : > { %v2132_v7 = vpop.f32.mrf.mxu1  ;;  %v2090_v17 = vadd.f32 %v2089_v6, %v2047_v11  ;;  %v2131_v29 = vadd.f32 %v2130_v63, %v2088_v16 }
 0x193   : > { %v2091_v13 = vpop.f32.mrf.mxu0 }
 0x194   : > { %v2134_v14 = vpop.f32.mrf.mxu1  ;;  %v2092_v21 = vadd.f32 %v2091_v13, %v2049_v15  ;;  %v2133_v30 = vadd.f32 %v2132_v7, %v2090_v17 }
 0x196   : > { %v2135_v25 = vadd.f32 %v2134_v14, %v2092_v21 }
 0x1cd   : > { %v2171_v18 = vpop.f32.mrf.mxu0 }
 0x1ce   : > { %v2214_v19 = vpop.f32.mrf.mxu1  ;;  %v2172_v34 = vadd.f32 %v2171_v18, %v2129_v20 }
 0x1cf   : > { %v2173_v22 = vpop.f32.mrf.mxu0 }
 0x1d0   : > { %v2216_v23 = vpop.f32.mrf.mxu1  ;;  %v2174_v26 = vadd.f32 %v2173_v22, %v2131_v29  ;;  %v2215_v37 = vadd.f32 %v2214_v19, %v2172_v34 }
 0x1d1   : > { %v2175_v35 = vpop.f32.mrf.mxu0 }
 0x1d2   : > { %v2218_v24 = vpop.f32.mrf.mxu1  ;;  %v2176_v27 = vadd.f32 %v2175_v35, %v2133_v30  ;;  %v2217_v41 = vadd.f32 %v2216_v23, %v2174_v26 }
 0x1d3   : > { %v2177_v36 = vpop.f32.mrf.mxu0 }
 0x1d4   : > { %v2219_v38 = vadd.f32 %v2218_v24, %v2176_v27  ;;  %v2178_v39 = vadd.f32 %v2177_v36, %v2135_v25  ;;  %v2220_v40 = vpop.f32.mrf.mxu1 }
 0x1d6   : > { %v2223_v42 = vadd.f32 %v2219_v38, %v2215_v37  ;;  %v2221_v43 = vadd.f32 %v2220_v40, %v2178_v39 }
 0x1d8   : > { %v2224_v44 = vrot.slane %v2223_v42, 4  ;;  %v2230_v45 = vadd.f32 %v2221_v43, %v2217_v41 }
 0x1da   : > { %v2225_v46 = vadd.f32 %v2224_v44, %v2223_v42  ;;  %v2231_v47 = vrot.slane %v2230_v45, 4 }
 0x1dc   : > { %v2226_v28 = vrot.slane %v2225_v46, 2  ;;  %v2232_v31 = vadd.f32 %v2231_v47, %v2230_v45 }
 0x1de   : > { %v2227_v48 = vadd.f32 %v2226_v28, %v2225_v46  ;;  %v2233_v32 = vrot.slane %v2232_v31, 2 }
 0x1e0   : > { %v2228_v33 = vrot.slane %v2227_v48, 1  ;;  %v2234_v49 = vadd.f32 %v2233_v32, %v2232_v31 }
 0x1e2   : > { %v2229_v50 = vadd.f32 %v2228_v33, %v2227_v48  ;;  %v2235_v51 = vrot.slane %v2234_v49, 1 }
 0x1e4   : > { %v2237_v52 = vmul.f32 0.0625, %v2229_v50  ;;  %v2236_v53 = vadd.f32 %v2235_v51, %v2234_v49 }
 0x1e6   : > { %v2239_v54 = vsub.f32 %v2215_v37, %v2237_v52  ;;  %v2241_v55 = vsub.f32 %v2219_v38, %v2237_v52  ;;  %v2238_v56 = vmul.f32 0.0625, %v2236_v53 }
 0x1e8   : > { %v2243_v57 = vmul.f32 %v2239_v54, %v2239_v54  ;;  %v2245_v58 = vmul.f32 %v2241_v55, %v2241_v55  ;;  %v2240_v59 = vsub.f32 %v2217_v41, %v2238_v56  ;;  %v2242_v60 = vsub.f32 %v2221_v43, %v2238_v56 }
 0x1ea   : > { %v2247_v61 = vadd.f32 %v2245_v58, %v2243_v57  ;;  %v2244_v62 = vmul.f32 %v2240_v59, %v2240_v59  ;;  %v2246_v63 = vmul.f32 %v2242_v60, %v2242_v60 }
 0x1ec   : > { %v2248_v0 = vrot.slane %v2247_v61, 4  ;;  %v2254_v1 = vadd.f32 %v2246_v63, %v2244_v62 }
 0x1ee   : > { %v2249_v2 = vadd.f32 %v2248_v0, %v2247_v61  ;;  %v2255_v3 = vrot.slane %v2254_v1, 4 }
 0x1f0   : > { %v2250_v4 = vrot.slane %v2249_v2, 2  ;;  %v2256_v5 = vadd.f32 %v2255_v3, %v2254_v1 }
 0x1f2   : > { %v2251_v6 = vadd.f32 %v2250_v4, %v2249_v2  ;;  %v2257_v7 = vrot.slane %v2256_v5, 2 }
 0x1f4   : > { %v2252_v8 = vrot.slane %v2251_v6, 1  ;;  %v2258_v9 = vadd.f32 %v2257_v7, %v2256_v5 }
 0x1f6   : > { %v2253_v10 = vadd.f32 %v2252_v8, %v2251_v6  ;;  %v2259_v11 = vrot.slane %v2258_v9, 1 }
 0x1f8   : > { %v2261_v12 = vmul.f32 0.0625, %v2253_v10  ;;  %v2260_v13 = vadd.f32 %v2259_v11, %v2258_v9 }
 0x1fa   : > { %v2263_v14 = vadd.f32 1e-05, %v2261_v12  ;;  %v2262_v15 = vmul.f32 0.0625, %v2260_v13 }
 0x1fc   : > { %3104 = vrsqrt.f32 %v2263_v14  ;;  %v2264_v16 = vadd.f32 1e-05, %v2262_v15 }
 0x1fe   : > { %3106 = vrsqrt.f32 %v2264_v16 }
 0x209   : > { %v3105_v17 = vpop.eup %3104 }
 0x20a   : > { %v2267_v18 = vmul.f32 %v3105_v17, %v2239_v54  ;;  %v2269_v19 = vmul.f32 %v3105_v17, %v2241_v55 }
 0x20b   : > { %v3107_v20 = vpop.eup %3106 }
 0x20c   : > { %v2275_v21 = vmul.f32 0.2, %v2267_v18  ;;  %v2277_v22 = vmul.f32 0.2, %v2269_v19  ;;  %v2268_v23 = vmul.f32 %v3107_v20, %v2240_v59  ;;  %v2270_v29 = vmul.f32 %v3107_v20, %v2242_v60 }
 0x20d   : > { %vm2271_vm0 = vcmp.ge.f32.partialorder %v2267_v18, 0.0  ;;  %vm2273_vm1 = vcmp.ge.f32.partialorder %v2269_v19, 0.0 }
 0x20e   : > { %vm2272_vm2 = vcmp.ge.f32.partialorder %v2268_v23, 0.0  ;;  %vm2274_vm3 = vcmp.ge.f32.partialorder %v2270_v29, 0.0  ;;  %v2276_v30 = vmul.f32 0.2, %v2268_v23  ;;  %v2278_v34 = vmul.f32 0.2, %v2270_v29 }
 0x20f   : > { %v2279_v35 = vsel %vm2271_vm0, %v2267_v18, %v2275_v21  ;;  %v2281_v24 = vsel %vm2273_vm1, %v2269_v19, %v2277_v22 }
 0x210   : > { %v2280_v25 = vsel %vm2272_vm2, %v2268_v23, %v2276_v30  ;;  %v2282_v26 = vsel %vm2274_vm3, %v2270_v29, %v2278_v34 }
 0x211   : > { %v2694_v27 = vpack.c.bf16 %v2280_v25, %v2279_v35  ;;  %v2695_v36 = vpack.c.bf16 %v2282_v26, %v2281_v24 }
 0x213   : > { %2295 = vst [vmem:[%s233_s21] sm:$0xff] %v2694_v27  ;;  %2296 = vst [vmem:[%s233_s21 + $0x8] sm:$0xff] %v2695_v36 }
 0x214 PF: > { %s13_s14 = sadd.s32 1, %s3130_s14   ;;  %s4034_s12 = smov %s3126_s13 }
 0x215   : > { %p10_p5 = scmp.ge.s32.totalorder %s13_s14, 4   ;;  %s4035_s13 = smov %s4037_s15 }
 0x217   :  { %12 = sbr.rel (!%p10_p5) target bundleno = 2 (0x2), region = 68 }

// kernel: _lambda_.8
= control target key start
LH: loop header
LB: loop body
LE: loop exit
PB: predicated region body
PF: predicated region fallthrough
CT: control target
= control target key end

     0   :  { %s10094_s12 = smov 0   ;;  %s10096_s13 = smov 0   ;;  %s11922_s0 = inlined_call_operand.vmem [shape: bf16[2,16,4096], index: 0, kind: input, shape index: {}]   ;;  %s11923_s1 = inlined_call_operand.vmem [shape: bf16[4096,512], index: 1, kind: input, shape index: {}]   ;;  %s11924_s2 = inlined_call_operand.vmem [shape: f32[1,512], index: 2, kind: input, shape index: {}]   ;;  %s11925_s3 = inlined_call_operand.vmem [shape: bf16[2,16,512], index: 3, kind: output, shape index: {}]  }
   0x1   :  { %s10098_s14 = smov 0   ;;  %s10100_s15 = smov 0  }
   0x2   :  { %s10102_s16 = smov 0   ;;  %s10104_s17 = smov 0  }
   0x3   :  { %s10106_s18 = smov 0   ;;  %s10108_s19 = smov 0  }
   0x4   :  { %s10110_s20 = smov 0  }
   0x5 LB: > { %s8589_s21 = sadd.s32 4294967295, %s10072_s20   ;;  %s22_s22 = sadd.s32 1, %s10064_s18  ;;  %s10072_s20 = sphi %s10110_s20, %s13_s20   ;;  %s10068_s19 = sphi %s10108_s19, %s11934_s19   ;;  %s10064_s18 = sphi %s10106_s18, %s11933_s18   ;;  %s10060_s17 = sphi %s10104_s17, %s11932_s17   ;;  %s10056_s16 = sphi %s10102_s16, %s11931_s16   ;;  %s10052_s15 = sphi %s10100_s15, %s11930_s15   ;;  %s10048_s14 = sphi %s10098_s14, %s11929_s14   ;;  %s10044_s13 = sphi %s10096_s13, %s11928_s13   ;;  %s10040_s12 = sphi %s10094_s12, %s11927_s12  }
   0x6   : > { %p23_p0 = scmp.ge.s32.totalorder %s22_s22, 2  ;;  %s25_s23 = sadd.s32 1, %s10068_s19 }
   0x7   : > { %s58_s24 = sadd.s32 1, %s10052_s15  ;;  %p65_p1 = scmp.ne.s32.totalorder %s10052_s15, %s10048_s14 }
   0x8   : > { %s11936_s22 = smov (%p23_p0, %s22_s22), 0  ;;  %s11938_s23 = smov (!%p23_p0, %s25_s23), %s10068_s19 }
   0x9   : > { %s55_s25 = ssub.s32 %s10064_s18, %s11936_s22  ;;  %p66_p2 = scmp.eq.s32.totalorder %s10072_s20, 0 }
   0xa   : > { %p27_p3 = scmp.ge.s32.totalorder %s11938_s23, 2  ;;  %p56_p4 = scmp.eq.s32.totalorder %s55_s25, 0 }
   0xb   : > { %p67_p5 = por %p66_p2, %p65_p1  ;;  %s112_s26 = sadd.s32 1, %s10044_s13 }
   0xc   : > { %s11940_s23 = smov (%p27_p3, %s11938_s23), 0  ;;  %p122_p6 = scmp.ne.s32.totalorder %s10044_s13, %s10040_s12 }
   0xd   : > { %s10155_s27 = scalar_select %p56_p4, %s10052_s15, %s58_s24  }
   0xe   : > { %s107_s28 = ssub.s32 %s10068_s19, %s11940_s23  ;;  %p123_p7 = scmp.eq.s32.totalorder %s8589_s21, 3 }
   0xf   : > { %s109_s29 = sor.u32 %s107_s28, %s55_s25  ;;  %p8592_p10 = scmp.ge.s32.totalorder %s10072_s20, 4 }
  0x10   : > { %p110_p8 = scmp.eq.s32.totalorder %s109_s29, 0  ;;  %p10161_p9 = por %p123_p7, %p122_p6 }
  0x11   : > { %145 = sbr.rel (%p8592_p10) target bundleno = 282 (0x11a), region = 16 }
  0x12   : > { %s10166_s4 = scalar_select %p110_p8, %s10044_s13, %s112_s26  }
  0x16   : > { %156 = sbr.rel (!%p67_p5) target bundleno = 282 (0x11a), region = 24  ;;  %s158_s5 = sand.u32 (%p67_p5), 1, %s10052_s15  }
  0x17   : > { %s9154_s6 = sshll.u32 (%p67_p5), %s10064_s18, 3  ;;  %s8593_s7 = sshll.u32 (%p67_p5), %s158_s5, 12 }
  0x18   : > { %s10174_s10 = scalar_lea.vmem (%p67_p5), %s11923_s1, %s9154_s6  ;;  %s10179_s11 = scalar_lea.vmem (%p67_p5), [#allocation2], %s8593_s7 }
  0x19   : > { %v1217_v0 = vld [vmem:[%s10174_s10] sm:$0xff] (%p67_p5)  ;;  %v1219_v1 = vld [vmem:[%s10174_s10 + $0x10] sm:$0xff] (%p67_p5) }
  0x1a   : > { %v1221_v2 = vld [vmem:[%s10174_s10 + $0x20] sm:$0xff] (%p67_p5)  ;;  %1218 = vst [vmem:[%s10179_s11] sm:$0xff] (%p67_p5), %v1217_v0  ;;  %1220 = vst [vmem:[%s10179_s11 + $0x8] sm:$0xff] (%p67_p5), %v1219_v1  ;;  %v1223_v3 = vld [vmem:[%s10174_s10 + $0x30] sm:$0xff] (%p67_p5) }
  0x1b   : > { %1222 = vst [vmem:[%s10179_s11 + $0x10] sm:$0xff] %v1221_v2  ;;  %v1225_v4 = vld [vmem:[%s10174_s10 + $0x40] sm:$0xff]  ;;  %v1227_v5 = vld [vmem:[%s10174_s10 + $0x50] sm:$0xff]  ;;  %1224 = vst [vmem:[%s10179_s11 + $0x18] sm:$0xff] %v1223_v3 }
  0x1c   : > { %1226 = vst [vmem:[%s10179_s11 + $0x20] sm:$0xff] %v1225_v4  ;;  %1228 = vst [vmem:[%s10179_s11 + $0x28] sm:$0xff] %v1227_v5  ;;  %v1229_v6 = vld [vmem:[%s10174_s10 + $0x60] sm:$0xff]  ;;  %v1231_v7 = vld [vmem:[%s10174_s10 + $0x70] sm:$0xff] }
  0x1d   : > { %v1233_v8 = vld [vmem:[%s10174_s10 + $0x80] sm:$0xff]  ;;  %1230 = vst [vmem:[%s10179_s11 + $0x30] sm:$0xff] %v1229_v6  ;;  %1232 = vst [vmem:[%s10179_s11 + $0x38] sm:$0xff] %v1231_v7  ;;  %v1235_v9 = vld [vmem:[%s10174_s10 + $0x90] sm:$0xff] }
  0x1e   : > { %1234 = vst [vmem:[%s10179_s11 + $0x40] sm:$0xff] %v1233_v8  ;;  %v1237_v10 = vld [vmem:[%s10174_s10 + $0xa0] sm:$0xff]  ;;  %v1239_v11 = vld [vmem:[%s10174_s10 + $0xb0] sm:$0xff]  ;;  %1236 = vst [vmem:[%s10179_s11 + $0x48] sm:$0xff] %v1235_v9 }
  0x1f   : > { %1238 = vst [vmem:[%s10179_s11 + $0x50] sm:$0xff] %v1237_v10  ;;  %1240 = vst [vmem:[%s10179_s11 + $0x58] sm:$0xff] %v1239_v11  ;;  %v1241_v12 = vld [vmem:[%s10174_s10 + $0xc0] sm:$0xff]  ;;  %v1243_v13 = vld [vmem:[%s10174_s10 + $0xd0] sm:$0xff] }
  0x20   : > { %v1245_v14 = vld [vmem:[%s10174_s10 + $0xe0] sm:$0xff]  ;;  %1242 = vst [vmem:[%s10179_s11 + $0x60] sm:$0xff] %v1241_v12  ;;  %1244 = vst [vmem:[%s10179_s11 + $0x68] sm:$0xff] %v1243_v13  ;;  %v1247_v15 = vld [vmem:[%s10174_s10 + $0xf0] sm:$0xff] }
  0x21   : > { %1246 = vst [vmem:[%s10179_s11 + $0x70] sm:$0xff] %v1245_v14  ;;  %v1249_v16 = vld [vmem:[%s10174_s10 + $0x100] sm:$0xff]  ;;  %v1251_v17 = vld [vmem:[%s10174_s10 + $0x110] sm:$0xff]  ;;  %1248 = vst [vmem:[%s10179_s11 + $0x78] sm:$0xff] %v1247_v15 }
  0x22   : > { %1250 = vst [vmem:[%s10179_s11 + $0x80] sm:$0xff] %v1249_v16  ;;  %1252 = vst [vmem:[%s10179_s11 + $0x88] sm:$0xff] %v1251_v17  ;;  %v1253_v18 = vld [vmem:[%s10174_s10 + $0x120] sm:$0xff]  ;;  %v1255_v19 = vld [vmem:[%s10174_s10 + $0x130] sm:$0xff] }
  0x23   : > { %v1257_v20 = vld [vmem:[%s10174_s10 + $0x140] sm:$0xff]  ;;  %1254 = vst [vmem:[%s10179_s11 + $0x90] sm:$0xff] %v1253_v18  ;;  %1256 = vst [vmem:[%s10179_s11 + $0x98] sm:$0xff] %v1255_v19  ;;  %v1259_v21 = vld [vmem:[%s10174_s10 + $0x150] sm:$0xff] }
  0x24   : > { %1258 = vst [vmem:[%s10179_s11 + $0xa0] sm:$0xff] %v1257_v20  ;;  %v1261_v22 = vld [vmem:[%s10174_s10 + $0x160] sm:$0xff]  ;;  %v1263_v23 = vld [vmem:[%s10174_s10 + $0x170] sm:$0xff]  ;;  %1260 = vst [vmem:[%s10179_s11 + $0xa8] sm:$0xff] %v1259_v21 }
  0x25   : > { %1262 = vst [vmem:[%s10179_s11 + $0xb0] sm:$0xff] %v1261_v22  ;;  %1264 = vst [vmem:[%s10179_s11 + $0xb8] sm:$0xff] %v1263_v23  ;;  %v1265_v24 = vld [vmem:[%s10174_s10 + $0x180] sm:$0xff]  ;;  %v1267_v25 = vld [vmem:[%s10174_s10 + $0x190] sm:$0xff] }
  0x26   : > { %v1269_v26 = vld [vmem:[%s10174_s10 + $0x1a0] sm:$0xff]  ;;  %1266 = vst [vmem:[%s10179_s11 + $0xc0] sm:$0xff] %v1265_v24  ;;  %1268 = vst [vmem:[%s10179_s11 + $0xc8] sm:$0xff] %v1267_v25  ;;  %v1271_v27 = vld [vmem:[%s10174_s10 + $0x1b0] sm:$0xff] }
  0x27   : > { %1270 = vst [vmem:[%s10179_s11 + $0xd0] sm:$0xff] %v1269_v26  ;;  %v1273_v28 = vld [vmem:[%s10174_s10 + $0x1c0] sm:$0xff]  ;;  %v1275_v29 = vld [vmem:[%s10174_s10 + $0x1d0] sm:$0xff]  ;;  %1272 = vst [vmem:[%s10179_s11 + $0xd8] sm:$0xff] %v1271_v27 }
  0x28   : > { %1274 = vst [vmem:[%s10179_s11 + $0xe0] sm:$0xff] %v1273_v28  ;;  %1276 = vst [vmem:[%s10179_s11 + $0xe8] sm:$0xff] %v1275_v29  ;;  %v1277_v30 = vld [vmem:[%s10174_s10 + $0x1e0] sm:$0xff]  ;;  %v1279_v31 = vld [vmem:[%s10174_s10 + $0x1f0] sm:$0xff] }
  0x29   : > { %v1281_v32 = vld [vmem:[%s10174_s10 + $0x200] sm:$0xff]  ;;  %1278 = vst [vmem:[%s10179_s11 + $0xf0] sm:$0xff] %v1277_v30  ;;  %1280 = vst [vmem:[%s10179_s11 + $0xf8] sm:$0xff] %v1279_v31  ;;  %v1283_v33 = vld [vmem:[%s10174_s10 + $0x210] sm:$0xff] }
  0x2a   : > { %1282 = vst [vmem:[%s10179_s11 + $0x100] sm:$0xff] %v1281_v32  ;;  %v1285_v34 = vld [vmem:[%s10174_s10 + $0x220] sm:$0xff]  ;;  %v1287_v35 = vld [vmem:[%s10174_s10 + $0x230] sm:$0xff]  ;;  %1284 = vst [vmem:[%s10179_s11 + $0x108] sm:$0xff] %v1283_v33 }
  0x2b   : > { %1286 = vst [vmem:[%s10179_s11 + $0x110] sm:$0xff] %v1285_v34  ;;  %1288 = vst [vmem:[%s10179_s11 + $0x118] sm:$0xff] %v1287_v35  ;;  %v1289_v36 = vld [vmem:[%s10174_s10 + $0x240] sm:$0xff]  ;;  %v1291_v37 = vld [vmem:[%s10174_s10 + $0x250] sm:$0xff] }
  0x2c   : > { %v1293_v38 = vld [vmem:[%s10174_s10 + $0x260] sm:$0xff]  ;;  %1290 = vst [vmem:[%s10179_s11 + $0x120] sm:$0xff] %v1289_v36  ;;  %1292 = vst [vmem:[%s10179_s11 + $0x128] sm:$0xff] %v1291_v37  ;;  %v1295_v39 = vld [vmem:[%s10174_s10 + $0x270] sm:$0xff] }
  0x2d   : > { %1294 = vst [vmem:[%s10179_s11 + $0x130] sm:$0xff] %v1293_v38  ;;  %v1297_v40 = vld [vmem:[%s10174_s10 + $0x280] sm:$0xff]  ;;  %v1299_v41 = vld [vmem:[%s10174_s10 + $0x290] sm:$0xff]  ;;  %1296 = vst [vmem:[%s10179_s11 + $0x138] sm:$0xff] %v1295_v39 }
  0x2e   : > { %1298 = vst [vmem:[%s10179_s11 + $0x140] sm:$0xff] %v1297_v40  ;;  %1300 = vst [vmem:[%s10179_s11 + $0x148] sm:$0xff] %v1299_v41  ;;  %v1301_v42 = vld [vmem:[%s10174_s10 + $0x2a0] sm:$0xff]  ;;  %v1303_v43 = vld [vmem:[%s10174_s10 + $0x2b0] sm:$0xff] }
  0x2f   : > { %v1305_v44 = vld [vmem:[%s10174_s10 + $0x2c0] sm:$0xff]  ;;  %1302 = vst [vmem:[%s10179_s11 + $0x150] sm:$0xff] %v1301_v42  ;;  %1304 = vst [vmem:[%s10179_s11 + $0x158] sm:$0xff] %v1303_v43  ;;  %v1307_v45 = vld [vmem:[%s10174_s10 + $0x2d0] sm:$0xff] }
  0x30   : > { %1306 = vst [vmem:[%s10179_s11 + $0x160] sm:$0xff] %v1305_v44  ;;  %v1309_v46 = vld [vmem:[%s10174_s10 + $0x2e0] sm:$0xff]  ;;  %v1311_v47 = vld [vmem:[%s10174_s10 + $0x2f0] sm:$0xff]  ;;  %1308 = vst [vmem:[%s10179_s11 + $0x168] sm:$0xff] %v1307_v45 }
  0x31   : > { %1310 = vst [vmem:[%s10179_s11 + $0x170] sm:$0xff] %v1309_v46  ;;  %1312 = vst [vmem:[%s10179_s11 + $0x178] sm:$0xff] %v1311_v47  ;;  %v1313_v48 = vld [vmem:[%s10174_s10 + $0x300] sm:$0xff]  ;;  %v1315_v49 = vld [vmem:[%s10174_s10 + $0x310] sm:$0xff] }
  0x32   : > { %v1317_v50 = vld [vmem:[%s10174_s10 + $0x320] sm:$0xff]  ;;  %1314 = vst [vmem:[%s10179_s11 + $0x180] sm:$0xff] %v1313_v48  ;;  %1316 = vst [vmem:[%s10179_s11 + $0x188] sm:$0xff] %v1315_v49  ;;  %v1319_v51 = vld [vmem:[%s10174_s10 + $0x330] sm:$0xff] }
  0x33   : > { %1318 = vst [vmem:[%s10179_s11 + $0x190] sm:$0xff] %v1317_v50  ;;  %v1321_v52 = vld [vmem:[%s10174_s10 + $0x340] sm:$0xff]  ;;  %v1323_v53 = vld [vmem:[%s10174_s10 + $0x350] sm:$0xff]  ;;  %1320 = vst [vmem:[%s10179_s11 + $0x198] sm:$0xff] %v1319_v51 }
  0x34   : > { %1322 = vst [vmem:[%s10179_s11 + $0x1a0] sm:$0xff] %v1321_v52  ;;  %1324 = vst [vmem:[%s10179_s11 + $0x1a8] sm:$0xff] %v1323_v53  ;;  %v1325_v54 = vld [vmem:[%s10174_s10 + $0x360] sm:$0xff]  ;;  %v1327_v55 = vld [vmem:[%s10174_s10 + $0x370] sm:$0xff] }
  0x35   : > { %v1329_v56 = vld [vmem:[%s10174_s10 + $0x380] sm:$0xff]  ;;  %1326 = vst [vmem:[%s10179_s11 + $0x1b0] sm:$0xff] %v1325_v54  ;;  %1328 = vst [vmem:[%s10179_s11 + $0x1b8] sm:$0xff] %v1327_v55  ;;  %v1331_v57 = vld [vmem:[%s10174_s10 + $0x390] sm:$0xff] }
  0x36   : > { %1330 = vst [vmem:[%s10179_s11 + $0x1c0] sm:$0xff] %v1329_v56  ;;  %v1333_v58 = vld [vmem:[%s10174_s10 + $0x3a0] sm:$0xff]  ;;  %v1335_v59 = vld [vmem:[%s10174_s10 + $0x3b0] sm:$0xff]  ;;  %1332 = vst [vmem:[%s10179_s11 + $0x1c8] sm:$0xff] %v1331_v57 }
  0x37   : > { %1334 = vst [vmem:[%s10179_s11 + $0x1d0] sm:$0xff] %v1333_v58  ;;  %1336 = vst [vmem:[%s10179_s11 + $0x1d8] sm:$0xff] %v1335_v59  ;;  %v1337_v60 = vld [vmem:[%s10174_s10 + $0x3c0] sm:$0xff]  ;;  %v1339_v61 = vld [vmem:[%s10174_s10 + $0x3d0] sm:$0xff] }
  0x38   : > { %v1341_v62 = vld [vmem:[%s10174_s10 + $0x3e0] sm:$0xff]  ;;  %1338 = vst [vmem:[%s10179_s11 + $0x1e0] sm:$0xff] %v1337_v60  ;;  %1340 = vst [vmem:[%s10179_s11 + $0x1e8] sm:$0xff] %v1339_v61  ;;  %v1343_v63 = vld [vmem:[%s10174_s10 + $0x3f0] sm:$0xff] }
  0x39   : > { %1342 = vst [vmem:[%s10179_s11 + $0x1f0] sm:$0xff] %v1341_v62  ;;  %v1345_v0 = vld [vmem:[%s10174_s10 + $0x400] sm:$0xff]  ;;  %v1347_v1 = vld [vmem:[%s10174_s10 + $0x410] sm:$0xff]  ;;  %1344 = vst [vmem:[%s10179_s11 + $0x1f8] sm:$0xff] %v1343_v63 }
  0x3a   : > { %1346 = vst [vmem:[%s10179_s11 + $0x200] sm:$0xff] %v1345_v0  ;;  %1348 = vst [vmem:[%s10179_s11 + $0x208] sm:$0xff] %v1347_v1  ;;  %v1349_v2 = vld [vmem:[%s10174_s10 + $0x420] sm:$0xff]  ;;  %v1351_v3 = vld [vmem:[%s10174_s10 + $0x430] sm:$0xff] }
  0x3b   : > { %v1353_v4 = vld [vmem:[%s10174_s10 + $0x440] sm:$0xff]  ;;  %1350 = vst [vmem:[%s10179_s11 + $0x210] sm:$0xff] %v1349_v2  ;;  %1352 = vst [vmem:[%s10179_s11 + $0x218] sm:$0xff] %v1351_v3  ;;  %v1355_v5 = vld [vmem:[%s10174_s10 + $0x450] sm:$0xff] }
  0x3c   : > { %1354 = vst [vmem:[%s10179_s11 + $0x220] sm:$0xff] %v1353_v4  ;;  %v1357_v6 = vld [vmem:[%s10174_s10 + $0x460] sm:$0xff]  ;;  %v1359_v7 = vld [vmem:[%s10174_s10 + $0x470] sm:$0xff]  ;;  %1356 = vst [vmem:[%s10179_s11 + $0x228] sm:$0xff] %v1355_v5 }
  0x3d   : > { %1358 = vst [vmem:[%s10179_s11 + $0x230] sm:$0xff] %v1357_v6  ;;  %1360 = vst [vmem:[%s10179_s11 + $0x238] sm:$0xff] %v1359_v7  ;;  %v1361_v8 = vld [vmem:[%s10174_s10 + $0x480] sm:$0xff]  ;;  %v1363_v9 = vld [vmem:[%s10174_s10 + $0x490] sm:$0xff] }
  0x3e   : > { %v1365_v10 = vld [vmem:[%s10174_s10 + $0x4a0] sm:$0xff]  ;;  %1362 = vst [vmem:[%s10179_s11 + $0x240] sm:$0xff] %v1361_v8  ;;  %1364 = vst [vmem:[%s10179_s11 + $0x248] sm:$0xff] %v1363_v9  ;;  %v1367_v11 = vld [vmem:[%s10174_s10 + $0x4b0] sm:$0xff] }
  0x3f   : > { %1366 = vst [vmem:[%s10179_s11 + $0x250] sm:$0xff] %v1365_v10  ;;  %v1369_v12 = vld [vmem:[%s10174_s10 + $0x4c0] sm:$0xff]  ;;  %v1371_v13 = vld [vmem:[%s10174_s10 + $0x4d0] sm:$0xff]  ;;  %1368 = vst [vmem:[%s10179_s11 + $0x258] sm:$0xff] %v1367_v11 }
  0x40   : > { %1370 = vst [vmem:[%s10179_s11 + $0x260] sm:$0xff] %v1369_v12  ;;  %1372 = vst [vmem:[%s10179_s11 + $0x268] sm:$0xff] %v1371_v13  ;;  %v1373_v14 = vld [vmem:[%s10174_s10 + $0x4e0] sm:$0xff]  ;;  %v1375_v15 = vld [vmem:[%s10174_s10 + $0x4f0] sm:$0xff] }
  0x41   : > { %v1377_v16 = vld [vmem:[%s10174_s10 + $0x500] sm:$0xff]  ;;  %1374 = vst [vmem:[%s10179_s11 + $0x270] sm:$0xff] %v1373_v14  ;;  %1376 = vst [vmem:[%s10179_s11 + $0x278] sm:$0xff] %v1375_v15  ;;  %v1379_v17 = vld [vmem:[%s10174_s10 + $0x510] sm:$0xff] }
  0x42   : > { %1378 = vst [vmem:[%s10179_s11 + $0x280] sm:$0xff] %v1377_v16  ;;  %v1381_v18 = vld [vmem:[%s10174_s10 + $0x520] sm:$0xff]  ;;  %v1383_v19 = vld [vmem:[%s10174_s10 + $0x530] sm:$0xff]  ;;  %1380 = vst [vmem:[%s10179_s11 + $0x288] sm:$0xff] %v1379_v17 }
  0x43   : > { %1382 = vst [vmem:[%s10179_s11 + $0x290] sm:$0xff] %v1381_v18  ;;  %1384 = vst [vmem:[%s10179_s11 + $0x298] sm:$0xff] %v1383_v19  ;;  %v1385_v20 = vld [vmem:[%s10174_s10 + $0x540] sm:$0xff]  ;;  %v1387_v21 = vld [vmem:[%s10174_s10 + $0x550] sm:$0xff] }
  0x44   : > { %v1389_v22 = vld [vmem:[%s10174_s10 + $0x560] sm:$0xff]  ;;  %1386 = vst [vmem:[%s10179_s11 + $0x2a0] sm:$0xff] %v1385_v20  ;;  %1388 = vst [vmem:[%s10179_s11 + $0x2a8] sm:$0xff] %v1387_v21  ;;  %v1391_v23 = vld [vmem:[%s10174_s10 + $0x570] sm:$0xff] }
  0x45   : > { %1390 = vst [vmem:[%s10179_s11 + $0x2b0] sm:$0xff] %v1389_v22  ;;  %v1393_v24 = vld [vmem:[%s10174_s10 + $0x580] sm:$0xff]  ;;  %v1395_v25 = vld [vmem:[%s10174_s10 + $0x590] sm:$0xff]  ;;  %1392 = vst [vmem:[%s10179_s11 + $0x2b8] sm:$0xff] %v1391_v23 }
  0x46   : > { %1394 = vst [vmem:[%s10179_s11 + $0x2c0] sm:$0xff] %v1393_v24  ;;  %1396 = vst [vmem:[%s10179_s11 + $0x2c8] sm:$0xff] %v1395_v25  ;;  %v1397_v26 = vld [vmem:[%s10174_s10 + $0x5a0] sm:$0xff]  ;;  %v1399_v27 = vld [vmem:[%s10174_s10 + $0x5b0] sm:$0xff] }
  0x47   : > { %v1401_v28 = vld [vmem:[%s10174_s10 + $0x5c0] sm:$0xff]  ;;  %1398 = vst [vmem:[%s10179_s11 + $0x2d0] sm:$0xff] %v1397_v26  ;;  %1400 = vst [vmem:[%s10179_s11 + $0x2d8] sm:$0xff] %v1399_v27  ;;  %v1403_v29 = vld [vmem:[%s10174_s10 + $0x5d0] sm:$0xff] }
  0x48   : > { %1402 = vst [vmem:[%s10179_s11 + $0x2e0] sm:$0xff] %v1401_v28  ;;  %v1405_v30 = vld [vmem:[%s10174_s10 + $0x5e0] sm:$0xff]  ;;  %v1407_v31 = vld [vmem:[%s10174_s10 + $0x5f0] sm:$0xff]  ;;  %1404 = vst [vmem:[%s10179_s11 + $0x2e8] sm:$0xff] %v1403_v29 }
  0x49   : > { %1406 = vst [vmem:[%s10179_s11 + $0x2f0] sm:$0xff] %v1405_v30  ;;  %1408 = vst [vmem:[%s10179_s11 + $0x2f8] sm:$0xff] %v1407_v31  ;;  %v1409_v32 = vld [vmem:[%s10174_s10 + $0x600] sm:$0xff]  ;;  %v1411_v33 = vld [vmem:[%s10174_s10 + $0x610] sm:$0xff] }
  0x4a   : > { %v1413_v34 = vld [vmem:[%s10174_s10 + $0x620] sm:$0xff]  ;;  %1410 = vst [vmem:[%s10179_s11 + $0x300] sm:$0xff] %v1409_v32  ;;  %1412 = vst [vmem:[%s10179_s11 + $0x308] sm:$0xff] %v1411_v33  ;;  %v1415_v35 = vld [vmem:[%s10174_s10 + $0x630] sm:$0xff] }
  0x4b   : > { %1414 = vst [vmem:[%s10179_s11 + $0x310] sm:$0xff] %v1413_v34  ;;  %v1417_v36 = vld [vmem:[%s10174_s10 + $0x640] sm:$0xff]  ;;  %v1419_v37 = vld [vmem:[%s10174_s10 + $0x650] sm:$0xff]  ;;  %1416 = vst [vmem:[%s10179_s11 + $0x318] sm:$0xff] %v1415_v35 }
  0x4c   : > { %1418 = vst [vmem:[%s10179_s11 + $0x320] sm:$0xff] %v1417_v36  ;;  %1420 = vst [vmem:[%s10179_s11 + $0x328] sm:$0xff] %v1419_v37  ;;  %v1421_v38 = vld [vmem:[%s10174_s10 + $0x660] sm:$0xff]  ;;  %v1423_v39 = vld [vmem:[%s10174_s10 + $0x670] sm:$0xff] }
  0x4d   : > { %v1425_v40 = vld [vmem:[%s10174_s10 + $0x680] sm:$0xff]  ;;  %1422 = vst [vmem:[%s10179_s11 + $0x330] sm:$0xff] %v1421_v38  ;;  %1424 = vst [vmem:[%s10179_s11 + $0x338] sm:$0xff] %v1423_v39  ;;  %v1427_v41 = vld [vmem:[%s10174_s10 + $0x690] sm:$0xff] }
  0x4e   : > { %1426 = vst [vmem:[%s10179_s11 + $0x340] sm:$0xff] %v1425_v40  ;;  %v1429_v42 = vld [vmem:[%s10174_s10 + $0x6a0] sm:$0xff]  ;;  %v1431_v43 = vld [vmem:[%s10174_s10 + $0x6b0] sm:$0xff]  ;;  %1428 = vst [vmem:[%s10179_s11 + $0x348] sm:$0xff] %v1427_v41 }
  0x4f   : > { %1430 = vst [vmem:[%s10179_s11 + $0x350] sm:$0xff] %v1429_v42  ;;  %1432 = vst [vmem:[%s10179_s11 + $0x358] sm:$0xff] %v1431_v43  ;;  %v1433_v44 = vld [vmem:[%s10174_s10 + $0x6c0] sm:$0xff]  ;;  %v1435_v45 = vld [vmem:[%s10174_s10 + $0x6d0] sm:$0xff] }
  0x50   : > { %v1437_v46 = vld [vmem:[%s10174_s10 + $0x6e0] sm:$0xff]  ;;  %1434 = vst [vmem:[%s10179_s11 + $0x360] sm:$0xff] %v1433_v44  ;;  %1436 = vst [vmem:[%s10179_s11 + $0x368] sm:$0xff] %v1435_v45  ;;  %v1439_v47 = vld [vmem:[%s10174_s10 + $0x6f0] sm:$0xff] }
  0x51   : > { %1438 = vst [vmem:[%s10179_s11 + $0x370] sm:$0xff] %v1437_v46  ;;  %v1441_v48 = vld [vmem:[%s10174_s10 + $0x700] sm:$0xff]  ;;  %v1443_v49 = vld [vmem:[%s10174_s10 + $0x710] sm:$0xff]  ;;  %1440 = vst [vmem:[%s10179_s11 + $0x378] sm:$0xff] %v1439_v47 }
  0x52   : > { %1442 = vst [vmem:[%s10179_s11 + $0x380] sm:$0xff] %v1441_v48  ;;  %1444 = vst [vmem:[%s10179_s11 + $0x388] sm:$0xff] %v1443_v49  ;;  %v1445_v50 = vld [vmem:[%s10174_s10 + $0x720] sm:$0xff]  ;;  %v1447_v51 = vld [vmem:[%s10174_s10 + $0x730] sm:$0xff] }
  0x53   : > { %v1449_v52 = vld [vmem:[%s10174_s10 + $0x740] sm:$0xff]  ;;  %1446 = vst [vmem:[%s10179_s11 + $0x390] sm:$0xff] %v1445_v50  ;;  %1448 = vst [vmem:[%s10179_s11 + $0x398] sm:$0xff] %v1447_v51  ;;  %v1451_v53 = vld [vmem:[%s10174_s10 + $0x750] sm:$0xff] }
  0x54   : > { %1450 = vst [vmem:[%s10179_s11 + $0x3a0] sm:$0xff] %v1449_v52  ;;  %v1453_v54 = vld [vmem:[%s10174_s10 + $0x760] sm:$0xff]  ;;  %v1455_v55 = vld [vmem:[%s10174_s10 + $0x770] sm:$0xff]  ;;  %1452 = vst [vmem:[%s10179_s11 + $0x3a8] sm:$0xff] %v1451_v53 }
  0x55   : > { %1454 = vst [vmem:[%s10179_s11 + $0x3b0] sm:$0xff] %v1453_v54  ;;  %1456 = vst [vmem:[%s10179_s11 + $0x3b8] sm:$0xff] %v1455_v55  ;;  %v1457_v56 = vld [vmem:[%s10174_s10 + $0x780] sm:$0xff]  ;;  %v1459_v57 = vld [vmem:[%s10174_s10 + $0x790] sm:$0xff] }
  0x56   : > { %v1461_v58 = vld [vmem:[%s10174_s10 + $0x7a0] sm:$0xff]  ;;  %1458 = vst [vmem:[%s10179_s11 + $0x3c0] sm:$0xff] %v1457_v56  ;;  %1460 = vst [vmem:[%s10179_s11 + $0x3c8] sm:$0xff] %v1459_v57  ;;  %v1463_v59 = vld [vmem:[%s10174_s10 + $0x7b0] sm:$0xff] }
  0x57   : > { %1462 = vst [vmem:[%s10179_s11 + $0x3d0] sm:$0xff] %v1461_v58  ;;  %v1465_v60 = vld [vmem:[%s10174_s10 + $0x7c0] sm:$0xff]  ;;  %v1467_v61 = vld [vmem:[%s10174_s10 + $0x7d0] sm:$0xff]  ;;  %1464 = vst [vmem:[%s10179_s11 + $0x3d8] sm:$0xff] %v1463_v59 }
  0x58   : > { %1466 = vst [vmem:[%s10179_s11 + $0x3e0] sm:$0xff] %v1465_v60  ;;  %1468 = vst [vmem:[%s10179_s11 + $0x3e8] sm:$0xff] %v1467_v61  ;;  %v1469_v62 = vld [vmem:[%s10174_s10 + $0x7e0] sm:$0xff]  ;;  %v1471_v63 = vld [vmem:[%s10174_s10 + $0x7f0] sm:$0xff] }
  0x59   : > { %v1473_v0 = vld [vmem:[%s10174_s10 + $0x800] sm:$0xff]  ;;  %1470 = vst [vmem:[%s10179_s11 + $0x3f0] sm:$0xff] %v1469_v62  ;;  %1472 = vst [vmem:[%s10179_s11 + $0x3f8] sm:$0xff] %v1471_v63  ;;  %v1475_v1 = vld [vmem:[%s10174_s10 + $0x810] sm:$0xff] }
  0x5a   : > { %1474 = vst [vmem:[%s10179_s11 + $0x400] sm:$0xff] %v1473_v0  ;;  %v1477_v2 = vld [vmem:[%s10174_s10 + $0x820] sm:$0xff]  ;;  %v1479_v3 = vld [vmem:[%s10174_s10 + $0x830] sm:$0xff]  ;;  %1476 = vst [vmem:[%s10179_s11 + $0x408] sm:$0xff] %v1475_v1 }
  0x5b   : > { %1478 = vst [vmem:[%s10179_s11 + $0x410] sm:$0xff] %v1477_v2  ;;  %1480 = vst [vmem:[%s10179_s11 + $0x418] sm:$0xff] %v1479_v3  ;;  %v1481_v4 = vld [vmem:[%s10174_s10 + $0x840] sm:$0xff]  ;;  %v1483_v5 = vld [vmem:[%s10174_s10 + $0x850] sm:$0xff] }
  0x5c   : > { %v1485_v6 = vld [vmem:[%s10174_s10 + $0x860] sm:$0xff]  ;;  %1482 = vst [vmem:[%s10179_s11 + $0x420] sm:$0xff] %v1481_v4  ;;  %1484 = vst [vmem:[%s10179_s11 + $0x428] sm:$0xff] %v1483_v5  ;;  %v1487_v7 = vld [vmem:[%s10174_s10 + $0x870] sm:$0xff] }
  0x5d   : > { %1486 = vst [vmem:[%s10179_s11 + $0x430] sm:$0xff] %v1485_v6  ;;  %v1489_v8 = vld [vmem:[%s10174_s10 + $0x880] sm:$0xff]  ;;  %v1491_v9 = vld [vmem:[%s10174_s10 + $0x890] sm:$0xff]  ;;  %1488 = vst [vmem:[%s10179_s11 + $0x438] sm:$0xff] %v1487_v7 }
  0x5e   : > { %1490 = vst [vmem:[%s10179_s11 + $0x440] sm:$0xff] %v1489_v8  ;;  %1492 = vst [vmem:[%s10179_s11 + $0x448] sm:$0xff] %v1491_v9  ;;  %v1493_v10 = vld [vmem:[%s10174_s10 + $0x8a0] sm:$0xff]  ;;  %v1495_v11 = vld [vmem:[%s10174_s10 + $0x8b0] sm:$0xff] }
  0x5f   : > { %v1497_v12 = vld [vmem:[%s10174_s10 + $0x8c0] sm:$0xff]  ;;  %1494 = vst [vmem:[%s10179_s11 + $0x450] sm:$0xff] %v1493_v10  ;;  %1496 = vst [vmem:[%s10179_s11 + $0x458] sm:$0xff] %v1495_v11  ;;  %v1499_v13 = vld [vmem:[%s10174_s10 + $0x8d0] sm:$0xff] }
  0x60   : > { %1498 = vst [vmem:[%s10179_s11 + $0x460] sm:$0xff] %v1497_v12  ;;  %v1501_v14 = vld [vmem:[%s10174_s10 + $0x8e0] sm:$0xff]  ;;  %v1503_v15 = vld [vmem:[%s10174_s10 + $0x8f0] sm:$0xff]  ;;  %1500 = vst [vmem:[%s10179_s11 + $0x468] sm:$0xff] %v1499_v13 }
  0x61   : > { %1502 = vst [vmem:[%s10179_s11 + $0x470] sm:$0xff] %v1501_v14  ;;  %1504 = vst [vmem:[%s10179_s11 + $0x478] sm:$0xff] %v1503_v15  ;;  %v1505_v16 = vld [vmem:[%s10174_s10 + $0x900] sm:$0xff]  ;;  %v1507_v17 = vld [vmem:[%s10174_s10 + $0x910] sm:$0xff] }
  0x62   : > { %v1509_v18 = vld [vmem:[%s10174_s10 + $0x920] sm:$0xff]  ;;  %1506 = vst [vmem:[%s10179_s11 + $0x480] sm:$0xff] %v1505_v16  ;;  %1508 = vst [vmem:[%s10179_s11 + $0x488] sm:$0xff] %v1507_v17  ;;  %v1511_v19 = vld [vmem:[%s10174_s10 + $0x930] sm:$0xff] }
  0x63   : > { %1510 = vst [vmem:[%s10179_s11 + $0x490] sm:$0xff] %v1509_v18  ;;  %v1513_v20 = vld [vmem:[%s10174_s10 + $0x940] sm:$0xff]  ;;  %v1515_v21 = vld [vmem:[%s10174_s10 + $0x950] sm:$0xff]  ;;  %1512 = vst [vmem:[%s10179_s11 + $0x498] sm:$0xff] %v1511_v19 }
  0x64   : > { %1514 = vst [vmem:[%s10179_s11 + $0x4a0] sm:$0xff] %v1513_v20  ;;  %1516 = vst [vmem:[%s10179_s11 + $0x4a8] sm:$0xff] %v1515_v21  ;;  %v1517_v22 = vld [vmem:[%s10174_s10 + $0x960] sm:$0xff]  ;;  %v1519_v23 = vld [vmem:[%s10174_s10 + $0x970] sm:$0xff] }
  0x65   : > { %v1521_v24 = vld [vmem:[%s10174_s10 + $0x980] sm:$0xff]  ;;  %1518 = vst [vmem:[%s10179_s11 + $0x4b0] sm:$0xff] %v1517_v22  ;;  %1520 = vst [vmem:[%s10179_s11 + $0x4b8] sm:$0xff] %v1519_v23  ;;  %v1523_v25 = vld [vmem:[%s10174_s10 + $0x990] sm:$0xff] }
  0x66   : > { %1522 = vst [vmem:[%s10179_s11 + $0x4c0] sm:$0xff] %v1521_v24  ;;  %v1525_v26 = vld [vmem:[%s10174_s10 + $0x9a0] sm:$0xff]  ;;  %v1527_v27 = vld [vmem:[%s10174_s10 + $0x9b0] sm:$0xff]  ;;  %1524 = vst [vmem:[%s10179_s11 + $0x4c8] sm:$0xff] %v1523_v25 }
  0x67   : > { %1526 = vst [vmem:[%s10179_s11 + $0x4d0] sm:$0xff] %v1525_v26  ;;  %1528 = vst [vmem:[%s10179_s11 + $0x4d8] sm:$0xff] %v1527_v27  ;;  %v1529_v28 = vld [vmem:[%s10174_s10 + $0x9c0] sm:$0xff]  ;;  %v1531_v29 = vld [vmem:[%s10174_s10 + $0x9d0] sm:$0xff] }
  0x68   : > { %v1533_v30 = vld [vmem:[%s10174_s10 + $0x9e0] sm:$0xff]  ;;  %1530 = vst [vmem:[%s10179_s11 + $0x4e0] sm:$0xff] %v1529_v28  ;;  %1532 = vst [vmem:[%s10179_s11 + $0x4e8] sm:$0xff] %v1531_v29  ;;  %v1535_v31 = vld [vmem:[%s10174_s10 + $0x9f0] sm:$0xff] }
  0x69   : > { %1534 = vst [vmem:[%s10179_s11 + $0x4f0] sm:$0xff] %v1533_v30  ;;  %v1537_v32 = vld [vmem:[%s10174_s10 + $0xa00] sm:$0xff]  ;;  %v1539_v33 = vld [vmem:[%s10174_s10 + $0xa10] sm:$0xff]  ;;  %1536 = vst [vmem:[%s10179_s11 + $0x4f8] sm:$0xff] %v1535_v31 }
  0x6a   : > { %1538 = vst [vmem:[%s10179_s11 + $0x500] sm:$0xff] %v1537_v32  ;;  %1540 = vst [vmem:[%s10179_s11 + $0x508] sm:$0xff] %v1539_v33  ;;  %v1541_v34 = vld [vmem:[%s10174_s10 + $0xa20] sm:$0xff]  ;;  %v1543_v35 = vld [vmem:[%s10174_s10 + $0xa30] sm:$0xff] }
  0x6b   : > { %v1545_v36 = vld [vmem:[%s10174_s10 + $0xa40] sm:$0xff]  ;;  %1542 = vst [vmem:[%s10179_s11 + $0x510] sm:$0xff] %v1541_v34  ;;  %1544 = vst [vmem:[%s10179_s11 + $0x518] sm:$0xff] %v1543_v35  ;;  %v1547_v37 = vld [vmem:[%s10174_s10 + $0xa50] sm:$0xff] }
  0x6c   : > { %1546 = vst [vmem:[%s10179_s11 + $0x520] sm:$0xff] %v1545_v36  ;;  %v1549_v38 = vld [vmem:[%s10174_s10 + $0xa60] sm:$0xff]  ;;  %v1551_v39 = vld [vmem:[%s10174_s10 + $0xa70] sm:$0xff]  ;;  %1548 = vst [vmem:[%s10179_s11 + $0x528] sm:$0xff] %v1547_v37 }
  0x6d   : > { %1550 = vst [vmem:[%s10179_s11 + $0x530] sm:$0xff] %v1549_v38  ;;  %1552 = vst [vmem:[%s10179_s11 + $0x538] sm:$0xff] %v1551_v39  ;;  %v1553_v40 = vld [vmem:[%s10174_s10 + $0xa80] sm:$0xff]  ;;  %v1555_v41 = vld [vmem:[%s10174_s10 + $0xa90] sm:$0xff] }
  0x6e   : > { %v1557_v42 = vld [vmem:[%s10174_s10 + $0xaa0] sm:$0xff]  ;;  %1554 = vst [vmem:[%s10179_s11 + $0x540] sm:$0xff] %v1553_v40  ;;  %1556 = vst [vmem:[%s10179_s11 + $0x548] sm:$0xff] %v1555_v41  ;;  %v1559_v43 = vld [vmem:[%s10174_s10 + $0xab0] sm:$0xff] }
  0x6f   : > { %1558 = vst [vmem:[%s10179_s11 + $0x550] sm:$0xff] %v1557_v42  ;;  %v1561_v44 = vld [vmem:[%s10174_s10 + $0xac0] sm:$0xff]  ;;  %v1563_v45 = vld [vmem:[%s10174_s10 + $0xad0] sm:$0xff]  ;;  %1560 = vst [vmem:[%s10179_s11 + $0x558] sm:$0xff] %v1559_v43 }
  0x70   : > { %1562 = vst [vmem:[%s10179_s11 + $0x560] sm:$0xff] %v1561_v44  ;;  %1564 = vst [vmem:[%s10179_s11 + $0x568] sm:$0xff] %v1563_v45  ;;  %v1565_v46 = vld [vmem:[%s10174_s10 + $0xae0] sm:$0xff]  ;;  %v1567_v47 = vld [vmem:[%s10174_s10 + $0xaf0] sm:$0xff] }
  0x71   : > { %v1569_v48 = vld [vmem:[%s10174_s10 + $0xb00] sm:$0xff]  ;;  %1566 = vst [vmem:[%s10179_s11 + $0x570] sm:$0xff] %v1565_v46  ;;  %1568 = vst [vmem:[%s10179_s11 + $0x578] sm:$0xff] %v1567_v47  ;;  %v1571_v49 = vld [vmem:[%s10174_s10 + $0xb10] sm:$0xff] }
  0x72   : > { %1570 = vst [vmem:[%s10179_s11 + $0x580] sm:$0xff] %v1569_v48  ;;  %v1573_v50 = vld [vmem:[%s10174_s10 + $0xb20] sm:$0xff]  ;;  %v1575_v51 = vld [vmem:[%s10174_s10 + $0xb30] sm:$0xff]  ;;  %1572 = vst [vmem:[%s10179_s11 + $0x588] sm:$0xff] %v1571_v49 }
  0x73   : > { %1574 = vst [vmem:[%s10179_s11 + $0x590] sm:$0xff] %v1573_v50  ;;  %1576 = vst [vmem:[%s10179_s11 + $0x598] sm:$0xff] %v1575_v51  ;;  %v1577_v52 = vld [vmem:[%s10174_s10 + $0xb40] sm:$0xff]  ;;  %v1579_v53 = vld [vmem:[%s10174_s10 + $0xb50] sm:$0xff] }
  0x74   : > { %v1581_v54 = vld [vmem:[%s10174_s10 + $0xb60] sm:$0xff]  ;;  %1578 = vst [vmem:[%s10179_s11 + $0x5a0] sm:$0xff] %v1577_v52  ;;  %1580 = vst [vmem:[%s10179_s11 + $0x5a8] sm:$0xff] %v1579_v53  ;;  %v1583_v55 = vld [vmem:[%s10174_s10 + $0xb70] sm:$0xff] }
  0x75   : > { %1582 = vst [vmem:[%s10179_s11 + $0x5b0] sm:$0xff] %v1581_v54  ;;  %v1585_v56 = vld [vmem:[%s10174_s10 + $0xb80] sm:$0xff]  ;;  %v1587_v57 = vld [vmem:[%s10174_s10 + $0xb90] sm:$0xff]  ;;  %1584 = vst [vmem:[%s10179_s11 + $0x5b8] sm:$0xff] %v1583_v55 }
  0x76   : > { %1586 = vst [vmem:[%s10179_s11 + $0x5c0] sm:$0xff] %v1585_v56  ;;  %1588 = vst [vmem:[%s10179_s11 + $0x5c8] sm:$0xff] %v1587_v57  ;;  %v1589_v58 = vld [vmem:[%s10174_s10 + $0xba0] sm:$0xff]  ;;  %v1591_v59 = vld [vmem:[%s10174_s10 + $0xbb0] sm:$0xff] }
  0x77   : > { %v1593_v60 = vld [vmem:[%s10174_s10 + $0xbc0] sm:$0xff]  ;;  %1590 = vst [vmem:[%s10179_s11 + $0x5d0] sm:$0xff] %v1589_v58  ;;  %1592 = vst [vmem:[%s10179_s11 + $0x5d8] sm:$0xff] %v1591_v59  ;;  %v1595_v61 = vld [vmem:[%s10174_s10 + $0xbd0] sm:$0xff] }
  0x78   : > { %1594 = vst [vmem:[%s10179_s11 + $0x5e0] sm:$0xff] %v1593_v60  ;;  %v1597_v62 = vld [vmem:[%s10174_s10 + $0xbe0] sm:$0xff]  ;;  %v1599_v63 = vld [vmem:[%s10174_s10 + $0xbf0] sm:$0xff]  ;;  %1596 = vst [vmem:[%s10179_s11 + $0x5e8] sm:$0xff] %v1595_v61 }
  0x79   : > { %1598 = vst [vmem:[%s10179_s11 + $0x5f0] sm:$0xff] %v1597_v62  ;;  %1600 = vst [vmem:[%s10179_s11 + $0x5f8] sm:$0xff] %v1599_v63  ;;  %v1601_v0 = vld [vmem:[%s10174_s10 + $0xc00] sm:$0xff]  ;;  %v1603_v1 = vld [vmem:[%s10174_s10 + $0xc10] sm:$0xff] }
  0x7a   : > { %v1605_v2 = vld [vmem:[%s10174_s10 + $0xc20] sm:$0xff]  ;;  %1602 = vst [vmem:[%s10179_s11 + $0x600] sm:$0xff] %v1601_v0  ;;  %1604 = vst [vmem:[%s10179_s11 + $0x608] sm:$0xff] %v1603_v1  ;;  %v1607_v3 = vld [vmem:[%s10174_s10 + $0xc30] sm:$0xff] }
  0x7b   : > { %1606 = vst [vmem:[%s10179_s11 + $0x610] sm:$0xff] %v1605_v2  ;;  %v1609_v4 = vld [vmem:[%s10174_s10 + $0xc40] sm:$0xff]  ;;  %v1611_v5 = vld [vmem:[%s10174_s10 + $0xc50] sm:$0xff]  ;;  %1608 = vst [vmem:[%s10179_s11 + $0x618] sm:$0xff] %v1607_v3 }
  0x7c   : > { %1610 = vst [vmem:[%s10179_s11 + $0x620] sm:$0xff] %v1609_v4  ;;  %1612 = vst [vmem:[%s10179_s11 + $0x628] sm:$0xff] %v1611_v5  ;;  %v1613_v6 = vld [vmem:[%s10174_s10 + $0xc60] sm:$0xff]  ;;  %v1615_v7 = vld [vmem:[%s10174_s10 + $0xc70] sm:$0xff] }
  0x7d   : > { %v1617_v8 = vld [vmem:[%s10174_s10 + $0xc80] sm:$0xff]  ;;  %1614 = vst [vmem:[%s10179_s11 + $0x630] sm:$0xff] %v1613_v6  ;;  %1616 = vst [vmem:[%s10179_s11 + $0x638] sm:$0xff] %v1615_v7  ;;  %v1619_v9 = vld [vmem:[%s10174_s10 + $0xc90] sm:$0xff] }
  0x7e   : > { %1618 = vst [vmem:[%s10179_s11 + $0x640] sm:$0xff] %v1617_v8  ;;  %v1621_v10 = vld [vmem:[%s10174_s10 + $0xca0] sm:$0xff]  ;;  %v1623_v11 = vld [vmem:[%s10174_s10 + $0xcb0] sm:$0xff]  ;;  %1620 = vst [vmem:[%s10179_s11 + $0x648] sm:$0xff] %v1619_v9 }
  0x7f   : > { %1622 = vst [vmem:[%s10179_s11 + $0x650] sm:$0xff] %v1621_v10  ;;  %1624 = vst [vmem:[%s10179_s11 + $0x658] sm:$0xff] %v1623_v11  ;;  %v1625_v12 = vld [vmem:[%s10174_s10 + $0xcc0] sm:$0xff]  ;;  %v1627_v13 = vld [vmem:[%s10174_s10 + $0xcd0] sm:$0xff] }
  0x80   : > { %v1629_v14 = vld [vmem:[%s10174_s10 + $0xce0] sm:$0xff]  ;;  %1626 = vst [vmem:[%s10179_s11 + $0x660] sm:$0xff] %v1625_v12  ;;  %1628 = vst [vmem:[%s10179_s11 + $0x668] sm:$0xff] %v1627_v13  ;;  %v1631_v15 = vld [vmem:[%s10174_s10 + $0xcf0] sm:$0xff] }
  0x81   : > { %1630 = vst [vmem:[%s10179_s11 + $0x670] sm:$0xff] %v1629_v14  ;;  %v1633_v16 = vld [vmem:[%s10174_s10 + $0xd00] sm:$0xff]  ;;  %v1635_v17 = vld [vmem:[%s10174_s10 + $0xd10] sm:$0xff]  ;;  %1632 = vst [vmem:[%s10179_s11 + $0x678] sm:$0xff] %v1631_v15 }
  0x82   : > { %1634 = vst [vmem:[%s10179_s11 + $0x680] sm:$0xff] %v1633_v16  ;;  %1636 = vst [vmem:[%s10179_s11 + $0x688] sm:$0xff] %v1635_v17  ;;  %v1637_v18 = vld [vmem:[%s10174_s10 + $0xd20] sm:$0xff]  ;;  %v1639_v19 = vld [vmem:[%s10174_s10 + $0xd30] sm:$0xff] }
  0x83   : > { %v1641_v20 = vld [vmem:[%s10174_s10 + $0xd40] sm:$0xff]  ;;  %1638 = vst [vmem:[%s10179_s11 + $0x690] sm:$0xff] %v1637_v18  ;;  %1640 = vst [vmem:[%s10179_s11 + $0x698] sm:$0xff] %v1639_v19  ;;  %v1643_v21 = vld [vmem:[%s10174_s10 + $0xd50] sm:$0xff] }
  0x84   : > { %1642 = vst [vmem:[%s10179_s11 + $0x6a0] sm:$0xff] %v1641_v20  ;;  %v1645_v22 = vld [vmem:[%s10174_s10 + $0xd60] sm:$0xff]  ;;  %v1647_v23 = vld [vmem:[%s10174_s10 + $0xd70] sm:$0xff]  ;;  %1644 = vst [vmem:[%s10179_s11 + $0x6a8] sm:$0xff] %v1643_v21 }
  0x85   : > { %1646 = vst [vmem:[%s10179_s11 + $0x6b0] sm:$0xff] %v1645_v22  ;;  %1648 = vst [vmem:[%s10179_s11 + $0x6b8] sm:$0xff] %v1647_v23  ;;  %v1649_v24 = vld [vmem:[%s10174_s10 + $0xd80] sm:$0xff]  ;;  %v1651_v25 = vld [vmem:[%s10174_s10 + $0xd90] sm:$0xff] }
  0x86   : > { %v1653_v26 = vld [vmem:[%s10174_s10 + $0xda0] sm:$0xff]  ;;  %1650 = vst [vmem:[%s10179_s11 + $0x6c0] sm:$0xff] %v1649_v24  ;;  %1652 = vst [vmem:[%s10179_s11 + $0x6c8] sm:$0xff] %v1651_v25  ;;  %v1655_v27 = vld [vmem:[%s10174_s10 + $0xdb0] sm:$0xff] }
  0x87   : > { %1654 = vst [vmem:[%s10179_s11 + $0x6d0] sm:$0xff] %v1653_v26  ;;  %v1657_v28 = vld [vmem:[%s10174_s10 + $0xdc0] sm:$0xff]  ;;  %v1659_v29 = vld [vmem:[%s10174_s10 + $0xdd0] sm:$0xff]  ;;  %1656 = vst [vmem:[%s10179_s11 + $0x6d8] sm:$0xff] %v1655_v27 }
  0x88   : > { %1658 = vst [vmem:[%s10179_s11 + $0x6e0] sm:$0xff] %v1657_v28  ;;  %1660 = vst [vmem:[%s10179_s11 + $0x6e8] sm:$0xff] %v1659_v29  ;;  %v1661_v30 = vld [vmem:[%s10174_s10 + $0xde0] sm:$0xff]  ;;  %v1663_v31 = vld [vmem:[%s10174_s10 + $0xdf0] sm:$0xff] }
  0x89   : > { %v1665_v32 = vld [vmem:[%s10174_s10 + $0xe00] sm:$0xff]  ;;  %1662 = vst [vmem:[%s10179_s11 + $0x6f0] sm:$0xff] %v1661_v30  ;;  %1664 = vst [vmem:[%s10179_s11 + $0x6f8] sm:$0xff] %v1663_v31  ;;  %v1667_v33 = vld [vmem:[%s10174_s10 + $0xe10] sm:$0xff] }
  0x8a   : > { %1666 = vst [vmem:[%s10179_s11 + $0x700] sm:$0xff] %v1665_v32  ;;  %v1669_v34 = vld [vmem:[%s10174_s10 + $0xe20] sm:$0xff]  ;;  %v1671_v35 = vld [vmem:[%s10174_s10 + $0xe30] sm:$0xff]  ;;  %1668 = vst [vmem:[%s10179_s11 + $0x708] sm:$0xff] %v1667_v33 }
  0x8b   : > { %1670 = vst [vmem:[%s10179_s11 + $0x710] sm:$0xff] %v1669_v34  ;;  %1672 = vst [vmem:[%s10179_s11 + $0x718] sm:$0xff] %v1671_v35  ;;  %v1673_v36 = vld [vmem:[%s10174_s10 + $0xe40] sm:$0xff]  ;;  %v1675_v37 = vld [vmem:[%s10174_s10 + $0xe50] sm:$0xff] }
  0x8c   : > { %v1677_v38 = vld [vmem:[%s10174_s10 + $0xe60] sm:$0xff]  ;;  %1674 = vst [vmem:[%s10179_s11 + $0x720] sm:$0xff] %v1673_v36  ;;  %1676 = vst [vmem:[%s10179_s11 + $0x728] sm:$0xff] %v1675_v37  ;;  %v1679_v39 = vld [vmem:[%s10174_s10 + $0xe70] sm:$0xff] }
  0x8d   : > { %1678 = vst [vmem:[%s10179_s11 + $0x730] sm:$0xff] %v1677_v38  ;;  %v1681_v40 = vld [vmem:[%s10174_s10 + $0xe80] sm:$0xff]  ;;  %v1683_v41 = vld [vmem:[%s10174_s10 + $0xe90] sm:$0xff]  ;;  %1680 = vst [vmem:[%s10179_s11 + $0x738] sm:$0xff] %v1679_v39 }
  0x8e   : > { %1682 = vst [vmem:[%s10179_s11 + $0x740] sm:$0xff] %v1681_v40  ;;  %1684 = vst [vmem:[%s10179_s11 + $0x748] sm:$0xff] %v1683_v41  ;;  %v1685_v42 = vld [vmem:[%s10174_s10 + $0xea0] sm:$0xff]  ;;  %v1687_v43 = vld [vmem:[%s10174_s10 + $0xeb0] sm:$0xff] }
  0x8f   : > { %v1689_v44 = vld [vmem:[%s10174_s10 + $0xec0] sm:$0xff]  ;;  %1686 = vst [vmem:[%s10179_s11 + $0x750] sm:$0xff] %v1685_v42  ;;  %1688 = vst [vmem:[%s10179_s11 + $0x758] sm:$0xff] %v1687_v43  ;;  %v1691_v45 = vld [vmem:[%s10174_s10 + $0xed0] sm:$0xff] }
  0x90   : > { %1690 = vst [vmem:[%s10179_s11 + $0x760] sm:$0xff] %v1689_v44  ;;  %v1693_v46 = vld [vmem:[%s10174_s10 + $0xee0] sm:$0xff]  ;;  %v1695_v47 = vld [vmem:[%s10174_s10 + $0xef0] sm:$0xff]  ;;  %1692 = vst [vmem:[%s10179_s11 + $0x768] sm:$0xff] %v1691_v45 }
  0x91   : > { %1694 = vst [vmem:[%s10179_s11 + $0x770] sm:$0xff] %v1693_v46  ;;  %1696 = vst [vmem:[%s10179_s11 + $0x778] sm:$0xff] %v1695_v47  ;;  %v1697_v48 = vld [vmem:[%s10174_s10 + $0xf00] sm:$0xff]  ;;  %v1699_v49 = vld [vmem:[%s10174_s10 + $0xf10] sm:$0xff] }
  0x92   : > { %v1701_v50 = vld [vmem:[%s10174_s10 + $0xf20] sm:$0xff]  ;;  %1698 = vst [vmem:[%s10179_s11 + $0x780] sm:$0xff] %v1697_v48  ;;  %1700 = vst [vmem:[%s10179_s11 + $0x788] sm:$0xff] %v1699_v49  ;;  %v1703_v51 = vld [vmem:[%s10174_s10 + $0xf30] sm:$0xff] }
  0x93   : > { %1702 = vst [vmem:[%s10179_s11 + $0x790] sm:$0xff] %v1701_v50  ;;  %v1705_v52 = vld [vmem:[%s10174_s10 + $0xf40] sm:$0xff]  ;;  %v1707_v53 = vld [vmem:[%s10174_s10 + $0xf50] sm:$0xff]  ;;  %1704 = vst [vmem:[%s10179_s11 + $0x798] sm:$0xff] %v1703_v51 }
  0x94   : > { %1706 = vst [vmem:[%s10179_s11 + $0x7a0] sm:$0xff] %v1705_v52  ;;  %1708 = vst [vmem:[%s10179_s11 + $0x7a8] sm:$0xff] %v1707_v53  ;;  %v1709_v54 = vld [vmem:[%s10174_s10 + $0xf60] sm:$0xff]  ;;  %v1711_v55 = vld [vmem:[%s10174_s10 + $0xf70] sm:$0xff] }
  0x95   : > { %v1713_v56 = vld [vmem:[%s10174_s10 + $0xf80] sm:$0xff]  ;;  %1710 = vst [vmem:[%s10179_s11 + $0x7b0] sm:$0xff] %v1709_v54  ;;  %1712 = vst [vmem:[%s10179_s11 + $0x7b8] sm:$0xff] %v1711_v55  ;;  %v1715_v57 = vld [vmem:[%s10174_s10 + $0xf90] sm:$0xff] }
  0x96   : > { %1714 = vst [vmem:[%s10179_s11 + $0x7c0] sm:$0xff] %v1713_v56  ;;  %v1717_v58 = vld [vmem:[%s10174_s10 + $0xfa0] sm:$0xff]  ;;  %v1719_v59 = vld [vmem:[%s10174_s10 + $0xfb0] sm:$0xff]  ;;  %1716 = vst [vmem:[%s10179_s11 + $0x7c8] sm:$0xff] %v1715_v57 }
  0x97   : > { %1718 = vst [vmem:[%s10179_s11 + $0x7d0] sm:$0xff] %v1717_v58  ;;  %1720 = vst [vmem:[%s10179_s11 + $0x7d8] sm:$0xff] %v1719_v59  ;;  %v1721_v60 = vld [vmem:[%s10174_s10 + $0xfc0] sm:$0xff]  ;;  %v1723_v61 = vld [vmem:[%s10174_s10 + $0xfd0] sm:$0xff] }
  0x98   : > { %v1725_v62 = vld [vmem:[%s10174_s10 + $0xfe0] sm:$0xff]  ;;  %1722 = vst [vmem:[%s10179_s11 + $0x7e0] sm:$0xff] %v1721_v60  ;;  %1724 = vst [vmem:[%s10179_s11 + $0x7e8] sm:$0xff] %v1723_v61  ;;  %v1727_v63 = vld [vmem:[%s10174_s10 + $0xff0] sm:$0xff] }
  0x99   : > { %1726 = vst [vmem:[%s10179_s11 + $0x7f0] sm:$0xff] %v1725_v62  ;;  %v1729_v0 = vld [vmem:[%s10174_s10 + $0x1000] sm:$0xff]  ;;  %v1731_v1 = vld [vmem:[%s10174_s10 + $0x1010] sm:$0xff]  ;;  %1728 = vst [vmem:[%s10179_s11 + $0x7f8] sm:$0xff] %v1727_v63 }
  0x9a   : > { %1730 = vst [vmem:[%s10179_s11 + $0x800] sm:$0xff] %v1729_v0  ;;  %1732 = vst [vmem:[%s10179_s11 + $0x808] sm:$0xff] %v1731_v1  ;;  %v1733_v2 = vld [vmem:[%s10174_s10 + $0x1020] sm:$0xff]  ;;  %v1735_v3 = vld [vmem:[%s10174_s10 + $0x1030] sm:$0xff] }
  0x9b   : > { %v1737_v4 = vld [vmem:[%s10174_s10 + $0x1040] sm:$0xff]  ;;  %1734 = vst [vmem:[%s10179_s11 + $0x810] sm:$0xff] %v1733_v2  ;;  %1736 = vst [vmem:[%s10179_s11 + $0x818] sm:$0xff] %v1735_v3  ;;  %v1739_v5 = vld [vmem:[%s10174_s10 + $0x1050] sm:$0xff] }
  0x9c   : > { %1738 = vst [vmem:[%s10179_s11 + $0x820] sm:$0xff] %v1737_v4  ;;  %v1741_v6 = vld [vmem:[%s10174_s10 + $0x1060] sm:$0xff]  ;;  %v1743_v7 = vld [vmem:[%s10174_s10 + $0x1070] sm:$0xff]  ;;  %1740 = vst [vmem:[%s10179_s11 + $0x828] sm:$0xff] %v1739_v5 }
  0x9d   : > { %1742 = vst [vmem:[%s10179_s11 + $0x830] sm:$0xff] %v1741_v6  ;;  %1744 = vst [vmem:[%s10179_s11 + $0x838] sm:$0xff] %v1743_v7  ;;  %v1745_v8 = vld [vmem:[%s10174_s10 + $0x1080] sm:$0xff]  ;;  %v1747_v9 = vld [vmem:[%s10174_s10 + $0x1090] sm:$0xff] }
  0x9e   : > { %v1749_v10 = vld [vmem:[%s10174_s10 + $0x10a0] sm:$0xff]  ;;  %1746 = vst [vmem:[%s10179_s11 + $0x840] sm:$0xff] %v1745_v8  ;;  %1748 = vst [vmem:[%s10179_s11 + $0x848] sm:$0xff] %v1747_v9  ;;  %v1751_v11 = vld [vmem:[%s10174_s10 + $0x10b0] sm:$0xff] }
  0x9f   : > { %1750 = vst [vmem:[%s10179_s11 + $0x850] sm:$0xff] %v1749_v10  ;;  %v1753_v12 = vld [vmem:[%s10174_s10 + $0x10c0] sm:$0xff]  ;;  %v1755_v13 = vld [vmem:[%s10174_s10 + $0x10d0] sm:$0xff]  ;;  %1752 = vst [vmem:[%s10179_s11 + $0x858] sm:$0xff] %v1751_v11 }
  0xa0   : > { %1754 = vst [vmem:[%s10179_s11 + $0x860] sm:$0xff] %v1753_v12  ;;  %1756 = vst [vmem:[%s10179_s11 + $0x868] sm:$0xff] %v1755_v13  ;;  %v1757_v14 = vld [vmem:[%s10174_s10 + $0x10e0] sm:$0xff]  ;;  %v1759_v15 = vld [vmem:[%s10174_s10 + $0x10f0] sm:$0xff] }
  0xa1   : > { %v1761_v16 = vld [vmem:[%s10174_s10 + $0x1100] sm:$0xff]  ;;  %1758 = vst [vmem:[%s10179_s11 + $0x870] sm:$0xff] %v1757_v14  ;;  %1760 = vst [vmem:[%s10179_s11 + $0x878] sm:$0xff] %v1759_v15  ;;  %v1763_v17 = vld [vmem:[%s10174_s10 + $0x1110] sm:$0xff] }
  0xa2   : > { %1762 = vst [vmem:[%s10179_s11 + $0x880] sm:$0xff] %v1761_v16  ;;  %v1765_v18 = vld [vmem:[%s10174_s10 + $0x1120] sm:$0xff]  ;;  %v1767_v19 = vld [vmem:[%s10174_s10 + $0x1130] sm:$0xff]  ;;  %1764 = vst [vmem:[%s10179_s11 + $0x888] sm:$0xff] %v1763_v17 }
  0xa3   : > { %1766 = vst [vmem:[%s10179_s11 + $0x890] sm:$0xff] %v1765_v18  ;;  %1768 = vst [vmem:[%s10179_s11 + $0x898] sm:$0xff] %v1767_v19  ;;  %v1769_v20 = vld [vmem:[%s10174_s10 + $0x1140] sm:$0xff]  ;;  %v1771_v21 = vld [vmem:[%s10174_s10 + $0x1150] sm:$0xff] }
  0xa4   : > { %v1773_v22 = vld [vmem:[%s10174_s10 + $0x1160] sm:$0xff]  ;;  %1770 = vst [vmem:[%s10179_s11 + $0x8a0] sm:$0xff] %v1769_v20  ;;  %1772 = vst [vmem:[%s10179_s11 + $0x8a8] sm:$0xff] %v1771_v21  ;;  %v1775_v23 = vld [vmem:[%s10174_s10 + $0x1170] sm:$0xff] }
  0xa5   : > { %1774 = vst [vmem:[%s10179_s11 + $0x8b0] sm:$0xff] %v1773_v22  ;;  %v1777_v24 = vld [vmem:[%s10174_s10 + $0x1180] sm:$0xff]  ;;  %v1779_v25 = vld [vmem:[%s10174_s10 + $0x1190] sm:$0xff]  ;;  %1776 = vst [vmem:[%s10179_s11 + $0x8b8] sm:$0xff] %v1775_v23 }
  0xa6   : > { %1778 = vst [vmem:[%s10179_s11 + $0x8c0] sm:$0xff] %v1777_v24  ;;  %1780 = vst [vmem:[%s10179_s11 + $0x8c8] sm:$0xff] %v1779_v25  ;;  %v1781_v26 = vld [vmem:[%s10174_s10 + $0x11a0] sm:$0xff]  ;;  %v1783_v27 = vld [vmem:[%s10174_s10 + $0x11b0] sm:$0xff] }
  0xa7   : > { %v1785_v28 = vld [vmem:[%s10174_s10 + $0x11c0] sm:$0xff]  ;;  %1782 = vst [vmem:[%s10179_s11 + $0x8d0] sm:$0xff] %v1781_v26  ;;  %1784 = vst [vmem:[%s10179_s11 + $0x8d8] sm:$0xff] %v1783_v27  ;;  %v1787_v29 = vld [vmem:[%s10174_s10 + $0x11d0] sm:$0xff] }
  0xa8   : > { %1786 = vst [vmem:[%s10179_s11 + $0x8e0] sm:$0xff] %v1785_v28  ;;  %v1789_v30 = vld [vmem:[%s10174_s10 + $0x11e0] sm:$0xff]  ;;  %v1791_v31 = vld [vmem:[%s10174_s10 + $0x11f0] sm:$0xff]  ;;  %1788 = vst [vmem:[%s10179_s11 + $0x8e8] sm:$0xff] %v1787_v29 }
  0xa9   : > { %1790 = vst [vmem:[%s10179_s11 + $0x8f0] sm:$0xff] %v1789_v30  ;;  %1792 = vst [vmem:[%s10179_s11 + $0x8f8] sm:$0xff] %v1791_v31  ;;  %v1793_v32 = vld [vmem:[%s10174_s10 + $0x1200] sm:$0xff]  ;;  %v1795_v33 = vld [vmem:[%s10174_s10 + $0x1210] sm:$0xff] }
  0xaa   : > { %v1797_v34 = vld [vmem:[%s10174_s10 + $0x1220] sm:$0xff]  ;;  %1794 = vst [vmem:[%s10179_s11 + $0x900] sm:$0xff] %v1793_v32  ;;  %1796 = vst [vmem:[%s10179_s11 + $0x908] sm:$0xff] %v1795_v33  ;;  %v1799_v35 = vld [vmem:[%s10174_s10 + $0x1230] sm:$0xff] }
  0xab   : > { %1798 = vst [vmem:[%s10179_s11 + $0x910] sm:$0xff] %v1797_v34  ;;  %v1801_v36 = vld [vmem:[%s10174_s10 + $0x1240] sm:$0xff]  ;;  %v1803_v37 = vld [vmem:[%s10174_s10 + $0x1250] sm:$0xff]  ;;  %1800 = vst [vmem:[%s10179_s11 + $0x918] sm:$0xff] %v1799_v35 }
  0xac   : > { %1802 = vst [vmem:[%s10179_s11 + $0x920] sm:$0xff] %v1801_v36  ;;  %1804 = vst [vmem:[%s10179_s11 + $0x928] sm:$0xff] %v1803_v37  ;;  %v1805_v38 = vld [vmem:[%s10174_s10 + $0x1260] sm:$0xff]  ;;  %v1807_v39 = vld [vmem:[%s10174_s10 + $0x1270] sm:$0xff] }
  0xad   : > { %v1809_v40 = vld [vmem:[%s10174_s10 + $0x1280] sm:$0xff]  ;;  %1806 = vst [vmem:[%s10179_s11 + $0x930] sm:$0xff] %v1805_v38  ;;  %1808 = vst [vmem:[%s10179_s11 + $0x938] sm:$0xff] %v1807_v39  ;;  %v1811_v41 = vld [vmem:[%s10174_s10 + $0x1290] sm:$0xff] }
  0xae   : > { %1810 = vst [vmem:[%s10179_s11 + $0x940] sm:$0xff] %v1809_v40  ;;  %v1813_v42 = vld [vmem:[%s10174_s10 + $0x12a0] sm:$0xff]  ;;  %v1815_v43 = vld [vmem:[%s10174_s10 + $0x12b0] sm:$0xff]  ;;  %1812 = vst [vmem:[%s10179_s11 + $0x948] sm:$0xff] %v1811_v41 }
  0xaf   : > { %1814 = vst [vmem:[%s10179_s11 + $0x950] sm:$0xff] %v1813_v42  ;;  %1816 = vst [vmem:[%s10179_s11 + $0x958] sm:$0xff] %v1815_v43  ;;  %v1817_v44 = vld [vmem:[%s10174_s10 + $0x12c0] sm:$0xff]  ;;  %v1819_v45 = vld [vmem:[%s10174_s10 + $0x12d0] sm:$0xff] }
  0xb0   : > { %v1821_v46 = vld [vmem:[%s10174_s10 + $0x12e0] sm:$0xff]  ;;  %1818 = vst [vmem:[%s10179_s11 + $0x960] sm:$0xff] %v1817_v44  ;;  %1820 = vst [vmem:[%s10179_s11 + $0x968] sm:$0xff] %v1819_v45  ;;  %v1823_v47 = vld [vmem:[%s10174_s10 + $0x12f0] sm:$0xff] }
  0xb1   : > { %1822 = vst [vmem:[%s10179_s11 + $0x970] sm:$0xff] %v1821_v46  ;;  %v1825_v48 = vld [vmem:[%s10174_s10 + $0x1300] sm:$0xff]  ;;  %v1827_v49 = vld [vmem:[%s10174_s10 + $0x1310] sm:$0xff]  ;;  %1824 = vst [vmem:[%s10179_s11 + $0x978] sm:$0xff] %v1823_v47 }
  0xb2   : > { %1826 = vst [vmem:[%s10179_s11 + $0x980] sm:$0xff] %v1825_v48  ;;  %1828 = vst [vmem:[%s10179_s11 + $0x988] sm:$0xff] %v1827_v49  ;;  %v1829_v50 = vld [vmem:[%s10174_s10 + $0x1320] sm:$0xff]  ;;  %v1831_v51 = vld [vmem:[%s10174_s10 + $0x1330] sm:$0xff] }
  0xb3   : > { %v1833_v52 = vld [vmem:[%s10174_s10 + $0x1340] sm:$0xff]  ;;  %1830 = vst [vmem:[%s10179_s11 + $0x990] sm:$0xff] %v1829_v50  ;;  %1832 = vst [vmem:[%s10179_s11 + $0x998] sm:$0xff] %v1831_v51  ;;  %v1835_v53 = vld [vmem:[%s10174_s10 + $0x1350] sm:$0xff] }
  0xb4   : > { %1834 = vst [vmem:[%s10179_s11 + $0x9a0] sm:$0xff] %v1833_v52  ;;  %v1837_v54 = vld [vmem:[%s10174_s10 + $0x1360] sm:$0xff]  ;;  %v1839_v55 = vld [vmem:[%s10174_s10 + $0x1370] sm:$0xff]  ;;  %1836 = vst [vmem:[%s10179_s11 + $0x9a8] sm:$0xff] %v1835_v53 }
  0xb5   : > { %1838 = vst [vmem:[%s10179_s11 + $0x9b0] sm:$0xff] %v1837_v54  ;;  %1840 = vst [vmem:[%s10179_s11 + $0x9b8] sm:$0xff] %v1839_v55  ;;  %v1841_v56 = vld [vmem:[%s10174_s10 + $0x1380] sm:$0xff]  ;;  %v1843_v57 = vld [vmem:[%s10174_s10 + $0x1390] sm:$0xff] }
  0xb6   : > { %v1845_v58 = vld [vmem:[%s10174_s10 + $0x13a0] sm:$0xff]  ;;  %1842 = vst [vmem:[%s10179_s11 + $0x9c0] sm:$0xff] %v1841_v56  ;;  %1844 = vst [vmem:[%s10179_s11 + $0x9c8] sm:$0xff] %v1843_v57  ;;  %v1847_v59 = vld [vmem:[%s10174_s10 + $0x13b0] sm:$0xff] }
  0xb7   : > { %1846 = vst [vmem:[%s10179_s11 + $0x9d0] sm:$0xff] %v1845_v58  ;;  %v1849_v60 = vld [vmem:[%s10174_s10 + $0x13c0] sm:$0xff]  ;;  %v1851_v61 = vld [vmem:[%s10174_s10 + $0x13d0] sm:$0xff]  ;;  %1848 = vst [vmem:[%s10179_s11 + $0x9d8] sm:$0xff] %v1847_v59 }
  0xb8   : > { %1850 = vst [vmem:[%s10179_s11 + $0x9e0] sm:$0xff] %v1849_v60  ;;  %1852 = vst [vmem:[%s10179_s11 + $0x9e8] sm:$0xff] %v1851_v61  ;;  %v1853_v62 = vld [vmem:[%s10174_s10 + $0x13e0] sm:$0xff]  ;;  %v1855_v63 = vld [vmem:[%s10174_s10 + $0x13f0] sm:$0xff] }
  0xb9   : > { %v1857_v0 = vld [vmem:[%s10174_s10 + $0x1400] sm:$0xff]  ;;  %1854 = vst [vmem:[%s10179_s11 + $0x9f0] sm:$0xff] %v1853_v62  ;;  %1856 = vst [vmem:[%s10179_s11 + $0x9f8] sm:$0xff] %v1855_v63  ;;  %v1859_v1 = vld [vmem:[%s10174_s10 + $0x1410] sm:$0xff] }
  0xba   : > { %1858 = vst [vmem:[%s10179_s11 + $0xa00] sm:$0xff] %v1857_v0  ;;  %v1861_v2 = vld [vmem:[%s10174_s10 + $0x1420] sm:$0xff]  ;;  %v1863_v3 = vld [vmem:[%s10174_s10 + $0x1430] sm:$0xff]  ;;  %1860 = vst [vmem:[%s10179_s11 + $0xa08] sm:$0xff] %v1859_v1 }
  0xbb   : > { %1862 = vst [vmem:[%s10179_s11 + $0xa10] sm:$0xff] %v1861_v2  ;;  %1864 = vst [vmem:[%s10179_s11 + $0xa18] sm:$0xff] %v1863_v3  ;;  %v1865_v4 = vld [vmem:[%s10174_s10 + $0x1440] sm:$0xff]  ;;  %v1867_v5 = vld [vmem:[%s10174_s10 + $0x1450] sm:$0xff] }
  0xbc   : > { %v1869_v6 = vld [vmem:[%s10174_s10 + $0x1460] sm:$0xff]  ;;  %1866 = vst [vmem:[%s10179_s11 + $0xa20] sm:$0xff] %v1865_v4  ;;  %1868 = vst [vmem:[%s10179_s11 + $0xa28] sm:$0xff] %v1867_v5  ;;  %v1871_v7 = vld [vmem:[%s10174_s10 + $0x1470] sm:$0xff] }
  0xbd   : > { %1870 = vst [vmem:[%s10179_s11 + $0xa30] sm:$0xff] %v1869_v6  ;;  %v1873_v8 = vld [vmem:[%s10174_s10 + $0x1480] sm:$0xff]  ;;  %v1875_v9 = vld [vmem:[%s10174_s10 + $0x1490] sm:$0xff]  ;;  %1872 = vst [vmem:[%s10179_s11 + $0xa38] sm:$0xff] %v1871_v7 }
  0xbe   : > { %1874 = vst [vmem:[%s10179_s11 + $0xa40] sm:$0xff] %v1873_v8  ;;  %1876 = vst [vmem:[%s10179_s11 + $0xa48] sm:$0xff] %v1875_v9  ;;  %v1877_v10 = vld [vmem:[%s10174_s10 + $0x14a0] sm:$0xff]  ;;  %v1879_v11 = vld [vmem:[%s10174_s10 + $0x14b0] sm:$0xff] }
  0xbf   : > { %v1881_v12 = vld [vmem:[%s10174_s10 + $0x14c0] sm:$0xff]  ;;  %1878 = vst [vmem:[%s10179_s11 + $0xa50] sm:$0xff] %v1877_v10  ;;  %1880 = vst [vmem:[%s10179_s11 + $0xa58] sm:$0xff] %v1879_v11  ;;  %v1883_v13 = vld [vmem:[%s10174_s10 + $0x14d0] sm:$0xff] }
  0xc0   : > { %1882 = vst [vmem:[%s10179_s11 + $0xa60] sm:$0xff] %v1881_v12  ;;  %v1885_v14 = vld [vmem:[%s10174_s10 + $0x14e0] sm:$0xff]  ;;  %v1887_v15 = vld [vmem:[%s10174_s10 + $0x14f0] sm:$0xff]  ;;  %1884 = vst [vmem:[%s10179_s11 + $0xa68] sm:$0xff] %v1883_v13 }
  0xc1   : > { %1886 = vst [vmem:[%s10179_s11 + $0xa70] sm:$0xff] %v1885_v14  ;;  %1888 = vst [vmem:[%s10179_s11 + $0xa78] sm:$0xff] %v1887_v15  ;;  %v1889_v16 = vld [vmem:[%s10174_s10 + $0x1500] sm:$0xff]  ;;  %v1891_v17 = vld [vmem:[%s10174_s10 + $0x1510] sm:$0xff] }
  0xc2   : > { %v1893_v18 = vld [vmem:[%s10174_s10 + $0x1520] sm:$0xff]  ;;  %1890 = vst [vmem:[%s10179_s11 + $0xa80] sm:$0xff] %v1889_v16  ;;  %1892 = vst [vmem:[%s10179_s11 + $0xa88] sm:$0xff] %v1891_v17  ;;  %v1895_v19 = vld [vmem:[%s10174_s10 + $0x1530] sm:$0xff] }
  0xc3   : > { %1894 = vst [vmem:[%s10179_s11 + $0xa90] sm:$0xff] %v1893_v18  ;;  %v1897_v20 = vld [vmem:[%s10174_s10 + $0x1540] sm:$0xff]  ;;  %v1899_v21 = vld [vmem:[%s10174_s10 + $0x1550] sm:$0xff]  ;;  %1896 = vst [vmem:[%s10179_s11 + $0xa98] sm:$0xff] %v1895_v19 }
  0xc4   : > { %1898 = vst [vmem:[%s10179_s11 + $0xaa0] sm:$0xff] %v1897_v20  ;;  %1900 = vst [vmem:[%s10179_s11 + $0xaa8] sm:$0xff] %v1899_v21  ;;  %v1901_v22 = vld [vmem:[%s10174_s10 + $0x1560] sm:$0xff]  ;;  %v1903_v23 = vld [vmem:[%s10174_s10 + $0x1570] sm:$0xff] }
  0xc5   : > { %v1905_v24 = vld [vmem:[%s10174_s10 + $0x1580] sm:$0xff]  ;;  %1902 = vst [vmem:[%s10179_s11 + $0xab0] sm:$0xff] %v1901_v22  ;;  %1904 = vst [vmem:[%s10179_s11 + $0xab8] sm:$0xff] %v1903_v23  ;;  %v1907_v25 = vld [vmem:[%s10174_s10 + $0x1590] sm:$0xff] }
  0xc6   : > { %1906 = vst [vmem:[%s10179_s11 + $0xac0] sm:$0xff] %v1905_v24  ;;  %v1909_v26 = vld [vmem:[%s10174_s10 + $0x15a0] sm:$0xff]  ;;  %v1911_v27 = vld [vmem:[%s10174_s10 + $0x15b0] sm:$0xff]  ;;  %1908 = vst [vmem:[%s10179_s11 + $0xac8] sm:$0xff] %v1907_v25 }
  0xc7   : > { %1910 = vst [vmem:[%s10179_s11 + $0xad0] sm:$0xff] %v1909_v26  ;;  %1912 = vst [vmem:[%s10179_s11 + $0xad8] sm:$0xff] %v1911_v27  ;;  %v1913_v28 = vld [vmem:[%s10174_s10 + $0x15c0] sm:$0xff]  ;;  %v1915_v29 = vld [vmem:[%s10174_s10 + $0x15d0] sm:$0xff] }
  0xc8   : > { %v1917_v30 = vld [vmem:[%s10174_s10 + $0x15e0] sm:$0xff]  ;;  %1914 = vst [vmem:[%s10179_s11 + $0xae0] sm:$0xff] %v1913_v28  ;;  %1916 = vst [vmem:[%s10179_s11 + $0xae8] sm:$0xff] %v1915_v29  ;;  %v1919_v31 = vld [vmem:[%s10174_s10 + $0x15f0] sm:$0xff] }
  0xc9   : > { %1918 = vst [vmem:[%s10179_s11 + $0xaf0] sm:$0xff] %v1917_v30  ;;  %v1921_v32 = vld [vmem:[%s10174_s10 + $0x1600] sm:$0xff]  ;;  %v1923_v33 = vld [vmem:[%s10174_s10 + $0x1610] sm:$0xff]  ;;  %1920 = vst [vmem:[%s10179_s11 + $0xaf8] sm:$0xff] %v1919_v31 }
  0xca   : > { %1922 = vst [vmem:[%s10179_s11 + $0xb00] sm:$0xff] %v1921_v32  ;;  %1924 = vst [vmem:[%s10179_s11 + $0xb08] sm:$0xff] %v1923_v33  ;;  %v1925_v34 = vld [vmem:[%s10174_s10 + $0x1620] sm:$0xff]  ;;  %v1927_v35 = vld [vmem:[%s10174_s10 + $0x1630] sm:$0xff] }
  0xcb   : > { %v1929_v36 = vld [vmem:[%s10174_s10 + $0x1640] sm:$0xff]  ;;  %1926 = vst [vmem:[%s10179_s11 + $0xb10] sm:$0xff] %v1925_v34  ;;  %1928 = vst [vmem:[%s10179_s11 + $0xb18] sm:$0xff] %v1927_v35  ;;  %v1931_v37 = vld [vmem:[%s10174_s10 + $0x1650] sm:$0xff] }
  0xcc   : > { %1930 = vst [vmem:[%s10179_s11 + $0xb20] sm:$0xff] %v1929_v36  ;;  %v1933_v38 = vld [vmem:[%s10174_s10 + $0x1660] sm:$0xff]  ;;  %v1935_v39 = vld [vmem:[%s10174_s10 + $0x1670] sm:$0xff]  ;;  %1932 = vst [vmem:[%s10179_s11 + $0xb28] sm:$0xff] %v1931_v37 }
  0xcd   : > { %1934 = vst [vmem:[%s10179_s11 + $0xb30] sm:$0xff] %v1933_v38  ;;  %1936 = vst [vmem:[%s10179_s11 + $0xb38] sm:$0xff] %v1935_v39  ;;  %v1937_v40 = vld [vmem:[%s10174_s10 + $0x1680] sm:$0xff]  ;;  %v1939_v41 = vld [vmem:[%s10174_s10 + $0x1690] sm:$0xff] }
  0xce   : > { %v1941_v42 = vld [vmem:[%s10174_s10 + $0x16a0] sm:$0xff]  ;;  %1938 = vst [vmem:[%s10179_s11 + $0xb40] sm:$0xff] %v1937_v40  ;;  %1940 = vst [vmem:[%s10179_s11 + $0xb48] sm:$0xff] %v1939_v41  ;;  %v1943_v43 = vld [vmem:[%s10174_s10 + $0x16b0] sm:$0xff] }
  0xcf   : > { %1942 = vst [vmem:[%s10179_s11 + $0xb50] sm:$0xff] %v1941_v42  ;;  %v1945_v44 = vld [vmem:[%s10174_s10 + $0x16c0] sm:$0xff]  ;;  %v1947_v45 = vld [vmem:[%s10174_s10 + $0x16d0] sm:$0xff]  ;;  %1944 = vst [vmem:[%s10179_s11 + $0xb58] sm:$0xff] %v1943_v43 }
  0xd0   : > { %1946 = vst [vmem:[%s10179_s11 + $0xb60] sm:$0xff] %v1945_v44  ;;  %1948 = vst [vmem:[%s10179_s11 + $0xb68] sm:$0xff] %v1947_v45  ;;  %v1949_v46 = vld [vmem:[%s10174_s10 + $0x16e0] sm:$0xff]  ;;  %v1951_v47 = vld [vmem:[%s10174_s10 + $0x16f0] sm:$0xff] }
  0xd1   : > { %v1953_v48 = vld [vmem:[%s10174_s10 + $0x1700] sm:$0xff]  ;;  %1950 = vst [vmem:[%s10179_s11 + $0xb70] sm:$0xff] %v1949_v46  ;;  %1952 = vst [vmem:[%s10179_s11 + $0xb78] sm:$0xff] %v1951_v47  ;;  %v1955_v49 = vld [vmem:[%s10174_s10 + $0x1710] sm:$0xff] }
  0xd2   : > { %1954 = vst [vmem:[%s10179_s11 + $0xb80] sm:$0xff] %v1953_v48  ;;  %v1957_v50 = vld [vmem:[%s10174_s10 + $0x1720] sm:$0xff]  ;;  %v1959_v51 = vld [vmem:[%s10174_s10 + $0x1730] sm:$0xff]  ;;  %1956 = vst [vmem:[%s10179_s11 + $0xb88] sm:$0xff] %v1955_v49 }
  0xd3   : > { %1958 = vst [vmem:[%s10179_s11 + $0xb90] sm:$0xff] %v1957_v50  ;;  %1960 = vst [vmem:[%s10179_s11 + $0xb98] sm:$0xff] %v1959_v51  ;;  %v1961_v52 = vld [vmem:[%s10174_s10 + $0x1740] sm:$0xff]  ;;  %v1963_v53 = vld [vmem:[%s10174_s10 + $0x1750] sm:$0xff] }
  0xd4   : > { %v1965_v54 = vld [vmem:[%s10174_s10 + $0x1760] sm:$0xff]  ;;  %1962 = vst [vmem:[%s10179_s11 + $0xba0] sm:$0xff] %v1961_v52  ;;  %1964 = vst [vmem:[%s10179_s11 + $0xba8] sm:$0xff] %v1963_v53  ;;  %v1967_v55 = vld [vmem:[%s10174_s10 + $0x1770] sm:$0xff] }
  0xd5   : > { %1966 = vst [vmem:[%s10179_s11 + $0xbb0] sm:$0xff] %v1965_v54  ;;  %v1969_v56 = vld [vmem:[%s10174_s10 + $0x1780] sm:$0xff]  ;;  %v1971_v57 = vld [vmem:[%s10174_s10 + $0x1790] sm:$0xff]  ;;  %1968 = vst [vmem:[%s10179_s11 + $0xbb8] sm:$0xff] %v1967_v55 }
  0xd6   : > { %1970 = vst [vmem:[%s10179_s11 + $0xbc0] sm:$0xff] %v1969_v56  ;;  %1972 = vst [vmem:[%s10179_s11 + $0xbc8] sm:$0xff] %v1971_v57  ;;  %v1973_v58 = vld [vmem:[%s10174_s10 + $0x17a0] sm:$0xff]  ;;  %v1975_v59 = vld [vmem:[%s10174_s10 + $0x17b0] sm:$0xff] }
  0xd7   : > { %v1977_v60 = vld [vmem:[%s10174_s10 + $0x17c0] sm:$0xff]  ;;  %1974 = vst [vmem:[%s10179_s11 + $0xbd0] sm:$0xff] %v1973_v58  ;;  %1976 = vst [vmem:[%s10179_s11 + $0xbd8] sm:$0xff] %v1975_v59  ;;  %v1979_v61 = vld [vmem:[%s10174_s10 + $0x17d0] sm:$0xff] }
  0xd8   : > { %1978 = vst [vmem:[%s10179_s11 + $0xbe0] sm:$0xff] %v1977_v60  ;;  %v1981_v62 = vld [vmem:[%s10174_s10 + $0x17e0] sm:$0xff]  ;;  %v1983_v63 = vld [vmem:[%s10174_s10 + $0x17f0] sm:$0xff]  ;;  %1980 = vst [vmem:[%s10179_s11 + $0xbe8] sm:$0xff] %v1979_v61 }
  0xd9   : > { %1982 = vst [vmem:[%s10179_s11 + $0xbf0] sm:$0xff] %v1981_v62  ;;  %1984 = vst [vmem:[%s10179_s11 + $0xbf8] sm:$0xff] %v1983_v63  ;;  %v1985_v0 = vld [vmem:[%s10174_s10 + $0x1800] sm:$0xff]  ;;  %v1987_v1 = vld [vmem:[%s10174_s10 + $0x1810] sm:$0xff] }
  0xda   : > { %v1989_v2 = vld [vmem:[%s10174_s10 + $0x1820] sm:$0xff]  ;;  %1986 = vst [vmem:[%s10179_s11 + $0xc00] sm:$0xff] %v1985_v0  ;;  %1988 = vst [vmem:[%s10179_s11 + $0xc08] sm:$0xff] %v1987_v1  ;;  %v1991_v3 = vld [vmem:[%s10174_s10 + $0x1830] sm:$0xff] }
  0xdb   : > { %1990 = vst [vmem:[%s10179_s11 + $0xc10] sm:$0xff] %v1989_v2  ;;  %v1993_v4 = vld [vmem:[%s10174_s10 + $0x1840] sm:$0xff]  ;;  %v1995_v5 = vld [vmem:[%s10174_s10 + $0x1850] sm:$0xff]  ;;  %1992 = vst [vmem:[%s10179_s11 + $0xc18] sm:$0xff] %v1991_v3 }
  0xdc   : > { %1994 = vst [vmem:[%s10179_s11 + $0xc20] sm:$0xff] %v1993_v4  ;;  %1996 = vst [vmem:[%s10179_s11 + $0xc28] sm:$0xff] %v1995_v5  ;;  %v1997_v6 = vld [vmem:[%s10174_s10 + $0x1860] sm:$0xff]  ;;  %v1999_v7 = vld [vmem:[%s10174_s10 + $0x1870] sm:$0xff] }
  0xdd   : > { %v2001_v8 = vld [vmem:[%s10174_s10 + $0x1880] sm:$0xff]  ;;  %1998 = vst [vmem:[%s10179_s11 + $0xc30] sm:$0xff] %v1997_v6  ;;  %2000 = vst [vmem:[%s10179_s11 + $0xc38] sm:$0xff] %v1999_v7  ;;  %v2003_v9 = vld [vmem:[%s10174_s10 + $0x1890] sm:$0xff] }
  0xde   : > { %2002 = vst [vmem:[%s10179_s11 + $0xc40] sm:$0xff] %v2001_v8  ;;  %v2005_v10 = vld [vmem:[%s10174_s10 + $0x18a0] sm:$0xff]  ;;  %v2007_v11 = vld [vmem:[%s10174_s10 + $0x18b0] sm:$0xff]  ;;  %2004 = vst [vmem:[%s10179_s11 + $0xc48] sm:$0xff] %v2003_v9 }
  0xdf   : > { %2006 = vst [vmem:[%s10179_s11 + $0xc50] sm:$0xff] %v2005_v10  ;;  %2008 = vst [vmem:[%s10179_s11 + $0xc58] sm:$0xff] %v2007_v11  ;;  %v2009_v12 = vld [vmem:[%s10174_s10 + $0x18c0] sm:$0xff]  ;;  %v2011_v13 = vld [vmem:[%s10174_s10 + $0x18d0] sm:$0xff] }
  0xe0   : > { %v2013_v14 = vld [vmem:[%s10174_s10 + $0x18e0] sm:$0xff]  ;;  %2010 = vst [vmem:[%s10179_s11 + $0xc60] sm:$0xff] %v2009_v12  ;;  %2012 = vst [vmem:[%s10179_s11 + $0xc68] sm:$0xff] %v2011_v13  ;;  %v2015_v15 = vld [vmem:[%s10174_s10 + $0x18f0] sm:$0xff] }
  0xe1   : > { %2014 = vst [vmem:[%s10179_s11 + $0xc70] sm:$0xff] %v2013_v14  ;;  %v2017_v16 = vld [vmem:[%s10174_s10 + $0x1900] sm:$0xff]  ;;  %v2019_v17 = vld [vmem:[%s10174_s10 + $0x1910] sm:$0xff]  ;;  %2016 = vst [vmem:[%s10179_s11 + $0xc78] sm:$0xff] %v2015_v15 }
  0xe2   : > { %2018 = vst [vmem:[%s10179_s11 + $0xc80] sm:$0xff] %v2017_v16  ;;  %2020 = vst [vmem:[%s10179_s11 + $0xc88] sm:$0xff] %v2019_v17  ;;  %v2021_v18 = vld [vmem:[%s10174_s10 + $0x1920] sm:$0xff]  ;;  %v2023_v19 = vld [vmem:[%s10174_s10 + $0x1930] sm:$0xff] }
  0xe3   : > { %v2025_v20 = vld [vmem:[%s10174_s10 + $0x1940] sm:$0xff]  ;;  %2022 = vst [vmem:[%s10179_s11 + $0xc90] sm:$0xff] %v2021_v18  ;;  %2024 = vst [vmem:[%s10179_s11 + $0xc98] sm:$0xff] %v2023_v19  ;;  %v2027_v21 = vld [vmem:[%s10174_s10 + $0x1950] sm:$0xff] }
  0xe4   : > { %2026 = vst [vmem:[%s10179_s11 + $0xca0] sm:$0xff] %v2025_v20  ;;  %v2029_v22 = vld [vmem:[%s10174_s10 + $0x1960] sm:$0xff]  ;;  %v2031_v23 = vld [vmem:[%s10174_s10 + $0x1970] sm:$0xff]  ;;  %2028 = vst [vmem:[%s10179_s11 + $0xca8] sm:$0xff] %v2027_v21 }
  0xe5   : > { %2030 = vst [vmem:[%s10179_s11 + $0xcb0] sm:$0xff] %v2029_v22  ;;  %2032 = vst [vmem:[%s10179_s11 + $0xcb8] sm:$0xff] %v2031_v23  ;;  %v2033_v24 = vld [vmem:[%s10174_s10 + $0x1980] sm:$0xff]  ;;  %v2035_v25 = vld [vmem:[%s10174_s10 + $0x1990] sm:$0xff] }
  0xe6   : > { %v2037_v26 = vld [vmem:[%s10174_s10 + $0x19a0] sm:$0xff]  ;;  %2034 = vst [vmem:[%s10179_s11 + $0xcc0] sm:$0xff] %v2033_v24  ;;  %2036 = vst [vmem:[%s10179_s11 + $0xcc8] sm:$0xff] %v2035_v25  ;;  %v2039_v27 = vld [vmem:[%s10174_s10 + $0x19b0] sm:$0xff] }
  0xe7   : > { %2038 = vst [vmem:[%s10179_s11 + $0xcd0] sm:$0xff] %v2037_v26  ;;  %v2041_v28 = vld [vmem:[%s10174_s10 + $0x19c0] sm:$0xff]  ;;  %v2043_v29 = vld [vmem:[%s10174_s10 + $0x19d0] sm:$0xff]  ;;  %2040 = vst [vmem:[%s10179_s11 + $0xcd8] sm:$0xff] %v2039_v27 }
  0xe8   : > { %2042 = vst [vmem:[%s10179_s11 + $0xce0] sm:$0xff] %v2041_v28  ;;  %2044 = vst [vmem:[%s10179_s11 + $0xce8] sm:$0xff] %v2043_v29  ;;  %v2045_v30 = vld [vmem:[%s10174_s10 + $0x19e0] sm:$0xff]  ;;  %v2047_v31 = vld [vmem:[%s10174_s10 + $0x19f0] sm:$0xff] }
  0xe9   : > { %v2049_v32 = vld [vmem:[%s10174_s10 + $0x1a00] sm:$0xff]  ;;  %2046 = vst [vmem:[%s10179_s11 + $0xcf0] sm:$0xff] %v2045_v30  ;;  %2048 = vst [vmem:[%s10179_s11 + $0xcf8] sm:$0xff] %v2047_v31  ;;  %v2051_v33 = vld [vmem:[%s10174_s10 + $0x1a10] sm:$0xff] }
  0xea   : > { %2050 = vst [vmem:[%s10179_s11 + $0xd00] sm:$0xff] %v2049_v32  ;;  %v2053_v34 = vld [vmem:[%s10174_s10 + $0x1a20] sm:$0xff]  ;;  %v2055_v35 = vld [vmem:[%s10174_s10 + $0x1a30] sm:$0xff]  ;;  %2052 = vst [vmem:[%s10179_s11 + $0xd08] sm:$0xff] %v2051_v33 }
  0xeb   : > { %2054 = vst [vmem:[%s10179_s11 + $0xd10] sm:$0xff] %v2053_v34  ;;  %2056 = vst [vmem:[%s10179_s11 + $0xd18] sm:$0xff] %v2055_v35  ;;  %v2057_v36 = vld [vmem:[%s10174_s10 + $0x1a40] sm:$0xff]  ;;  %v2059_v37 = vld [vmem:[%s10174_s10 + $0x1a50] sm:$0xff] }
  0xec   : > { %v2061_v38 = vld [vmem:[%s10174_s10 + $0x1a60] sm:$0xff]  ;;  %2058 = vst [vmem:[%s10179_s11 + $0xd20] sm:$0xff] %v2057_v36  ;;  %2060 = vst [vmem:[%s10179_s11 + $0xd28] sm:$0xff] %v2059_v37  ;;  %v2063_v39 = vld [vmem:[%s10174_s10 + $0x1a70] sm:$0xff] }
  0xed   : > { %2062 = vst [vmem:[%s10179_s11 + $0xd30] sm:$0xff] %v2061_v38  ;;  %v2065_v40 = vld [vmem:[%s10174_s10 + $0x1a80] sm:$0xff]  ;;  %v2067_v41 = vld [vmem:[%s10174_s10 + $0x1a90] sm:$0xff]  ;;  %2064 = vst [vmem:[%s10179_s11 + $0xd38] sm:$0xff] %v2063_v39 }
  0xee   : > { %2066 = vst [vmem:[%s10179_s11 + $0xd40] sm:$0xff] %v2065_v40  ;;  %2068 = vst [vmem:[%s10179_s11 + $0xd48] sm:$0xff] %v2067_v41  ;;  %v2069_v42 = vld [vmem:[%s10174_s10 + $0x1aa0] sm:$0xff]  ;;  %v2071_v43 = vld [vmem:[%s10174_s10 + $0x1ab0] sm:$0xff] }
  0xef   : > { %v2073_v44 = vld [vmem:[%s10174_s10 + $0x1ac0] sm:$0xff]  ;;  %2070 = vst [vmem:[%s10179_s11 + $0xd50] sm:$0xff] %v2069_v42  ;;  %2072 = vst [vmem:[%s10179_s11 + $0xd58] sm:$0xff] %v2071_v43  ;;  %v2075_v45 = vld [vmem:[%s10174_s10 + $0x1ad0] sm:$0xff] }
  0xf0   : > { %2074 = vst [vmem:[%s10179_s11 + $0xd60] sm:$0xff] %v2073_v44  ;;  %v2077_v46 = vld [vmem:[%s10174_s10 + $0x1ae0] sm:$0xff]  ;;  %v2079_v47 = vld [vmem:[%s10174_s10 + $0x1af0] sm:$0xff]  ;;  %2076 = vst [vmem:[%s10179_s11 + $0xd68] sm:$0xff] %v2075_v45 }
  0xf1   : > { %2078 = vst [vmem:[%s10179_s11 + $0xd70] sm:$0xff] %v2077_v46  ;;  %2080 = vst [vmem:[%s10179_s11 + $0xd78] sm:$0xff] %v2079_v47  ;;  %v2081_v48 = vld [vmem:[%s10174_s10 + $0x1b00] sm:$0xff]  ;;  %v2083_v49 = vld [vmem:[%s10174_s10 + $0x1b10] sm:$0xff] }
  0xf2   : > { %v2085_v50 = vld [vmem:[%s10174_s10 + $0x1b20] sm:$0xff]  ;;  %2082 = vst [vmem:[%s10179_s11 + $0xd80] sm:$0xff] %v2081_v48  ;;  %2084 = vst [vmem:[%s10179_s11 + $0xd88] sm:$0xff] %v2083_v49  ;;  %v2087_v51 = vld [vmem:[%s10174_s10 + $0x1b30] sm:$0xff] }
  0xf3   : > { %2086 = vst [vmem:[%s10179_s11 + $0xd90] sm:$0xff] %v2085_v50  ;;  %v2089_v52 = vld [vmem:[%s10174_s10 + $0x1b40] sm:$0xff]  ;;  %v2091_v53 = vld [vmem:[%s10174_s10 + $0x1b50] sm:$0xff]  ;;  %2088 = vst [vmem:[%s10179_s11 + $0xd98] sm:$0xff] %v2087_v51 }
  0xf4   : > { %2090 = vst [vmem:[%s10179_s11 + $0xda0] sm:$0xff] %v2089_v52  ;;  %2092 = vst [vmem:[%s10179_s11 + $0xda8] sm:$0xff] %v2091_v53  ;;  %v2093_v54 = vld [vmem:[%s10174_s10 + $0x1b60] sm:$0xff]  ;;  %v2095_v55 = vld [vmem:[%s10174_s10 + $0x1b70] sm:$0xff] }
  0xf5   : > { %v2097_v56 = vld [vmem:[%s10174_s10 + $0x1b80] sm:$0xff]  ;;  %2094 = vst [vmem:[%s10179_s11 + $0xdb0] sm:$0xff] %v2093_v54  ;;  %2096 = vst [vmem:[%s10179_s11 + $0xdb8] sm:$0xff] %v2095_v55  ;;  %v2099_v57 = vld [vmem:[%s10174_s10 + $0x1b90] sm:$0xff] }
  0xf6   : > { %2098 = vst [vmem:[%s10179_s11 + $0xdc0] sm:$0xff] %v2097_v56  ;;  %v2101_v58 = vld [vmem:[%s10174_s10 + $0x1ba0] sm:$0xff]  ;;  %v2103_v59 = vld [vmem:[%s10174_s10 + $0x1bb0] sm:$0xff]  ;;  %2100 = vst [vmem:[%s10179_s11 + $0xdc8] sm:$0xff] %v2099_v57 }
  0xf7   : > { %2102 = vst [vmem:[%s10179_s11 + $0xdd0] sm:$0xff] %v2101_v58  ;;  %2104 = vst [vmem:[%s10179_s11 + $0xdd8] sm:$0xff] %v2103_v59  ;;  %v2105_v60 = vld [vmem:[%s10174_s10 + $0x1bc0] sm:$0xff]  ;;  %v2107_v61 = vld [vmem:[%s10174_s10 + $0x1bd0] sm:$0xff] }
  0xf8   : > { %v2109_v62 = vld [vmem:[%s10174_s10 + $0x1be0] sm:$0xff]  ;;  %2106 = vst [vmem:[%s10179_s11 + $0xde0] sm:$0xff] %v2105_v60  ;;  %2108 = vst [vmem:[%s10179_s11 + $0xde8] sm:$0xff] %v2107_v61  ;;  %v2111_v63 = vld [vmem:[%s10174_s10 + $0x1bf0] sm:$0xff] }
  0xf9   : > { %2110 = vst [vmem:[%s10179_s11 + $0xdf0] sm:$0xff] %v2109_v62  ;;  %v2113_v0 = vld [vmem:[%s10174_s10 + $0x1c00] sm:$0xff]  ;;  %v2115_v1 = vld [vmem:[%s10174_s10 + $0x1c10] sm:$0xff]  ;;  %2112 = vst [vmem:[%s10179_s11 + $0xdf8] sm:$0xff] %v2111_v63 }
  0xfa   : > { %2114 = vst [vmem:[%s10179_s11 + $0xe00] sm:$0xff] %v2113_v0  ;;  %2116 = vst [vmem:[%s10179_s11 + $0xe08] sm:$0xff] %v2115_v1  ;;  %v2117_v2 = vld [vmem:[%s10174_s10 + $0x1c20] sm:$0xff]  ;;  %v2119_v3 = vld [vmem:[%s10174_s10 + $0x1c30] sm:$0xff] }
  0xfb   : > { %v2121_v4 = vld [vmem:[%s10174_s10 + $0x1c40] sm:$0xff]  ;;  %2118 = vst [vmem:[%s10179_s11 + $0xe10] sm:$0xff] %v2117_v2  ;;  %2120 = vst [vmem:[%s10179_s11 + $0xe18] sm:$0xff] %v2119_v3  ;;  %v2123_v5 = vld [vmem:[%s10174_s10 + $0x1c50] sm:$0xff] }
  0xfc   : > { %2122 = vst [vmem:[%s10179_s11 + $0xe20] sm:$0xff] %v2121_v4  ;;  %v2125_v6 = vld [vmem:[%s10174_s10 + $0x1c60] sm:$0xff]  ;;  %v2127_v7 = vld [vmem:[%s10174_s10 + $0x1c70] sm:$0xff]  ;;  %2124 = vst [vmem:[%s10179_s11 + $0xe28] sm:$0xff] %v2123_v5 }
  0xfd   : > { %2126 = vst [vmem:[%s10179_s11 + $0xe30] sm:$0xff] %v2125_v6  ;;  %2128 = vst [vmem:[%s10179_s11 + $0xe38] sm:$0xff] %v2127_v7  ;;  %v2129_v8 = vld [vmem:[%s10174_s10 + $0x1c80] sm:$0xff]  ;;  %v2131_v9 = vld [vmem:[%s10174_s10 + $0x1c90] sm:$0xff] }
  0xfe   : > { %v2133_v10 = vld [vmem:[%s10174_s10 + $0x1ca0] sm:$0xff]  ;;  %2130 = vst [vmem:[%s10179_s11 + $0xe40] sm:$0xff] %v2129_v8  ;;  %2132 = vst [vmem:[%s10179_s11 + $0xe48] sm:$0xff] %v2131_v9  ;;  %v2135_v11 = vld [vmem:[%s10174_s10 + $0x1cb0] sm:$0xff] }
  0xff   : > { %2134 = vst [vmem:[%s10179_s11 + $0xe50] sm:$0xff] %v2133_v10  ;;  %v2137_v12 = vld [vmem:[%s10174_s10 + $0x1cc0] sm:$0xff]  ;;  %v2139_v13 = vld [vmem:[%s10174_s10 + $0x1cd0] sm:$0xff]  ;;  %2136 = vst [vmem:[%s10179_s11 + $0xe58] sm:$0xff] %v2135_v11 }
 0x100   : > { %2138 = vst [vmem:[%s10179_s11 + $0xe60] sm:$0xff] %v2137_v12  ;;  %2140 = vst [vmem:[%s10179_s11 + $0xe68] sm:$0xff] %v2139_v13  ;;  %v2141_v14 = vld [vmem:[%s10174_s10 + $0x1ce0] sm:$0xff]  ;;  %v2143_v15 = vld [vmem:[%s10174_s10 + $0x1cf0] sm:$0xff] }
 0x101   : > { %v2145_v16 = vld [vmem:[%s10174_s10 + $0x1d00] sm:$0xff]  ;;  %2142 = vst [vmem:[%s10179_s11 + $0xe70] sm:$0xff] %v2141_v14  ;;  %2144 = vst [vmem:[%s10179_s11 + $0xe78] sm:$0xff] %v2143_v15  ;;  %v2147_v17 = vld [vmem:[%s10174_s10 + $0x1d10] sm:$0xff] }
 0x102   : > { %2146 = vst [vmem:[%s10179_s11 + $0xe80] sm:$0xff] %v2145_v16  ;;  %v2149_v18 = vld [vmem:[%s10174_s10 + $0x1d20] sm:$0xff]  ;;  %v2151_v19 = vld [vmem:[%s10174_s10 + $0x1d30] sm:$0xff]  ;;  %2148 = vst [vmem:[%s10179_s11 + $0xe88] sm:$0xff] %v2147_v17 }
 0x103   : > { %2150 = vst [vmem:[%s10179_s11 + $0xe90] sm:$0xff] %v2149_v18  ;;  %2152 = vst [vmem:[%s10179_s11 + $0xe98] sm:$0xff] %v2151_v19  ;;  %v2153_v20 = vld [vmem:[%s10174_s10 + $0x1d40] sm:$0xff]  ;;  %v2155_v21 = vld [vmem:[%s10174_s10 + $0x1d50] sm:$0xff] }
 0x104   : > { %v2157_v22 = vld [vmem:[%s10174_s10 + $0x1d60] sm:$0xff]  ;;  %2154 = vst [vmem:[%s10179_s11 + $0xea0] sm:$0xff] %v2153_v20  ;;  %2156 = vst [vmem:[%s10179_s11 + $0xea8] sm:$0xff] %v2155_v21  ;;  %v2159_v23 = vld [vmem:[%s10174_s10 + $0x1d70] sm:$0xff] }
 0x105   : > { %2158 = vst [vmem:[%s10179_s11 + $0xeb0] sm:$0xff] %v2157_v22  ;;  %v2161_v24 = vld [vmem:[%s10174_s10 + $0x1d80] sm:$0xff]  ;;  %v2163_v25 = vld [vmem:[%s10174_s10 + $0x1d90] sm:$0xff]  ;;  %2160 = vst [vmem:[%s10179_s11 + $0xeb8] sm:$0xff] %v2159_v23 }
 0x106   : > { %2162 = vst [vmem:[%s10179_s11 + $0xec0] sm:$0xff] %v2161_v24  ;;  %2164 = vst [vmem:[%s10179_s11 + $0xec8] sm:$0xff] %v2163_v25  ;;  %v2165_v26 = vld [vmem:[%s10174_s10 + $0x1da0] sm:$0xff]  ;;  %v2167_v27 = vld [vmem:[%s10174_s10 + $0x1db0] sm:$0xff] }
 0x107   : > { %v2169_v28 = vld [vmem:[%s10174_s10 + $0x1dc0] sm:$0xff]  ;;  %2166 = vst [vmem:[%s10179_s11 + $0xed0] sm:$0xff] %v2165_v26  ;;  %2168 = vst [vmem:[%s10179_s11 + $0xed8] sm:$0xff] %v2167_v27  ;;  %v2171_v29 = vld [vmem:[%s10174_s10 + $0x1dd0] sm:$0xff] }
 0x108   : > { %2170 = vst [vmem:[%s10179_s11 + $0xee0] sm:$0xff] %v2169_v28  ;;  %v2173_v30 = vld [vmem:[%s10174_s10 + $0x1de0] sm:$0xff]  ;;  %v2175_v31 = vld [vmem:[%s10174_s10 + $0x1df0] sm:$0xff]  ;;  %2172 = vst [vmem:[%s10179_s11 + $0xee8] sm:$0xff] %v2171_v29 }
 0x109   : > { %2174 = vst [vmem:[%s10179_s11 + $0xef0] sm:$0xff] %v2173_v30  ;;  %2176 = vst [vmem:[%s10179_s11 + $0xef8] sm:$0xff] %v2175_v31  ;;  %v2177_v32 = vld [vmem:[%s10174_s10 + $0x1e00] sm:$0xff]  ;;  %v2179_v33 = vld [vmem:[%s10174_s10 + $0x1e10] sm:$0xff] }
 0x10a   : > { %v2181_v34 = vld [vmem:[%s10174_s10 + $0x1e20] sm:$0xff]  ;;  %2178 = vst [vmem:[%s10179_s11 + $0xf00] sm:$0xff] %v2177_v32  ;;  %2180 = vst [vmem:[%s10179_s11 + $0xf08] sm:$0xff] %v2179_v33  ;;  %v2183_v35 = vld [vmem:[%s10174_s10 + $0x1e30] sm:$0xff] }
 0x10b   : > { %2182 = vst [vmem:[%s10179_s11 + $0xf10] sm:$0xff] %v2181_v34  ;;  %v2185_v36 = vld [vmem:[%s10174_s10 + $0x1e40] sm:$0xff]  ;;  %v2187_v37 = vld [vmem:[%s10174_s10 + $0x1e50] sm:$0xff]  ;;  %2184 = vst [vmem:[%s10179_s11 + $0xf18] sm:$0xff] %v2183_v35 }
 0x10c   : > { %2186 = vst [vmem:[%s10179_s11 + $0xf20] sm:$0xff] %v2185_v36  ;;  %2188 = vst [vmem:[%s10179_s11 + $0xf28] sm:$0xff] %v2187_v37  ;;  %v2189_v38 = vld [vmem:[%s10174_s10 + $0x1e60] sm:$0xff]  ;;  %v2191_v39 = vld [vmem:[%s10174_s10 + $0x1e70] sm:$0xff] }
 0x10d   : > { %v2193_v40 = vld [vmem:[%s10174_s10 + $0x1e80] sm:$0xff]  ;;  %2190 = vst [vmem:[%s10179_s11 + $0xf30] sm:$0xff] %v2189_v38  ;;  %2192 = vst [vmem:[%s10179_s11 + $0xf38] sm:$0xff] %v2191_v39  ;;  %v2195_v41 = vld [vmem:[%s10174_s10 + $0x1e90] sm:$0xff] }
 0x10e   : > { %2194 = vst [vmem:[%s10179_s11 + $0xf40] sm:$0xff] %v2193_v40  ;;  %v2197_v42 = vld [vmem:[%s10174_s10 + $0x1ea0] sm:$0xff]  ;;  %v2199_v43 = vld [vmem:[%s10174_s10 + $0x1eb0] sm:$0xff]  ;;  %2196 = vst [vmem:[%s10179_s11 + $0xf48] sm:$0xff] %v2195_v41 }
 0x10f   : > { %2198 = vst [vmem:[%s10179_s11 + $0xf50] sm:$0xff] %v2197_v42  ;;  %2200 = vst [vmem:[%s10179_s11 + $0xf58] sm:$0xff] %v2199_v43  ;;  %v2201_v44 = vld [vmem:[%s10174_s10 + $0x1ec0] sm:$0xff]  ;;  %v2203_v45 = vld [vmem:[%s10174_s10 + $0x1ed0] sm:$0xff] }
 0x110   : > { %v2205_v46 = vld [vmem:[%s10174_s10 + $0x1ee0] sm:$0xff]  ;;  %2202 = vst [vmem:[%s10179_s11 + $0xf60] sm:$0xff] %v2201_v44  ;;  %2204 = vst [vmem:[%s10179_s11 + $0xf68] sm:$0xff] %v2203_v45  ;;  %v2207_v47 = vld [vmem:[%s10174_s10 + $0x1ef0] sm:$0xff] }
 0x111   : > { %2206 = vst [vmem:[%s10179_s11 + $0xf70] sm:$0xff] %v2205_v46  ;;  %v2209_v48 = vld [vmem:[%s10174_s10 + $0x1f00] sm:$0xff]  ;;  %v2211_v49 = vld [vmem:[%s10174_s10 + $0x1f10] sm:$0xff]  ;;  %2208 = vst [vmem:[%s10179_s11 + $0xf78] sm:$0xff] %v2207_v47 }
 0x112   : > { %2210 = vst [vmem:[%s10179_s11 + $0xf80] sm:$0xff] %v2209_v48  ;;  %2212 = vst [vmem:[%s10179_s11 + $0xf88] sm:$0xff] %v2211_v49  ;;  %v2213_v50 = vld [vmem:[%s10174_s10 + $0x1f20] sm:$0xff]  ;;  %v2215_v51 = vld [vmem:[%s10174_s10 + $0x1f30] sm:$0xff] }
 0x113   : > { %v2217_v52 = vld [vmem:[%s10174_s10 + $0x1f40] sm:$0xff]  ;;  %2214 = vst [vmem:[%s10179_s11 + $0xf90] sm:$0xff] %v2213_v50  ;;  %2216 = vst [vmem:[%s10179_s11 + $0xf98] sm:$0xff] %v2215_v51  ;;  %v2219_v53 = vld [vmem:[%s10174_s10 + $0x1f50] sm:$0xff] }
 0x114   : > { %2218 = vst [vmem:[%s10179_s11 + $0xfa0] sm:$0xff] %v2217_v52  ;;  %v2221_v54 = vld [vmem:[%s10174_s10 + $0x1f60] sm:$0xff]  ;;  %v2223_v55 = vld [vmem:[%s10174_s10 + $0x1f70] sm:$0xff]  ;;  %2220 = vst [vmem:[%s10179_s11 + $0xfa8] sm:$0xff] %v2219_v53 }
 0x115   : > { %2222 = vst [vmem:[%s10179_s11 + $0xfb0] sm:$0xff] %v2221_v54  ;;  %2224 = vst [vmem:[%s10179_s11 + $0xfb8] sm:$0xff] %v2223_v55  ;;  %v2225_v56 = vld [vmem:[%s10174_s10 + $0x1f80] sm:$0xff]  ;;  %v2227_v57 = vld [vmem:[%s10174_s10 + $0x1f90] sm:$0xff] }
 0x116   : > { %v2229_v58 = vld [vmem:[%s10174_s10 + $0x1fa0] sm:$0xff]  ;;  %2226 = vst [vmem:[%s10179_s11 + $0xfc0] sm:$0xff] %v2225_v56  ;;  %2228 = vst [vmem:[%s10179_s11 + $0xfc8] sm:$0xff] %v2227_v57  ;;  %v2231_v59 = vld [vmem:[%s10174_s10 + $0x1fb0] sm:$0xff] }
 0x117   : > { %2230 = vst [vmem:[%s10179_s11 + $0xfd0] sm:$0xff] %v2229_v58  ;;  %v2233_v60 = vld [vmem:[%s10174_s10 + $0x1fc0] sm:$0xff]  ;;  %v2235_v61 = vld [vmem:[%s10174_s10 + $0x1fd0] sm:$0xff]  ;;  %2232 = vst [vmem:[%s10179_s11 + $0xfd8] sm:$0xff] %v2231_v59 }
 0x118   : > { %2234 = vst [vmem:[%s10179_s11 + $0xfe0] sm:$0xff] %v2233_v60  ;;  %2236 = vst [vmem:[%s10179_s11 + $0xfe8] sm:$0xff] %v2235_v61  ;;  %v2237_v62 = vld [vmem:[%s10174_s10 + $0x1fe0] sm:$0xff]  ;;  %v2239_v63 = vld [vmem:[%s10174_s10 + $0x1ff0] sm:$0xff] }
 0x119   : > { %2238 = vst [vmem:[%s10179_s11 + $0xff0] sm:$0xff] %v2237_v62  ;;  %2240 = vst [vmem:[%s10179_s11 + $0xff8] sm:$0xff] %v2239_v63 }
 0x11a PF: > { %p8596_p11 = scmp.ge.s32.totalorder %s10072_s20, 1  ;;  %p4338_p12 = scmp.lt.s32.totalorder %s10072_s20, 5 }
 0x11c   : > { %p4339_p13 = pnand %p8596_p11, %p4338_p12 }
 0x11d   : > { %s4345_s21 = sand.u32 (!%p4339_p13), 1, %s10048_s14   ;;  %p4376_p0 = scmp.lt.s32.totalorder (!%p4339_p13), %s10060_s17, 1 }
 0x11e   : > { %4342 = sbr.rel (%p4339_p13) target bundleno = 1077 (0x435), region = 80  ;;  %s8597_s24 = sshll.u32 (!%p4339_p13), %s4345_s21, 12 }
 0x11f   : > { %s11205_s25 = scalar_lea.vmem (!%p4339_p13), [#allocation2], %s8597_s24  ;;  %s11871_s6 = sshll.u32 (!%p4339_p13), %s10056_s16, 1 }
 0x120   : > { %p4383_p1 = scmp.lt.s32.totalorder (!%p4339_p13), %s11871_s6, 3  ;;  %s4373_s16 = sand.u32 (!%p4339_p13), 1, %s10040_s12  }
 0x121   : > { %s8598_s11 = sshll.u32 (!%p4339_p13), %s4373_s16, 4 }
 0x122   : > { %s4375_s21 = scalar_lea.vmem (!%p4339_p13), [#allocation3], %s8598_s11 }
 0x123   : > { %v9230_v0 = vld [vmem:[%s11205_s25 + $0x74] ss:$8 sps:$4 sm:$0xff]   ;;  %v9234_v2 = vld [vmem:[%s11205_s25 + $0x70] ss:$8 sps:$4 sm:$0xff]   ;;  %v9236_v4 = vld [vmem:[%s11205_s25 + $0x64] ss:$8 sps:$4 sm:$0xff]  }
 0x124   : > { %v9232_v1 = vld [vmem:[%s11205_s25 + $0x174] ss:$8 sps:$4 sm:$0xff]   ;;  %7664 = vmatprep.subr.bf16.mxu0 %v9230_v0  ;;  %v9235_v3 = vld [vmem:[%s11205_s25 + $0x170] ss:$8 sps:$4 sm:$0xff]   ;;  %v9238_v5 = vld [vmem:[%s11205_s25 + $0x164] ss:$8 sps:$4 sm:$0xff]  }
 0x125   : > { %7707 = vmatprep.subr.bf16.mxu1 %v9232_v1  ;;  %7665 = vmatpush1.bf16.msra.mxu0 %v9234_v2  ;;  %v9240_v6 = vld [vmem:[%s11205_s25 + $0x60] ss:$8 sps:$4 sm:$0xff]   ;;  %v9242_v8 = vld [vmem:[%s11205_s25 + $0x54] ss:$8 sps:$4 sm:$0xff]   ;;  %v9246_v10 = vld [vmem:[%s11205_s25 + $0x50] ss:$8 sps:$4 sm:$0xff]  }
 0x126   : > { %7708 = vmatpush1.bf16.msra.mxu1 %v9235_v3  ;;  %7666 = vmatprep.subr.bf16.mxu0 %v9236_v4  ;;  %v9241_v7 = vld [vmem:[%s11205_s25 + $0x160] ss:$8 sps:$4 sm:$0xff]   ;;  %v9244_v9 = vld [vmem:[%s11205_s25 + $0x154] ss:$8 sps:$4 sm:$0xff]   ;;  %v9247_v11 = vld [vmem:[%s11205_s25 + $0x150] ss:$8 sps:$4 sm:$0xff]  }
 0x127   : > { %7709 = vmatprep.subr.bf16.mxu1 %v9238_v5  ;;  %v9248_v12 = vld [vmem:[%s11205_s25 + $0x44] ss:$8 sps:$4 sm:$0xff]   ;;  %v9252_v14 = vld [vmem:[%s11205_s25 + $0x40] ss:$8 sps:$4 sm:$0xff]   ;;  %v9254_v16 = vld [vmem:[%s11205_s25 + $0x34] ss:$8 sps:$4 sm:$0xff]  }
 0x128   : > { %v9250_v13 = vld [vmem:[%s11205_s25 + $0x144] ss:$8 sps:$4 sm:$0xff]   ;;  %v9253_v15 = vld [vmem:[%s11205_s25 + $0x140] ss:$8 sps:$4 sm:$0xff]   ;;  %v9256_v17 = vld [vmem:[%s11205_s25 + $0x134] ss:$8 sps:$4 sm:$0xff]  }
 0x129   : > { %7667 = vmatpush1.bf16.msra.mxu0 %v9240_v6  ;;  %v9258_v18 = vld [vmem:[%s11205_s25 + $0x30] ss:$8 sps:$4 sm:$0xff]   ;;  %v9260_v20 = vld [vmem:[%s11205_s25 + $0x24] ss:$8 sps:$4 sm:$0xff]   ;;  %v9264_v22 = vld [vmem:[%s11205_s25 + $0x20] ss:$8 sps:$4 sm:$0xff]  }
 0x12a   : > { %7710 = vmatpush1.bf16.msra.mxu1 %v9241_v7  ;;  %7668 = vmatprep.subr.bf16.mxu0 %v9242_v8  ;;  %v9259_v19 = vld [vmem:[%s11205_s25 + $0x130] ss:$8 sps:$4 sm:$0xff]   ;;  %v9262_v21 = vld [vmem:[%s11205_s25 + $0x124] ss:$8 sps:$4 sm:$0xff]   ;;  %v9265_v23 = vld [vmem:[%s11205_s25 + $0x120] ss:$8 sps:$4 sm:$0xff]  }
 0x12b   : > { %7711 = vmatprep.subr.bf16.mxu1 %v9244_v9  ;;  %v9266_v24 = vld [vmem:[%s11205_s25 + $0x14] ss:$8 sps:$4 sm:$0xff]   ;;  %v9270_v26 = vld [vmem:[%s11205_s25 + $0x10] ss:$8 sps:$4 sm:$0xff]   ;;  %v9272_v28 = vld [vmem:[%s11205_s25 + $0x4] ss:$8 sps:$4 sm:$0xff]  }
 0x12c   : > { %v9268_v25 = vld [vmem:[%s11205_s25 + $0x114] ss:$8 sps:$4 sm:$0xff]   ;;  %v9271_v27 = vld [vmem:[%s11205_s25 + $0x110] ss:$8 sps:$4 sm:$0xff]   ;;  %v9274_v29 = vld [vmem:[%s11205_s25 + $0x104] ss:$8 sps:$4 sm:$0xff]  }
 0x12d   : > { %7669 = vmatpush1.bf16.msra.mxu0 %v9246_v10  ;;  %v9276_v30 = vld [vmem:[%s11205_s25] ss:$8 sps:$4 sm:$0xff]   ;;  %v9278_v32 = vld [vmem:[%s11205_s25 + $0xf4] ss:$8 sps:$4 sm:$0xff]   ;;  %v9282_v34 = vld [vmem:[%s11205_s25 + $0xf0] ss:$8 sps:$4 sm:$0xff]  }
 0x12e   : > { %7712 = vmatpush1.bf16.msra.mxu1 %v9247_v11  ;;  %7670 = vmatprep.subr.bf16.mxu0 %v9248_v12  ;;  %v9277_v31 = vld [vmem:[%s11205_s25 + $0x100] ss:$8 sps:$4 sm:$0xff]   ;;  %v9280_v33 = vld [vmem:[%s11205_s25 + $0x1f4] ss:$8 sps:$4 sm:$0xff]   ;;  %v9283_v35 = vld [vmem:[%s11205_s25 + $0x1f0] ss:$8 sps:$4 sm:$0xff]  }
 0x12f   : > { %7713 = vmatprep.subr.bf16.mxu1 %v9250_v13  ;;  %v9284_v36 = vld [vmem:[%s11205_s25 + $0xe4] ss:$8 sps:$4 sm:$0xff]   ;;  %s4377_s14 = scalar_select %p4376_p0, %s10060_s17, 1  ;;  %v9288_v38 = vld [vmem:[%s11205_s25 + $0xe0] ss:$8 sps:$4 sm:$0xff]  }
 0x130   : > { %v9286_v37 = vld [vmem:[%s11205_s25 + $0x1e4] ss:$8 sps:$4 sm:$0xff]   ;;  %v9289_v39 = vld [vmem:[%s11205_s25 + $0x1e0] ss:$8 sps:$4 sm:$0xff]   ;;  %v9290_v40 = vld [vmem:[%s11205_s25 + $0xd4] ss:$8 sps:$4 sm:$0xff]  }
 0x131   : > { %7671 = vmatpush1.bf16.msra.mxu0 %v9252_v14  ;;  %s9155_s26 = sshll.u32 %s4377_s14, 8  ;;  %v9292_v41 = vld [vmem:[%s11205_s25 + $0x1d4] ss:$8 sps:$4 sm:$0xff]   ;;  %v9294_v42 = vld [vmem:[%s11205_s25 + $0xd0] ss:$8 sps:$4 sm:$0xff]   ;;  %s9150_s12 = sshll.u32 (%p10161_p9), %s10060_s17, 3 }
 0x132   : > { %7714 = vmatpush1.bf16.msra.mxu1 %v9253_v15  ;;  %7672 = vmatprep.subr.bf16.mxu0 %v9254_v16  ;;  %v9295_v43 = vld [vmem:[%s11205_s25 + $0x1d0] ss:$8 sps:$4 sm:$0xff]   ;;  %s11256_s5 = scalar_lea.vmem %s11922_s0, %s9155_s26  ;;  %v9296_v44 = vld [vmem:[%s11205_s25 + $0xc4] ss:$8 sps:$4 sm:$0xff]   ;;  %v9300_v46 = vld [vmem:[%s11205_s25 + $0xc0] ss:$8 sps:$4 sm:$0xff]   ;;  %s8448_s24 = sadd.s32 (%p10161_p9), %s9150_s12, %s11871_s6 }
 0x133   : > { %7715 = vmatprep.subr.bf16.mxu1 %v9256_v17  ;;  %v9298_v45 = vld [vmem:[%s11205_s25 + $0x1c4] ss:$8 sps:$4 sm:$0xff]   ;;  %v9301_v47 = vld [vmem:[%s11205_s25 + $0x1c0] ss:$8 sps:$4 sm:$0xff]   ;;  %v9302_v52 = vld [vmem:[%s11205_s25 + $0xb4] ss:$8 sps:$4 sm:$0xff]  }
 0x134   : > { %v4388_v48 = vld [vmem:[%s11256_s5] sm:$0xff]  ;;  %v4389_v50 = vld [vmem:[%s11256_s5 + $0x8] sm:$0xff]  ;;  %v9304_v54 = vld [vmem:[%s11205_s25 + $0x1b4] ss:$8 sps:$4 sm:$0xff]   ;;  %s4384_s7 = scalar_select %p4383_p1, %s11871_s6, 3 }
 0x135   : > { %7673 = vmatpush1.bf16.msra.mxu0 %v9258_v18  ;;  %v4404_v49 = vld [vmem:[%s11256_s5 + $0x80] sm:$0xff]  ;;  %v4405_v51 = vld [vmem:[%s11256_s5 + $0x88] sm:$0xff]  ;;  %v9306_v56 = vld [vmem:[%s11205_s25 + $0xb0] ss:$8 sps:$4 sm:$0xff]  }
 0x136   : > { %7716 = vmatpush1.bf16.msra.mxu1 %v9259_v19  ;;  %7674 = vmatprep.subr.bf16.mxu0 %v9260_v20  ;;  %v8603_v53 = vcombine.high %v4388_v48, %v4404_v49  ;;  %v8605_v55 = vcombine.high %v4389_v50, %v4405_v51  ;;  %v9307_v57 = vld [vmem:[%s11205_s25 + $0x1b0] ss:$8 sps:$4 sm:$0xff]   ;;  %v9308_v58 = vld [vmem:[%s11205_s25 + $0xa4] ss:$8 sps:$4 sm:$0xff]   ;;  %v9312_v60 = vld [vmem:[%s11205_s25 + $0xa0] ss:$8 sps:$4 sm:$0xff]   ;;  %v8602_v8 = vcombine.low %v4388_v48, %v4404_v49  ;;  %s4385_s10 = scalar_lea.vmem %s11924_s2, %s4384_s7 }
 0x137   : > { %7717 = vmatprep.subr.bf16.mxu1 %v9262_v21  ;;  %v9310_v59 = vld [vmem:[%s11205_s25 + $0x1a4] ss:$8 sps:$4 sm:$0xff]   ;;  %v9313_v61 = vld [vmem:[%s11205_s25 + $0x1a0] ss:$8 sps:$4 sm:$0xff]   ;;  %v9314_v62 = vld [vmem:[%s11205_s25 + $0x94] ss:$8 sps:$4 sm:$0xff]   ;;  %v8604_v9 = vcombine.low %v4389_v50, %v4405_v51 }
 0x138   : > { %7696 = vmatprep.mubr.bf16.mxu0 %v8603_v53  ;;  %7739 = vmatprep.mubr.bf16.mxu1 %v8605_v55  ;;  %v9316_v63 = vld [vmem:[%s11205_s25 + $0x194] ss:$8 sps:$4 sm:$0xff]   ;;  %v9318_v0 = vld [vmem:[%s11205_s25 + $0x90] ss:$8 sps:$4 sm:$0xff]   ;;  %v9320_v2 = vld [vmem:[%s11205_s25 + $0x84] ss:$8 sps:$4 sm:$0xff]  }
 0x139   : > { %7675 = vmatpush1.bf16.msra.mxu0 %v9264_v22  ;;  %v9319_v1 = vld [vmem:[%s11205_s25 + $0x190] ss:$8 sps:$4 sm:$0xff]   ;;  %v9322_v3 = vld [vmem:[%s11205_s25 + $0x184] ss:$8 sps:$4 sm:$0xff]   ;;  %v9324_v4 = vld [vmem:[%s11205_s25 + $0x80] ss:$8 sps:$4 sm:$0xff]  }
 0x13a   : > { %7718 = vmatpush1.bf16.msra.mxu1 %v9265_v23  ;;  %7676 = vmatprep.subr.bf16.mxu0 %v9266_v24  ;;  %v9325_v5 = vld [vmem:[%s11205_s25 + $0x180] ss:$8 sps:$4 sm:$0xff]   ;;  %v9328_v6 = vld [vmem:[%s11205_s25 + $0x274] ss:$8 sps:$4 sm:$0xff]   ;;  %v9326_v10 = vld [vmem:[%s11205_s25 + $0x270] ss:$8 sps:$4 sm:$0xff]  }
 0x13b   : > { %7719 = vmatprep.subr.bf16.mxu1 %v9268_v25  ;;  %v9331_v7 = vld [vmem:[%s11205_s25 + $0x374] ss:$8 sps:$4 sm:$0xff]   ;;  %v9329_v11 = vld [vmem:[%s11205_s25 + $0x370] ss:$8 sps:$4 sm:$0xff]   ;;  %v9334_v12 = vld [vmem:[%s11205_s25 + $0x264] ss:$8 sps:$4 sm:$0xff]  }
 0x13c   : > { %v9337_v13 = vld [vmem:[%s11205_s25 + $0x364] ss:$8 sps:$4 sm:$0xff]   ;;  %v9332_v14 = vld [vmem:[%s11205_s25 + $0x260] ss:$8 sps:$4 sm:$0xff]   ;;  %v9340_v16 = vld [vmem:[%s11205_s25 + $0x254] ss:$8 sps:$4 sm:$0xff]  }
 0x13d   : > { %7677 = vmatpush1.bf16.msra.mxu0 %v9270_v26  ;;  %v9335_v15 = vld [vmem:[%s11205_s25 + $0x360] ss:$8 sps:$4 sm:$0xff]   ;;  %v9343_v17 = vld [vmem:[%s11205_s25 + $0x354] ss:$8 sps:$4 sm:$0xff]   ;;  %v9338_v18 = vld [vmem:[%s11205_s25 + $0x250] ss:$8 sps:$4 sm:$0xff]  }
 0x13e   : > { %7720 = vmatpush1.bf16.msra.mxu1 %v9271_v27  ;;  %7678 = vmatprep.subr.bf16.mxu0 %v9272_v28  ;;  %v9341_v19 = vld [vmem:[%s11205_s25 + $0x350] ss:$8 sps:$4 sm:$0xff]   ;;  %v9346_v20 = vld [vmem:[%s11205_s25 + $0x244] ss:$8 sps:$4 sm:$0xff]   ;;  %v9344_v22 = vld [vmem:[%s11205_s25 + $0x240] ss:$8 sps:$4 sm:$0xff]  }
 0x13f   : > { %7721 = vmatprep.subr.bf16.mxu1 %v9274_v29  ;;  %v9349_v21 = vld [vmem:[%s11205_s25 + $0x344] ss:$8 sps:$4 sm:$0xff]   ;;  %v9347_v23 = vld [vmem:[%s11205_s25 + $0x340] ss:$8 sps:$4 sm:$0xff]   ;;  %v9352_v24 = vld [vmem:[%s11205_s25 + $0x234] ss:$8 sps:$4 sm:$0xff]  }
 0x140   : > { %v9355_v25 = vld [vmem:[%s11205_s25 + $0x334] ss:$8 sps:$4 sm:$0xff]   ;;  %v9350_v26 = vld [vmem:[%s11205_s25 + $0x230] ss:$8 sps:$4 sm:$0xff]   ;;  %v9358_v28 = vld [vmem:[%s11205_s25 + $0x224] ss:$8 sps:$4 sm:$0xff]  }
 0x141   : > { %7679 = vmatpush1.bf16.msra.mxu0 %v9276_v30  ;;  %v9353_v27 = vld [vmem:[%s11205_s25 + $0x330] ss:$8 sps:$4 sm:$0xff]   ;;  %v9361_v29 = vld [vmem:[%s11205_s25 + $0x324] ss:$8 sps:$4 sm:$0xff]   ;;  %v9356_v30 = vld [vmem:[%s11205_s25 + $0x220] ss:$8 sps:$4 sm:$0xff]  }
 0x142   : > { %7722 = vmatpush1.bf16.msra.mxu1 %v9277_v31  ;;  %7680 = vmatprep.subr.bf16.mxu0 %v9278_v32  ;;  %v9359_v31 = vld [vmem:[%s11205_s25 + $0x320] ss:$8 sps:$4 sm:$0xff]   ;;  %v9364_v32 = vld [vmem:[%s11205_s25 + $0x214] ss:$8 sps:$4 sm:$0xff]   ;;  %v9374_v48 = vld [vmem:[%s11205_s25 + $0x2f0] ss:$8 sps:$4 sm:$0xff]  }
 0x143   : > { %7723 = vmatprep.subr.bf16.mxu1 %v9280_v33  ;;  %v9367_v33 = vld [vmem:[%s11205_s25 + $0x314] ss:$8 sps:$4 sm:$0xff]   ;;  %v9377_v49 = vld [vmem:[%s11205_s25 + $0x3f0] ss:$8 sps:$4 sm:$0xff]   ;;  %v9382_v50 = vld [vmem:[%s11205_s25 + $0x2e4] ss:$8 sps:$4 sm:$0xff]  }
 0x144   : > { %v9385_v51 = vld [vmem:[%s11205_s25 + $0x3e4] ss:$8 sps:$4 sm:$0xff]   ;;  %v9383_v53 = vld [vmem:[%s11205_s25 + $0x3e0] ss:$8 sps:$4 sm:$0xff]   ;;  %v9391_v55 = vld [vmem:[%s11205_s25 + $0x3d4] ss:$8 sps:$4 sm:$0xff]  }
 0x145   : > { %7681 = vmatpush2.bf16.msra.mxu0 %v9282_v34  ;;  %v9362_v34 = vld [vmem:[%s11205_s25 + $0x210] ss:$8 sps:$4 sm:$0xff]  }
 0x146   : > { %7724 = vmatpush2.bf16.msra.mxu1 %v9283_v35  ;;  %7682 = vmatprep.subr.bf16.mxu0 %v9284_v36  ;;  %v9365_v35 = vld [vmem:[%s11205_s25 + $0x310] ss:$8 sps:$4 sm:$0xff]  }
 0x147   : > { %7725 = vmatprep.subr.bf16.mxu1 %v9286_v37  ;;  %v11311_v36 = vld [vmem:[%s11256_s5 + $0x10] sm:$0xff] }
 0x148   : > { %v11314_v37 = vld [vmem:[%s11256_s5 + $0x90] sm:$0xff] }
 0x149   : > { %7683 = vmatpush2.bf16.msra.mxu0 %v9288_v38  ;;  %v11317_v38 = vld [vmem:[%s11256_s5 + $0x18] sm:$0xff] }
 0x14a   : > { %7726 = vmatpush2.bf16.msra.mxu1 %v9289_v39  ;;  %7684 = vmatprep.subr.bf16.mxu0 %v9290_v40  ;;  %v11320_v39 = vld [vmem:[%s11256_s5 + $0x98] sm:$0xff]  ;;  %v9370_v40 = vld [vmem:[%s11205_s25 + $0x204] ss:$8 sps:$4 sm:$0xff]  }
 0x14b   : > { %7727 = vmatprep.subr.bf16.mxu1 %v9292_v41  ;;  %v8607_v41 = vcombine.high %v11311_v36, %v11314_v37 }
 0x14d   : > { %7685 = vmatpush2.bf16.msra.mxu0 %v9294_v42  ;;  %v9373_v42 = vld [vmem:[%s11205_s25 + $0x304] ss:$8 sps:$4 sm:$0xff]  }
 0x14e   : > { %7728 = vmatpush2.bf16.msra.mxu1 %v9295_v43  ;;  %7686 = vmatprep.subr.bf16.mxu0 %v9296_v44  ;;  %v8609_v43 = vcombine.high %v11317_v38, %v11320_v39  ;;  %v9368_v44 = vld [vmem:[%s11205_s25 + $0x200] ss:$8 sps:$4 sm:$0xff]  }
 0x14f   : > { %7729 = vmatprep.subr.bf16.mxu1 %v9298_v45  ;;  %v9371_v45 = vld [vmem:[%s11205_s25 + $0x300] ss:$8 sps:$4 sm:$0xff]  }
 0x151   : > { %7687 = vmatpush2.bf16.msra.mxu0 %v9300_v46  ;;  %v9376_v46 = vld [vmem:[%s11205_s25 + $0x2f4] ss:$8 sps:$4 sm:$0xff]  }
 0x152   : > { %7730 = vmatpush2.bf16.msra.mxu1 %v9301_v47  ;;  %7688 = vmatprep.subr.bf16.mxu0 %v9302_v52  ;;  %v9379_v47 = vld [vmem:[%s11205_s25 + $0x3f4] ss:$8 sps:$4 sm:$0xff]   ;;  %v9380_v52 = vld [vmem:[%s11205_s25 + $0x2e0] ss:$8 sps:$4 sm:$0xff]  }
 0x153   : > { %7731 = vmatprep.subr.bf16.mxu1 %v9304_v54  ;;  %v9388_v54 = vld [vmem:[%s11205_s25 + $0x2d4] ss:$8 sps:$4 sm:$0xff]  }
 0x155   : > { %7689 = vmatpush2.bf16.msra.mxu0 %v9306_v56  ;;  %v9386_v56 = vld [vmem:[%s11205_s25 + $0x2d0] ss:$8 sps:$4 sm:$0xff]  }
 0x156   : > { %7732 = vmatpush2.bf16.msra.mxu1 %v9307_v57  ;;  %7690 = vmatprep.subr.bf16.mxu0 %v9308_v58  ;;  %v9389_v57 = vld [vmem:[%s11205_s25 + $0x3d0] ss:$8 sps:$4 sm:$0xff]   ;;  %v9394_v58 = vld [vmem:[%s11205_s25 + $0x2c4] ss:$8 sps:$4 sm:$0xff]  }
 0x157   : > { %7733 = vmatprep.subr.bf16.mxu1 %v9310_v59  ;;  %v9397_v59 = vld [vmem:[%s11205_s25 + $0x3c4] ss:$8 sps:$4 sm:$0xff]  }
 0x159   : > { %7691 = vmatpush2.bf16.msra.mxu0 %v9312_v60  ;;  %v9392_v60 = vld [vmem:[%s11205_s25 + $0x2c0] ss:$8 sps:$4 sm:$0xff]  }
 0x15a   : > { %7734 = vmatpush2.bf16.msra.mxu1 %v9313_v61  ;;  %7692 = vmatprep.subr.bf16.mxu0 %v9314_v62  ;;  %v9395_v61 = vld [vmem:[%s11205_s25 + $0x3c0] ss:$8 sps:$4 sm:$0xff]   ;;  %v9400_v62 = vld [vmem:[%s11205_s25 + $0x2b4] ss:$8 sps:$4 sm:$0xff]  }
 0x15b   : > { %7735 = vmatprep.subr.bf16.mxu1 %v9316_v63  ;;  %v9403_v63 = vld [vmem:[%s11205_s25 + $0x3b4] ss:$8 sps:$4 sm:$0xff]  }
 0x15d   : > { %7693 = vmatpush2.bf16.msra.mxu0 %v9318_v0  ;;  %v9398_v0 = vld [vmem:[%s11205_s25 + $0x2b0] ss:$8 sps:$4 sm:$0xff]  }
 0x15e   : > { %7736 = vmatpush2.bf16.msra.mxu1 %v9319_v1  ;;  %7694 = vmatprep.subr.bf16.mxu0 %v9320_v2  ;;  %v9401_v1 = vld [vmem:[%s11205_s25 + $0x3b0] ss:$8 sps:$4 sm:$0xff]   ;;  %v9406_v2 = vld [vmem:[%s11205_s25 + $0x2a4] ss:$8 sps:$4 sm:$0xff]  }
 0x15f   : > { %7737 = vmatprep.subr.bf16.mxu1 %v9322_v3  ;;  %v9409_v3 = vld [vmem:[%s11205_s25 + $0x3a4] ss:$8 sps:$4 sm:$0xff]  }
 0x161   : > { %7695 = vmatpush2.bf16.msra.mxu0 %v9324_v4  ;;  %v9404_v4 = vld [vmem:[%s11205_s25 + $0x2a0] ss:$8 sps:$4 sm:$0xff]  }
 0x162   : > { %7738 = vmatpush2.bf16.msra.mxu1 %v9325_v5  ;;  %7750 = vmatprep.subr.bf16.mxu0 %v9328_v6  ;;  %v9407_v5 = vld [vmem:[%s11205_s25 + $0x3a0] ss:$8 sps:$4 sm:$0xff]   ;;  %v9412_v6 = vld [vmem:[%s11205_s25 + $0x294] ss:$8 sps:$4 sm:$0xff]  }
 0x163   : > { %7793 = vmatprep.subr.bf16.mxu1 %v9331_v7  ;;  %v9415_v7 = vld [vmem:[%s11205_s25 + $0x394] ss:$8 sps:$4 sm:$0xff]  }
 0x164   : > { %7697 = vmatmul.mubr.bf16.vlgmr.msra.gmra.mxu0 %v8602_v8  ;;  %v9410_v8 = vld [vmem:[%s11205_s25 + $0x290] ss:$8 sps:$4 sm:$0xff]  }
 0x165   : > { %7740 = vmatmul.mubr.bf16.vlgmr.msra.gmra.mxu1 %v8604_v9  ;;  %7751 = vmatpush1.bf16.msra.mxu0 %v9326_v10  ;;  %v9413_v9 = vld [vmem:[%s11205_s25 + $0x390] ss:$8 sps:$4 sm:$0xff]   ;;  %v9418_v10 = vld [vmem:[%s11205_s25 + $0x284] ss:$8 sps:$4 sm:$0xff]  }
 0x166   : > { %7794 = vmatpush1.bf16.msra.mxu1 %v9329_v11  ;;  %7752 = vmatprep.subr.bf16.mxu0 %v9334_v12  ;;  %v9421_v11 = vld [vmem:[%s11205_s25 + $0x384] ss:$8 sps:$4 sm:$0xff]   ;;  %v9416_v12 = vld [vmem:[%s11205_s25 + $0x280] ss:$8 sps:$4 sm:$0xff]  }
 0x167   : > { %7795 = vmatprep.subr.bf16.mxu1 %v9337_v13  ;;  %7782 = vmatprep.mubr.bf16.mxu0 %v8607_v41  ;;  %v9419_v13 = vld [vmem:[%s11205_s25 + $0x380] ss:$8 sps:$4 sm:$0xff]   ;;  %v9449_v41 = vld [vmem:[%s11205_s25 + $0x530] ss:$8 sps:$4 sm:$0xff]  }
 0x168   : > { %7825 = vmatprep.mubr.bf16.mxu1 %v8609_v43  ;;  %v9457_v43 = vld [vmem:[%s11205_s25 + $0x524] ss:$8 sps:$4 sm:$0xff]  }
 0x169   : > { %7753 = vmatpush1.bf16.msra.mxu0 %v9332_v14  ;;  %v9424_v14 = vld [vmem:[%s11205_s25 + $0x474] ss:$8 sps:$4 sm:$0xff]  }
 0x16a   : > { %7796 = vmatpush1.bf16.msra.mxu1 %v9335_v15  ;;  %7754 = vmatprep.subr.bf16.mxu0 %v9340_v16  ;;  %v9427_v15 = vld [vmem:[%s11205_s25 + $0x574] ss:$8 sps:$4 sm:$0xff]   ;;  %v8606_v16 = vcombine.low %v11311_v36, %v11314_v37  ;;  %v9440_v36 = vld [vmem:[%s11205_s25 + $0x440] ss:$8 sps:$4 sm:$0xff]  }
 0x16b   : > { %7797 = vmatprep.subr.bf16.mxu1 %v9343_v17  ;;  %v8608_v17 = vcombine.low %v11317_v38, %v11320_v39  ;;  %v9443_v37 = vld [vmem:[%s11205_s25 + $0x540] ss:$8 sps:$4 sm:$0xff]   ;;  %v9448_v38 = vld [vmem:[%s11205_s25 + $0x434] ss:$8 sps:$4 sm:$0xff]  }
 0x16c   : > { %v9451_v39 = vld [vmem:[%s11205_s25 + $0x534] ss:$8 sps:$4 sm:$0xff]  }
 0x16d   : > { %7755 = vmatpush1.bf16.msra.mxu0 %v9338_v18  ;;  %v9422_v18 = vld [vmem:[%s11205_s25 + $0x470] ss:$8 sps:$4 sm:$0xff]  }
 0x16e   : > { %7798 = vmatpush1.bf16.msra.mxu1 %v9341_v19  ;;  %7756 = vmatprep.subr.bf16.mxu0 %v9346_v20  ;;  %v9425_v19 = vld [vmem:[%s11205_s25 + $0x570] ss:$8 sps:$4 sm:$0xff]   ;;  %v9430_v20 = vld [vmem:[%s11205_s25 + $0x464] ss:$8 sps:$4 sm:$0xff]  }
 0x16f   : > { %7799 = vmatprep.subr.bf16.mxu1 %v9349_v21  ;;  %v9433_v21 = vld [vmem:[%s11205_s25 + $0x564] ss:$8 sps:$4 sm:$0xff]  }
 0x171   : > { %7757 = vmatpush1.bf16.msra.mxu0 %v9344_v22  ;;  %v9428_v22 = vld [vmem:[%s11205_s25 + $0x460] ss:$8 sps:$4 sm:$0xff]  }
 0x172   : > { %7800 = vmatpush1.bf16.msra.mxu1 %v9347_v23  ;;  %7758 = vmatprep.subr.bf16.mxu0 %v9352_v24  ;;  %v9431_v23 = vld [vmem:[%s11205_s25 + $0x560] ss:$8 sps:$4 sm:$0xff]  }
 0x173   : > { %7801 = vmatprep.subr.bf16.mxu1 %v9355_v25  ;;  %v11375_v24 = vld [vmem:[%s11256_s5 + $0x20] sm:$0xff] }
 0x174   : > { %v11378_v25 = vld [vmem:[%s11256_s5 + $0xa0] sm:$0xff] }
 0x175   : > { %7759 = vmatpush1.bf16.msra.mxu0 %v9350_v26  ;;  %v11381_v26 = vld [vmem:[%s11256_s5 + $0x28] sm:$0xff] }
 0x176   : > { %7802 = vmatpush1.bf16.msra.mxu1 %v9353_v27  ;;  %7760 = vmatprep.subr.bf16.mxu0 %v9358_v28  ;;  %v11384_v27 = vld [vmem:[%s11256_s5 + $0xa8] sm:$0xff]  ;;  %v9436_v28 = vld [vmem:[%s11205_s25 + $0x454] ss:$8 sps:$4 sm:$0xff]  }
 0x177   : > { %7803 = vmatprep.subr.bf16.mxu1 %v9361_v29  ;;  %v8611_v29 = vcombine.high %v11375_v24, %v11378_v25 }
 0x179   : > { %7761 = vmatpush1.bf16.msra.mxu0 %v9356_v30  ;;  %v9439_v30 = vld [vmem:[%s11205_s25 + $0x554] ss:$8 sps:$4 sm:$0xff]  }
 0x17a   : > { %7804 = vmatpush1.bf16.msra.mxu1 %v9359_v31  ;;  %7762 = vmatprep.subr.bf16.mxu0 %v9364_v32  ;;  %v8613_v31 = vcombine.high %v11381_v26, %v11384_v27  ;;  %v9434_v32 = vld [vmem:[%s11205_s25 + $0x450] ss:$8 sps:$4 sm:$0xff]  }
 0x17b   : > { %7805 = vmatprep.subr.bf16.mxu1 %v9367_v33  ;;  %v9437_v33 = vld [vmem:[%s11205_s25 + $0x550] ss:$8 sps:$4 sm:$0xff]  }
 0x17d   : > { %7763 = vmatpush1.bf16.msra.mxu0 %v9362_v34  ;;  %v9442_v34 = vld [vmem:[%s11205_s25 + $0x444] ss:$8 sps:$4 sm:$0xff]  }
 0x17e   : > { %7806 = vmatpush1.bf16.msra.mxu1 %v9365_v35  ;;  %7764 = vmatprep.subr.bf16.mxu0 %v9370_v40  ;;  %v9445_v35 = vld [vmem:[%s11205_s25 + $0x544] ss:$8 sps:$4 sm:$0xff]   ;;  %v9446_v40 = vld [vmem:[%s11205_s25 + $0x430] ss:$8 sps:$4 sm:$0xff]  }
 0x17f   : > { %7807 = vmatprep.subr.bf16.mxu1 %v9373_v42  ;;  %v9454_v42 = vld [vmem:[%s11205_s25 + $0x424] ss:$8 sps:$4 sm:$0xff]  }
 0x181   : > { %7765 = vmatpush1.bf16.msra.mxu0 %v9368_v44  ;;  %v9452_v44 = vld [vmem:[%s11205_s25 + $0x420] ss:$8 sps:$4 sm:$0xff]  }
 0x182   : > { %7808 = vmatpush1.bf16.msra.mxu1 %v9371_v45  ;;  %7766 = vmatprep.subr.bf16.mxu0 %v9376_v46  ;;  %v9455_v45 = vld [vmem:[%s11205_s25 + $0x520] ss:$8 sps:$4 sm:$0xff]   ;;  %v9460_v46 = vld [vmem:[%s11205_s25 + $0x414] ss:$8 sps:$4 sm:$0xff]  }
 0x183   : > { %7809 = vmatprep.subr.bf16.mxu1 %v9379_v47  ;;  %v9463_v47 = vld [vmem:[%s11205_s25 + $0x514] ss:$8 sps:$4 sm:$0xff]  }
 0x185   : > { %7767 = vmatpush2.bf16.msra.mxu0 %v9374_v48  ;;  %v9458_v48 = vld [vmem:[%s11205_s25 + $0x410] ss:$8 sps:$4 sm:$0xff]  }
 0x186   : > { %7810 = vmatpush2.bf16.msra.mxu1 %v9377_v49  ;;  %7768 = vmatprep.subr.bf16.mxu0 %v9382_v50  ;;  %v9461_v49 = vld [vmem:[%s11205_s25 + $0x510] ss:$8 sps:$4 sm:$0xff]   ;;  %v9466_v50 = vld [vmem:[%s11205_s25 + $0x404] ss:$8 sps:$4 sm:$0xff]  }
 0x187   : > { %7811 = vmatprep.subr.bf16.mxu1 %v9385_v51  ;;  %v9469_v51 = vld [vmem:[%s11205_s25 + $0x504] ss:$8 sps:$4 sm:$0xff]  }
 0x189   : > { %7769 = vmatpush2.bf16.msra.mxu0 %v9380_v52  ;;  %v9464_v52 = vld [vmem:[%s11205_s25 + $0x400] ss:$8 sps:$4 sm:$0xff]  }
 0x18a   : > { %7812 = vmatpush2.bf16.msra.mxu1 %v9383_v53  ;;  %7770 = vmatprep.subr.bf16.mxu0 %v9388_v54  ;;  %v9467_v53 = vld [vmem:[%s11205_s25 + $0x500] ss:$8 sps:$4 sm:$0xff]   ;;  %v9472_v54 = vld [vmem:[%s11205_s25 + $0x4f4] ss:$8 sps:$4 sm:$0xff]  }
 0x18b   : > { %7813 = vmatprep.subr.bf16.mxu1 %v9391_v55  ;;  %v9475_v55 = vld [vmem:[%s11205_s25 + $0x5f4] ss:$8 sps:$4 sm:$0xff]  }
 0x18d   : > { %7771 = vmatpush2.bf16.msra.mxu0 %v9386_v56  ;;  %v9470_v56 = vld [vmem:[%s11205_s25 + $0x4f0] ss:$8 sps:$4 sm:$0xff]  }
 0x18e   : > { %7814 = vmatpush2.bf16.msra.mxu1 %v9389_v57  ;;  %7772 = vmatprep.subr.bf16.mxu0 %v9394_v58  ;;  %v9473_v57 = vld [vmem:[%s11205_s25 + $0x5f0] ss:$8 sps:$4 sm:$0xff]   ;;  %v9478_v58 = vld [vmem:[%s11205_s25 + $0x4e4] ss:$8 sps:$4 sm:$0xff]  }
 0x18f   : > { %7815 = vmatprep.subr.bf16.mxu1 %v9397_v59  ;;  %v9481_v59 = vld [vmem:[%s11205_s25 + $0x5e4] ss:$8 sps:$4 sm:$0xff]  }
 0x191   : > { %7773 = vmatpush2.bf16.msra.mxu0 %v9392_v60  ;;  %v9476_v60 = vld [vmem:[%s11205_s25 + $0x4e0] ss:$8 sps:$4 sm:$0xff]  }
 0x192   : > { %7816 = vmatpush2.bf16.msra.mxu1 %v9395_v61  ;;  %7774 = vmatprep.subr.bf16.mxu0 %v9400_v62  ;;  %v9479_v61 = vld [vmem:[%s11205_s25 + $0x5e0] ss:$8 sps:$4 sm:$0xff]   ;;  %v9484_v62 = vld [vmem:[%s11205_s25 + $0x4d4] ss:$8 sps:$4 sm:$0xff]  }
 0x193   : > { %7817 = vmatprep.subr.bf16.mxu1 %v9403_v63  ;;  %v9487_v63 = vld [vmem:[%s11205_s25 + $0x5d4] ss:$8 sps:$4 sm:$0xff]  }
 0x195   : > { %7775 = vmatpush2.bf16.msra.mxu0 %v9398_v0  ;;  %v9482_v0 = vld [vmem:[%s11205_s25 + $0x4d0] ss:$8 sps:$4 sm:$0xff]  }
 0x196   : > { %7818 = vmatpush2.bf16.msra.mxu1 %v9401_v1  ;;  %7776 = vmatprep.subr.bf16.mxu0 %v9406_v2  ;;  %v9485_v1 = vld [vmem:[%s11205_s25 + $0x5d0] ss:$8 sps:$4 sm:$0xff]   ;;  %v9490_v2 = vld [vmem:[%s11205_s25 + $0x4c4] ss:$8 sps:$4 sm:$0xff]  }
 0x197   : > { %7819 = vmatprep.subr.bf16.mxu1 %v9409_v3  ;;  %v9493_v3 = vld [vmem:[%s11205_s25 + $0x5c4] ss:$8 sps:$4 sm:$0xff]  }
 0x199   : > { %7777 = vmatpush2.bf16.msra.mxu0 %v9404_v4  ;;  %v9488_v4 = vld [vmem:[%s11205_s25 + $0x4c0] ss:$8 sps:$4 sm:$0xff]  }
 0x19a   : > { %7820 = vmatpush2.bf16.msra.mxu1 %v9407_v5  ;;  %7778 = vmatprep.subr.bf16.mxu0 %v9412_v6  ;;  %v9491_v5 = vld [vmem:[%s11205_s25 + $0x5c0] ss:$8 sps:$4 sm:$0xff]   ;;  %v9496_v6 = vld [vmem:[%s11205_s25 + $0x4b4] ss:$8 sps:$4 sm:$0xff]  }
 0x19b   : > { %7821 = vmatprep.subr.bf16.mxu1 %v9415_v7  ;;  %v9499_v7 = vld [vmem:[%s11205_s25 + $0x5b4] ss:$8 sps:$4 sm:$0xff]  }
 0x19d   : > { %7779 = vmatpush2.bf16.msra.mxu0 %v9410_v8  ;;  %v9494_v8 = vld [vmem:[%s11205_s25 + $0x4b0] ss:$8 sps:$4 sm:$0xff]  }
 0x19e   : > { %7822 = vmatpush2.bf16.msra.mxu1 %v9413_v9  ;;  %7780 = vmatprep.subr.bf16.mxu0 %v9418_v10  ;;  %v9497_v9 = vld [vmem:[%s11205_s25 + $0x5b0] ss:$8 sps:$4 sm:$0xff]   ;;  %v9502_v10 = vld [vmem:[%s11205_s25 + $0x4a4] ss:$8 sps:$4 sm:$0xff]  }
 0x19f   : > { %7823 = vmatprep.subr.bf16.mxu1 %v9421_v11  ;;  %v9505_v11 = vld [vmem:[%s11205_s25 + $0x5a4] ss:$8 sps:$4 sm:$0xff]  }
 0x1a1   : > { %7781 = vmatpush2.bf16.msra.mxu0 %v9416_v12  ;;  %v9500_v12 = vld [vmem:[%s11205_s25 + $0x4a0] ss:$8 sps:$4 sm:$0xff]  }
 0x1a2   : > { %7824 = vmatpush2.bf16.msra.mxu1 %v9419_v13  ;;  %7836 = vmatprep.subr.bf16.mxu0 %v9424_v14  ;;  %v9503_v13 = vld [vmem:[%s11205_s25 + $0x5a0] ss:$8 sps:$4 sm:$0xff]   ;;  %v9508_v14 = vld [vmem:[%s11205_s25 + $0x494] ss:$8 sps:$4 sm:$0xff]  }
 0x1a3   : > { %7879 = vmatprep.subr.bf16.mxu1 %v9427_v15  ;;  %v9511_v15 = vld [vmem:[%s11205_s25 + $0x594] ss:$8 sps:$4 sm:$0xff]  }
 0x1a4   : > { %7783 = vmatmul.mubr.bf16.vlgmr.msra.gmra.mxu0 %v8606_v16  ;;  %v9506_v16 = vld [vmem:[%s11205_s25 + $0x490] ss:$8 sps:$4 sm:$0xff]  }
 0x1a5   : > { %7826 = vmatmul.mubr.bf16.vlgmr.msra.gmra.mxu1 %v8608_v17  ;;  %7837 = vmatpush1.bf16.msra.mxu0 %v9422_v18  ;;  %v9509_v17 = vld [vmem:[%s11205_s25 + $0x590] ss:$8 sps:$4 sm:$0xff]   ;;  %v9514_v18 = vld [vmem:[%s11205_s25 + $0x484] ss:$8 sps:$4 sm:$0xff]  }
 0x1a6   : > { %7880 = vmatpush1.bf16.msra.mxu1 %v9425_v19  ;;  %7838 = vmatprep.subr.bf16.mxu0 %v9430_v20  ;;  %v9517_v19 = vld [vmem:[%s11205_s25 + $0x584] ss:$8 sps:$4 sm:$0xff]   ;;  %v9512_v20 = vld [vmem:[%s11205_s25 + $0x480] ss:$8 sps:$4 sm:$0xff]  }
 0x1a7   : > { %7881 = vmatprep.subr.bf16.mxu1 %v9433_v21  ;;  %7868 = vmatprep.mubr.bf16.mxu0 %v8611_v29  ;;  %v9515_v21 = vld [vmem:[%s11205_s25 + $0x580] ss:$8 sps:$4 sm:$0xff]   ;;  %v9518_v29 = vld [vmem:[%s11205_s25 + $0x670] ss:$8 sps:$4 sm:$0xff]  }
 0x1a8   : > { %7911 = vmatprep.mubr.bf16.mxu1 %v8613_v31  ;;  %v11456_v31 = vld [vmem:[%s11256_s5 + $0x38] sm:$0xff] }
 0x1a9   : > { %7839 = vmatpush1.bf16.msra.mxu0 %v9428_v22  ;;  %v9520_v22 = vld [vmem:[%s11205_s25 + $0x674] ss:$8 sps:$4 sm:$0xff]  }
 0x1aa   : > { %7882 = vmatpush1.bf16.msra.mxu1 %v9431_v23  ;;  %7840 = vmatprep.subr.bf16.mxu0 %v9436_v28  ;;  %v9523_v23 = vld [vmem:[%s11205_s25 + $0x774] ss:$8 sps:$4 sm:$0xff]  }
 0x1ab   : > { %7883 = vmatprep.subr.bf16.mxu1 %v9439_v30  ;;  %v11449_v28 = vld [vmem:[%s11256_s5 + $0x30] sm:$0xff] }
 0x1ac   : > { %v11453_v30 = vld [vmem:[%s11256_s5 + $0xb0] sm:$0xff] }
 0x1ad   : > { %7841 = vmatpush1.bf16.msra.mxu0 %v9434_v32  ;;  %v8610_v32 = vcombine.low %v11375_v24, %v11378_v25  ;;  %v9524_v25 = vld [vmem:[%s11205_s25 + $0x660] ss:$8 sps:$4 sm:$0xff]  }
 0x1ae   : > { %7884 = vmatpush1.bf16.msra.mxu1 %v9437_v33  ;;  %7842 = vmatprep.subr.bf16.mxu0 %v9442_v34  ;;  %v8612_v33 = vcombine.low %v11381_v26, %v11384_v27  ;;  %v11463_v34 = vld [vmem:[%s11256_s5 + $0xb8] sm:$0xff]  ;;  %v9527_v26 = vld [vmem:[%s11205_s25 + $0x760] ss:$8 sps:$4 sm:$0xff]  }
 0x1af   : > { %7885 = vmatprep.subr.bf16.mxu1 %v9445_v35  ;;  %v9521_v35 = vld [vmem:[%s11205_s25 + $0x770] ss:$8 sps:$4 sm:$0xff]   ;;  %v8617_v24 = vcombine.high %v11456_v31, %v11463_v34  ;;  %v9532_v27 = vld [vmem:[%s11205_s25 + $0x654] ss:$8 sps:$4 sm:$0xff]  }
 0x1b1   : > { %7843 = vmatpush1.bf16.msra.mxu0 %v9440_v36  ;;  %v9526_v36 = vld [vmem:[%s11205_s25 + $0x664] ss:$8 sps:$4 sm:$0xff]  }
 0x1b2   : > { %7886 = vmatpush1.bf16.msra.mxu1 %v9443_v37  ;;  %7844 = vmatprep.subr.bf16.mxu0 %v9448_v38  ;;  %v9529_v37 = vld [vmem:[%s11205_s25 + $0x764] ss:$8 sps:$4 sm:$0xff]   ;;  %v8615_v38 = vcombine.high %v11449_v28, %v11453_v30 }
 0x1b3   : > { %7887 = vmatprep.subr.bf16.mxu1 %v9451_v39  ;;  %v9535_v39 = vld [vmem:[%s11205_s25 + $0x754] ss:$8 sps:$4 sm:$0xff]  }
 0x1b5   : > { %7845 = vmatpush1.bf16.msra.mxu0 %v9446_v40  ;;  %v9530_v40 = vld [vmem:[%s11205_s25 + $0x650] ss:$8 sps:$4 sm:$0xff]  }
 0x1b6   : > { %7888 = vmatpush1.bf16.msra.mxu1 %v9449_v41  ;;  %7846 = vmatprep.subr.bf16.mxu0 %v9454_v42  ;;  %v9533_v41 = vld [vmem:[%s11205_s25 + $0x750] ss:$8 sps:$4 sm:$0xff]   ;;  %v9538_v42 = vld [vmem:[%s11205_s25 + $0x644] ss:$8 sps:$4 sm:$0xff]  }
 0x1b7   : > { %7889 = vmatprep.subr.bf16.mxu1 %v9457_v43  ;;  %v9541_v43 = vld [vmem:[%s11205_s25 + $0x744] ss:$8 sps:$4 sm:$0xff]  }
 0x1b9   : > { %7847 = vmatpush1.bf16.msra.mxu0 %v9452_v44  ;;  %v9536_v44 = vld [vmem:[%s11205_s25 + $0x640] ss:$8 sps:$4 sm:$0xff]  }
 0x1ba   : > { %7890 = vmatpush1.bf16.msra.mxu1 %v9455_v45  ;;  %7848 = vmatprep.subr.bf16.mxu0 %v9460_v46  ;;  %v9539_v45 = vld [vmem:[%s11205_s25 + $0x740] ss:$8 sps:$4 sm:$0xff]   ;;  %v9544_v46 = vld [vmem:[%s11205_s25 + $0x634] ss:$8 sps:$4 sm:$0xff]  }
 0x1bb   : > { %7891 = vmatprep.subr.bf16.mxu1 %v9463_v47  ;;  %v9547_v47 = vld [vmem:[%s11205_s25 + $0x734] ss:$8 sps:$4 sm:$0xff]  }
 0x1bd   : > { %7849 = vmatpush1.bf16.msra.mxu0 %v9458_v48  ;;  %v9542_v48 = vld [vmem:[%s11205_s25 + $0x630] ss:$8 sps:$4 sm:$0xff]  }
 0x1be   : > { %7892 = vmatpush1.bf16.msra.mxu1 %v9461_v49  ;;  %7850 = vmatprep.subr.bf16.mxu0 %v9466_v50  ;;  %v9545_v49 = vld [vmem:[%s11205_s25 + $0x730] ss:$8 sps:$4 sm:$0xff]   ;;  %v9550_v50 = vld [vmem:[%s11205_s25 + $0x624] ss:$8 sps:$4 sm:$0xff]  }
 0x1bf   : > { %7893 = vmatprep.subr.bf16.mxu1 %v9469_v51  ;;  %v9553_v51 = vld [vmem:[%s11205_s25 + $0x724] ss:$8 sps:$4 sm:$0xff]  }
 0x1c1   : > { %7851 = vmatpush1.bf16.msra.mxu0 %v9464_v52  ;;  %v9548_v52 = vld [vmem:[%s11205_s25 + $0x620] ss:$8 sps:$4 sm:$0xff]  }
 0x1c2   : > { %7894 = vmatpush1.bf16.msra.mxu1 %v9467_v53  ;;  %7852 = vmatprep.subr.bf16.mxu0 %v9472_v54  ;;  %v9551_v53 = vld [vmem:[%s11205_s25 + $0x720] ss:$8 sps:$4 sm:$0xff]   ;;  %v9556_v54 = vld [vmem:[%s11205_s25 + $0x614] ss:$8 sps:$4 sm:$0xff]  }
 0x1c3   : > { %7895 = vmatprep.subr.bf16.mxu1 %v9475_v55  ;;  %v9559_v55 = vld [vmem:[%s11205_s25 + $0x714] ss:$8 sps:$4 sm:$0xff]  }
 0x1c5   : > { %7853 = vmatpush2.bf16.msra.mxu0 %v9470_v56  ;;  %v9554_v56 = vld [vmem:[%s11205_s25 + $0x610] ss:$8 sps:$4 sm:$0xff]  }
 0x1c6   : > { %7896 = vmatpush2.bf16.msra.mxu1 %v9473_v57  ;;  %7854 = vmatprep.subr.bf16.mxu0 %v9478_v58  ;;  %v9557_v57 = vld [vmem:[%s11205_s25 + $0x710] ss:$8 sps:$4 sm:$0xff]   ;;  %v9562_v58 = vld [vmem:[%s11205_s25 + $0x604] ss:$8 sps:$4 sm:$0xff]  }
 0x1c7   : > { %7897 = vmatprep.subr.bf16.mxu1 %v9481_v59  ;;  %v9565_v59 = vld [vmem:[%s11205_s25 + $0x704] ss:$8 sps:$4 sm:$0xff]  }
 0x1c9   : > { %7855 = vmatpush2.bf16.msra.mxu0 %v9476_v60  ;;  %v9560_v60 = vld [vmem:[%s11205_s25 + $0x600] ss:$8 sps:$4 sm:$0xff]  }
 0x1ca   : > { %7898 = vmatpush2.bf16.msra.mxu1 %v9479_v61  ;;  %7856 = vmatprep.subr.bf16.mxu0 %v9484_v62  ;;  %v9563_v61 = vld [vmem:[%s11205_s25 + $0x700] ss:$8 sps:$4 sm:$0xff]   ;;  %v9568_v62 = vld [vmem:[%s11205_s25 + $0x6f4] ss:$8 sps:$4 sm:$0xff]  }
 0x1cb   : > { %7899 = vmatprep.subr.bf16.mxu1 %v9487_v63  ;;  %v9571_v63 = vld [vmem:[%s11205_s25 + $0x7f4] ss:$8 sps:$4 sm:$0xff]  }
 0x1cd   : > { %7857 = vmatpush2.bf16.msra.mxu0 %v9482_v0  ;;  %v9566_v0 = vld [vmem:[%s11205_s25 + $0x6f0] ss:$8 sps:$4 sm:$0xff]  }
 0x1ce   : > { %7900 = vmatpush2.bf16.msra.mxu1 %v9485_v1  ;;  %7858 = vmatprep.subr.bf16.mxu0 %v9490_v2  ;;  %v9569_v1 = vld [vmem:[%s11205_s25 + $0x7f0] ss:$8 sps:$4 sm:$0xff]   ;;  %v9574_v2 = vld [vmem:[%s11205_s25 + $0x6e4] ss:$8 sps:$4 sm:$0xff]  }
 0x1cf   : > { %7901 = vmatprep.subr.bf16.mxu1 %v9493_v3  ;;  %v9577_v3 = vld [vmem:[%s11205_s25 + $0x7e4] ss:$8 sps:$4 sm:$0xff]  }
 0x1d1   : > { %7859 = vmatpush2.bf16.msra.mxu0 %v9488_v4  ;;  %v9572_v4 = vld [vmem:[%s11205_s25 + $0x6e0] ss:$8 sps:$4 sm:$0xff]  }
 0x1d2   : > { %7902 = vmatpush2.bf16.msra.mxu1 %v9491_v5  ;;  %7860 = vmatprep.subr.bf16.mxu0 %v9496_v6  ;;  %v9575_v5 = vld [vmem:[%s11205_s25 + $0x7e0] ss:$8 sps:$4 sm:$0xff]   ;;  %v9580_v6 = vld [vmem:[%s11205_s25 + $0x6d4] ss:$8 sps:$4 sm:$0xff]  }
 0x1d3   : > { %7903 = vmatprep.subr.bf16.mxu1 %v9499_v7  ;;  %v9583_v7 = vld [vmem:[%s11205_s25 + $0x7d4] ss:$8 sps:$4 sm:$0xff]  }
 0x1d5   : > { %7861 = vmatpush2.bf16.msra.mxu0 %v9494_v8  ;;  %v9578_v8 = vld [vmem:[%s11205_s25 + $0x6d0] ss:$8 sps:$4 sm:$0xff]  }
 0x1d6   : > { %7904 = vmatpush2.bf16.msra.mxu1 %v9497_v9  ;;  %7862 = vmatprep.subr.bf16.mxu0 %v9502_v10  ;;  %v9581_v9 = vld [vmem:[%s11205_s25 + $0x7d0] ss:$8 sps:$4 sm:$0xff]   ;;  %v9586_v10 = vld [vmem:[%s11205_s25 + $0x6c4] ss:$8 sps:$4 sm:$0xff]  }
 0x1d7   : > { %7905 = vmatprep.subr.bf16.mxu1 %v9505_v11  ;;  %v9589_v11 = vld [vmem:[%s11205_s25 + $0x7c4] ss:$8 sps:$4 sm:$0xff]  }
 0x1d9   : > { %7863 = vmatpush2.bf16.msra.mxu0 %v9500_v12  ;;  %v9584_v12 = vld [vmem:[%s11205_s25 + $0x6c0] ss:$8 sps:$4 sm:$0xff]  }
 0x1da   : > { %7906 = vmatpush2.bf16.msra.mxu1 %v9503_v13  ;;  %7864 = vmatprep.subr.bf16.mxu0 %v9508_v14  ;;  %v9587_v13 = vld [vmem:[%s11205_s25 + $0x7c0] ss:$8 sps:$4 sm:$0xff]   ;;  %v9592_v14 = vld [vmem:[%s11205_s25 + $0x6b4] ss:$8 sps:$4 sm:$0xff]  }
 0x1db   : > { %7907 = vmatprep.subr.bf16.mxu1 %v9511_v15  ;;  %v9595_v15 = vld [vmem:[%s11205_s25 + $0x7b4] ss:$8 sps:$4 sm:$0xff]  }
 0x1dd   : > { %7865 = vmatpush2.bf16.msra.mxu0 %v9506_v16  ;;  %v9590_v16 = vld [vmem:[%s11205_s25 + $0x6b0] ss:$8 sps:$4 sm:$0xff]  }
 0x1de   : > { %7908 = vmatpush2.bf16.msra.mxu1 %v9509_v17  ;;  %7866 = vmatprep.subr.bf16.mxu0 %v9514_v18  ;;  %v9593_v17 = vld [vmem:[%s11205_s25 + $0x7b0] ss:$8 sps:$4 sm:$0xff]   ;;  %v9598_v18 = vld [vmem:[%s11205_s25 + $0x6a4] ss:$8 sps:$4 sm:$0xff]  }
 0x1df   : > { %7909 = vmatprep.subr.bf16.mxu1 %v9517_v19  ;;  %v9601_v19 = vld [vmem:[%s11205_s25 + $0x7a4] ss:$8 sps:$4 sm:$0xff]  }
 0x1e1   : > { %7867 = vmatpush2.bf16.msra.mxu0 %v9512_v20  ;;  %v9596_v20 = vld [vmem:[%s11205_s25 + $0x6a0] ss:$8 sps:$4 sm:$0xff]  }
 0x1e2   : > { %7910 = vmatpush2.bf16.msra.mxu1 %v9515_v21  ;;  %7922 = vmatprep.subr.bf16.mxu0 %v9520_v22  ;;  %v9599_v21 = vld [vmem:[%s11205_s25 + $0x7a0] ss:$8 sps:$4 sm:$0xff]   ;;  %v9604_v22 = vld [vmem:[%s11205_s25 + $0x694] ss:$8 sps:$4 sm:$0xff]  }
 0x1e3   : > { %7965 = vmatprep.subr.bf16.mxu1 %v9523_v23  ;;  %v9607_v23 = vld [vmem:[%s11205_s25 + $0x794] ss:$8 sps:$4 sm:$0xff]  }
 0x1e4   : > { %7869 = vmatmul.mubr.bf16.vlgmr.msra.gmra.mxu0 %v8610_v32  ;;  %v9605_v32 = vld [vmem:[%s11205_s25 + $0x790] ss:$8 sps:$4 sm:$0xff]  }
 0x1e5   : > { %7912 = vmatmul.mubr.bf16.vlgmr.msra.gmra.mxu1 %v8612_v33  ;;  %7923 = vmatpush1.bf16.msra.mxu0 %v9518_v29  ;;  %v9602_v29 = vld [vmem:[%s11205_s25 + $0x690] ss:$8 sps:$4 sm:$0xff]   ;;  %v9610_v33 = vld [vmem:[%s11205_s25 + $0x684] ss:$8 sps:$4 sm:$0xff]  }
 0x1e6   : > { %7966 = vmatpush1.bf16.msra.mxu1 %v9521_v35  ;;  %7924 = vmatprep.subr.bf16.mxu0 %v9526_v36  ;;  %v9613_v35 = vld [vmem:[%s11205_s25 + $0x784] ss:$8 sps:$4 sm:$0xff]   ;;  %v9608_v36 = vld [vmem:[%s11205_s25 + $0x680] ss:$8 sps:$4 sm:$0xff]  }
 0x1e7   : > { %7967 = vmatprep.subr.bf16.mxu1 %v9529_v37  ;;  %7954 = vmatprep.mubr.bf16.mxu0 %v8615_v38  ;;  %v9611_v37 = vld [vmem:[%s11205_s25 + $0x780] ss:$8 sps:$4 sm:$0xff]   ;;  %v9616_v38 = vld [vmem:[%s11205_s25 + $0x874] ss:$8 sps:$4 sm:$0xff]  }
 0x1e8   : > { %7997 = vmatprep.mubr.bf16.mxu1 %v8617_v24  ;;  %v9619_v24 = vld [vmem:[%s11205_s25 + $0x974] ss:$8 sps:$4 sm:$0xff]  }
 0x1e9   : > { %7925 = vmatpush1.bf16.msra.mxu0 %v9524_v25  ;;  %v11533_v25 = vld [vmem:[%s11256_s5 + $0x40] sm:$0xff] }
 0x1ea   : > { %7968 = vmatpush1.bf16.msra.mxu1 %v9527_v26  ;;  %7926 = vmatprep.subr.bf16.mxu0 %v9532_v27  ;;  %v9614_v26 = vld [vmem:[%s11205_s25 + $0x870] ss:$8 sps:$4 sm:$0xff]   ;;  %v11537_v27 = vld [vmem:[%s11256_s5 + $0xc0] sm:$0xff] }
 0x1eb   : > { %7969 = vmatprep.subr.bf16.mxu1 %v9535_v39  ;;  %v11540_v39 = vld [vmem:[%s11256_s5 + $0x48] sm:$0xff] }
 0x1ed   : > { %7927 = vmatpush1.bf16.msra.mxu0 %v9530_v40  ;;  %v8614_v40 = vcombine.low %v11449_v28, %v11453_v30  ;;  %v9620_v30 = vld [vmem:[%s11205_s25 + $0x860] ss:$8 sps:$4 sm:$0xff]  }
 0x1ee   : > { %7970 = vmatpush1.bf16.msra.mxu1 %v9533_v41  ;;  %7928 = vmatprep.subr.bf16.mxu0 %v9538_v42  ;;  %v8616_v41 = vcombine.low %v11456_v31, %v11463_v34  ;;  %v11547_v42 = vld [vmem:[%s11256_s5 + $0xc8] sm:$0xff]  ;;  %v9628_v34 = vld [vmem:[%s11205_s25 + $0x854] ss:$8 sps:$4 sm:$0xff]  }
 0x1ef   : > { %7971 = vmatprep.subr.bf16.mxu1 %v9541_v43  ;;  %v9617_v43 = vld [vmem:[%s11205_s25 + $0x970] ss:$8 sps:$4 sm:$0xff]   ;;  %v8621_v28 = vcombine.high %v11540_v39, %v11547_v42  ;;  %v9623_v31 = vld [vmem:[%s11205_s25 + $0x960] ss:$8 sps:$4 sm:$0xff]  }
 0x1f1   : > { %7929 = vmatpush1.bf16.msra.mxu0 %v9536_v44  ;;  %v9622_v44 = vld [vmem:[%s11205_s25 + $0x864] ss:$8 sps:$4 sm:$0xff]  }
 0x1f2   : > { %7972 = vmatpush1.bf16.msra.mxu1 %v9539_v45  ;;  %7930 = vmatprep.subr.bf16.mxu0 %v9544_v46  ;;  %v9625_v45 = vld [vmem:[%s11205_s25 + $0x964] ss:$8 sps:$4 sm:$0xff]   ;;  %v8619_v46 = vcombine.high %v11533_v25, %v11537_v27 }
 0x1f3   : > { %7973 = vmatprep.subr.bf16.mxu1 %v9547_v47  ;;  %v9631_v47 = vld [vmem:[%s11205_s25 + $0x954] ss:$8 sps:$4 sm:$0xff]  }
 0x1f5   : > { %7931 = vmatpush1.bf16.msra.mxu0 %v9542_v48  ;;  %v9626_v48 = vld [vmem:[%s11205_s25 + $0x850] ss:$8 sps:$4 sm:$0xff]  }
 0x1f6   : > { %7974 = vmatpush1.bf16.msra.mxu1 %v9545_v49  ;;  %7932 = vmatprep.subr.bf16.mxu0 %v9550_v50  ;;  %v9629_v49 = vld [vmem:[%s11205_s25 + $0x950] ss:$8 sps:$4 sm:$0xff]   ;;  %v9634_v50 = vld [vmem:[%s11205_s25 + $0x844] ss:$8 sps:$4 sm:$0xff]  }
 0x1f7   : > { %7975 = vmatprep.subr.bf16.mxu1 %v9553_v51  ;;  %v9637_v51 = vld [vmem:[%s11205_s25 + $0x944] ss:$8 sps:$4 sm:$0xff]  }
 0x1f9   : > { %7933 = vmatpush1.bf16.msra.mxu0 %v9548_v52  ;;  %v9632_v52 = vld [vmem:[%s11205_s25 + $0x840] ss:$8 sps:$4 sm:$0xff]  }
 0x1fa   : > { %7976 = vmatpush1.bf16.msra.mxu1 %v9551_v53  ;;  %7934 = vmatprep.subr.bf16.mxu0 %v9556_v54  ;;  %v9635_v53 = vld [vmem:[%s11205_s25 + $0x940] ss:$8 sps:$4 sm:$0xff]   ;;  %v9640_v54 = vld [vmem:[%s11205_s25 + $0x834] ss:$8 sps:$4 sm:$0xff]  }
 0x1fb   : > { %7977 = vmatprep.subr.bf16.mxu1 %v9559_v55  ;;  %v9643_v55 = vld [vmem:[%s11205_s25 + $0x934] ss:$8 sps:$4 sm:$0xff]  }
 0x1fd   : > { %7935 = vmatpush1.bf16.msra.mxu0 %v9554_v56  ;;  %v9638_v56 = vld [vmem:[%s11205_s25 + $0x830] ss:$8 sps:$4 sm:$0xff]  }
 0x1fe   : > { %7978 = vmatpush1.bf16.msra.mxu1 %v9557_v57  ;;  %7936 = vmatprep.subr.bf16.mxu0 %v9562_v58  ;;  %v9641_v57 = vld [vmem:[%s11205_s25 + $0x930] ss:$8 sps:$4 sm:$0xff]   ;;  %v9646_v58 = vld [vmem:[%s11205_s25 + $0x824] ss:$8 sps:$4 sm:$0xff]  }
 0x1ff   : > { %7979 = vmatprep.subr.bf16.mxu1 %v9565_v59  ;;  %v9649_v59 = vld [vmem:[%s11205_s25 + $0x924] ss:$8 sps:$4 sm:$0xff]  }
 0x201   : > { %7937 = vmatpush1.bf16.msra.mxu0 %v9560_v60  ;;  %v9644_v60 = vld [vmem:[%s11205_s25 + $0x820] ss:$8 sps:$4 sm:$0xff]  }
 0x202   : > { %7980 = vmatpush1.bf16.msra.mxu1 %v9563_v61  ;;  %7938 = vmatprep.subr.bf16.mxu0 %v9568_v62  ;;  %v9647_v61 = vld [vmem:[%s11205_s25 + $0x920] ss:$8 sps:$4 sm:$0xff]   ;;  %v9652_v62 = vld [vmem:[%s11205_s25 + $0x814] ss:$8 sps:$4 sm:$0xff]  }
 0x203   : > { %7981 = vmatprep.subr.bf16.mxu1 %v9571_v63  ;;  %v9655_v63 = vld [vmem:[%s11205_s25 + $0x914] ss:$8 sps:$4 sm:$0xff]  }
 0x205   : > { %7939 = vmatpush2.bf16.msra.mxu0 %v9566_v0  ;;  %v9650_v0 = vld [vmem:[%s11205_s25 + $0x810] ss:$8 sps:$4 sm:$0xff]  }
 0x206   : > { %7982 = vmatpush2.bf16.msra.mxu1 %v9569_v1  ;;  %7940 = vmatprep.subr.bf16.mxu0 %v9574_v2  ;;  %v9653_v1 = vld [vmem:[%s11205_s25 + $0x910] ss:$8 sps:$4 sm:$0xff]   ;;  %v9658_v2 = vld [vmem:[%s11205_s25 + $0x804] ss:$8 sps:$4 sm:$0xff]  }
 0x207   : > { %7983 = vmatprep.subr.bf16.mxu1 %v9577_v3  ;;  %v9661_v3 = vld [vmem:[%s11205_s25 + $0x904] ss:$8 sps:$4 sm:$0xff]  }
 0x209   : > { %7941 = vmatpush2.bf16.msra.mxu0 %v9572_v4  ;;  %v9656_v4 = vld [vmem:[%s11205_s25 + $0x800] ss:$8 sps:$4 sm:$0xff]  }
 0x20a   : > { %7984 = vmatpush2.bf16.msra.mxu1 %v9575_v5  ;;  %7942 = vmatprep.subr.bf16.mxu0 %v9580_v6  ;;  %v9659_v5 = vld [vmem:[%s11205_s25 + $0x900] ss:$8 sps:$4 sm:$0xff]   ;;  %v9664_v6 = vld [vmem:[%s11205_s25 + $0x8f4] ss:$8 sps:$4 sm:$0xff]  }
 0x20b   : > { %7985 = vmatprep.subr.bf16.mxu1 %v9583_v7  ;;  %v9667_v7 = vld [vmem:[%s11205_s25 + $0x9f4] ss:$8 sps:$4 sm:$0xff]  }
 0x20d   : > { %7943 = vmatpush2.bf16.msra.mxu0 %v9578_v8  ;;  %v9662_v8 = vld [vmem:[%s11205_s25 + $0x8f0] ss:$8 sps:$4 sm:$0xff]  }
 0x20e   : > { %7986 = vmatpush2.bf16.msra.mxu1 %v9581_v9  ;;  %7944 = vmatprep.subr.bf16.mxu0 %v9586_v10  ;;  %v9665_v9 = vld [vmem:[%s11205_s25 + $0x9f0] ss:$8 sps:$4 sm:$0xff]   ;;  %v9670_v10 = vld [vmem:[%s11205_s25 + $0x8e4] ss:$8 sps:$4 sm:$0xff]  }
 0x20f   : > { %7987 = vmatprep.subr.bf16.mxu1 %v9589_v11  ;;  %v9673_v11 = vld [vmem:[%s11205_s25 + $0x9e4] ss:$8 sps:$4 sm:$0xff]  }
 0x211   : > { %7945 = vmatpush2.bf16.msra.mxu0 %v9584_v12  ;;  %v9668_v12 = vld [vmem:[%s11205_s25 + $0x8e0] ss:$8 sps:$4 sm:$0xff]  }
 0x212   : > { %7988 = vmatpush2.bf16.msra.mxu1 %v9587_v13  ;;  %7946 = vmatprep.subr.bf16.mxu0 %v9592_v14  ;;  %v9671_v13 = vld [vmem:[%s11205_s25 + $0x9e0] ss:$8 sps:$4 sm:$0xff]   ;;  %v9676_v14 = vld [vmem:[%s11205_s25 + $0x8d4] ss:$8 sps:$4 sm:$0xff]  }
 0x213   : > { %7989 = vmatprep.subr.bf16.mxu1 %v9595_v15  ;;  %v9679_v15 = vld [vmem:[%s11205_s25 + $0x9d4] ss:$8 sps:$4 sm:$0xff]  }
 0x215   : > { %7947 = vmatpush2.bf16.msra.mxu0 %v9590_v16  ;;  %v9674_v16 = vld [vmem:[%s11205_s25 + $0x8d0] ss:$8 sps:$4 sm:$0xff]  }
 0x216   : > { %7990 = vmatpush2.bf16.msra.mxu1 %v9593_v17  ;;  %7948 = vmatprep.subr.bf16.mxu0 %v9598_v18  ;;  %v9677_v17 = vld [vmem:[%s11205_s25 + $0x9d0] ss:$8 sps:$4 sm:$0xff]   ;;  %v9682_v18 = vld [vmem:[%s11205_s25 + $0x8c4] ss:$8 sps:$4 sm:$0xff]  }
 0x217   : > { %7991 = vmatprep.subr.bf16.mxu1 %v9601_v19  ;;  %v9685_v19 = vld [vmem:[%s11205_s25 + $0x9c4] ss:$8 sps:$4 sm:$0xff]  }
 0x219   : > { %7949 = vmatpush2.bf16.msra.mxu0 %v9596_v20  ;;  %v9680_v20 = vld [vmem:[%s11205_s25 + $0x8c0] ss:$8 sps:$4 sm:$0xff]  }
 0x21a   : > { %7992 = vmatpush2.bf16.msra.mxu1 %v9599_v21  ;;  %7950 = vmatprep.subr.bf16.mxu0 %v9604_v22  ;;  %v9683_v21 = vld [vmem:[%s11205_s25 + $0x9c0] ss:$8 sps:$4 sm:$0xff]   ;;  %v9688_v22 = vld [vmem:[%s11205_s25 + $0x8b4] ss:$8 sps:$4 sm:$0xff]  }
 0x21b   : > { %7993 = vmatprep.subr.bf16.mxu1 %v9607_v23  ;;  %v9691_v23 = vld [vmem:[%s11205_s25 + $0x9b4] ss:$8 sps:$4 sm:$0xff]  }
 0x21d   : > { %7951 = vmatpush2.bf16.msra.mxu0 %v9602_v29  ;;  %v9686_v29 = vld [vmem:[%s11205_s25 + $0x8b0] ss:$8 sps:$4 sm:$0xff]  }
 0x21e   : > { %7994 = vmatpush2.bf16.msra.mxu1 %v9605_v32  ;;  %7952 = vmatprep.subr.bf16.mxu0 %v9610_v33  ;;  %v9689_v32 = vld [vmem:[%s11205_s25 + $0x9b0] ss:$8 sps:$4 sm:$0xff]   ;;  %v9694_v33 = vld [vmem:[%s11205_s25 + $0x8a4] ss:$8 sps:$4 sm:$0xff]  }
 0x21f   : > { %7995 = vmatprep.subr.bf16.mxu1 %v9613_v35  ;;  %v9697_v35 = vld [vmem:[%s11205_s25 + $0x9a4] ss:$8 sps:$4 sm:$0xff]  }
 0x221   : > { %7953 = vmatpush2.bf16.msra.mxu0 %v9608_v36  ;;  %v9692_v36 = vld [vmem:[%s11205_s25 + $0x8a0] ss:$8 sps:$4 sm:$0xff]  }
 0x222   : > { %7996 = vmatpush2.bf16.msra.mxu1 %v9611_v37  ;;  %8008 = vmatprep.subr.bf16.mxu0 %v9616_v38  ;;  %v9695_v37 = vld [vmem:[%s11205_s25 + $0x9a0] ss:$8 sps:$4 sm:$0xff]   ;;  %v9700_v38 = vld [vmem:[%s11205_s25 + $0x894] ss:$8 sps:$4 sm:$0xff]  }
 0x223   : > { %8051 = vmatprep.subr.bf16.mxu1 %v9619_v24  ;;  %v9703_v24 = vld [vmem:[%s11205_s25 + $0x994] ss:$8 sps:$4 sm:$0xff]  }
 0x224   : > { %7955 = vmatmul.mubr.bf16.vlgmr.msra.gmra.mxu0 %v8614_v40  ;;  %v9701_v40 = vld [vmem:[%s11205_s25 + $0x990] ss:$8 sps:$4 sm:$0xff]  }
 0x225   : > { %7998 = vmatmul.mubr.bf16.vlgmr.msra.gmra.mxu1 %v8616_v41  ;;  %8009 = vmatpush1.bf16.msra.mxu0 %v9614_v26  ;;  %v9698_v26 = vld [vmem:[%s11205_s25 + $0x890] ss:$8 sps:$4 sm:$0xff]   ;;  %v9706_v41 = vld [vmem:[%s11205_s25 + $0x884] ss:$8 sps:$4 sm:$0xff]  }
 0x226   : > { %8052 = vmatpush1.bf16.msra.mxu1 %v9617_v43  ;;  %8010 = vmatprep.subr.bf16.mxu0 %v9622_v44  ;;  %v9709_v43 = vld [vmem:[%s11205_s25 + $0x984] ss:$8 sps:$4 sm:$0xff]   ;;  %v9704_v44 = vld [vmem:[%s11205_s25 + $0x880] ss:$8 sps:$4 sm:$0xff]  }
 0x227   : > { %8053 = vmatprep.subr.bf16.mxu1 %v9625_v45  ;;  %8040 = vmatprep.mubr.bf16.mxu0 %v8619_v46  ;;  %v9707_v45 = vld [vmem:[%s11205_s25 + $0x980] ss:$8 sps:$4 sm:$0xff]   ;;  %v9712_v46 = vld [vmem:[%s11205_s25 + $0xa74] ss:$8 sps:$4 sm:$0xff]  }
 0x228   : > { %8083 = vmatprep.mubr.bf16.mxu1 %v8621_v28  ;;  %v9715_v28 = vld [vmem:[%s11205_s25 + $0xb74] ss:$8 sps:$4 sm:$0xff]  }
 0x229   : > { %8011 = vmatpush1.bf16.msra.mxu0 %v9620_v30  ;;  %v11617_v30 = vld [vmem:[%s11256_s5 + $0x50] sm:$0xff] }
 0x22a   : > { %8054 = vmatpush1.bf16.msra.mxu1 %v9623_v31  ;;  %8012 = vmatprep.subr.bf16.mxu0 %v9628_v34  ;;  %v9710_v31 = vld [vmem:[%s11205_s25 + $0xa70] ss:$8 sps:$4 sm:$0xff]   ;;  %v8618_v34 = vcombine.low %v11533_v25, %v11537_v27  ;;  %v9721_v25 = vld [vmem:[%s11205_s25 + $0xb64] ss:$8 sps:$4 sm:$0xff]   ;;  %v9716_v27 = vld [vmem:[%s11205_s25 + $0xa60] ss:$8 sps:$4 sm:$0xff]  }
 0x22b   : > { %8055 = vmatprep.subr.bf16.mxu1 %v9631_v47  ;;  %v8620_v47 = vcombine.low %v11540_v39, %v11547_v42 }
 0x22d   : > { %8013 = vmatpush1.bf16.msra.mxu0 %v9626_v48  ;;  %v11625_v48 = vld [vmem:[%s11256_s5 + $0xd0] sm:$0xff] }
 0x22e   : > { %8056 = vmatpush1.bf16.msra.mxu1 %v9629_v49  ;;  %8014 = vmatprep.subr.bf16.mxu0 %v9634_v50  ;;  %v11628_v49 = vld [vmem:[%s11256_s5 + $0x58] sm:$0xff]  ;;  %v8623_v39 = vcombine.high %v11617_v30, %v11625_v48 }
 0x22f   : > { %8057 = vmatprep.subr.bf16.mxu1 %v9637_v51  ;;  %v11631_v50 = vld [vmem:[%s11256_s5 + $0xd8] sm:$0xff] }
 0x230   : > { %v9713_v51 = vld [vmem:[%s11205_s25 + $0xb70] ss:$8 sps:$4 sm:$0xff]   ;;  %v8625_v42 = vcombine.high %v11628_v49, %v11631_v50 }
 0x231   : > { %8015 = vmatpush1.bf16.msra.mxu0 %v9632_v52  ;;  %v9718_v52 = vld [vmem:[%s11205_s25 + $0xa64] ss:$8 sps:$4 sm:$0xff]  }
 0x232   : > { %8058 = vmatpush1.bf16.msra.mxu1 %v9635_v53  ;;  %8016 = vmatprep.subr.bf16.mxu0 %v9640_v54  ;;  %v9719_v53 = vld [vmem:[%s11205_s25 + $0xb60] ss:$8 sps:$4 sm:$0xff]   ;;  %v9724_v54 = vld [vmem:[%s11205_s25 + $0xa54] ss:$8 sps:$4 sm:$0xff]  }
 0x233   : > { %8059 = vmatprep.subr.bf16.mxu1 %v9643_v55  ;;  %v9727_v55 = vld [vmem:[%s11205_s25 + $0xb54] ss:$8 sps:$4 sm:$0xff]  }
 0x235   : > { %8017 = vmatpush1.bf16.msra.mxu0 %v9638_v56  ;;  %v9722_v56 = vld [vmem:[%s11205_s25 + $0xa50] ss:$8 sps:$4 sm:$0xff]  }
 0x236   : > { %8060 = vmatpush1.bf16.msra.mxu1 %v9641_v57  ;;  %8018 = vmatprep.subr.bf16.mxu0 %v9646_v58  ;;  %v9725_v57 = vld [vmem:[%s11205_s25 + $0xb50] ss:$8 sps:$4 sm:$0xff]   ;;  %v9730_v58 = vld [vmem:[%s11205_s25 + $0xa44] ss:$8 sps:$4 sm:$0xff]  }
 0x237   : > { %8061 = vmatprep.subr.bf16.mxu1 %v9649_v59  ;;  %v9733_v59 = vld [vmem:[%s11205_s25 + $0xb44] ss:$8 sps:$4 sm:$0xff]  }
 0x239   : > { %8019 = vmatpush1.bf16.msra.mxu0 %v9644_v60  ;;  %v9728_v60 = vld [vmem:[%s11205_s25 + $0xa40] ss:$8 sps:$4 sm:$0xff]  }
 0x23a   : > { %8062 = vmatpush1.bf16.msra.mxu1 %v9647_v61  ;;  %8020 = vmatprep.subr.bf16.mxu0 %v9652_v62  ;;  %v9731_v61 = vld [vmem:[%s11205_s25 + $0xb40] ss:$8 sps:$4 sm:$0xff]   ;;  %v9736_v62 = vld [vmem:[%s11205_s25 + $0xa34] ss:$8 sps:$4 sm:$0xff]  }
 0x23b   : > { %8063 = vmatprep.subr.bf16.mxu1 %v9655_v63  ;;  %v9739_v63 = vld [vmem:[%s11205_s25 + $0xb34] ss:$8 sps:$4 sm:$0xff]  }
 0x23d   : > { %8021 = vmatpush1.bf16.msra.mxu0 %v9650_v0  ;;  %v9734_v0 = vld [vmem:[%s11205_s25 + $0xa30] ss:$8 sps:$4 sm:$0xff]  }
 0x23e   : > { %8064 = vmatpush1.bf16.msra.mxu1 %v9653_v1  ;;  %8022 = vmatprep.subr.bf16.mxu0 %v9658_v2  ;;  %v9737_v1 = vld [vmem:[%s11205_s25 + $0xb30] ss:$8 sps:$4 sm:$0xff]   ;;  %v9742_v2 = vld [vmem:[%s11205_s25 + $0xa24] ss:$8 sps:$4 sm:$0xff]  }
 0x23f   : > { %8065 = vmatprep.subr.bf16.mxu1 %v9661_v3  ;;  %v9745_v3 = vld [vmem:[%s11205_s25 + $0xb24] ss:$8 sps:$4 sm:$0xff]  }
 0x241   : > { %8023 = vmatpush1.bf16.msra.mxu0 %v9656_v4  ;;  %v9740_v4 = vld [vmem:[%s11205_s25 + $0xa20] ss:$8 sps:$4 sm:$0xff]  }
 0x242   : > { %8066 = vmatpush1.bf16.msra.mxu1 %v9659_v5  ;;  %8024 = vmatprep.subr.bf16.mxu0 %v9664_v6  ;;  %v9743_v5 = vld [vmem:[%s11205_s25 + $0xb20] ss:$8 sps:$4 sm:$0xff]   ;;  %v9748_v6 = vld [vmem:[%s11205_s25 + $0xa14] ss:$8 sps:$4 sm:$0xff]  }
 0x243   : > { %8067 = vmatprep.subr.bf16.mxu1 %v9667_v7  ;;  %v9751_v7 = vld [vmem:[%s11205_s25 + $0xb14] ss:$8 sps:$4 sm:$0xff]  }
 0x245   : > { %8025 = vmatpush2.bf16.msra.mxu0 %v9662_v8  ;;  %v9746_v8 = vld [vmem:[%s11205_s25 + $0xa10] ss:$8 sps:$4 sm:$0xff]  }
 0x246   : > { %8068 = vmatpush2.bf16.msra.mxu1 %v9665_v9  ;;  %8026 = vmatprep.subr.bf16.mxu0 %v9670_v10  ;;  %v9749_v9 = vld [vmem:[%s11205_s25 + $0xb10] ss:$8 sps:$4 sm:$0xff]   ;;  %v9754_v10 = vld [vmem:[%s11205_s25 + $0xa04] ss:$8 sps:$4 sm:$0xff]  }
 0x247   : > { %8069 = vmatprep.subr.bf16.mxu1 %v9673_v11  ;;  %v9757_v11 = vld [vmem:[%s11205_s25 + $0xb04] ss:$8 sps:$4 sm:$0xff]  }
 0x249   : > { %8027 = vmatpush2.bf16.msra.mxu0 %v9668_v12  ;;  %v9752_v12 = vld [vmem:[%s11205_s25 + $0xa00] ss:$8 sps:$4 sm:$0xff]  }
 0x24a   : > { %8070 = vmatpush2.bf16.msra.mxu1 %v9671_v13  ;;  %8028 = vmatprep.subr.bf16.mxu0 %v9676_v14  ;;  %v9755_v13 = vld [vmem:[%s11205_s25 + $0xb00] ss:$8 sps:$4 sm:$0xff]   ;;  %v9760_v14 = vld [vmem:[%s11205_s25 + $0xaf4] ss:$8 sps:$4 sm:$0xff]  }
 0x24b   : > { %8071 = vmatprep.subr.bf16.mxu1 %v9679_v15  ;;  %v9763_v15 = vld [vmem:[%s11205_s25 + $0xbf4] ss:$8 sps:$4 sm:$0xff]  }
 0x24d   : > { %8029 = vmatpush2.bf16.msra.mxu0 %v9674_v16  ;;  %v9758_v16 = vld [vmem:[%s11205_s25 + $0xaf0] ss:$8 sps:$4 sm:$0xff]  }
 0x24e   : > { %8072 = vmatpush2.bf16.msra.mxu1 %v9677_v17  ;;  %8030 = vmatprep.subr.bf16.mxu0 %v9682_v18  ;;  %v9761_v17 = vld [vmem:[%s11205_s25 + $0xbf0] ss:$8 sps:$4 sm:$0xff]   ;;  %v9766_v18 = vld [vmem:[%s11205_s25 + $0xae4] ss:$8 sps:$4 sm:$0xff]  }
 0x24f   : > { %8073 = vmatprep.subr.bf16.mxu1 %v9685_v19  ;;  %v9769_v19 = vld [vmem:[%s11205_s25 + $0xbe4] ss:$8 sps:$4 sm:$0xff]  }
 0x251   : > { %8031 = vmatpush2.bf16.msra.mxu0 %v9680_v20  ;;  %v9764_v20 = vld [vmem:[%s11205_s25 + $0xae0] ss:$8 sps:$4 sm:$0xff]  }
 0x252   : > { %8074 = vmatpush2.bf16.msra.mxu1 %v9683_v21  ;;  %8032 = vmatprep.subr.bf16.mxu0 %v9688_v22  ;;  %v9767_v21 = vld [vmem:[%s11205_s25 + $0xbe0] ss:$8 sps:$4 sm:$0xff]   ;;  %v9772_v22 = vld [vmem:[%s11205_s25 + $0xad4] ss:$8 sps:$4 sm:$0xff]  }
 0x253   : > { %8075 = vmatprep.subr.bf16.mxu1 %v9691_v23  ;;  %v9775_v23 = vld [vmem:[%s11205_s25 + $0xbd4] ss:$8 sps:$4 sm:$0xff]  }
 0x255   : > { %8033 = vmatpush2.bf16.msra.mxu0 %v9686_v29  ;;  %v9770_v29 = vld [vmem:[%s11205_s25 + $0xad0] ss:$8 sps:$4 sm:$0xff]  }
 0x256   : > { %8076 = vmatpush2.bf16.msra.mxu1 %v9689_v32  ;;  %8034 = vmatprep.subr.bf16.mxu0 %v9694_v33  ;;  %v9773_v32 = vld [vmem:[%s11205_s25 + $0xbd0] ss:$8 sps:$4 sm:$0xff]   ;;  %v9778_v33 = vld [vmem:[%s11205_s25 + $0xac4] ss:$8 sps:$4 sm:$0xff]  }
 0x257   : > { %8077 = vmatprep.subr.bf16.mxu1 %v9697_v35  ;;  %v9781_v35 = vld [vmem:[%s11205_s25 + $0xbc4] ss:$8 sps:$4 sm:$0xff]  }
 0x259   : > { %8035 = vmatpush2.bf16.msra.mxu0 %v9692_v36  ;;  %v9776_v36 = vld [vmem:[%s11205_s25 + $0xac0] ss:$8 sps:$4 sm:$0xff]  }
 0x25a   : > { %8078 = vmatpush2.bf16.msra.mxu1 %v9695_v37  ;;  %8036 = vmatprep.subr.bf16.mxu0 %v9700_v38  ;;  %v9779_v37 = vld [vmem:[%s11205_s25 + $0xbc0] ss:$8 sps:$4 sm:$0xff]   ;;  %v9784_v38 = vld [vmem:[%s11205_s25 + $0xab4] ss:$8 sps:$4 sm:$0xff]  }
 0x25b   : > { %8079 = vmatprep.subr.bf16.mxu1 %v9703_v24  ;;  %v9787_v24 = vld [vmem:[%s11205_s25 + $0xbb4] ss:$8 sps:$4 sm:$0xff]  }
 0x25d   : > { %8037 = vmatpush2.bf16.msra.mxu0 %v9698_v26  ;;  %v9782_v26 = vld [vmem:[%s11205_s25 + $0xab0] ss:$8 sps:$4 sm:$0xff]  }
 0x25e   : > { %8080 = vmatpush2.bf16.msra.mxu1 %v9701_v40  ;;  %8038 = vmatprep.subr.bf16.mxu0 %v9706_v41  ;;  %v9785_v40 = vld [vmem:[%s11205_s25 + $0xbb0] ss:$8 sps:$4 sm:$0xff]   ;;  %v9790_v41 = vld [vmem:[%s11205_s25 + $0xaa4] ss:$8 sps:$4 sm:$0xff]  }
 0x25f   : > { %8081 = vmatprep.subr.bf16.mxu1 %v9709_v43  ;;  %v9793_v43 = vld [vmem:[%s11205_s25 + $0xba4] ss:$8 sps:$4 sm:$0xff]  }
 0x261   : > { %8039 = vmatpush2.bf16.msra.mxu0 %v9704_v44  ;;  %v9788_v44 = vld [vmem:[%s11205_s25 + $0xaa0] ss:$8 sps:$4 sm:$0xff]  }
 0x262   : > { %8082 = vmatpush2.bf16.msra.mxu1 %v9707_v45  ;;  %8094 = vmatprep.subr.bf16.mxu0 %v9712_v46  ;;  %v9791_v45 = vld [vmem:[%s11205_s25 + $0xba0] ss:$8 sps:$4 sm:$0xff]   ;;  %v9796_v46 = vld [vmem:[%s11205_s25 + $0xa94] ss:$8 sps:$4 sm:$0xff]  }
 0x263   : > { %8137 = vmatprep.subr.bf16.mxu1 %v9715_v28  ;;  %v9799_v28 = vld [vmem:[%s11205_s25 + $0xb94] ss:$8 sps:$4 sm:$0xff]  }
 0x264   : > { %8041 = vmatmul.mubr.bf16.vlgmr.msra.gmra.mxu0 %v8618_v34  ;;  %v9797_v34 = vld [vmem:[%s11205_s25 + $0xb90] ss:$8 sps:$4 sm:$0xff]  }
 0x265   : > { %8084 = vmatmul.mubr.bf16.vlgmr.msra.gmra.mxu1 %v8620_v47  ;;  %8095 = vmatpush1.bf16.msra.mxu0 %v9710_v31  ;;  %v9794_v31 = vld [vmem:[%s11205_s25 + $0xa90] ss:$8 sps:$4 sm:$0xff]   ;;  %v9802_v47 = vld [vmem:[%s11205_s25 + $0xa84] ss:$8 sps:$4 sm:$0xff]  }
 0x266   : > { %8138 = vmatpush1.bf16.msra.mxu1 %v9713_v51  ;;  %8096 = vmatprep.subr.bf16.mxu0 %v9718_v52  ;;  %v9805_v51 = vld [vmem:[%s11205_s25 + $0xb84] ss:$8 sps:$4 sm:$0xff]   ;;  %v9800_v52 = vld [vmem:[%s11205_s25 + $0xa80] ss:$8 sps:$4 sm:$0xff]  }
 0x267   : > { %8139 = vmatprep.subr.bf16.mxu1 %v9721_v25  ;;  %8126 = vmatprep.mubr.bf16.mxu0 %v8623_v39  ;;  %v9803_v25 = vld [vmem:[%s11205_s25 + $0xb80] ss:$8 sps:$4 sm:$0xff]  }
 0x268   : > { %8169 = vmatprep.mubr.bf16.mxu1 %v8625_v42  ;;  %v11701_v39 = vld [vmem:[%s11256_s5 + $0x60] sm:$0xff]  ;;  %v8622_v42 = vcombine.low %v11617_v30, %v11625_v48 }
 0x269   : > { %8097 = vmatpush1.bf16.msra.mxu0 %v9716_v27  ;;  %v9808_v27 = vld [vmem:[%s11205_s25 + $0xc74] ss:$8 sps:$4 sm:$0xff]   ;;  %v9814_v30 = vld [vmem:[%s11205_s25 + $0xc64] ss:$8 sps:$4 sm:$0xff]  }
 0x26a   : > { %8140 = vmatpush1.bf16.msra.mxu1 %v9719_v53  ;;  %8098 = vmatprep.subr.bf16.mxu0 %v9724_v54  ;;  %v9811_v53 = vld [vmem:[%s11205_s25 + $0xd74] ss:$8 sps:$4 sm:$0xff]   ;;  %v8624_v54 = vcombine.low %v11628_v49, %v11631_v50  ;;  %v9817_v48 = vld [vmem:[%s11205_s25 + $0xd64] ss:$8 sps:$4 sm:$0xff]  }
 0x26b   : > { %8141 = vmatprep.subr.bf16.mxu1 %v9727_v55  ;;  %v11708_v55 = vld [vmem:[%s11256_s5 + $0xe0] sm:$0xff] }
 0x26c   : > { %v8627_v49 = vcombine.high %v11701_v39, %v11708_v55 }
 0x26d   : > { %8099 = vmatpush1.bf16.msra.mxu0 %v9722_v56  ;;  %v11711_v56 = vld [vmem:[%s11256_s5 + $0x68] sm:$0xff] }
 0x26e   : > { %8142 = vmatpush1.bf16.msra.mxu1 %v9725_v57  ;;  %8100 = vmatprep.subr.bf16.mxu0 %v9730_v58  ;;  %v11714_v57 = vld [vmem:[%s11256_s5 + $0xe8] sm:$0xff]  ;;  %v9806_v58 = vld [vmem:[%s11205_s25 + $0xc70] ss:$8 sps:$4 sm:$0xff]  }
 0x26f   : > { %8143 = vmatprep.subr.bf16.mxu1 %v9733_v59  ;;  %v9809_v59 = vld [vmem:[%s11205_s25 + $0xd70] ss:$8 sps:$4 sm:$0xff]   ;;  %v8629_v50 = vcombine.high %v11711_v56, %v11714_v57 }
 0x271   : > { %8101 = vmatpush1.bf16.msra.mxu0 %v9728_v60  ;;  %v9812_v60 = vld [vmem:[%s11205_s25 + $0xc60] ss:$8 sps:$4 sm:$0xff]  }
 0x272   : > { %8144 = vmatpush1.bf16.msra.mxu1 %v9731_v61  ;;  %8102 = vmatprep.subr.bf16.mxu0 %v9736_v62  ;;  %v9815_v61 = vld [vmem:[%s11205_s25 + $0xd60] ss:$8 sps:$4 sm:$0xff]   ;;  %v9820_v62 = vld [vmem:[%s11205_s25 + $0xc54] ss:$8 sps:$4 sm:$0xff]  }
 0x273   : > { %8145 = vmatprep.subr.bf16.mxu1 %v9739_v63  ;;  %v9823_v63 = vld [vmem:[%s11205_s25 + $0xd54] ss:$8 sps:$4 sm:$0xff]  }
 0x275   : > { %8103 = vmatpush1.bf16.msra.mxu0 %v9734_v0  ;;  %v9818_v0 = vld [vmem:[%s11205_s25 + $0xc50] ss:$8 sps:$4 sm:$0xff]  }
 0x276   : > { %8146 = vmatpush1.bf16.msra.mxu1 %v9737_v1  ;;  %8104 = vmatprep.subr.bf16.mxu0 %v9742_v2  ;;  %v9821_v1 = vld [vmem:[%s11205_s25 + $0xd50] ss:$8 sps:$4 sm:$0xff]   ;;  %v9826_v2 = vld [vmem:[%s11205_s25 + $0xc44] ss:$8 sps:$4 sm:$0xff]  }
 0x277   : > { %8147 = vmatprep.subr.bf16.mxu1 %v9745_v3  ;;  %v9829_v3 = vld [vmem:[%s11205_s25 + $0xd44] ss:$8 sps:$4 sm:$0xff]  }
 0x279   : > { %8105 = vmatpush1.bf16.msra.mxu0 %v9740_v4  ;;  %v9824_v4 = vld [vmem:[%s11205_s25 + $0xc40] ss:$8 sps:$4 sm:$0xff]  }
 0x27a   : > { %8148 = vmatpush1.bf16.msra.mxu1 %v9743_v5  ;;  %8106 = vmatprep.subr.bf16.mxu0 %v9748_v6  ;;  %v9827_v5 = vld [vmem:[%s11205_s25 + $0xd40] ss:$8 sps:$4 sm:$0xff]   ;;  %v9832_v6 = vld [vmem:[%s11205_s25 + $0xc34] ss:$8 sps:$4 sm:$0xff]  }
 0x27b   : > { %8149 = vmatprep.subr.bf16.mxu1 %v9751_v7  ;;  %v9835_v7 = vld [vmem:[%s11205_s25 + $0xd34] ss:$8 sps:$4 sm:$0xff]  }
 0x27d   : > { %8107 = vmatpush1.bf16.msra.mxu0 %v9746_v8  ;;  %v9830_v8 = vld [vmem:[%s11205_s25 + $0xc30] ss:$8 sps:$4 sm:$0xff]  }
 0x27e   : > { %8150 = vmatpush1.bf16.msra.mxu1 %v9749_v9  ;;  %8108 = vmatprep.subr.bf16.mxu0 %v9754_v10  ;;  %v9833_v9 = vld [vmem:[%s11205_s25 + $0xd30] ss:$8 sps:$4 sm:$0xff]   ;;  %v9838_v10 = vld [vmem:[%s11205_s25 + $0xc24] ss:$8 sps:$4 sm:$0xff]  }
 0x27f   : > { %8151 = vmatprep.subr.bf16.mxu1 %v9757_v11  ;;  %v9841_v11 = vld [vmem:[%s11205_s25 + $0xd24] ss:$8 sps:$4 sm:$0xff]  }
 0x281   : > { %8109 = vmatpush1.bf16.msra.mxu0 %v9752_v12  ;;  %v9836_v12 = vld [vmem:[%s11205_s25 + $0xc20] ss:$8 sps:$4 sm:$0xff]  }
 0x282   : > { %8152 = vmatpush1.bf16.msra.mxu1 %v9755_v13  ;;  %8110 = vmatprep.subr.bf16.mxu0 %v9760_v14  ;;  %v9839_v13 = vld [vmem:[%s11205_s25 + $0xd20] ss:$8 sps:$4 sm:$0xff]   ;;  %v9844_v14 = vld [vmem:[%s11205_s25 + $0xc14] ss:$8 sps:$4 sm:$0xff]  }
 0x283   : > { %8153 = vmatprep.subr.bf16.mxu1 %v9763_v15  ;;  %v9847_v15 = vld [vmem:[%s11205_s25 + $0xd14] ss:$8 sps:$4 sm:$0xff]  }
 0x285   : > { %8111 = vmatpush2.bf16.msra.mxu0 %v9758_v16  ;;  %v9842_v16 = vld [vmem:[%s11205_s25 + $0xc10] ss:$8 sps:$4 sm:$0xff]  }
 0x286   : > { %8154 = vmatpush2.bf16.msra.mxu1 %v9761_v17  ;;  %8112 = vmatprep.subr.bf16.mxu0 %v9766_v18  ;;  %v9845_v17 = vld [vmem:[%s11205_s25 + $0xd10] ss:$8 sps:$4 sm:$0xff]   ;;  %v9850_v18 = vld [vmem:[%s11205_s25 + $0xc04] ss:$8 sps:$4 sm:$0xff]  }
 0x287   : > { %8155 = vmatprep.subr.bf16.mxu1 %v9769_v19  ;;  %v9853_v19 = vld [vmem:[%s11205_s25 + $0xd04] ss:$8 sps:$4 sm:$0xff]  }
 0x289   : > { %8113 = vmatpush2.bf16.msra.mxu0 %v9764_v20  ;;  %v9848_v20 = vld [vmem:[%s11205_s25 + $0xc00] ss:$8 sps:$4 sm:$0xff]  }
 0x28a   : > { %8156 = vmatpush2.bf16.msra.mxu1 %v9767_v21  ;;  %8114 = vmatprep.subr.bf16.mxu0 %v9772_v22  ;;  %v9851_v21 = vld [vmem:[%s11205_s25 + $0xd00] ss:$8 sps:$4 sm:$0xff]   ;;  %v9856_v22 = vld [vmem:[%s11205_s25 + $0xcf4] ss:$8 sps:$4 sm:$0xff]  }
 0x28b   : > { %8157 = vmatprep.subr.bf16.mxu1 %v9775_v23  ;;  %v9859_v23 = vld [vmem:[%s11205_s25 + $0xdf4] ss:$8 sps:$4 sm:$0xff]  }
 0x28d   : > { %8115 = vmatpush2.bf16.msra.mxu0 %v9770_v29  ;;  %v9854_v29 = vld [vmem:[%s11205_s25 + $0xcf0] ss:$8 sps:$4 sm:$0xff]  }
 0x28e   : > { %8158 = vmatpush2.bf16.msra.mxu1 %v9773_v32  ;;  %8116 = vmatprep.subr.bf16.mxu0 %v9778_v33  ;;  %v9857_v32 = vld [vmem:[%s11205_s25 + $0xdf0] ss:$8 sps:$4 sm:$0xff]   ;;  %v9862_v33 = vld [vmem:[%s11205_s25 + $0xce4] ss:$8 sps:$4 sm:$0xff]  }
 0x28f   : > { %8159 = vmatprep.subr.bf16.mxu1 %v9781_v35  ;;  %v9865_v35 = vld [vmem:[%s11205_s25 + $0xde4] ss:$8 sps:$4 sm:$0xff]  }
 0x291   : > { %8117 = vmatpush2.bf16.msra.mxu0 %v9776_v36  ;;  %v9860_v36 = vld [vmem:[%s11205_s25 + $0xce0] ss:$8 sps:$4 sm:$0xff]  }
 0x292   : > { %8160 = vmatpush2.bf16.msra.mxu1 %v9779_v37  ;;  %8118 = vmatprep.subr.bf16.mxu0 %v9784_v38  ;;  %v9863_v37 = vld [vmem:[%s11205_s25 + $0xde0] ss:$8 sps:$4 sm:$0xff]   ;;  %v9868_v38 = vld [vmem:[%s11205_s25 + $0xcd4] ss:$8 sps:$4 sm:$0xff]  }
 0x293   : > { %8161 = vmatprep.subr.bf16.mxu1 %v9787_v24  ;;  %v9871_v24 = vld [vmem:[%s11205_s25 + $0xdd4] ss:$8 sps:$4 sm:$0xff]  }
 0x295   : > { %8119 = vmatpush2.bf16.msra.mxu0 %v9782_v26  ;;  %v9866_v26 = vld [vmem:[%s11205_s25 + $0xcd0] ss:$8 sps:$4 sm:$0xff]  }
 0x296   : > { %8162 = vmatpush2.bf16.msra.mxu1 %v9785_v40  ;;  %8120 = vmatprep.subr.bf16.mxu0 %v9790_v41  ;;  %v9869_v40 = vld [vmem:[%s11205_s25 + $0xdd0] ss:$8 sps:$4 sm:$0xff]   ;;  %v9874_v41 = vld [vmem:[%s11205_s25 + $0xcc4] ss:$8 sps:$4 sm:$0xff]  }
 0x297   : > { %8163 = vmatprep.subr.bf16.mxu1 %v9793_v43  ;;  %v9877_v43 = vld [vmem:[%s11205_s25 + $0xdc4] ss:$8 sps:$4 sm:$0xff]  }
 0x299   : > { %8121 = vmatpush2.bf16.msra.mxu0 %v9788_v44  ;;  %v9872_v44 = vld [vmem:[%s11205_s25 + $0xcc0] ss:$8 sps:$4 sm:$0xff]  }
 0x29a   : > { %8164 = vmatpush2.bf16.msra.mxu1 %v9791_v45  ;;  %8122 = vmatprep.subr.bf16.mxu0 %v9796_v46  ;;  %v9875_v45 = vld [vmem:[%s11205_s25 + $0xdc0] ss:$8 sps:$4 sm:$0xff]   ;;  %v9880_v46 = vld [vmem:[%s11205_s25 + $0xcb4] ss:$8 sps:$4 sm:$0xff]  }
 0x29b   : > { %8165 = vmatprep.subr.bf16.mxu1 %v9799_v28  ;;  %v9883_v28 = vld [vmem:[%s11205_s25 + $0xdb4] ss:$8 sps:$4 sm:$0xff]  }
 0x29d   : > { %8123 = vmatpush2.bf16.msra.mxu0 %v9794_v31  ;;  %v9878_v31 = vld [vmem:[%s11205_s25 + $0xcb0] ss:$8 sps:$4 sm:$0xff]  }
 0x29e   : > { %8166 = vmatpush2.bf16.msra.mxu1 %v9797_v34  ;;  %8124 = vmatprep.subr.bf16.mxu0 %v9802_v47  ;;  %v9881_v34 = vld [vmem:[%s11205_s25 + $0xdb0] ss:$8 sps:$4 sm:$0xff]   ;;  %v9886_v47 = vld [vmem:[%s11205_s25 + $0xca4] ss:$8 sps:$4 sm:$0xff]  }
 0x29f   : > { %8167 = vmatprep.subr.bf16.mxu1 %v9805_v51  ;;  %v9889_v51 = vld [vmem:[%s11205_s25 + $0xda4] ss:$8 sps:$4 sm:$0xff]  }
 0x2a1   : > { %8125 = vmatpush2.bf16.msra.mxu0 %v9800_v52  ;;  %v9884_v52 = vld [vmem:[%s11205_s25 + $0xca0] ss:$8 sps:$4 sm:$0xff]  }
 0x2a2   : > { %8168 = vmatpush2.bf16.msra.mxu1 %v9803_v25  ;;  %8180 = vmatprep.subr.bf16.mxu0 %v9808_v27  ;;  %v9887_v25 = vld [vmem:[%s11205_s25 + $0xda0] ss:$8 sps:$4 sm:$0xff]   ;;  %v9892_v27 = vld [vmem:[%s11205_s25 + $0xc94] ss:$8 sps:$4 sm:$0xff]  }
 0x2a3   : > { %8223 = vmatprep.subr.bf16.mxu1 %v9811_v53  ;;  %v9895_v53 = vld [vmem:[%s11205_s25 + $0xd94] ss:$8 sps:$4 sm:$0xff]  }
 0x2a4   : > { %8127 = vmatmul.mubr.bf16.vlgmr.msra.gmra.mxu0 %v8622_v42  ;;  %v9890_v42 = vld [vmem:[%s11205_s25 + $0xc90] ss:$8 sps:$4 sm:$0xff]  }
 0x2a5   : > { %8170 = vmatmul.mubr.bf16.vlgmr.msra.gmra.mxu1 %v8624_v54  ;;  %8181 = vmatpush1.bf16.msra.mxu0 %v9806_v58  ;;  %v9893_v54 = vld [vmem:[%s11205_s25 + $0xd90] ss:$8 sps:$4 sm:$0xff]   ;;  %v9898_v58 = vld [vmem:[%s11205_s25 + $0xc84] ss:$8 sps:$4 sm:$0xff]  }
 0x2a6   : > { %8224 = vmatpush1.bf16.msra.mxu1 %v9809_v59  ;;  %8182 = vmatprep.subr.bf16.mxu0 %v9814_v30  ;;  %v9901_v59 = vld [vmem:[%s11205_s25 + $0xd84] ss:$8 sps:$4 sm:$0xff]   ;;  %v9896_v30 = vld [vmem:[%s11205_s25 + $0xc80] ss:$8 sps:$4 sm:$0xff]  }
 0x2a7   : > { %8225 = vmatprep.subr.bf16.mxu1 %v9817_v48  ;;  %8212 = vmatprep.mubr.bf16.mxu0 %v8627_v49  ;;  %v9899_v48 = vld [vmem:[%s11205_s25 + $0xd80] ss:$8 sps:$4 sm:$0xff]   ;;  %v9904_v49 = vld [vmem:[%s11205_s25 + $0xe74] ss:$8 sps:$4 sm:$0xff]  }
 0x2a8   : > { %8255 = vmatprep.mubr.bf16.mxu1 %v8629_v50  ;;  %v9907_v50 = vld [vmem:[%s11205_s25 + $0xf74] ss:$8 sps:$4 sm:$0xff]  }
 0x2a9   : > { %8183 = vmatpush1.bf16.msra.mxu0 %v9812_v60  ;;  %v11785_v60 = vld [vmem:[%s11256_s5 + $0x70] sm:$0xff] }
 0x2aa   : > { %8226 = vmatpush1.bf16.msra.mxu1 %v9815_v61  ;;  %8184 = vmatprep.subr.bf16.mxu0 %v9820_v62  ;;  %v8626_v61 = vcombine.low %v11701_v39, %v11708_v55  ;;  %v8628_v62 = vcombine.low %v11711_v56, %v11714_v57  ;;  %v9910_v39 = vld [vmem:[%s11205_s25 + $0xe64] ss:$8 sps:$4 sm:$0xff]  }
 0x2ab   : > { %8227 = vmatprep.subr.bf16.mxu1 %v9823_v63  ;;  %v11792_v63 = vld [vmem:[%s11256_s5 + $0xf0] sm:$0xff]  ;;  %v9913_v55 = vld [vmem:[%s11205_s25 + $0xf64] ss:$8 sps:$4 sm:$0xff]  }
 0x2ac   : > { %v8631_v56 = vcombine.high %v11785_v60, %v11792_v63 }
 0x2ad   : > { %8185 = vmatpush1.bf16.msra.mxu0 %v9818_v0  ;;  %v11795_v0 = vld [vmem:[%s11256_s5 + $0x78] sm:$0xff] }
 0x2ae   : > { %8228 = vmatpush1.bf16.msra.mxu1 %v9821_v1  ;;  %8186 = vmatprep.subr.bf16.mxu0 %v9826_v2  ;;  %v11798_v1 = vld [vmem:[%s11256_s5 + $0xf8] sm:$0xff] }
 0x2af   : > { %8229 = vmatprep.subr.bf16.mxu1 %v9829_v3  ;;  %v9902_v2 = vld [vmem:[%s11205_s25 + $0xe70] ss:$8 sps:$4 sm:$0xff]   ;;  %v8633_v57 = vcombine.high %v11795_v0, %v11798_v1 }
 0x2b0   : > { %v9905_v3 = vld [vmem:[%s11205_s25 + $0xf70] ss:$8 sps:$4 sm:$0xff]  }
 0x2b1   : > { %8187 = vmatpush1.bf16.msra.mxu0 %v9824_v4  ;;  %v9908_v4 = vld [vmem:[%s11205_s25 + $0xe60] ss:$8 sps:$4 sm:$0xff]  }
 0x2b2   : > { %8230 = vmatpush1.bf16.msra.mxu1 %v9827_v5  ;;  %8188 = vmatprep.subr.bf16.mxu0 %v9832_v6  ;;  %v9911_v5 = vld [vmem:[%s11205_s25 + $0xf60] ss:$8 sps:$4 sm:$0xff]   ;;  %v9916_v6 = vld [vmem:[%s11205_s25 + $0xe54] ss:$8 sps:$4 sm:$0xff]  }
 0x2b3   : > { %8231 = vmatprep.subr.bf16.mxu1 %v9835_v7  ;;  %v9919_v7 = vld [vmem:[%s11205_s25 + $0xf54] ss:$8 sps:$4 sm:$0xff]  }
 0x2b5   : > { %8189 = vmatpush1.bf16.msra.mxu0 %v9830_v8  ;;  %v9914_v8 = vld [vmem:[%s11205_s25 + $0xe50] ss:$8 sps:$4 sm:$0xff]  }
 0x2b6   : > { %8232 = vmatpush1.bf16.msra.mxu1 %v9833_v9  ;;  %8190 = vmatprep.subr.bf16.mxu0 %v9838_v10  ;;  %v9917_v9 = vld [vmem:[%s11205_s25 + $0xf50] ss:$8 sps:$4 sm:$0xff]   ;;  %v9922_v10 = vld [vmem:[%s11205_s25 + $0xe44] ss:$8 sps:$4 sm:$0xff]  }
 0x2b7   : > { %8233 = vmatprep.subr.bf16.mxu1 %v9841_v11  ;;  %v9925_v11 = vld [vmem:[%s11205_s25 + $0xf44] ss:$8 sps:$4 sm:$0xff]  }
 0x2b9   : > { %8191 = vmatpush1.bf16.msra.mxu0 %v9836_v12  ;;  %v9920_v12 = vld [vmem:[%s11205_s25 + $0xe40] ss:$8 sps:$4 sm:$0xff]  }
 0x2ba   : > { %8234 = vmatpush1.bf16.msra.mxu1 %v9839_v13  ;;  %8192 = vmatprep.subr.bf16.mxu0 %v9844_v14  ;;  %v9923_v13 = vld [vmem:[%s11205_s25 + $0xf40] ss:$8 sps:$4 sm:$0xff]   ;;  %v9928_v14 = vld [vmem:[%s11205_s25 + $0xe34] ss:$8 sps:$4 sm:$0xff]  }
 0x2bb   : > { %8235 = vmatprep.subr.bf16.mxu1 %v9847_v15  ;;  %v9931_v15 = vld [vmem:[%s11205_s25 + $0xf34] ss:$8 sps:$4 sm:$0xff]  }
 0x2bd   : > { %8193 = vmatpush1.bf16.msra.mxu0 %v9842_v16  ;;  %v9926_v16 = vld [vmem:[%s11205_s25 + $0xe30] ss:$8 sps:$4 sm:$0xff]  }
 0x2be   : > { %8236 = vmatpush1.bf16.msra.mxu1 %v9845_v17  ;;  %8194 = vmatprep.subr.bf16.mxu0 %v9850_v18  ;;  %v9929_v17 = vld [vmem:[%s11205_s25 + $0xf30] ss:$8 sps:$4 sm:$0xff]   ;;  %v9934_v18 = vld [vmem:[%s11205_s25 + $0xe24] ss:$8 sps:$4 sm:$0xff]  }
 0x2bf   : > { %8237 = vmatprep.subr.bf16.mxu1 %v9853_v19  ;;  %v9937_v19 = vld [vmem:[%s11205_s25 + $0xf24] ss:$8 sps:$4 sm:$0xff]  }
 0x2c1   : > { %8195 = vmatpush1.bf16.msra.mxu0 %v9848_v20  ;;  %v9932_v20 = vld [vmem:[%s11205_s25 + $0xe20] ss:$8 sps:$4 sm:$0xff]  }
 0x2c2   : > { %8238 = vmatpush1.bf16.msra.mxu1 %v9851_v21  ;;  %8196 = vmatprep.subr.bf16.mxu0 %v9856_v22  ;;  %v9935_v21 = vld [vmem:[%s11205_s25 + $0xf20] ss:$8 sps:$4 sm:$0xff]   ;;  %v9940_v22 = vld [vmem:[%s11205_s25 + $0xe14] ss:$8 sps:$4 sm:$0xff]  }
 0x2c3   : > { %8239 = vmatprep.subr.bf16.mxu1 %v9859_v23  ;;  %v9943_v23 = vld [vmem:[%s11205_s25 + $0xf14] ss:$8 sps:$4 sm:$0xff]  }
 0x2c5   : > { %8197 = vmatpush2.bf16.msra.mxu0 %v9854_v29  ;;  %v9938_v29 = vld [vmem:[%s11205_s25 + $0xe10] ss:$8 sps:$4 sm:$0xff]  }
 0x2c6   : > { %8240 = vmatpush2.bf16.msra.mxu1 %v9857_v32  ;;  %8198 = vmatprep.subr.bf16.mxu0 %v9862_v33  ;;  %v9941_v32 = vld [vmem:[%s11205_s25 + $0xf10] ss:$8 sps:$4 sm:$0xff]   ;;  %v9946_v33 = vld [vmem:[%s11205_s25 + $0xe04] ss:$8 sps:$4 sm:$0xff]  }
 0x2c7   : > { %8241 = vmatprep.subr.bf16.mxu1 %v9865_v35  ;;  %v9949_v35 = vld [vmem:[%s11205_s25 + $0xf04] ss:$8 sps:$4 sm:$0xff]  }
 0x2c9   : > { %8199 = vmatpush2.bf16.msra.mxu0 %v9860_v36  ;;  %v9944_v36 = vld [vmem:[%s11205_s25 + $0xe00] ss:$8 sps:$4 sm:$0xff]  }
 0x2ca   : > { %8242 = vmatpush2.bf16.msra.mxu1 %v9863_v37  ;;  %8200 = vmatprep.subr.bf16.mxu0 %v9868_v38  ;;  %v9947_v37 = vld [vmem:[%s11205_s25 + $0xf00] ss:$8 sps:$4 sm:$0xff]   ;;  %v9952_v38 = vld [vmem:[%s11205_s25 + $0xef4] ss:$8 sps:$4 sm:$0xff]  }
 0x2cb   : > { %8243 = vmatprep.subr.bf16.mxu1 %v9871_v24  ;;  %v9955_v24 = vld [vmem:[%s11205_s25 + $0xff4] ss:$8 sps:$4 sm:$0xff]  }
 0x2cd   : > { %8201 = vmatpush2.bf16.msra.mxu0 %v9866_v26  ;;  %v9950_v26 = vld [vmem:[%s11205_s25 + $0xef0] ss:$8 sps:$4 sm:$0xff]  }
 0x2ce   : > { %8244 = vmatpush2.bf16.msra.mxu1 %v9869_v40  ;;  %8202 = vmatprep.subr.bf16.mxu0 %v9874_v41  ;;  %v9953_v40 = vld [vmem:[%s11205_s25 + $0xff0] ss:$8 sps:$4 sm:$0xff]   ;;  %v9958_v41 = vld [vmem:[%s11205_s25 + $0xee4] ss:$8 sps:$4 sm:$0xff]  }
 0x2cf   : > { %8245 = vmatprep.subr.bf16.mxu1 %v9877_v43  ;;  %v9961_v43 = vld [vmem:[%s11205_s25 + $0xfe4] ss:$8 sps:$4 sm:$0xff]  }
 0x2d1   : > { %8203 = vmatpush2.bf16.msra.mxu0 %v9872_v44  ;;  %v9956_v44 = vld [vmem:[%s11205_s25 + $0xee0] ss:$8 sps:$4 sm:$0xff]  }
 0x2d2   : > { %8246 = vmatpush2.bf16.msra.mxu1 %v9875_v45  ;;  %8204 = vmatprep.subr.bf16.mxu0 %v9880_v46  ;;  %v9959_v45 = vld [vmem:[%s11205_s25 + $0xfe0] ss:$8 sps:$4 sm:$0xff]   ;;  %v9964_v46 = vld [vmem:[%s11205_s25 + $0xed4] ss:$8 sps:$4 sm:$0xff]  }
 0x2d3   : > { %8247 = vmatprep.subr.bf16.mxu1 %v9883_v28  ;;  %v9967_v28 = vld [vmem:[%s11205_s25 + $0xfd4] ss:$8 sps:$4 sm:$0xff]  }
 0x2d5   : > { %8205 = vmatpush2.bf16.msra.mxu0 %v9878_v31  ;;  %v9962_v31 = vld [vmem:[%s11205_s25 + $0xed0] ss:$8 sps:$4 sm:$0xff]  }
 0x2d6   : > { %8248 = vmatpush2.bf16.msra.mxu1 %v9881_v34  ;;  %8206 = vmatprep.subr.bf16.mxu0 %v9886_v47  ;;  %v9965_v34 = vld [vmem:[%s11205_s25 + $0xfd0] ss:$8 sps:$4 sm:$0xff]   ;;  %v9970_v47 = vld [vmem:[%s11205_s25 + $0xec4] ss:$8 sps:$4 sm:$0xff]  }
 0x2d7   : > { %8249 = vmatprep.subr.bf16.mxu1 %v9889_v51  ;;  %v9973_v51 = vld [vmem:[%s11205_s25 + $0xfc4] ss:$8 sps:$4 sm:$0xff]  }
 0x2d9   : > { %8207 = vmatpush2.bf16.msra.mxu0 %v9884_v52  ;;  %v9968_v52 = vld [vmem:[%s11205_s25 + $0xec0] ss:$8 sps:$4 sm:$0xff]  }
 0x2da   : > { %8250 = vmatpush2.bf16.msra.mxu1 %v9887_v25  ;;  %8208 = vmatprep.subr.bf16.mxu0 %v9892_v27  ;;  %v9971_v25 = vld [vmem:[%s11205_s25 + $0xfc0] ss:$8 sps:$4 sm:$0xff]   ;;  %v9976_v27 = vld [vmem:[%s11205_s25 + $0xeb4] ss:$8 sps:$4 sm:$0xff]  }
 0x2db   : > { %8251 = vmatprep.subr.bf16.mxu1 %v9895_v53  ;;  %v9979_v53 = vld [vmem:[%s11205_s25 + $0xfb4] ss:$8 sps:$4 sm:$0xff]  }
 0x2dd   : > { %8209 = vmatpush2.bf16.msra.mxu0 %v9890_v42  ;;  %v9974_v42 = vld [vmem:[%s11205_s25 + $0xeb0] ss:$8 sps:$4 sm:$0xff]  }
 0x2de   : > { %8252 = vmatpush2.bf16.msra.mxu1 %v9893_v54  ;;  %8210 = vmatprep.subr.bf16.mxu0 %v9898_v58  ;;  %v9977_v54 = vld [vmem:[%s11205_s25 + $0xfb0] ss:$8 sps:$4 sm:$0xff]   ;;  %v9982_v58 = vld [vmem:[%s11205_s25 + $0xea4] ss:$8 sps:$4 sm:$0xff]  }
 0x2df   : > { %8253 = vmatprep.subr.bf16.mxu1 %v9901_v59  ;;  %v9985_v59 = vld [vmem:[%s11205_s25 + $0xfa4] ss:$8 sps:$4 sm:$0xff]  }
 0x2e1   : > { %8211 = vmatpush2.bf16.msra.mxu0 %v9896_v30  ;;  %v9980_v30 = vld [vmem:[%s11205_s25 + $0xea0] ss:$8 sps:$4 sm:$0xff]  }
 0x2e2   : > { %8254 = vmatpush2.bf16.msra.mxu1 %v9899_v48  ;;  %8266 = vmatprep.subr.bf16.mxu0 %v9904_v49  ;;  %v9983_v48 = vld [vmem:[%s11205_s25 + $0xfa0] ss:$8 sps:$4 sm:$0xff]   ;;  %v9988_v49 = vld [vmem:[%s11205_s25 + $0xe94] ss:$8 sps:$4 sm:$0xff]  }
 0x2e3   : > { %8309 = vmatprep.subr.bf16.mxu1 %v9907_v50  ;;  %v9991_v50 = vld [vmem:[%s11205_s25 + $0xf94] ss:$8 sps:$4 sm:$0xff]  }
 0x2e4   : > { %8213 = vmatmul.mubr.bf16.vlgmr.msra.gmra.mxu0 %v8626_v61  ;;  %v9986_v61 = vld [vmem:[%s11205_s25 + $0xe90] ss:$8 sps:$4 sm:$0xff]  }
 0x2e5   : > { %8256 = vmatmul.mubr.bf16.vlgmr.msra.gmra.mxu1 %v8628_v62  ;;  %8267 = vmatpush1.bf16.msra.mxu0 %v9902_v2  ;;  %v9989_v62 = vld [vmem:[%s11205_s25 + $0xf90] ss:$8 sps:$4 sm:$0xff]   ;;  %v9994_v2 = vld [vmem:[%s11205_s25 + $0xe84] ss:$8 sps:$4 sm:$0xff]  }
 0x2e6   : > { %8310 = vmatpush1.bf16.msra.mxu1 %v9905_v3  ;;  %8268 = vmatprep.subr.bf16.mxu0 %v9910_v39  ;;  %v9997_v3 = vld [vmem:[%s11205_s25 + $0xf84] ss:$8 sps:$4 sm:$0xff]   ;;  %v9992_v39 = vld [vmem:[%s11205_s25 + $0xe80] ss:$8 sps:$4 sm:$0xff]  }
 0x2e7   : > { %8311 = vmatprep.subr.bf16.mxu1 %v9913_v55  ;;  %8298 = vmatprep.mubr.bf16.mxu0 %v8631_v56  ;;  %v9995_v55 = vld [vmem:[%s11205_s25 + $0xf80] ss:$8 sps:$4 sm:$0xff]   ;;  %v8630_v56 = vcombine.low %v11785_v60, %v11792_v63  ;;  %s9151_s25 = sshll.u32 (%p10161_p9), %s8448_s24, 2 }
 0x2e8   : > { %8341 = vmatprep.mubr.bf16.mxu1 %v8633_v57  ;;  %v8632_v57 = vcombine.low %v11795_v0, %v11798_v1  ;;  %s8450_s28 = scalar_lea.vmem (%p10161_p9), %s11925_s3, %s9151_s25 }
 0x2e9   : > { %8269 = vmatpush1.bf16.msra.mxu0 %v9908_v4  ;;  %v7698_v4 = vpop.f32.mrf.mxu0 }
 0x2ea   : > { %8312 = vmatpush1.bf16.msra.mxu1 %v9911_v5  ;;  %8270 = vmatprep.subr.bf16.mxu0 %v9916_v6  ;;  %v7741_v5 = vpop.f32.mrf.mxu1 }
 0x2eb   : > { %8313 = vmatprep.subr.bf16.mxu1 %v9919_v7  ;;  %v7700_v6 = vpop.f32.mrf.mxu0 }
 0x2ec   : > { %v7743_v7 = vpop.f32.mrf.mxu1 }
 0x2ed   : > { %8271 = vmatpush1.bf16.msra.mxu0 %v9914_v8  ;;  %v7702_v8 = vpop.f32.mrf.mxu0 }
 0x2ee   : > { %8314 = vmatpush1.bf16.msra.mxu1 %v9917_v9  ;;  %8272 = vmatprep.subr.bf16.mxu0 %v9922_v10  ;;  %v7745_v9 = vpop.f32.mrf.mxu1 }
 0x2ef   : > { %8315 = vmatprep.subr.bf16.mxu1 %v9925_v11  ;;  %v7704_v10 = vpop.f32.mrf.mxu0 }
 0x2f0   : > { %v7747_v11 = vpop.f32.mrf.mxu1 }
 0x2f1   : > { %8273 = vmatpush1.bf16.msra.mxu0 %v9920_v12  ;;  %v7784_v12 = vpop.f32.mrf.mxu0 }
 0x2f2   : > { %8316 = vmatpush1.bf16.msra.mxu1 %v9923_v13  ;;  %8274 = vmatprep.subr.bf16.mxu0 %v9928_v14  ;;  %v7827_v13 = vpop.f32.mrf.mxu1 }
 0x2f3   : > { %8317 = vmatprep.subr.bf16.mxu1 %v9931_v15  ;;  %v7786_v14 = vpop.f32.mrf.mxu0 }
 0x2f4   : > { %v7829_v60 = vpop.f32.mrf.mxu1 }
 0x2f5   : > { %8275 = vmatpush1.bf16.msra.mxu0 %v9926_v16  ;;  %v7788_v63 = vpop.f32.mrf.mxu0 }
 0x2f6   : > { %8318 = vmatpush1.bf16.msra.mxu1 %v9929_v17  ;;  %8276 = vmatprep.subr.bf16.mxu0 %v9934_v18  ;;  %v7831_v15 = vpop.f32.mrf.mxu1 }
 0x2f7   : > { %8319 = vmatprep.subr.bf16.mxu1 %v9937_v19  ;;  %v7790_v0 = vpop.f32.mrf.mxu0 }
 0x2f8   : > { %v7833_v1 = vpop.f32.mrf.mxu1 }
 0x2f9   : > { %8277 = vmatpush1.bf16.msra.mxu0 %v9932_v20  ;;  %v7870_v16 = vpop.f32.mrf.mxu0 }
 0x2fa   : > { %8320 = vmatpush1.bf16.msra.mxu1 %v9935_v21  ;;  %8278 = vmatprep.subr.bf16.mxu0 %v9940_v22  ;;  %v7913_v17 = vpop.f32.mrf.mxu1 }
 0x2fb   : > { %8321 = vmatprep.subr.bf16.mxu1 %v9943_v23  ;;  %v7872_v18 = vpop.f32.mrf.mxu0 }
 0x2fc   : > { %v7915_v19 = vpop.f32.mrf.mxu1 }
 0x2fd   : > { %8279 = vmatpush1.bf16.msra.mxu0 %v9938_v29  ;;  %v7874_v20 = vpop.f32.mrf.mxu0 }
 0x2fe   : > { %8322 = vmatpush1.bf16.msra.mxu1 %v9941_v32  ;;  %8280 = vmatprep.subr.bf16.mxu0 %v9946_v33  ;;  %v7917_v21 = vpop.f32.mrf.mxu1  ;;  %v4934_v33 = vlaneseq }
 0x2ff   : > { %8323 = vmatprep.subr.bf16.mxu1 %v9949_v35  ;;  %v7876_v22 = vpop.f32.mrf.mxu0 }
 0x300   : > { %v7919_v23 = vpop.f32.mrf.mxu1 }
 0x301   : > { %8281 = vmatpush1.bf16.msra.mxu0 %v9944_v36  ;;  %v7956_v29 = vpop.f32.mrf.mxu0 }
 0x302   : > { %8324 = vmatpush1.bf16.msra.mxu1 %v9947_v37  ;;  %8282 = vmatprep.subr.bf16.mxu0 %v9952_v38  ;;  %v7999_v32 = vpop.f32.mrf.mxu1  ;;  %v11875_v37 = vshrl.u32 %v4934_v33, 7 }
 0x303   : > { %8325 = vmatprep.subr.bf16.mxu1 %v9955_v24  ;;  %v7958_v35 = vpop.f32.mrf.mxu0 }
 0x304   : > { %v8001_v36 = vpop.f32.mrf.mxu1 }
 0x305   : > { %8283 = vmatpush2.bf16.msra.mxu0 %v9950_v26  ;;  %v7960_v38 = vpop.f32.mrf.mxu0  ;;  %v4936_v26 = vsub.s32 0, %v11875_v37 }
 0x306   : > { %8326 = vmatpush2.bf16.msra.mxu1 %v9953_v40  ;;  %8284 = vmatprep.subr.bf16.mxu0 %v9958_v41  ;;  %v8003_v24 = vpop.f32.mrf.mxu1  ;;  %v4932_v40 = vld [vmem:[%s4385_s10] sm:$0x3]  ;;  %v4940_v41 = vsub.s32 1, %v11875_v37 }
 0x307   : > { %8327 = vmatprep.subr.bf16.mxu1 %v9961_v43  ;;  %v7962_v43 = vpop.f32.mrf.mxu0 }
 0x309   : > { %8285 = vmatpush2.bf16.msra.mxu0 %v9956_v44  ;;  %v8005_v44 = vpop.f32.mrf.mxu1 }
 0x30a   : > { %8328 = vmatpush2.bf16.msra.mxu1 %v9959_v45  ;;  %8286 = vmatprep.subr.bf16.mxu0 %v9964_v46  ;;  %v4937_v45 = vrot.slane %v4932_v40, %v4936_v26 }
 0x30b   : > { %8329 = vmatprep.subr.bf16.mxu1 %v9967_v28 }
 0x30d   : > { %8287 = vmatpush2.bf16.msra.mxu0 %v9962_v31  ;;  %v4941_v31 = vrot.slane %v4932_v40, %v4940_v41 }
 0x30e   : > { %8330 = vmatpush2.bf16.msra.mxu1 %v9965_v34  ;;  %8288 = vmatprep.subr.bf16.mxu0 %v9970_v47  ;;  %v7699_v34 = vadd.f32 %v7698_v4, %v4937_v45 }
 0x30f   : > { %8331 = vmatprep.subr.bf16.mxu1 %v9973_v51 }
 0x311   : > { %8289 = vmatpush2.bf16.msra.mxu0 %v9968_v52  ;;  %v7703_v52 = vadd.f32 %v7702_v8, %v4937_v45 }
 0x312   : > { %8332 = vmatpush2.bf16.msra.mxu1 %v9971_v25  ;;  %8290 = vmatprep.subr.bf16.mxu0 %v9976_v27  ;;  %v7701_v25 = vadd.f32 %v7700_v6, %v4941_v31  ;;  %v7705_v27 = vadd.f32 %v7704_v10, %v4941_v31 }
 0x313   : > { %8333 = vmatprep.subr.bf16.mxu1 %v9979_v53  ;;  %v7742_v53 = vadd.f32 %v7741_v5, %v7699_v34 }
 0x315   : > { %8291 = vmatpush2.bf16.msra.mxu0 %v9974_v42 }
 0x316   : > { %8334 = vmatpush2.bf16.msra.mxu1 %v9977_v54  ;;  %8292 = vmatprep.subr.bf16.mxu0 %v9982_v58  ;;  %v7746_v58 = vadd.f32 %v7745_v9, %v7703_v52 }
 0x317   : > { %8335 = vmatprep.subr.bf16.mxu1 %v9985_v59  ;;  %v7744_v59 = vadd.f32 %v7743_v7, %v7701_v25 }
 0x319   : > { %8293 = vmatpush2.bf16.msra.mxu0 %v9980_v30  ;;  %v7785_v30 = vadd.f32 %v7784_v12, %v7742_v53 }
 0x31a   : > { %8336 = vmatpush2.bf16.msra.mxu1 %v9983_v48  ;;  %8294 = vmatprep.subr.bf16.mxu0 %v9988_v49  ;;  %v7748_v48 = vadd.f32 %v7747_v11, %v7705_v27  ;;  %v7789_v49 = vadd.f32 %v7788_v63, %v7746_v58 }
 0x31b   : > { %8337 = vmatprep.subr.bf16.mxu1 %v9991_v50  ;;  %v7787_v50 = vadd.f32 %v7786_v14, %v7744_v59 }
 0x31d   : > { %8295 = vmatpush2.bf16.msra.mxu0 %v9986_v61 }
 0x31e   : > { %8338 = vmatpush2.bf16.msra.mxu1 %v9989_v62  ;;  %8296 = vmatprep.subr.bf16.mxu0 %v9994_v2  ;;  %v7791_v2 = vadd.f32 %v7790_v0, %v7748_v48 }
 0x31f   : > { %8339 = vmatprep.subr.bf16.mxu1 %v9997_v3  ;;  %v7828_v3 = vadd.f32 %v7827_v13, %v7785_v30 }
 0x320   : > { %v7834_v6 = vadd.f32 %v7833_v1, %v7791_v2 }
 0x321   : > { %8297 = vmatpush2.bf16.msra.mxu0 %v9992_v39  ;;  %v7871_v4 = vadd.f32 %v7870_v16, %v7828_v3 }
 0x322   : > { %8340 = vmatpush2.bf16.msra.mxu1 %v9995_v55  ;;  %v7877_v9 = vadd.f32 %v7876_v22, %v7834_v6 }
 0x323   : > { %v7914_v7 = vadd.f32 %v7913_v17, %v7871_v4 }
 0x324   : > { %8299 = vmatmul.mubr.bf16.vlgmr.msra.gmra.mxu0 %v8630_v56  ;;  %v8042_v46 = vpop.f32.mrf.mxu0  ;;  %v7832_v56 = vadd.f32 %v7831_v15, %v7789_v49  ;;  %v7920_v40 = vadd.f32 %v7919_v23, %v7877_v9 }
 0x325   : > { %8342 = vmatmul.mubr.bf16.vlgmr.msra.gmra.mxu1 %v8632_v57  ;;  %v8085_v28 = vpop.f32.mrf.mxu1  ;;  %v7830_v57 = vadd.f32 %v7829_v60, %v7787_v50  ;;  %v7957_v63 = vadd.f32 %v7956_v29, %v7914_v7 }
 0x326   : > { %v8044_v47 = vpop.f32.mrf.mxu0  ;;  %v7875_v8 = vadd.f32 %v7874_v20, %v7832_v56  ;;  %v7963_v41 = vadd.f32 %v7962_v43, %v7920_v40 }
 0x327   : > { %v8087_v51 = vpop.f32.mrf.mxu1  ;;  %v7873_v5 = vadd.f32 %v7872_v18, %v7830_v57  ;;  %v8000_v45 = vadd.f32 %v7999_v32, %v7957_v63 }
 0x328   : > { %v8046_v42 = vpop.f32.mrf.mxu0  ;;  %v7918_v12 = vadd.f32 %v7917_v21, %v7875_v8  ;;  %v8006_v34 = vadd.f32 %v8005_v44, %v7963_v41 }
 0x329   : > { %v8089_v54 = vpop.f32.mrf.mxu1  ;;  %v7916_v11 = vadd.f32 %v7915_v19, %v7873_v5  ;;  %v8043_v20 = vadd.f32 %v8042_v46, %v8000_v45 }
 0x32a   : > { %v8048_v61 = vpop.f32.mrf.mxu0  ;;  %v7961_v0 = vadd.f32 %v7960_v38, %v7918_v12 }
 0x32b   : > { %v8091_v62 = vpop.f32.mrf.mxu1  ;;  %v7959_v13 = vadd.f32 %v7958_v35, %v7916_v11  ;;  %v8049_v21 = vadd.f32 %v8048_v61, %v8006_v34  ;;  %v8086_v19 = vadd.f32 %v8085_v28, %v8043_v20 }
 0x32c   : > { %v8004_v16 = vadd.f32 %v8003_v24, %v7961_v0 }
 0x32d   : > { %v8002_v1 = vadd.f32 %v8001_v36, %v7959_v13  ;;  %v8092_v35 = vadd.f32 %v8091_v62, %v8049_v21  ;;  %v8354_v62 = vadd.s32 8, %v11875_v37 }
 0x32e   : > { %v8047_v22 = vadd.f32 %v8046_v42, %v8004_v16 }
 0x32f   : > { %v8045_v17 = vadd.f32 %v8044_v47, %v8002_v1  ;;  %vm8356_vm0 = vcmp.lt.s32.totalorder %v8354_v62, 9 }
 0x330   : > { %v8090_v25 = vadd.f32 %v8089_v54, %v8047_v22 }
 0x331   : > { %v8088_v23 = vadd.f32 %v8087_v51, %v8045_v17 }
 0x364   : > { %v8128_v39 = vpop.f32.mrf.mxu0 }
 0x365   : > { %v8171_v55 = vpop.f32.mrf.mxu1  ;;  %v8129_v38 = vadd.f32 %v8128_v39, %v8086_v19 }
 0x366   : > { %v8130_v10 = vpop.f32.mrf.mxu0 }
 0x367   : > { %v8173_v33 = vpop.f32.mrf.mxu1  ;;  %v8131_v32 = vadd.f32 %v8130_v10, %v8088_v23  ;;  %v8172_v36 = vadd.f32 %v8171_v55, %v8129_v38 }
 0x368   : > { %v8132_v14 = vpop.f32.mrf.mxu0 }
 0x369   : > { %v8175_v26 = vpop.f32.mrf.mxu1  ;;  %v8133_v43 = vadd.f32 %v8132_v14, %v8090_v25  ;;  %v8174_v58 = vadd.f32 %v8173_v33, %v8131_v32 }
 0x36a   : > { %v8134_v15 = vpop.f32.mrf.mxu0 }
 0x36b   : > { %v8177_v60 = vpop.f32.mrf.mxu1  ;;  %v8135_v24 = vadd.f32 %v8134_v15, %v8092_v35  ;;  %v8176_v46 = vadd.f32 %v8175_v26, %v8133_v43 }
 0x36d   : > { %v8178_v47 = vadd.f32 %v8177_v60, %v8135_v24 }
 0x3a4   : > { %v8214_v18 = vpop.f32.mrf.mxu0 }
 0x3a5   : > { %v8257_v31 = vpop.f32.mrf.mxu1  ;;  %v8215_v59 = vadd.f32 %v8214_v18, %v8172_v36 }
 0x3a6   : > { %v8216_v29 = vpop.f32.mrf.mxu0 }
 0x3a7   : > { %v8259_v52 = vpop.f32.mrf.mxu1  ;;  %v8217_v28 = vadd.f32 %v8216_v29, %v8174_v58  ;;  %v8258_v51 = vadd.f32 %v8257_v31, %v8215_v59 }
 0x3a8   : > { %v8218_v27 = vpop.f32.mrf.mxu0 }
 0x3a9   : > { %v8261_v53 = vpop.f32.mrf.mxu1  ;;  %v8219_v30 = vadd.f32 %v8218_v27, %v8176_v46  ;;  %v8260_v3 = vadd.f32 %v8259_v52, %v8217_v28 }
 0x3aa   : > { %v8220_v44 = vpop.f32.mrf.mxu0 }
 0x3ab   : > { %v8263_v42 = vpop.f32.mrf.mxu1  ;;  %v8221_v54 = vadd.f32 %v8220_v44, %v8178_v47  ;;  %v8262_v2 = vadd.f32 %v8261_v53, %v8219_v30 }
 0x3ad   : > { %v8264_v57 = vadd.f32 %v8263_v42, %v8221_v54 }
 0x3e4   : > { %v8300_v48 = vpop.f32.mrf.mxu0 }
 0x3e5   : > { %v8343_v49 = vpop.f32.mrf.mxu1  ;;  %v8301_v39 = vadd.f32 %v8300_v48, %v8258_v51 }
 0x3e6   : > { %v8302_v50 = vpop.f32.mrf.mxu0 }
 0x3e7   : > { %v8345_v61 = vpop.f32.mrf.mxu1  ;;  %v8303_v6 = vadd.f32 %v8302_v50, %v8260_v3  ;;  %v8344_v33 = vadd.f32 %v8343_v49, %v8301_v39 }
 0x3e8   : > { %v8304_v55 = vpop.f32.mrf.mxu0 }
 0x3e9   : > { %v8347_v56 = vpop.f32.mrf.mxu1  ;;  %v8305_v4 = vadd.f32 %v8304_v55, %v8262_v2  ;;  %v8346_v11 = vadd.f32 %v8345_v61, %v8303_v6 }
 0x3ea   : > { %v8306_v8 = vpop.f32.mrf.mxu0 }
 0x3eb   : > { %v8348_v5 = vadd.f32 %v8347_v56, %v8305_v4  ;;  %v8307_v10 = vadd.f32 %v8306_v8, %v8264_v57  ;;  %v8349_v9 = vpop.f32.mrf.mxu1 }
 0x3ed   : > { %v8359_v7 = vsel %vm8356_vm0, %v8348_v5, 0.0  ;;  %v8350_v12 = vadd.f32 %v8349_v9, %v8307_v10 }
 0x3ee   : > { %v8361_v63 = vadd.f32 %v8359_v7, %v8344_v33 }
 0x3ef   : > { %v8360_v37 = vsel %vm8356_vm0, %v8350_v12, 0.0 }
 0x3f0   : > { %v8362_v14 = vrot.slane %v8361_v63, 4  ;;  %v8368_v26 = vadd.f32 %v8360_v37, %v8346_v11 }
 0x3f2   : > { %v8363_v40 = vadd.f32 %v8362_v14, %v8361_v63  ;;  %v8369_v0 = vrot.slane %v8368_v26, 4 }
 0x3f4   : > { %v8364_v13 = vrot.slane %v8363_v40, 2  ;;  %v8370_v41 = vadd.f32 %v8369_v0, %v8368_v26 }
 0x3f6   : > { %v8365_v45 = vadd.f32 %v8364_v13, %v8363_v40  ;;  %v8371_v15 = vrot.slane %v8370_v41, 2 }
 0x3f8   : > { %v8366_v60 = vrot.slane %v8365_v45, 1  ;;  %v8372_v16 = vadd.f32 %v8371_v15, %v8370_v41 }
 0x3fa   : > { %v8367_v1 = vadd.f32 %v8366_v60, %v8365_v45  ;;  %v8373_v20 = vrot.slane %v8372_v16, 1 }
 0x3fc   : > { %v8375_v18 = vmul.f32 0.11111111, %v8367_v1  ;;  %v8374_v31 = vadd.f32 %v8373_v20, %v8372_v16 }
 0x3fe   : > { %v8377_v34 = vsub.f32 %v8344_v33, %v8375_v18  ;;  %v8379_v22 = vsub.f32 %v8348_v5, %v8375_v18  ;;  %v8376_v17 = vmul.f32 0.11111111, %v8374_v31 }
 0x400   : > { %v8381_v21 = vmul.f32 %v8377_v34, %v8377_v34  ;;  %v8383_v19 = vmul.f32 %v8379_v22, %v8379_v22  ;;  %v8378_v29 = vsub.f32 %v8346_v11, %v8376_v17  ;;  %v8380_v52 = vsub.f32 %v8350_v12, %v8376_v17 }
 0x402   : > { %v8387_v25 = vsel %vm8356_vm0, %v8383_v19, 0.0  ;;  %v8382_v23 = vmul.f32 %v8378_v29, %v8378_v29  ;;  %v8384_v38 = vmul.f32 %v8380_v52, %v8380_v52 }
 0x403   : > { %v8389_v35 = vadd.f32 %v8387_v25, %v8381_v21 }
 0x404   : > { %v8388_v43 = vsel %vm8356_vm0, %v8384_v38, 0.0 }
 0x405   : > { %v8390_v32 = vrot.slane %v8389_v35, 4  ;;  %v8396_v27 = vadd.f32 %v8388_v43, %v8382_v23 }
 0x407   : > { %v8391_v53 = vadd.f32 %v8390_v32, %v8389_v35  ;;  %v8397_v24 = vrot.slane %v8396_v27, 4 }
 0x409   : > { %v8392_v36 = vrot.slane %v8391_v53, 2  ;;  %v8398_v46 = vadd.f32 %v8397_v24, %v8396_v27 }
 0x40b   : > { %v8393_v58 = vadd.f32 %v8392_v36, %v8391_v53  ;;  %v8399_v59 = vrot.slane %v8398_v46, 2 }
 0x40d   : > { %v8394_v44 = vrot.slane %v8393_v58, 1  ;;  %v8400_v42 = vadd.f32 %v8399_v59, %v8398_v46 }
 0x40f   : > { %v8395_v47 = vadd.f32 %v8394_v44, %v8393_v58  ;;  %v8401_v30 = vrot.slane %v8400_v42, 1 }
 0x411   : > { %v8403_v28 = vmul.f32 0.11111111, %v8395_v47  ;;  %v8402_v48 = vadd.f32 %v8401_v30, %v8400_v42 }
 0x413   : > { %v8405_v49 = vadd.f32 1e-05, %v8403_v28  ;;  %v8404_v54 = vmul.f32 0.11111111, %v8402_v48 }
 0x415   : > { %9998 = vrsqrt.f32 %v8405_v49  ;;  %v8406_v51 = vadd.f32 1e-05, %v8404_v54 }
 0x417   : > { %10000 = vrsqrt.f32 %v8406_v51 }
 0x422   : > { %v9999_v50 = vpop.eup %9998 }
 0x423   : > { %v8409_v61 = vmul.f32 %v9999_v50, %v8377_v34  ;;  %v8411_v62 = vmul.f32 %v9999_v50, %v8379_v22 }
 0x424   : > { %v10001_v2 = vpop.eup %10000 }
 0x425   : > { %v8417_v3 = vmul.f32 0.2, %v8409_v61  ;;  %v8419_v39 = vmul.f32 0.2, %v8411_v62  ;;  %v8410_v55 = vmul.f32 %v10001_v2, %v8378_v29  ;;  %v8412_v56 = vmul.f32 %v10001_v2, %v8380_v52 }
 0x426   : > { %vm8413_vm1 = vcmp.ge.f32.partialorder %v8409_v61, 0.0  ;;  %vm8415_vm2 = vcmp.ge.f32.partialorder %v8411_v62, 0.0 }
 0x427   : > { %vm8414_vm3 = vcmp.ge.f32.partialorder %v8410_v55, 0.0  ;;  %vm8416_vm4 = vcmp.ge.f32.partialorder %v8412_v56, 0.0  ;;  %v8418_v57 = vmul.f32 0.2, %v8410_v55  ;;  %v8420_v4 = vmul.f32 0.2, %v8412_v56 }
 0x428   : > { %v8421_v6 = vsel %vm8413_vm1, %v8409_v61, %v8417_v3  ;;  %v8423_v8 = vsel %vm8415_vm2, %v8411_v62, %v8419_v39  ;;  %8445 = sbr.rel (!%p10161_p9) target bundleno = 1077 (0x435), region = 88 }
 0x429   : > { %v8422_v5 = vsel %vm8414_vm3, %v8410_v55, %v8418_v57  ;;  %v8424_v10 = vsel %vm8416_vm4, %v8412_v56, %v8420_v4 }
 0x42a   : > { %v9156_v33 = vpack.c.bf16 %v8422_v5, %v8421_v6  ;;  %v9157_v9 = vpack.c.bf16 %v8424_v10, %v8423_v8 }
 0x42c   : > { %8437 = vst [vmem:[%s4375_s21] sm:$0xff] %v9156_v33  ;;  %8438 = vst [vmem:[%s4375_s21 + $0x8] sm:$0xff] %v9157_v9 }
 0x433   : > { %v8481_v7 = vld [vmem:[%s4375_s21] sm:$0xff]  ;;  %v8483_v12 = vld [vmem:[%s4375_s21 + $0x8] sm:$0xff] }
 0x434   : > { %8482 = vst [vmem:[%s8450_s28] sm:$0xff] %v8481_v7  ;;  %8484 = vst [vmem:[%s8450_s28 + $0x10] sm:$0xff] %v8483_v12 }
 0x435 PF: > { %s13_s20 = sadd.s32 1, %s10072_s20   ;;  %s11927_s12 = smov %s10044_s13 }
 0x436   : > { %p10_p2 = scmp.ge.s32.totalorder %s13_s20, 6   ;;  %s11928_s13 = smov %s10166_s4 }
 0x437   : > { %s11929_s14 = smov %s10052_s15  ;;  %s11930_s15 = smov %s10155_s27 }
 0x438   : > { %s11931_s16 = smov %s10064_s18  ;;  %s11932_s17 = smov %s10068_s19 }
 0x439   : > { %s11933_s18 = smov %s11936_s22  ;;  %s11934_s19 = smov %s11940_s23 }
 0x43a   :  { %12 = sbr.rel (!%p10_p2) target bundleno = 5 (0x5), region = 169 }

// kernel: _lambda_.9
= control target key start
LH: loop header
LB: loop body
LE: loop exit
PB: predicated region body
PF: predicated region fallthrough
CT: control target
= control target key end

     0   :  { %s7898_s12 = smov 0   ;;  %s7900_s13 = smov 0   ;;  %s9539_s0 = inlined_call_operand.vmem [shape: bf16[2,8,8192], index: 0, kind: input, shape index: {}]   ;;  %s9540_s1 = inlined_call_operand.vmem [shape: bf16[8192,128], index: 1, kind: input, shape index: {}]   ;;  %s9541_s2 = inlined_call_operand.vmem [shape: f32[1,128], index: 2, kind: input, shape index: {}]   ;;  %s9542_s3 = inlined_call_operand.vmem [shape: f32[2,8,128], index: 3, kind: output, shape index: {}]  }
   0x1   :  { %s7902_s14 = smov 0  }
   0x2 LB: > { %s25_s15 = sadd.s32 1, %s7872_s13  ;;  %p5966_p0 = scmp.ge.s32.totalorder %s7876_s14, 1  ;;  %s7876_s14 = sphi %s7902_s14, %s13_s14   ;;  %s7872_s13 = sphi %s7900_s13, %s9544_s13   ;;  %s7868_s12 = sphi %s7898_s12, %s9543_s12  }
   0x3   : > { %p27_p1 = scmp.ge.s32.totalorder %s25_s15, 2  ;;  %p168_p2 = scmp.lt.s32.totalorder %s7876_s14, 3 }
   0x5   : > { %s9546_s15 = smov (%p27_p1, %s25_s15), 0  ;;  %p169_p3 = pnand %p5966_p0, %p168_p2 }
   0x6   : > { %p201_p4 = scmp.lt.s32.totalorder (!%p169_p3), %s7868_s12, 1 }
   0x7   : > { %172 = sbr.rel (%p169_p3) target bundleno = 728 (0x2d8), region = 32 }
   0xc   : > { %v7278_v0 = vld [vmem:[%s9540_s1 + $0x78] sm:$0xff]   ;;  %v7282_v4 = vld [vmem:[%s9540_s1 + $0x70] sm:$0xff]   ;;  %v7286_v8 = vld [vmem:[%s9540_s1 + $0x68] sm:$0xff]   ;;  %s9548_s12 = smov (!%p201_p4, %s7868_s12), 1 }
   0xd   : > { %v7279_v1 = vld [vmem:[%s9540_s1 + $0xf8] sm:$0xff]   ;;  %6550 = vmatprep.subr.bf16.mxu0 %v7278_v0  ;;  %v7283_v5 = vld [vmem:[%s9540_s1 + $0xf0] sm:$0xff]   ;;  %v7287_v9 = vld [vmem:[%s9540_s1 + $0xe8] sm:$0xff]   ;;  %s6549_s24 = sshll.u32 %s9548_s12, 8 }
   0xe   : > { %v7280_v2 = vld [vmem:[%s9540_s1 + $0x38] sm:$0xff]   ;;  %6572 = vmatprep.subr.bf16.mxu1 %v7279_v1  ;;  %v7284_v6 = vld [vmem:[%s9540_s1 + $0x30] sm:$0xff]   ;;  %v7288_v10 = vld [vmem:[%s9540_s1 + $0x28] sm:$0xff]   ;;  %s8016_s6 = scalar_lea.vmem %s9539_s0, %s6549_s24 }
   0xf   : > { %v7281_v3 = vld [vmem:[%s9540_s1 + $0xb8] sm:$0xff]   ;;  %6551 = vmatpush3.bf16.msra.mxu0 %v7280_v2  ;;  %v7285_v7 = vld [vmem:[%s9540_s1 + $0xb0] sm:$0xff]   ;;  %v7289_v11 = vld [vmem:[%s9540_s1 + $0xa8] sm:$0xff]  }
  0x10   : > { %6573 = vmatpush3.bf16.msra.mxu1 %v7281_v3  ;;  %6552 = vmatprep.subr.bf16.mxu0 %v7282_v4  ;;  %v7290_v12 = vld [vmem:[%s9540_s1 + $0x60] sm:$0xff]   ;;  %v7294_v16 = vld [vmem:[%s9540_s1 + $0x58] sm:$0xff]   ;;  %v7298_v20 = vld [vmem:[%s9540_s1 + $0x50] sm:$0xff]  }
  0x11   : > { %6574 = vmatprep.subr.bf16.mxu1 %v7283_v5  ;;  %v7291_v13 = vld [vmem:[%s9540_s1 + $0xe0] sm:$0xff]   ;;  %v7295_v17 = vld [vmem:[%s9540_s1 + $0xd8] sm:$0xff]   ;;  %v7299_v21 = vld [vmem:[%s9540_s1 + $0xd0] sm:$0xff]  }
  0x12   : > { %v7292_v14 = vld [vmem:[%s9540_s1 + $0x20] sm:$0xff]   ;;  %v7296_v18 = vld [vmem:[%s9540_s1 + $0x18] sm:$0xff]   ;;  %v7300_v22 = vld [vmem:[%s9540_s1 + $0x10] sm:$0xff]  }
  0x13   : > { %6553 = vmatpush3.bf16.msra.mxu0 %v7284_v6  ;;  %v7293_v15 = vld [vmem:[%s9540_s1 + $0xa0] sm:$0xff]   ;;  %v7297_v19 = vld [vmem:[%s9540_s1 + $0x98] sm:$0xff]   ;;  %v7301_v23 = vld [vmem:[%s9540_s1 + $0x90] sm:$0xff]  }
  0x14   : > { %6575 = vmatpush3.bf16.msra.mxu1 %v7285_v7  ;;  %6554 = vmatprep.subr.bf16.mxu0 %v7286_v8  ;;  %v7302_v24 = vld [vmem:[%s9540_s1 + $0x48] sm:$0xff]   ;;  %v7306_v28 = vld [vmem:[%s9540_s1 + $0x40] sm:$0xff]   ;;  %v7314_v38 = vld [vmem:[%s9540_s1 + $0x178] sm:$0xff]  }
  0x15   : > { %6576 = vmatprep.subr.bf16.mxu1 %v7287_v9  ;;  %v7303_v25 = vld [vmem:[%s9540_s1 + $0xc8] sm:$0xff]   ;;  %v7307_v29 = vld [vmem:[%s9540_s1 + $0xc0] sm:$0xff]   ;;  %v7315_v39 = vld [vmem:[%s9540_s1 + $0x1f8] sm:$0xff]  }
  0x16   : > { %v7304_v26 = vld [vmem:[%s9540_s1 + $0x8] sm:$0xff]   ;;  %v7308_v30 = vld [vmem:[%s9540_s1] sm:$0xff]   ;;  %v7316_v40 = vld [vmem:[%s9540_s1 + $0x138] sm:$0xff]  }
  0x17   : > { %6555 = vmatpush3.bf16.msra.mxu0 %v7288_v10  ;;  %v7305_v27 = vld [vmem:[%s9540_s1 + $0x88] sm:$0xff]   ;;  %v7309_v31 = vld [vmem:[%s9540_s1 + $0x80] sm:$0xff]   ;;  %v7317_v41 = vld [vmem:[%s9540_s1 + $0x1b8] sm:$0xff]  }
  0x18   : > { %6577 = vmatpush3.bf16.msra.mxu1 %v7289_v11  ;;  %6556 = vmatprep.subr.bf16.mxu0 %v7290_v12  ;;  %v221_v32 = vld [vmem:[%s8016_s6] sm:$0xff]  ;;  %v222_v33 = vld [vmem:[%s8016_s6 + $0x8] sm:$0xff]  ;;  %v7318_v42 = vld [vmem:[%s9540_s1 + $0x170] sm:$0xff]  }
  0x19   : > { %6578 = vmatprep.subr.bf16.mxu1 %v7291_v13  ;;  %v5971_v34 = vcombine.low %v221_v32, %v221_v32  ;;  %v5972_v35 = vcombine.high %v221_v32, %v221_v32  ;;  %v5973_v36 = vcombine.low %v222_v33, %v222_v33  ;;  %v5974_v37 = vcombine.high %v222_v33, %v222_v33  ;;  %v7319_v43 = vld [vmem:[%s9540_s1 + $0x1f0] sm:$0xff]   ;;  %v7322_v46 = vld [vmem:[%s9540_s1 + $0x168] sm:$0xff]   ;;  %v7326_v50 = vld [vmem:[%s9540_s1 + $0x160] sm:$0xff]  }
  0x1a   : > { %v7320_v44 = vld [vmem:[%s9540_s1 + $0x130] sm:$0xff]   ;;  %v7323_v47 = vld [vmem:[%s9540_s1 + $0x1e8] sm:$0xff]   ;;  %v7327_v51 = vld [vmem:[%s9540_s1 + $0x1e0] sm:$0xff]  }
  0x1b   : > { %6557 = vmatpush3.bf16.msra.mxu0 %v7292_v14  ;;  %4612 = vmatprep.mubr.bf16.mxu0 %v5972_v35  ;;  %v7321_v45 = vld [vmem:[%s9540_s1 + $0x1b0] sm:$0xff]   ;;  %v7324_v48 = vld [vmem:[%s9540_s1 + $0x128] sm:$0xff]   ;;  %v7328_v52 = vld [vmem:[%s9540_s1 + $0x120] sm:$0xff]  }
  0x1c   : > { %6579 = vmatpush3.bf16.msra.mxu1 %v7293_v15  ;;  %6558 = vmatprep.subr.bf16.mxu0 %v7294_v16  ;;  %v7325_v49 = vld [vmem:[%s9540_s1 + $0x1a8] sm:$0xff]   ;;  %v7329_v53 = vld [vmem:[%s9540_s1 + $0x1a0] sm:$0xff]   ;;  %v7330_v54 = vld [vmem:[%s9540_s1 + $0x158] sm:$0xff]  }
  0x1d   : > { %6580 = vmatprep.subr.bf16.mxu1 %v7295_v17  ;;  %4652 = vmatprep.mubr.bf16.mxu1 %v5974_v37  ;;  %v7331_v55 = vld [vmem:[%s9540_s1 + $0x1d8] sm:$0xff]   ;;  %v7334_v58 = vld [vmem:[%s9540_s1 + $0x150] sm:$0xff]   ;;  %v7338_v62 = vld [vmem:[%s9540_s1 + $0x148] sm:$0xff]  }
  0x1e   : > { %v7332_v56 = vld [vmem:[%s9540_s1 + $0x118] sm:$0xff]   ;;  %v7335_v59 = vld [vmem:[%s9540_s1 + $0x1d0] sm:$0xff]   ;;  %v7339_v63 = vld [vmem:[%s9540_s1 + $0x1c8] sm:$0xff]  }
  0x1f   : > { %6559 = vmatpush3.bf16.msra.mxu0 %v7296_v18  ;;  %v7333_v57 = vld [vmem:[%s9540_s1 + $0x198] sm:$0xff]   ;;  %v7336_v60 = vld [vmem:[%s9540_s1 + $0x110] sm:$0xff]   ;;  %v7340_v0 = vld [vmem:[%s9540_s1 + $0x108] sm:$0xff]  }
  0x20   : > { %6581 = vmatpush3.bf16.msra.mxu1 %v7297_v19  ;;  %6560 = vmatprep.subr.bf16.mxu0 %v7298_v20  ;;  %v7337_v61 = vld [vmem:[%s9540_s1 + $0x190] sm:$0xff]   ;;  %v7341_v1 = vld [vmem:[%s9540_s1 + $0x188] sm:$0xff]   ;;  %v7342_v2 = vld [vmem:[%s9540_s1 + $0x140] sm:$0xff]  }
  0x21   : > { %6582 = vmatprep.subr.bf16.mxu1 %v7299_v21  ;;  %v7343_v3 = vld [vmem:[%s9540_s1 + $0x1c0] sm:$0xff]   ;;  %v223_v6 = vld [vmem:[%s8016_s6 + $0x10] sm:$0xff]  ;;  %v224_v9 = vld [vmem:[%s8016_s6 + $0x18] sm:$0xff] }
  0x22   : > { %v7344_v4 = vld [vmem:[%s9540_s1 + $0x100] sm:$0xff]   ;;  %v5975_v7 = vcombine.low %v223_v6, %v223_v6  ;;  %v5976_v8 = vcombine.high %v223_v6, %v223_v6  ;;  %v5977_v10 = vcombine.low %v224_v9, %v224_v9  ;;  %v5978_v11 = vcombine.high %v224_v9, %v224_v9  ;;  %v7350_v12 = vld [vmem:[%s9540_s1 + $0x278] sm:$0xff]   ;;  %v7354_v16 = vld [vmem:[%s9540_s1 + $0x270] sm:$0xff]  }
  0x23   : > { %6561 = vmatpush3.bf16.msra.mxu0 %v7300_v22  ;;  %v7345_v5 = vld [vmem:[%s9540_s1 + $0x180] sm:$0xff]   ;;  %v7351_v13 = vld [vmem:[%s9540_s1 + $0x2f8] sm:$0xff]   ;;  %v7355_v17 = vld [vmem:[%s9540_s1 + $0x2f0] sm:$0xff]  }
  0x24   : > { %6583 = vmatpush3.bf16.msra.mxu1 %v7301_v23  ;;  %6562 = vmatprep.subr.bf16.mxu0 %v7302_v24  ;;  %v7352_v14 = vld [vmem:[%s9540_s1 + $0x238] sm:$0xff]   ;;  %v7356_v18 = vld [vmem:[%s9540_s1 + $0x230] sm:$0xff]   ;;  %v7358_v20 = vld [vmem:[%s9540_s1 + $0x268] sm:$0xff]  }
  0x25   : > { %6584 = vmatprep.subr.bf16.mxu1 %v7303_v25  ;;  %v7353_v15 = vld [vmem:[%s9540_s1 + $0x2b8] sm:$0xff]   ;;  %v7357_v19 = vld [vmem:[%s9540_s1 + $0x2b0] sm:$0xff]   ;;  %v7359_v21 = vld [vmem:[%s9540_s1 + $0x2e8] sm:$0xff]  }
  0x26   : > { %v7360_v22 = vld [vmem:[%s9540_s1 + $0x228] sm:$0xff]   ;;  %v7362_v24 = vld [vmem:[%s9540_s1 + $0x260] sm:$0xff]   ;;  %v7370_v32 = vld [vmem:[%s9540_s1 + $0x250] sm:$0xff]  }
  0x27   : > { %6563 = vmatpush3.bf16.msra.mxu0 %v7304_v26  ;;  %v7361_v23 = vld [vmem:[%s9540_s1 + $0x2a8] sm:$0xff]   ;;  %v7363_v25 = vld [vmem:[%s9540_s1 + $0x2e0] sm:$0xff]   ;;  %v7371_v33 = vld [vmem:[%s9540_s1 + $0x2d0] sm:$0xff]  }
  0x28   : > { %6585 = vmatpush3.bf16.msra.mxu1 %v7305_v27  ;;  %6564 = vmatprep.subr.bf16.mxu0 %v7306_v28  ;;  %v7364_v26 = vld [vmem:[%s9540_s1 + $0x220] sm:$0xff]   ;;  %v7366_v28 = vld [vmem:[%s9540_s1 + $0x258] sm:$0xff]   ;;  %v7373_v35 = vld [vmem:[%s9540_s1 + $0x290] sm:$0xff]  }
  0x29   : > { %6586 = vmatprep.subr.bf16.mxu1 %v7307_v29  ;;  %v7365_v27 = vld [vmem:[%s9540_s1 + $0x2a0] sm:$0xff]   ;;  %v7367_v29 = vld [vmem:[%s9540_s1 + $0x2d8] sm:$0xff]   ;;  %v7375_v37 = vld [vmem:[%s9540_s1 + $0x2c8] sm:$0xff]  }
  0x2a   : > { %v7406_v6 = vld [vmem:[%s9540_s1 + $0x350] sm:$0xff]  }
  0x2b   : > { %6565 = vmatpush3.bf16.msra.mxu0 %v7308_v30  ;;  %v7368_v30 = vld [vmem:[%s9540_s1 + $0x218] sm:$0xff]   ;;  %v7409_v9 = vld [vmem:[%s9540_s1 + $0x390] sm:$0xff]  }
  0x2c   : > { %6587 = vmatpush3.bf16.msra.mxu1 %v7309_v31  ;;  %6594 = vmatprep.subr.bf16.mxu0 %v7314_v38  ;;  %v7369_v31 = vld [vmem:[%s9540_s1 + $0x298] sm:$0xff]   ;;  %v7376_v38 = vld [vmem:[%s9540_s1 + $0x208] sm:$0xff]  }
  0x2d   : > { %6616 = vmatprep.subr.bf16.mxu1 %v7315_v39  ;;  %v7377_v39 = vld [vmem:[%s9540_s1 + $0x288] sm:$0xff]  }
  0x2e   : > { %4613 = vmatmul.mubr.bf16.vlgmr.msra.gmra.mxu0 %v5971_v34  ;;  %v7372_v34 = vld [vmem:[%s9540_s1 + $0x210] sm:$0xff]  }
  0x2f   : > { %4653 = vmatmul.mubr.bf16.vlgmr.msra.gmra.mxu1 %v5973_v36  ;;  %6595 = vmatpush3.bf16.msra.mxu0 %v7316_v40  ;;  %v7374_v36 = vld [vmem:[%s9540_s1 + $0x248] sm:$0xff]   ;;  %v7378_v40 = vld [vmem:[%s9540_s1 + $0x240] sm:$0xff]  }
  0x30   : > { %6617 = vmatpush3.bf16.msra.mxu1 %v7317_v41  ;;  %6596 = vmatprep.subr.bf16.mxu0 %v7318_v42  ;;  %v7379_v41 = vld [vmem:[%s9540_s1 + $0x2c0] sm:$0xff]  }
  0x31   : > { %6618 = vmatprep.subr.bf16.mxu1 %v7319_v43  ;;  %4692 = vmatprep.mubr.bf16.mxu0 %v5976_v8  ;;  %v7380_v42 = vld [vmem:[%s9540_s1 + $0x200] sm:$0xff]   ;;  %v7408_v8 = vld [vmem:[%s9540_s1 + $0x310] sm:$0xff]  }
  0x32   : > { %4732 = vmatprep.mubr.bf16.mxu1 %v5978_v11  ;;  %v7381_v43 = vld [vmem:[%s9540_s1 + $0x280] sm:$0xff]   ;;  %v7411_v11 = vld [vmem:[%s9540_s1 + $0x3c8] sm:$0xff]  }
  0x33   : > { %6597 = vmatpush3.bf16.msra.mxu0 %v7320_v44  ;;  %v225_v44 = vld [vmem:[%s8016_s6 + $0x20] sm:$0xff] }
  0x34   : > { %6619 = vmatpush3.bf16.msra.mxu1 %v7321_v45  ;;  %6598 = vmatprep.subr.bf16.mxu0 %v7322_v46  ;;  %v226_v45 = vld [vmem:[%s8016_s6 + $0x28] sm:$0xff]  ;;  %v5979_v46 = vcombine.low %v225_v44, %v225_v44 }
  0x35   : > { %6620 = vmatprep.subr.bf16.mxu1 %v7323_v47  ;;  %v5980_v47 = vcombine.high %v225_v44, %v225_v44  ;;  %v7442_v44 = vld [vmem:[%s9540_s1 + $0x450] sm:$0xff]  }
  0x37   : > { %6599 = vmatpush3.bf16.msra.mxu0 %v7324_v48  ;;  %v5981_v48 = vcombine.low %v226_v45, %v226_v45 }
  0x38   : > { %6621 = vmatpush3.bf16.msra.mxu1 %v7325_v49  ;;  %6600 = vmatprep.subr.bf16.mxu0 %v7326_v50  ;;  %v5982_v49 = vcombine.high %v226_v45, %v226_v45  ;;  %v7386_v50 = vld [vmem:[%s9540_s1 + $0x378] sm:$0xff]   ;;  %v7443_v45 = vld [vmem:[%s9540_s1 + $0x4d0] sm:$0xff]  }
  0x39   : > { %6622 = vmatprep.subr.bf16.mxu1 %v7327_v51  ;;  %v7387_v51 = vld [vmem:[%s9540_s1 + $0x3f8] sm:$0xff]  }
  0x3b   : > { %6601 = vmatpush3.bf16.msra.mxu0 %v7328_v52  ;;  %v7388_v52 = vld [vmem:[%s9540_s1 + $0x338] sm:$0xff]  }
  0x3c   : > { %6623 = vmatpush3.bf16.msra.mxu1 %v7329_v53  ;;  %6602 = vmatprep.subr.bf16.mxu0 %v7330_v54  ;;  %v7389_v53 = vld [vmem:[%s9540_s1 + $0x3b8] sm:$0xff]   ;;  %v7390_v54 = vld [vmem:[%s9540_s1 + $0x370] sm:$0xff]  }
  0x3d   : > { %6624 = vmatprep.subr.bf16.mxu1 %v7331_v55  ;;  %v7391_v55 = vld [vmem:[%s9540_s1 + $0x3f0] sm:$0xff]  }
  0x3f   : > { %6603 = vmatpush3.bf16.msra.mxu0 %v7332_v56  ;;  %v7392_v56 = vld [vmem:[%s9540_s1 + $0x330] sm:$0xff]  }
  0x40   : > { %6625 = vmatpush3.bf16.msra.mxu1 %v7333_v57  ;;  %6604 = vmatprep.subr.bf16.mxu0 %v7334_v58  ;;  %v7393_v57 = vld [vmem:[%s9540_s1 + $0x3b0] sm:$0xff]   ;;  %v7394_v58 = vld [vmem:[%s9540_s1 + $0x368] sm:$0xff]  }
  0x41   : > { %6626 = vmatprep.subr.bf16.mxu1 %v7335_v59  ;;  %v7395_v59 = vld [vmem:[%s9540_s1 + $0x3e8] sm:$0xff]  }
  0x43   : > { %6605 = vmatpush3.bf16.msra.mxu0 %v7336_v60  ;;  %v7396_v60 = vld [vmem:[%s9540_s1 + $0x328] sm:$0xff]  }
  0x44   : > { %6627 = vmatpush3.bf16.msra.mxu1 %v7337_v61  ;;  %6606 = vmatprep.subr.bf16.mxu0 %v7338_v62  ;;  %v7397_v61 = vld [vmem:[%s9540_s1 + $0x3a8] sm:$0xff]   ;;  %v7398_v62 = vld [vmem:[%s9540_s1 + $0x360] sm:$0xff]  }
  0x45   : > { %6628 = vmatprep.subr.bf16.mxu1 %v7339_v63  ;;  %v7399_v63 = vld [vmem:[%s9540_s1 + $0x3e0] sm:$0xff]  }
  0x47   : > { %6607 = vmatpush3.bf16.msra.mxu0 %v7340_v0  ;;  %v7400_v0 = vld [vmem:[%s9540_s1 + $0x320] sm:$0xff]  }
  0x48   : > { %6629 = vmatpush3.bf16.msra.mxu1 %v7341_v1  ;;  %6608 = vmatprep.subr.bf16.mxu0 %v7342_v2  ;;  %v7401_v1 = vld [vmem:[%s9540_s1 + $0x3a0] sm:$0xff]   ;;  %v7402_v2 = vld [vmem:[%s9540_s1 + $0x358] sm:$0xff]  }
  0x49   : > { %6630 = vmatprep.subr.bf16.mxu1 %v7343_v3  ;;  %v7403_v3 = vld [vmem:[%s9540_s1 + $0x3d8] sm:$0xff]  }
  0x4b   : > { %6609 = vmatpush3.bf16.msra.mxu0 %v7344_v4  ;;  %v7404_v4 = vld [vmem:[%s9540_s1 + $0x318] sm:$0xff]  }
  0x4c   : > { %6631 = vmatpush3.bf16.msra.mxu1 %v7345_v5  ;;  %6638 = vmatprep.subr.bf16.mxu0 %v7350_v12  ;;  %v7405_v5 = vld [vmem:[%s9540_s1 + $0x398] sm:$0xff]   ;;  %v7412_v12 = vld [vmem:[%s9540_s1 + $0x308] sm:$0xff]  }
  0x4d   : > { %6660 = vmatprep.subr.bf16.mxu1 %v7351_v13  ;;  %v7413_v13 = vld [vmem:[%s9540_s1 + $0x388] sm:$0xff]  }
  0x4e   : > { %4693 = vmatmul.mubr.bf16.vlgmr.msra.gmra.mxu0 %v5975_v7  ;;  %v7407_v7 = vld [vmem:[%s9540_s1 + $0x3d0] sm:$0xff]  }
  0x4f   : > { %4733 = vmatmul.mubr.bf16.vlgmr.msra.gmra.mxu1 %v5977_v10  ;;  %6639 = vmatpush3.bf16.msra.mxu0 %v7352_v14  ;;  %v7410_v10 = vld [vmem:[%s9540_s1 + $0x348] sm:$0xff]   ;;  %v7414_v14 = vld [vmem:[%s9540_s1 + $0x340] sm:$0xff]  }
  0x50   : > { %6661 = vmatpush3.bf16.msra.mxu1 %v7353_v15  ;;  %6640 = vmatprep.subr.bf16.mxu0 %v7354_v16  ;;  %v7415_v15 = vld [vmem:[%s9540_s1 + $0x3c0] sm:$0xff]  }
  0x51   : > { %6662 = vmatprep.subr.bf16.mxu1 %v7355_v17  ;;  %4772 = vmatprep.mubr.bf16.mxu0 %v5980_v47  ;;  %v7416_v16 = vld [vmem:[%s9540_s1 + $0x300] sm:$0xff]   ;;  %v7445_v47 = vld [vmem:[%s9540_s1 + $0x490] sm:$0xff]  }
  0x52   : > { %4812 = vmatprep.mubr.bf16.mxu1 %v5982_v49  ;;  %v7417_v17 = vld [vmem:[%s9540_s1 + $0x380] sm:$0xff]   ;;  %v7447_v49 = vld [vmem:[%s9540_s1 + $0x4c8] sm:$0xff]  }
  0x53   : > { %6641 = vmatpush3.bf16.msra.mxu0 %v7356_v18  ;;  %v227_v18 = vld [vmem:[%s8016_s6 + $0x30] sm:$0xff] }
  0x54   : > { %6663 = vmatpush3.bf16.msra.mxu1 %v7357_v19  ;;  %6642 = vmatprep.subr.bf16.mxu0 %v7358_v20  ;;  %v228_v19 = vld [vmem:[%s8016_s6 + $0x38] sm:$0xff]  ;;  %v5983_v20 = vcombine.low %v227_v18, %v227_v18 }
  0x55   : > { %6664 = vmatprep.subr.bf16.mxu1 %v7359_v21  ;;  %v5984_v21 = vcombine.high %v227_v18, %v227_v18  ;;  %v7478_v18 = vld [vmem:[%s9540_s1 + $0x550] sm:$0xff]  }
  0x57   : > { %6643 = vmatpush3.bf16.msra.mxu0 %v7360_v22  ;;  %v5985_v22 = vcombine.low %v228_v19, %v228_v19 }
  0x58   : > { %6665 = vmatpush3.bf16.msra.mxu1 %v7361_v23  ;;  %6644 = vmatprep.subr.bf16.mxu0 %v7362_v24  ;;  %v7422_v23 = vld [vmem:[%s9540_s1 + $0x478] sm:$0xff]   ;;  %v5986_v24 = vcombine.high %v228_v19, %v228_v19  ;;  %v7479_v19 = vld [vmem:[%s9540_s1 + $0x5d0] sm:$0xff]  }
  0x59   : > { %6666 = vmatprep.subr.bf16.mxu1 %v7363_v25  ;;  %v7423_v25 = vld [vmem:[%s9540_s1 + $0x4f8] sm:$0xff]  }
  0x5b   : > { %6645 = vmatpush3.bf16.msra.mxu0 %v7364_v26  ;;  %v7424_v26 = vld [vmem:[%s9540_s1 + $0x438] sm:$0xff]  }
  0x5c   : > { %6667 = vmatpush3.bf16.msra.mxu1 %v7365_v27  ;;  %6646 = vmatprep.subr.bf16.mxu0 %v7366_v28  ;;  %v7425_v27 = vld [vmem:[%s9540_s1 + $0x4b8] sm:$0xff]   ;;  %v7426_v28 = vld [vmem:[%s9540_s1 + $0x470] sm:$0xff]  }
  0x5d   : > { %6668 = vmatprep.subr.bf16.mxu1 %v7367_v29  ;;  %v7427_v29 = vld [vmem:[%s9540_s1 + $0x4f0] sm:$0xff]  }
  0x5f   : > { %6647 = vmatpush3.bf16.msra.mxu0 %v7368_v30  ;;  %v7428_v30 = vld [vmem:[%s9540_s1 + $0x430] sm:$0xff]  }
  0x60   : > { %6669 = vmatpush3.bf16.msra.mxu1 %v7369_v31  ;;  %6648 = vmatprep.subr.bf16.mxu0 %v7370_v32  ;;  %v7429_v31 = vld [vmem:[%s9540_s1 + $0x4b0] sm:$0xff]   ;;  %v7430_v32 = vld [vmem:[%s9540_s1 + $0x468] sm:$0xff]  }
  0x61   : > { %6670 = vmatprep.subr.bf16.mxu1 %v7371_v33  ;;  %v7431_v33 = vld [vmem:[%s9540_s1 + $0x4e8] sm:$0xff]  }
  0x63   : > { %6649 = vmatpush3.bf16.msra.mxu0 %v7372_v34  ;;  %v7432_v34 = vld [vmem:[%s9540_s1 + $0x428] sm:$0xff]  }
  0x64   : > { %6671 = vmatpush3.bf16.msra.mxu1 %v7373_v35  ;;  %6650 = vmatprep.subr.bf16.mxu0 %v7374_v36  ;;  %v7433_v35 = vld [vmem:[%s9540_s1 + $0x4a8] sm:$0xff]   ;;  %v7434_v36 = vld [vmem:[%s9540_s1 + $0x460] sm:$0xff]  }
  0x65   : > { %6672 = vmatprep.subr.bf16.mxu1 %v7375_v37  ;;  %v7435_v37 = vld [vmem:[%s9540_s1 + $0x4e0] sm:$0xff]  }
  0x67   : > { %6651 = vmatpush3.bf16.msra.mxu0 %v7376_v38  ;;  %v7436_v38 = vld [vmem:[%s9540_s1 + $0x420] sm:$0xff]  }
  0x68   : > { %6673 = vmatpush3.bf16.msra.mxu1 %v7377_v39  ;;  %6652 = vmatprep.subr.bf16.mxu0 %v7378_v40  ;;  %v7437_v39 = vld [vmem:[%s9540_s1 + $0x4a0] sm:$0xff]   ;;  %v7438_v40 = vld [vmem:[%s9540_s1 + $0x458] sm:$0xff]  }
  0x69   : > { %6674 = vmatprep.subr.bf16.mxu1 %v7379_v41  ;;  %v7439_v41 = vld [vmem:[%s9540_s1 + $0x4d8] sm:$0xff]  }
  0x6b   : > { %6653 = vmatpush3.bf16.msra.mxu0 %v7380_v42  ;;  %v7440_v42 = vld [vmem:[%s9540_s1 + $0x418] sm:$0xff]  }
  0x6c   : > { %6675 = vmatpush3.bf16.msra.mxu1 %v7381_v43  ;;  %6682 = vmatprep.subr.bf16.mxu0 %v7386_v50  ;;  %v7441_v43 = vld [vmem:[%s9540_s1 + $0x498] sm:$0xff]   ;;  %v7448_v50 = vld [vmem:[%s9540_s1 + $0x408] sm:$0xff]  }
  0x6d   : > { %6704 = vmatprep.subr.bf16.mxu1 %v7387_v51  ;;  %v7449_v51 = vld [vmem:[%s9540_s1 + $0x488] sm:$0xff]  }
  0x6e   : > { %4773 = vmatmul.mubr.bf16.vlgmr.msra.gmra.mxu0 %v5979_v46  ;;  %v7444_v46 = vld [vmem:[%s9540_s1 + $0x410] sm:$0xff]  }
  0x6f   : > { %4813 = vmatmul.mubr.bf16.vlgmr.msra.gmra.mxu1 %v5981_v48  ;;  %6683 = vmatpush3.bf16.msra.mxu0 %v7388_v52  ;;  %v7446_v48 = vld [vmem:[%s9540_s1 + $0x448] sm:$0xff]   ;;  %v7450_v52 = vld [vmem:[%s9540_s1 + $0x440] sm:$0xff]  }
  0x70   : > { %6705 = vmatpush3.bf16.msra.mxu1 %v7389_v53  ;;  %6684 = vmatprep.subr.bf16.mxu0 %v7390_v54  ;;  %v7451_v53 = vld [vmem:[%s9540_s1 + $0x4c0] sm:$0xff]  }
  0x71   : > { %6706 = vmatprep.subr.bf16.mxu1 %v7391_v55  ;;  %4852 = vmatprep.mubr.bf16.mxu0 %v5984_v21  ;;  %v7452_v54 = vld [vmem:[%s9540_s1 + $0x400] sm:$0xff]   ;;  %v7481_v21 = vld [vmem:[%s9540_s1 + $0x590] sm:$0xff]  }
  0x72   : > { %4892 = vmatprep.mubr.bf16.mxu1 %v5986_v24  ;;  %v7453_v55 = vld [vmem:[%s9540_s1 + $0x480] sm:$0xff]   ;;  %v7484_v24 = vld [vmem:[%s9540_s1 + $0x508] sm:$0xff]  }
  0x73   : > { %6685 = vmatpush3.bf16.msra.mxu0 %v7392_v56  ;;  %v229_v56 = vld [vmem:[%s8016_s6 + $0x40] sm:$0xff] }
  0x74   : > { %6707 = vmatpush3.bf16.msra.mxu1 %v7393_v57  ;;  %6686 = vmatprep.subr.bf16.mxu0 %v7394_v58  ;;  %v5987_v57 = vcombine.low %v229_v56, %v229_v56  ;;  %v5988_v58 = vcombine.high %v229_v56, %v229_v56  ;;  %v7514_v56 = vld [vmem:[%s9540_s1 + $0x650] sm:$0xff]  }
  0x75   : > { %6708 = vmatprep.subr.bf16.mxu1 %v7395_v59  ;;  %v230_v59 = vld [vmem:[%s8016_s6 + $0x48] sm:$0xff] }
  0x77   : > { %6687 = vmatpush3.bf16.msra.mxu0 %v7396_v60  ;;  %v5989_v60 = vcombine.low %v230_v59, %v230_v59 }
  0x78   : > { %6709 = vmatpush3.bf16.msra.mxu1 %v7397_v61  ;;  %6688 = vmatprep.subr.bf16.mxu0 %v7398_v62  ;;  %v5990_v61 = vcombine.high %v230_v59, %v230_v59  ;;  %v7458_v62 = vld [vmem:[%s9540_s1 + $0x578] sm:$0xff]   ;;  %v7517_v59 = vld [vmem:[%s9540_s1 + $0x690] sm:$0xff]  }
  0x79   : > { %6710 = vmatprep.subr.bf16.mxu1 %v7399_v63  ;;  %v7459_v63 = vld [vmem:[%s9540_s1 + $0x5f8] sm:$0xff]  }
  0x7b   : > { %6689 = vmatpush3.bf16.msra.mxu0 %v7400_v0  ;;  %v7460_v0 = vld [vmem:[%s9540_s1 + $0x538] sm:$0xff]  }
  0x7c   : > { %6711 = vmatpush3.bf16.msra.mxu1 %v7401_v1  ;;  %6690 = vmatprep.subr.bf16.mxu0 %v7402_v2  ;;  %v7461_v1 = vld [vmem:[%s9540_s1 + $0x5b8] sm:$0xff]   ;;  %v7462_v2 = vld [vmem:[%s9540_s1 + $0x570] sm:$0xff]  }
  0x7d   : > { %6712 = vmatprep.subr.bf16.mxu1 %v7403_v3  ;;  %v7463_v3 = vld [vmem:[%s9540_s1 + $0x5f0] sm:$0xff]  }
  0x7f   : > { %6691 = vmatpush3.bf16.msra.mxu0 %v7404_v4  ;;  %v7464_v4 = vld [vmem:[%s9540_s1 + $0x530] sm:$0xff]  }
  0x80   : > { %6713 = vmatpush3.bf16.msra.mxu1 %v7405_v5  ;;  %6692 = vmatprep.subr.bf16.mxu0 %v7406_v6  ;;  %v7465_v5 = vld [vmem:[%s9540_s1 + $0x5b0] sm:$0xff]   ;;  %v7466_v6 = vld [vmem:[%s9540_s1 + $0x568] sm:$0xff]  }
  0x81   : > { %6714 = vmatprep.subr.bf16.mxu1 %v7407_v7  ;;  %v7467_v7 = vld [vmem:[%s9540_s1 + $0x5e8] sm:$0xff]  }
  0x83   : > { %6693 = vmatpush3.bf16.msra.mxu0 %v7408_v8  ;;  %v7468_v8 = vld [vmem:[%s9540_s1 + $0x528] sm:$0xff]  }
  0x84   : > { %6715 = vmatpush3.bf16.msra.mxu1 %v7409_v9  ;;  %6694 = vmatprep.subr.bf16.mxu0 %v7410_v10  ;;  %v7469_v9 = vld [vmem:[%s9540_s1 + $0x5a8] sm:$0xff]   ;;  %v7470_v10 = vld [vmem:[%s9540_s1 + $0x560] sm:$0xff]  }
  0x85   : > { %6716 = vmatprep.subr.bf16.mxu1 %v7411_v11  ;;  %v7471_v11 = vld [vmem:[%s9540_s1 + $0x5e0] sm:$0xff]  }
  0x87   : > { %6695 = vmatpush3.bf16.msra.mxu0 %v7412_v12  ;;  %v7472_v12 = vld [vmem:[%s9540_s1 + $0x520] sm:$0xff]  }
  0x88   : > { %6717 = vmatpush3.bf16.msra.mxu1 %v7413_v13  ;;  %6696 = vmatprep.subr.bf16.mxu0 %v7414_v14  ;;  %v7473_v13 = vld [vmem:[%s9540_s1 + $0x5a0] sm:$0xff]   ;;  %v7474_v14 = vld [vmem:[%s9540_s1 + $0x558] sm:$0xff]  }
  0x89   : > { %6718 = vmatprep.subr.bf16.mxu1 %v7415_v15  ;;  %v7475_v15 = vld [vmem:[%s9540_s1 + $0x5d8] sm:$0xff]  }
  0x8b   : > { %6697 = vmatpush3.bf16.msra.mxu0 %v7416_v16  ;;  %v7476_v16 = vld [vmem:[%s9540_s1 + $0x518] sm:$0xff]  }
  0x8c   : > { %6719 = vmatpush3.bf16.msra.mxu1 %v7417_v17  ;;  %6726 = vmatprep.subr.bf16.mxu0 %v7422_v23  ;;  %v7477_v17 = vld [vmem:[%s9540_s1 + $0x598] sm:$0xff]   ;;  %v7483_v23 = vld [vmem:[%s9540_s1 + $0x5c8] sm:$0xff]  }
  0x8d   : > { %6748 = vmatprep.subr.bf16.mxu1 %v7423_v25  ;;  %v7485_v25 = vld [vmem:[%s9540_s1 + $0x588] sm:$0xff]  }
  0x8e   : > { %4853 = vmatmul.mubr.bf16.vlgmr.msra.gmra.mxu0 %v5983_v20  ;;  %v7480_v20 = vld [vmem:[%s9540_s1 + $0x510] sm:$0xff]  }
  0x8f   : > { %4893 = vmatmul.mubr.bf16.vlgmr.msra.gmra.mxu1 %v5985_v22  ;;  %6727 = vmatpush3.bf16.msra.mxu0 %v7424_v26  ;;  %v7482_v22 = vld [vmem:[%s9540_s1 + $0x548] sm:$0xff]   ;;  %v7486_v26 = vld [vmem:[%s9540_s1 + $0x540] sm:$0xff]  }
  0x90   : > { %6749 = vmatpush3.bf16.msra.mxu1 %v7425_v27  ;;  %6728 = vmatprep.subr.bf16.mxu0 %v7426_v28  ;;  %v7487_v27 = vld [vmem:[%s9540_s1 + $0x5c0] sm:$0xff]  }
  0x91   : > { %6750 = vmatprep.subr.bf16.mxu1 %v7427_v29  ;;  %4932 = vmatprep.mubr.bf16.mxu0 %v5988_v58  ;;  %v7488_v28 = vld [vmem:[%s9540_s1 + $0x500] sm:$0xff]   ;;  %v7516_v58 = vld [vmem:[%s9540_s1 + $0x610] sm:$0xff]  }
  0x92   : > { %4972 = vmatprep.mubr.bf16.mxu1 %v5990_v61  ;;  %v7489_v29 = vld [vmem:[%s9540_s1 + $0x580] sm:$0xff]   ;;  %v7519_v61 = vld [vmem:[%s9540_s1 + $0x6c8] sm:$0xff]  }
  0x93   : > { %6729 = vmatpush3.bf16.msra.mxu0 %v7428_v30  ;;  %v231_v30 = vld [vmem:[%s8016_s6 + $0x50] sm:$0xff] }
  0x94   : > { %6751 = vmatpush3.bf16.msra.mxu1 %v7429_v31  ;;  %6730 = vmatprep.subr.bf16.mxu0 %v7430_v32  ;;  %v232_v31 = vld [vmem:[%s8016_s6 + $0x58] sm:$0xff]  ;;  %v5991_v32 = vcombine.low %v231_v30, %v231_v30 }
  0x95   : > { %6752 = vmatprep.subr.bf16.mxu1 %v7431_v33  ;;  %v5992_v33 = vcombine.high %v231_v30, %v231_v30  ;;  %v7537_v30 = vld [vmem:[%s9540_s1 + $0x7b0] sm:$0xff]  }
  0x97   : > { %6731 = vmatpush3.bf16.msra.mxu0 %v7432_v34  ;;  %v5993_v34 = vcombine.low %v232_v31, %v232_v31 }
  0x98   : > { %6753 = vmatpush3.bf16.msra.mxu1 %v7433_v35  ;;  %6732 = vmatprep.subr.bf16.mxu0 %v7434_v36  ;;  %v5994_v35 = vcombine.high %v232_v31, %v232_v31  ;;  %v7494_v36 = vld [vmem:[%s9540_s1 + $0x678] sm:$0xff]   ;;  %v7538_v31 = vld [vmem:[%s9540_s1 + $0x768] sm:$0xff]  }
  0x99   : > { %6754 = vmatprep.subr.bf16.mxu1 %v7435_v37  ;;  %v7495_v37 = vld [vmem:[%s9540_s1 + $0x6f8] sm:$0xff]  }
  0x9b   : > { %6733 = vmatpush3.bf16.msra.mxu0 %v7436_v38  ;;  %v7496_v38 = vld [vmem:[%s9540_s1 + $0x638] sm:$0xff]  }
  0x9c   : > { %6755 = vmatpush3.bf16.msra.mxu1 %v7437_v39  ;;  %6734 = vmatprep.subr.bf16.mxu0 %v7438_v40  ;;  %v7497_v39 = vld [vmem:[%s9540_s1 + $0x6b8] sm:$0xff]   ;;  %v7498_v40 = vld [vmem:[%s9540_s1 + $0x670] sm:$0xff]  }
  0x9d   : > { %6756 = vmatprep.subr.bf16.mxu1 %v7439_v41  ;;  %v7499_v41 = vld [vmem:[%s9540_s1 + $0x6f0] sm:$0xff]  }
  0x9f   : > { %6735 = vmatpush3.bf16.msra.mxu0 %v7440_v42  ;;  %v7500_v42 = vld [vmem:[%s9540_s1 + $0x630] sm:$0xff]  }
  0xa0   : > { %6757 = vmatpush3.bf16.msra.mxu1 %v7441_v43  ;;  %6736 = vmatprep.subr.bf16.mxu0 %v7442_v44  ;;  %v7501_v43 = vld [vmem:[%s9540_s1 + $0x6b0] sm:$0xff]   ;;  %v7502_v44 = vld [vmem:[%s9540_s1 + $0x668] sm:$0xff]  }
  0xa1   : > { %6758 = vmatprep.subr.bf16.mxu1 %v7443_v45  ;;  %v7503_v45 = vld [vmem:[%s9540_s1 + $0x6e8] sm:$0xff]  }
  0xa3   : > { %6737 = vmatpush3.bf16.msra.mxu0 %v7444_v46  ;;  %v7504_v46 = vld [vmem:[%s9540_s1 + $0x628] sm:$0xff]  }
  0xa4   : > { %6759 = vmatpush3.bf16.msra.mxu1 %v7445_v47  ;;  %6738 = vmatprep.subr.bf16.mxu0 %v7446_v48  ;;  %v7505_v47 = vld [vmem:[%s9540_s1 + $0x6a8] sm:$0xff]   ;;  %v7506_v48 = vld [vmem:[%s9540_s1 + $0x660] sm:$0xff]  }
  0xa5   : > { %6760 = vmatprep.subr.bf16.mxu1 %v7447_v49  ;;  %v7507_v49 = vld [vmem:[%s9540_s1 + $0x6e0] sm:$0xff]  }
  0xa7   : > { %6739 = vmatpush3.bf16.msra.mxu0 %v7448_v50  ;;  %v7508_v50 = vld [vmem:[%s9540_s1 + $0x620] sm:$0xff]  }
  0xa8   : > { %6761 = vmatpush3.bf16.msra.mxu1 %v7449_v51  ;;  %6740 = vmatprep.subr.bf16.mxu0 %v7450_v52  ;;  %v7509_v51 = vld [vmem:[%s9540_s1 + $0x6a0] sm:$0xff]   ;;  %v7510_v52 = vld [vmem:[%s9540_s1 + $0x658] sm:$0xff]  }
  0xa9   : > { %6762 = vmatprep.subr.bf16.mxu1 %v7451_v53  ;;  %v7511_v53 = vld [vmem:[%s9540_s1 + $0x6d8] sm:$0xff]  }
  0xab   : > { %6741 = vmatpush3.bf16.msra.mxu0 %v7452_v54  ;;  %v7512_v54 = vld [vmem:[%s9540_s1 + $0x618] sm:$0xff]  }
  0xac   : > { %6763 = vmatpush3.bf16.msra.mxu1 %v7453_v55  ;;  %6770 = vmatprep.subr.bf16.mxu0 %v7458_v62  ;;  %v7513_v55 = vld [vmem:[%s9540_s1 + $0x698] sm:$0xff]   ;;  %v7520_v62 = vld [vmem:[%s9540_s1 + $0x608] sm:$0xff]  }
  0xad   : > { %6792 = vmatprep.subr.bf16.mxu1 %v7459_v63  ;;  %v7521_v63 = vld [vmem:[%s9540_s1 + $0x688] sm:$0xff]  }
  0xae   : > { %4933 = vmatmul.mubr.bf16.vlgmr.msra.gmra.mxu0 %v5987_v57  ;;  %v7515_v57 = vld [vmem:[%s9540_s1 + $0x6d0] sm:$0xff]  }
  0xaf   : > { %4973 = vmatmul.mubr.bf16.vlgmr.msra.gmra.mxu1 %v5989_v60  ;;  %6771 = vmatpush3.bf16.msra.mxu0 %v7460_v0  ;;  %v7518_v60 = vld [vmem:[%s9540_s1 + $0x648] sm:$0xff]   ;;  %v7522_v0 = vld [vmem:[%s9540_s1 + $0x640] sm:$0xff]  }
  0xb0   : > { %6793 = vmatpush3.bf16.msra.mxu1 %v7461_v1  ;;  %6772 = vmatprep.subr.bf16.mxu0 %v7462_v2  ;;  %v7523_v1 = vld [vmem:[%s9540_s1 + $0x6c0] sm:$0xff]  }
  0xb1   : > { %6794 = vmatprep.subr.bf16.mxu1 %v7463_v3  ;;  %5012 = vmatprep.mubr.bf16.mxu0 %v5992_v33  ;;  %v7524_v2 = vld [vmem:[%s9540_s1 + $0x600] sm:$0xff]   ;;  %v7540_v33 = vld [vmem:[%s9540_s1 + $0x728] sm:$0xff]  }
  0xb2   : > { %5052 = vmatprep.mubr.bf16.mxu1 %v5994_v35  ;;  %v7525_v3 = vld [vmem:[%s9540_s1 + $0x680] sm:$0xff]  }
  0xb3   : > { %6773 = vmatpush3.bf16.msra.mxu0 %v7464_v4  ;;  %v233_v4 = vld [vmem:[%s8016_s6 + $0x60] sm:$0xff] }
  0xb4   : > { %6795 = vmatpush3.bf16.msra.mxu1 %v7465_v5  ;;  %6774 = vmatprep.subr.bf16.mxu0 %v7466_v6  ;;  %v234_v5 = vld [vmem:[%s8016_s6 + $0x68] sm:$0xff]  ;;  %v7542_v35 = vld [vmem:[%s9540_s1 + $0x760] sm:$0xff]  }
  0xb5   : > { %6796 = vmatprep.subr.bf16.mxu1 %v7467_v7 }
  0xb7   : > { %6775 = vmatpush3.bf16.msra.mxu0 %v7468_v8  ;;  %v5995_v8 = vcombine.low %v233_v4, %v233_v4 }
  0xb8   : > { %6797 = vmatpush3.bf16.msra.mxu1 %v7469_v9  ;;  %6776 = vmatprep.subr.bf16.mxu0 %v7470_v10  ;;  %v5996_v9 = vcombine.high %v233_v4, %v233_v4  ;;  %v5997_v10 = vcombine.low %v234_v5, %v234_v5 }
  0xb9   : > { %6798 = vmatprep.subr.bf16.mxu1 %v7471_v11  ;;  %v7530_v11 = vld [vmem:[%s9540_s1 + $0x778] sm:$0xff]  }
  0xbb   : > { %6777 = vmatpush3.bf16.msra.mxu0 %v7472_v12  ;;  %v5998_v12 = vcombine.high %v234_v5, %v234_v5 }
  0xbc   : > { %6799 = vmatpush3.bf16.msra.mxu1 %v7473_v13  ;;  %6778 = vmatprep.subr.bf16.mxu0 %v7474_v14  ;;  %v7531_v13 = vld [vmem:[%s9540_s1 + $0x7f8] sm:$0xff]  }
  0xbd   : > { %6800 = vmatprep.subr.bf16.mxu1 %v7475_v15 }
  0xbf   : > { %6779 = vmatpush3.bf16.msra.mxu0 %v7476_v16  ;;  %v7532_v16 = vld [vmem:[%s9540_s1 + $0x738] sm:$0xff]  }
  0xc0   : > { %6801 = vmatpush3.bf16.msra.mxu1 %v7477_v17  ;;  %6780 = vmatprep.subr.bf16.mxu0 %v7478_v18 }
  0xc1   : > { %6802 = vmatprep.subr.bf16.mxu1 %v7479_v19  ;;  %v7533_v19 = vld [vmem:[%s9540_s1 + $0x7b8] sm:$0xff]  }
  0xc3   : > { %6781 = vmatpush3.bf16.msra.mxu0 %v7480_v20  ;;  %v5970_v20 = vld [vmem:[%s9541_s2] ss:$0 sm:$0xff] }
  0xc4   : > { %6803 = vmatpush3.bf16.msra.mxu1 %v7481_v21  ;;  %6782 = vmatprep.subr.bf16.mxu0 %v7482_v22 }
  0xc5   : > { %6804 = vmatprep.subr.bf16.mxu1 %v7483_v23 }
  0xc7   : > { %6783 = vmatpush3.bf16.msra.mxu0 %v7484_v24  ;;  %v7534_v24 = vld [vmem:[%s9540_s1 + $0x770] sm:$0xff]  }
  0xc8   : > { %6805 = vmatpush3.bf16.msra.mxu1 %v7485_v25  ;;  %6784 = vmatprep.subr.bf16.mxu0 %v7486_v26  ;;  %v7535_v25 = vld [vmem:[%s9540_s1 + $0x7f0] sm:$0xff]  }
  0xc9   : > { %6806 = vmatprep.subr.bf16.mxu1 %v7487_v27 }
  0xcb   : > { %6785 = vmatpush3.bf16.msra.mxu0 %v7488_v28 }
  0xcc   : > { %6807 = vmatpush3.bf16.msra.mxu1 %v7489_v29  ;;  %6814 = vmatprep.subr.bf16.mxu0 %v7494_v36  ;;  %v7536_v29 = vld [vmem:[%s9540_s1 + $0x730] sm:$0xff]   ;;  %v7543_v36 = vld [vmem:[%s9540_s1 + $0x7e0] sm:$0xff]  }
  0xcd   : > { %6836 = vmatprep.subr.bf16.mxu1 %v7495_v37  ;;  %v7544_v37 = vld [vmem:[%s9540_s1 + $0x720] sm:$0xff]  }
  0xce   : > { %5013 = vmatmul.mubr.bf16.vlgmr.msra.gmra.mxu0 %v5991_v32  ;;  %v7539_v32 = vld [vmem:[%s9540_s1 + $0x7e8] sm:$0xff]  }
  0xcf   : > { %5053 = vmatmul.mubr.bf16.vlgmr.msra.gmra.mxu1 %v5993_v34  ;;  %6815 = vmatpush3.bf16.msra.mxu0 %v7496_v38  ;;  %v7541_v34 = vld [vmem:[%s9540_s1 + $0x7a8] sm:$0xff]   ;;  %v7545_v38 = vld [vmem:[%s9540_s1 + $0x7a0] sm:$0xff]  }
  0xd0   : > { %6837 = vmatpush3.bf16.msra.mxu1 %v7497_v39  ;;  %6816 = vmatprep.subr.bf16.mxu0 %v7498_v40  ;;  %v7546_v39 = vld [vmem:[%s9540_s1 + $0x758] sm:$0xff]  }
  0xd1   : > { %6838 = vmatprep.subr.bf16.mxu1 %v7499_v41  ;;  %5092 = vmatprep.mubr.bf16.mxu0 %v5996_v9  ;;  %v7547_v40 = vld [vmem:[%s9540_s1 + $0x7d8] sm:$0xff]  }
  0xd2   : > { %5132 = vmatprep.mubr.bf16.mxu1 %v5998_v12  ;;  %v7548_v41 = vld [vmem:[%s9540_s1 + $0x718] sm:$0xff]  }
  0xd3   : > { %6817 = vmatpush3.bf16.msra.mxu0 %v7500_v42  ;;  %v7549_v42 = vld [vmem:[%s9540_s1 + $0x798] sm:$0xff]  }
  0xd4   : > { %6839 = vmatpush3.bf16.msra.mxu1 %v7501_v43  ;;  %6818 = vmatprep.subr.bf16.mxu0 %v7502_v44  ;;  %v7550_v43 = vld [vmem:[%s9540_s1 + $0x750] sm:$0xff]  }
  0xd5   : > { %6840 = vmatprep.subr.bf16.mxu1 %v7503_v45  ;;  %v7551_v44 = vld [vmem:[%s9540_s1 + $0x7d0] sm:$0xff]  }
  0xd6   : > { %v7552_v45 = vld [vmem:[%s9540_s1 + $0x710] sm:$0xff]  }
  0xd7   : > { %6819 = vmatpush3.bf16.msra.mxu0 %v7504_v46  ;;  %v7553_v46 = vld [vmem:[%s9540_s1 + $0x790] sm:$0xff]  }
  0xd8   : > { %6841 = vmatpush3.bf16.msra.mxu1 %v7505_v47  ;;  %6820 = vmatprep.subr.bf16.mxu0 %v7506_v48  ;;  %v7554_v47 = vld [vmem:[%s9540_s1 + $0x748] sm:$0xff]  }
  0xd9   : > { %6842 = vmatprep.subr.bf16.mxu1 %v7507_v49  ;;  %v7555_v48 = vld [vmem:[%s9540_s1 + $0x7c8] sm:$0xff]  }
  0xda   : > { %v7556_v49 = vld [vmem:[%s9540_s1 + $0x708] sm:$0xff]  }
  0xdb   : > { %6821 = vmatpush3.bf16.msra.mxu0 %v7508_v50  ;;  %v7557_v50 = vld [vmem:[%s9540_s1 + $0x788] sm:$0xff]  }
  0xdc   : > { %6843 = vmatpush3.bf16.msra.mxu1 %v7509_v51  ;;  %6822 = vmatprep.subr.bf16.mxu0 %v7510_v52  ;;  %v7558_v51 = vld [vmem:[%s9540_s1 + $0x740] sm:$0xff]  }
  0xdd   : > { %6844 = vmatprep.subr.bf16.mxu1 %v7511_v53  ;;  %v7559_v52 = vld [vmem:[%s9540_s1 + $0x7c0] sm:$0xff]  }
  0xde   : > { %v7560_v53 = vld [vmem:[%s9540_s1 + $0x700] sm:$0xff]  }
  0xdf   : > { %6823 = vmatpush3.bf16.msra.mxu0 %v7512_v54  ;;  %v7561_v54 = vld [vmem:[%s9540_s1 + $0x780] sm:$0xff]  }
  0xe0   : > { %6845 = vmatpush3.bf16.msra.mxu1 %v7513_v55  ;;  %6824 = vmatprep.subr.bf16.mxu0 %v7514_v56  ;;  %v235_v55 = vld [vmem:[%s8016_s6 + $0x70] sm:$0xff]  ;;  %v236_v56 = vld [vmem:[%s8016_s6 + $0x78] sm:$0xff] }
  0xe1   : > { %6846 = vmatprep.subr.bf16.mxu1 %v7515_v57 }
  0xe3   : > { %6825 = vmatpush3.bf16.msra.mxu0 %v7516_v58 }
  0xe4   : > { %6847 = vmatpush3.bf16.msra.mxu1 %v7517_v59  ;;  %6826 = vmatprep.subr.bf16.mxu0 %v7518_v60  ;;  %v5999_v59 = vcombine.low %v235_v55, %v235_v55  ;;  %v6000_v60 = vcombine.high %v235_v55, %v235_v55 }
  0xe5   : > { %6848 = vmatprep.subr.bf16.mxu1 %v7519_v61  ;;  %v6001_v61 = vcombine.low %v236_v56, %v236_v56 }
  0xe7   : > { %6827 = vmatpush3.bf16.msra.mxu0 %v7520_v62  ;;  %v7566_v62 = vld [vmem:[%s9540_s1 + $0x878] sm:$0xff]  }
  0xe8   : > { %6849 = vmatpush3.bf16.msra.mxu1 %v7521_v63  ;;  %6828 = vmatprep.subr.bf16.mxu0 %v7522_v0  ;;  %v6002_v63 = vcombine.high %v236_v56, %v236_v56  ;;  %v7567_v0 = vld [vmem:[%s9540_s1 + $0x8f8] sm:$0xff]  }
  0xe9   : > { %6850 = vmatprep.subr.bf16.mxu1 %v7523_v1 }
  0xeb   : > { %6829 = vmatpush3.bf16.msra.mxu0 %v7524_v2 }
  0xec   : > { %6851 = vmatpush3.bf16.msra.mxu1 %v7525_v3  ;;  %6858 = vmatprep.subr.bf16.mxu0 %v7530_v11  ;;  %v7568_v3 = vld [vmem:[%s9540_s1 + $0x838] sm:$0xff]   ;;  %v7571_v11 = vld [vmem:[%s9540_s1 + $0x8f0] sm:$0xff]  }
  0xed   : > { %6880 = vmatprep.subr.bf16.mxu1 %v7531_v13 }
  0xee   : > { %v6566_v6 = vpop.f32.mrf.mxu0  ;;  %5093 = vmatmul.mubr.bf16.vlgmr.msra.gmra.mxu0 %v5995_v8 }
  0xef   : > { %v6588_v7 = vpop.f32.mrf.mxu1  ;;  %5133 = vmatmul.mubr.bf16.vlgmr.msra.gmra.mxu1 %v5997_v10  ;;  %6859 = vmatpush3.bf16.msra.mxu0 %v7532_v16  ;;  %v7570_v10 = vld [vmem:[%s9540_s1 + $0x870] sm:$0xff]  }
  0xf0   : > { %v6567_v14 = vpop.f32.mrf.mxu0  ;;  %6881 = vmatpush3.bf16.msra.mxu1 %v7533_v19  ;;  %6860 = vmatprep.subr.bf16.mxu0 %v7534_v24  ;;  %v7573_v16 = vld [vmem:[%s9540_s1 + $0x8b0] sm:$0xff]   ;;  %v7576_v19 = vld [vmem:[%s9540_s1 + $0x828] sm:$0xff]   ;;  %v7581_v24 = vld [vmem:[%s9540_s1 + $0x8a0] sm:$0xff]  }
  0xf1   : > { %v6589_v15 = vpop.f32.mrf.mxu1  ;;  %v6568_v17 = vadd.f32 %v6567_v14, %v6566_v6  ;;  %6882 = vmatprep.subr.bf16.mxu1 %v7535_v25  ;;  %5172 = vmatprep.mubr.bf16.mxu0 %v6000_v60  ;;  %v7569_v6 = vld [vmem:[%s9540_s1 + $0x8b8] sm:$0xff]   ;;  %v7606_v60 = vld [vmem:[%s9540_s1 + $0x970] sm:$0xff]  }
  0xf2   : > { %v6590_v18 = vadd.f32 %v6589_v15, %v6588_v7  ;;  %v6569_v21 = vpop.f32.mrf.mxu0  ;;  %5212 = vmatprep.mubr.bf16.mxu1 %v6002_v63  ;;  %v7572_v15 = vld [vmem:[%s9540_s1 + $0x830] sm:$0xff]   ;;  %v7582_v25 = vld [vmem:[%s9540_s1 + $0x858] sm:$0xff]  }
  0xf3   : > { %v6591_v22 = vpop.f32.mrf.mxu1  ;;  %v4615_v23 = vadd.f32 %v6568_v17, %v5970_v20  ;;  %6861 = vmatpush3.bf16.msra.mxu0 %v7536_v29  ;;  %v7574_v17 = vld [vmem:[%s9540_s1 + $0x868] sm:$0xff]   ;;  %v7578_v21 = vld [vmem:[%s9540_s1 + $0x860] sm:$0xff]   ;;  %v7586_v29 = vld [vmem:[%s9540_s1 + $0x850] sm:$0xff]  }
  0xf4   : > { %v6570_v26 = vpop.f32.mrf.mxu0  ;;  %6883 = vmatpush3.bf16.msra.mxu1 %v7537_v30  ;;  %6862 = vmatprep.subr.bf16.mxu0 %v7538_v31  ;;  %v7577_v20 = vld [vmem:[%s9540_s1 + $0x8a8] sm:$0xff]   ;;  %v7579_v22 = vld [vmem:[%s9540_s1 + $0x8e0] sm:$0xff]   ;;  %v7587_v30 = vld [vmem:[%s9540_s1 + $0x8d0] sm:$0xff]  }
  0xf5   : > { %v6592_v27 = vpop.f32.mrf.mxu1  ;;  %v8635_v28 = vadd.f32 %v6590_v18, %v4615_v23  ;;  %6884 = vmatprep.subr.bf16.mxu1 %v7539_v32  ;;  %v7575_v18 = vld [vmem:[%s9540_s1 + $0x8e8] sm:$0xff]   ;;  %v7580_v23 = vld [vmem:[%s9540_s1 + $0x820] sm:$0xff]   ;;  %v7583_v26 = vld [vmem:[%s9540_s1 + $0x8d8] sm:$0xff]  }
  0xf6   : > { %v7584_v27 = vld [vmem:[%s9540_s1 + $0x818] sm:$0xff]   ;;  %v7588_v31 = vld [vmem:[%s9540_s1 + $0x810] sm:$0xff]  }
  0xf7   : > { %6863 = vmatpush3.bf16.msra.mxu0 %v7540_v33  ;;  %v7589_v32 = vld [vmem:[%s9540_s1 + $0x890] sm:$0xff]   ;;  %v7590_v33 = vld [vmem:[%s9540_s1 + $0x848] sm:$0xff]  }
  0xf8   : > { %6885 = vmatpush3.bf16.msra.mxu1 %v7541_v34  ;;  %6864 = vmatprep.subr.bf16.mxu0 %v7542_v35  ;;  %v7591_v34 = vld [vmem:[%s9540_s1 + $0x8c8] sm:$0xff]   ;;  %v7607_v63 = vld [vmem:[%s9540_s1 + $0x9f0] sm:$0xff]  }
  0xf9   : > { %6886 = vmatprep.subr.bf16.mxu1 %v7543_v36  ;;  %v7592_v35 = vld [vmem:[%s9540_s1 + $0x808] sm:$0xff]  }
  0xfa   : > { %v7593_v36 = vld [vmem:[%s9540_s1 + $0x888] sm:$0xff]  }
  0xfb   : > { %6865 = vmatpush3.bf16.msra.mxu0 %v7544_v37  ;;  %v7594_v37 = vld [vmem:[%s9540_s1 + $0x840] sm:$0xff]  }
  0xfc   : > { %6887 = vmatpush3.bf16.msra.mxu1 %v7545_v38  ;;  %6866 = vmatprep.subr.bf16.mxu0 %v7546_v39  ;;  %v7595_v38 = vld [vmem:[%s9540_s1 + $0x8c0] sm:$0xff]  }
  0xfd   : > { %6888 = vmatprep.subr.bf16.mxu1 %v7547_v40  ;;  %v7596_v39 = vld [vmem:[%s9540_s1 + $0x800] sm:$0xff]  }
  0xfe   : > { %v7597_v40 = vld [vmem:[%s9540_s1 + $0x880] sm:$0xff]  }
  0xff   : > { %6867 = vmatpush3.bf16.msra.mxu0 %v7548_v41  ;;  %v237_v41 = vld [vmem:[%s8016_s6 + $0x80] sm:$0xff] }
 0x100   : > { %6889 = vmatpush3.bf16.msra.mxu1 %v7549_v42  ;;  %6868 = vmatprep.subr.bf16.mxu0 %v7550_v43  ;;  %v6003_v43 = vcombine.low %v237_v41, %v237_v41 }
 0x101   : > { %6890 = vmatprep.subr.bf16.mxu1 %v7551_v44  ;;  %v6004_v44 = vcombine.high %v237_v41, %v237_v41  ;;  %v7641_v41 = vld [vmem:[%s9540_s1 + $0xab8] sm:$0xff]  }
 0x103   : > { %6869 = vmatpush3.bf16.msra.mxu0 %v7552_v45  ;;  %v238_v45 = vld [vmem:[%s8016_s6 + $0x88] sm:$0xff] }
 0x104   : > { %6891 = vmatpush3.bf16.msra.mxu1 %v7553_v46  ;;  %6870 = vmatprep.subr.bf16.mxu0 %v7554_v47  ;;  %v6005_v47 = vcombine.low %v238_v45, %v238_v45 }
 0x105   : > { %6892 = vmatprep.subr.bf16.mxu1 %v7555_v48  ;;  %v6006_v48 = vcombine.high %v238_v45, %v238_v45 }
 0x107   : > { %6871 = vmatpush3.bf16.msra.mxu0 %v7556_v49  ;;  %v7602_v49 = vld [vmem:[%s9540_s1 + $0x978] sm:$0xff]  }
 0x108   : > { %6893 = vmatpush3.bf16.msra.mxu1 %v7557_v50  ;;  %6872 = vmatprep.subr.bf16.mxu0 %v7558_v51  ;;  %v7603_v51 = vld [vmem:[%s9540_s1 + $0x9f8] sm:$0xff]  }
 0x109   : > { %6894 = vmatprep.subr.bf16.mxu1 %v7559_v52 }
 0x10b   : > { %6873 = vmatpush3.bf16.msra.mxu0 %v7560_v53 }
 0x10c   : > { %6895 = vmatpush3.bf16.msra.mxu1 %v7561_v54  ;;  %6902 = vmatprep.subr.bf16.mxu0 %v7566_v62  ;;  %v7604_v54 = vld [vmem:[%s9540_s1 + $0x938] sm:$0xff]  }
 0x10d   : > { %6924 = vmatprep.subr.bf16.mxu1 %v7567_v0 }
 0x10e   : > { %v6610_v57 = vpop.f32.mrf.mxu0  ;;  %5173 = vmatmul.mubr.bf16.vlgmr.msra.gmra.mxu0 %v5999_v59 }
 0x10f   : > { %v6632_v58 = vpop.f32.mrf.mxu1  ;;  %5213 = vmatmul.mubr.bf16.vlgmr.msra.gmra.mxu1 %v6001_v61  ;;  %6903 = vmatpush3.bf16.msra.mxu0 %v7568_v3  ;;  %v7610_v3 = vld [vmem:[%s9540_s1 + $0x968] sm:$0xff]  }
 0x110   : > { %v6611_v1 = vpop.f32.mrf.mxu0  ;;  %6925 = vmatpush3.bf16.msra.mxu1 %v7569_v6  ;;  %6904 = vmatprep.subr.bf16.mxu0 %v7570_v10  ;;  %v7613_v6 = vld [vmem:[%s9540_s1 + $0x9a8] sm:$0xff]   ;;  %v7617_v10 = vld [vmem:[%s9540_s1 + $0x9a0] sm:$0xff]  }
 0x111   : > { %v6633_v2 = vpop.f32.mrf.mxu1  ;;  %v6612_v4 = vadd.f32 %v6611_v1, %v6610_v57  ;;  %6926 = vmatprep.subr.bf16.mxu1 %v7571_v11  ;;  %5252 = vmatprep.mubr.bf16.mxu0 %v6004_v44  ;;  %v7605_v57 = vld [vmem:[%s9540_s1 + $0x9b8] sm:$0xff]   ;;  %v7608_v1 = vld [vmem:[%s9540_s1 + $0x930] sm:$0xff]  }
 0x112   : > { %v6634_v5 = vadd.f32 %v6633_v2, %v6632_v58  ;;  %v6613_v7 = vpop.f32.mrf.mxu0  ;;  %5292 = vmatprep.mubr.bf16.mxu1 %v6006_v48  ;;  %v7609_v2 = vld [vmem:[%s9540_s1 + $0x9b0] sm:$0xff]   ;;  %v7618_v11 = vld [vmem:[%s9540_s1 + $0x958] sm:$0xff]  }
 0x113   : > { %v6635_v8 = vpop.f32.mrf.mxu1  ;;  %v4695_v9 = vadd.f32 %v6612_v4, %v8635_v28  ;;  %6905 = vmatpush3.bf16.msra.mxu0 %v7572_v15  ;;  %v7585_v28 = vld [vmem:[%s9540_s1 + $0x898] sm:$0xff]   ;;  %v7611_v4 = vld [vmem:[%s9540_s1 + $0x9e8] sm:$0xff]   ;;  %v7614_v7 = vld [vmem:[%s9540_s1 + $0x960] sm:$0xff]  }
 0x114   : > { %v6614_v12 = vpop.f32.mrf.mxu0  ;;  %6927 = vmatpush3.bf16.msra.mxu1 %v7573_v16  ;;  %6906 = vmatprep.subr.bf16.mxu0 %v7574_v17  ;;  %v7615_v8 = vld [vmem:[%s9540_s1 + $0x9e0] sm:$0xff]   ;;  %v7622_v15 = vld [vmem:[%s9540_s1 + $0x950] sm:$0xff]  }
 0x115   : > { %v6636_v13 = vpop.f32.mrf.mxu1  ;;  %v8736_v14 = vadd.f32 %v6634_v5, %v4695_v9  ;;  %6928 = vmatprep.subr.bf16.mxu1 %v7575_v18  ;;  %v7612_v5 = vld [vmem:[%s9540_s1 + $0x928] sm:$0xff]   ;;  %v7616_v9 = vld [vmem:[%s9540_s1 + $0x920] sm:$0xff]   ;;  %v7619_v12 = vld [vmem:[%s9540_s1 + $0x9d8] sm:$0xff]  }
 0x116   : > { %v7620_v13 = vld [vmem:[%s9540_s1 + $0x918] sm:$0xff]   ;;  %v7623_v16 = vld [vmem:[%s9540_s1 + $0x9d0] sm:$0xff]  }
 0x117   : > { %6907 = vmatpush3.bf16.msra.mxu0 %v7576_v19  ;;  %v7624_v17 = vld [vmem:[%s9540_s1 + $0x910] sm:$0xff]   ;;  %v7626_v19 = vld [vmem:[%s9540_s1 + $0x948] sm:$0xff]  }
 0x118   : > { %6929 = vmatpush3.bf16.msra.mxu1 %v7577_v20  ;;  %6908 = vmatprep.subr.bf16.mxu0 %v7578_v21  ;;  %v7625_v18 = vld [vmem:[%s9540_s1 + $0x990] sm:$0xff]   ;;  %v7627_v20 = vld [vmem:[%s9540_s1 + $0x9c8] sm:$0xff]  }
 0x119   : > { %6930 = vmatprep.subr.bf16.mxu1 %v7579_v22  ;;  %v7628_v21 = vld [vmem:[%s9540_s1 + $0x908] sm:$0xff]  }
 0x11a   : > { %v7629_v22 = vld [vmem:[%s9540_s1 + $0x988] sm:$0xff]  }
 0x11b   : > { %6909 = vmatpush3.bf16.msra.mxu0 %v7580_v23  ;;  %v7630_v23 = vld [vmem:[%s9540_s1 + $0x940] sm:$0xff]  }
 0x11c   : > { %6931 = vmatpush3.bf16.msra.mxu1 %v7581_v24  ;;  %6910 = vmatprep.subr.bf16.mxu0 %v7582_v25  ;;  %v7631_v24 = vld [vmem:[%s9540_s1 + $0x9c0] sm:$0xff]  }
 0x11d   : > { %6932 = vmatprep.subr.bf16.mxu1 %v7583_v26  ;;  %v7632_v25 = vld [vmem:[%s9540_s1 + $0x900] sm:$0xff]  }
 0x11e   : > { %v7633_v26 = vld [vmem:[%s9540_s1 + $0x980] sm:$0xff]  }
 0x11f   : > { %6911 = vmatpush3.bf16.msra.mxu0 %v7584_v27  ;;  %v239_v27 = vld [vmem:[%s8016_s6 + $0x90] sm:$0xff] }
 0x120   : > { %6933 = vmatpush3.bf16.msra.mxu1 %v7585_v28  ;;  %6912 = vmatprep.subr.bf16.mxu0 %v7586_v29  ;;  %v240_v28 = vld [vmem:[%s8016_s6 + $0x98] sm:$0xff] }
 0x121   : > { %6934 = vmatprep.subr.bf16.mxu1 %v7587_v30  ;;  %v6007_v30 = vcombine.low %v239_v27, %v239_v27 }
 0x123   : > { %6913 = vmatpush3.bf16.msra.mxu0 %v7588_v31  ;;  %v6008_v31 = vcombine.high %v239_v27, %v239_v27 }
 0x124   : > { %6935 = vmatpush3.bf16.msra.mxu1 %v7589_v32  ;;  %6914 = vmatprep.subr.bf16.mxu0 %v7590_v33  ;;  %v6009_v32 = vcombine.low %v240_v28, %v240_v28  ;;  %v6010_v33 = vcombine.high %v240_v28, %v240_v28  ;;  %v7677_v28 = vld [vmem:[%s9540_s1 + $0xbb8] sm:$0xff]  }
 0x125   : > { %6936 = vmatprep.subr.bf16.mxu1 %v7591_v34 }
 0x127   : > { %6915 = vmatpush3.bf16.msra.mxu0 %v7592_v35  ;;  %v7638_v35 = vld [vmem:[%s9540_s1 + $0xa78] sm:$0xff]  }
 0x128   : > { %6937 = vmatpush3.bf16.msra.mxu1 %v7593_v36  ;;  %6916 = vmatprep.subr.bf16.mxu0 %v7594_v37  ;;  %v7639_v36 = vld [vmem:[%s9540_s1 + $0xaf8] sm:$0xff]  }
 0x129   : > { %6938 = vmatprep.subr.bf16.mxu1 %v7595_v38  ;;  %v7640_v38 = vld [vmem:[%s9540_s1 + $0xa38] sm:$0xff]  }
 0x12b   : > { %6917 = vmatpush3.bf16.msra.mxu0 %v7596_v39 }
 0x12c   : > { %6939 = vmatpush3.bf16.msra.mxu1 %v7597_v40  ;;  %6946 = vmatprep.subr.bf16.mxu0 %v7602_v49 }
 0x12d   : > { %6968 = vmatprep.subr.bf16.mxu1 %v7603_v51 }
 0x12e   : > { %v6654_v42 = vpop.f32.mrf.mxu0  ;;  %5253 = vmatmul.mubr.bf16.vlgmr.msra.gmra.mxu0 %v6003_v43 }
 0x12f   : > { %v6676_v46 = vpop.f32.mrf.mxu1  ;;  %5293 = vmatmul.mubr.bf16.vlgmr.msra.gmra.mxu1 %v6005_v47  ;;  %6947 = vmatpush3.bf16.msra.mxu0 %v7604_v54  ;;  %v7643_v47 = vld [vmem:[%s9540_s1 + $0xaf0] sm:$0xff]   ;;  %v7647_v54 = vld [vmem:[%s9540_s1 + $0xae8] sm:$0xff]  }
 0x130   : > { %v6655_v50 = vpop.f32.mrf.mxu0  ;;  %6969 = vmatpush3.bf16.msra.mxu1 %v7605_v57  ;;  %6948 = vmatprep.subr.bf16.mxu0 %v7606_v60  ;;  %v7650_v57 = vld [vmem:[%s9540_s1 + $0xa60] sm:$0xff]  }
 0x131   : > { %v6656_v52 = vadd.f32 %v6655_v50, %v6654_v42  ;;  %v6677_v53 = vpop.f32.mrf.mxu1  ;;  %6970 = vmatprep.subr.bf16.mxu1 %v7607_v63  ;;  %5332 = vmatprep.mubr.bf16.mxu0 %v6008_v31  ;;  %v7644_v50 = vld [vmem:[%s9540_s1 + $0xa30] sm:$0xff]   ;;  %v7653_v60 = vld [vmem:[%s9540_s1 + $0xaa0] sm:$0xff]   ;;  %v7656_v63 = vld [vmem:[%s9540_s1 + $0xa18] sm:$0xff]  }
 0x132   : > { %v6678_v55 = vadd.f32 %v6677_v53, %v6676_v46  ;;  %v6657_v56 = vpop.f32.mrf.mxu0  ;;  %5372 = vmatprep.mubr.bf16.mxu1 %v6010_v33  ;;  %v7642_v46 = vld [vmem:[%s9540_s1 + $0xa70] sm:$0xff]   ;;  %v7646_v53 = vld [vmem:[%s9540_s1 + $0xa68] sm:$0xff]  }
 0x133   : > { %v4775_v58 = vadd.f32 %v6656_v52, %v8736_v14  ;;  %v6679_v59 = vpop.f32.mrf.mxu1  ;;  %6949 = vmatpush3.bf16.msra.mxu0 %v7608_v1  ;;  %v7621_v14 = vld [vmem:[%s9540_s1 + $0x998] sm:$0xff]   ;;  %v7645_v52 = vld [vmem:[%s9540_s1 + $0xab0] sm:$0xff]   ;;  %v7649_v56 = vld [vmem:[%s9540_s1 + $0xaa8] sm:$0xff]  }
 0x134   : > { %v6658_v61 = vpop.f32.mrf.mxu0  ;;  %6971 = vmatpush3.bf16.msra.mxu1 %v7609_v2  ;;  %6950 = vmatprep.subr.bf16.mxu0 %v7610_v3  ;;  %v7652_v59 = vld [vmem:[%s9540_s1 + $0xa20] sm:$0xff]   ;;  %v7658_v1 = vld [vmem:[%s9540_s1 + $0xa50] sm:$0xff]  }
 0x135   : > { %v8834_v62 = vadd.f32 %v6678_v55, %v4775_v58  ;;  %v6680_v0 = vpop.f32.mrf.mxu1  ;;  %6972 = vmatprep.subr.bf16.mxu1 %v7611_v4  ;;  %v7648_v55 = vld [vmem:[%s9540_s1 + $0xa28] sm:$0xff]   ;;  %v7651_v58 = vld [vmem:[%s9540_s1 + $0xae0] sm:$0xff]   ;;  %v7654_v61 = vld [vmem:[%s9540_s1 + $0xa58] sm:$0xff]  }
 0x136   : > { %v7657_v0 = vld [vmem:[%s9540_s1 + $0xa98] sm:$0xff]   ;;  %v7659_v2 = vld [vmem:[%s9540_s1 + $0xad0] sm:$0xff]  }
 0x137   : > { %6951 = vmatpush3.bf16.msra.mxu0 %v7612_v5  ;;  %v7660_v3 = vld [vmem:[%s9540_s1 + $0xa10] sm:$0xff]   ;;  %v7662_v5 = vld [vmem:[%s9540_s1 + $0xa48] sm:$0xff]  }
 0x138   : > { %6973 = vmatpush3.bf16.msra.mxu1 %v7613_v6  ;;  %6952 = vmatprep.subr.bf16.mxu0 %v7614_v7  ;;  %v7661_v4 = vld [vmem:[%s9540_s1 + $0xa90] sm:$0xff]   ;;  %v7663_v6 = vld [vmem:[%s9540_s1 + $0xac8] sm:$0xff]  }
 0x139   : > { %6974 = vmatprep.subr.bf16.mxu1 %v7615_v8  ;;  %v7664_v7 = vld [vmem:[%s9540_s1 + $0xa08] sm:$0xff]   ;;  %v7679_v33 = vld [vmem:[%s9540_s1 + $0xbf0] sm:$0xff]  }
 0x13a   : > { %v7665_v8 = vld [vmem:[%s9540_s1 + $0xa88] sm:$0xff]  }
 0x13b   : > { %6953 = vmatpush3.bf16.msra.mxu0 %v7616_v9  ;;  %v7666_v9 = vld [vmem:[%s9540_s1 + $0xa40] sm:$0xff]  }
 0x13c   : > { %6975 = vmatpush3.bf16.msra.mxu1 %v7617_v10  ;;  %6954 = vmatprep.subr.bf16.mxu0 %v7618_v11  ;;  %v7667_v10 = vld [vmem:[%s9540_s1 + $0xac0] sm:$0xff]  }
 0x13d   : > { %6976 = vmatprep.subr.bf16.mxu1 %v7619_v12  ;;  %v7668_v11 = vld [vmem:[%s9540_s1 + $0xa00] sm:$0xff]  }
 0x13e   : > { %v7669_v12 = vld [vmem:[%s9540_s1 + $0xa80] sm:$0xff]  }
 0x13f   : > { %6955 = vmatpush3.bf16.msra.mxu0 %v7620_v13  ;;  %v241_v13 = vld [vmem:[%s8016_s6 + $0xa0] sm:$0xff] }
 0x140   : > { %6977 = vmatpush3.bf16.msra.mxu1 %v7621_v14  ;;  %6956 = vmatprep.subr.bf16.mxu0 %v7622_v15  ;;  %v242_v14 = vld [vmem:[%s8016_s6 + $0xa8] sm:$0xff] }
 0x141   : > { %6978 = vmatprep.subr.bf16.mxu1 %v7623_v16 }
 0x143   : > { %6957 = vmatpush3.bf16.msra.mxu0 %v7624_v17  ;;  %v6011_v17 = vcombine.low %v241_v13, %v241_v13 }
 0x144   : > { %6979 = vmatpush3.bf16.msra.mxu1 %v7625_v18  ;;  %6958 = vmatprep.subr.bf16.mxu0 %v7626_v19  ;;  %v6012_v18 = vcombine.high %v241_v13, %v241_v13  ;;  %v6013_v19 = vcombine.low %v242_v14, %v242_v14 }
 0x145   : > { %6980 = vmatprep.subr.bf16.mxu1 %v7627_v20  ;;  %v7674_v20 = vld [vmem:[%s9540_s1 + $0xb78] sm:$0xff]  }
 0x147   : > { %6959 = vmatpush3.bf16.msra.mxu0 %v7628_v21  ;;  %v6014_v21 = vcombine.high %v242_v14, %v242_v14 }
 0x148   : > { %6981 = vmatpush3.bf16.msra.mxu1 %v7629_v22  ;;  %6960 = vmatprep.subr.bf16.mxu0 %v7630_v23  ;;  %v7675_v22 = vld [vmem:[%s9540_s1 + $0xbf8] sm:$0xff]  }
 0x149   : > { %6982 = vmatprep.subr.bf16.mxu1 %v7631_v24 }
 0x14b   : > { %6961 = vmatpush3.bf16.msra.mxu0 %v7632_v25  ;;  %v7676_v25 = vld [vmem:[%s9540_s1 + $0xb38] sm:$0xff]  }
 0x14c   : > { %6983 = vmatpush3.bf16.msra.mxu1 %v7633_v26  ;;  %6990 = vmatprep.subr.bf16.mxu0 %v7638_v35 }
 0x14d   : > { %7012 = vmatprep.subr.bf16.mxu1 %v7639_v36 }
 0x14e   : > { %v6698_v29 = vpop.f32.mrf.mxu0  ;;  %5333 = vmatmul.mubr.bf16.vlgmr.msra.gmra.mxu0 %v6007_v30 }
 0x14f   : > { %v6720_v34 = vpop.f32.mrf.mxu1  ;;  %5373 = vmatmul.mubr.bf16.vlgmr.msra.gmra.mxu1 %v6009_v32  ;;  %6991 = vmatpush3.bf16.msra.mxu0 %v7640_v38  ;;  %v7678_v32 = vld [vmem:[%s9540_s1 + $0xb70] sm:$0xff]  }
 0x150   : > { %v6699_v37 = vpop.f32.mrf.mxu0  ;;  %7013 = vmatpush3.bf16.msra.mxu1 %v7641_v41  ;;  %6992 = vmatprep.subr.bf16.mxu0 %v7642_v46  ;;  %v7681_v38 = vld [vmem:[%s9540_s1 + $0xbb0] sm:$0xff]   ;;  %v7684_v41 = vld [vmem:[%s9540_s1 + $0xb28] sm:$0xff]   ;;  %v7689_v46 = vld [vmem:[%s9540_s1 + $0xba0] sm:$0xff]  }
 0x151   : > { %v6700_v39 = vadd.f32 %v6699_v37, %v6698_v29  ;;  %v6721_v40 = vpop.f32.mrf.mxu1  ;;  %7014 = vmatprep.subr.bf16.mxu1 %v7643_v47  ;;  %5412 = vmatprep.mubr.bf16.mxu0 %v6012_v18  ;;  %v7680_v37 = vld [vmem:[%s9540_s1 + $0xb30] sm:$0xff]   ;;  %v7690_v47 = vld [vmem:[%s9540_s1 + $0xb58] sm:$0xff]  }
 0x152   : > { %v6722_v42 = vadd.f32 %v6721_v40, %v6720_v34  ;;  %v6701_v43 = vpop.f32.mrf.mxu0  ;;  %5452 = vmatprep.mubr.bf16.mxu1 %v6014_v21  ;;  %v7683_v40 = vld [vmem:[%s9540_s1 + $0xbe8] sm:$0xff]   ;;  %v7714_v18 = vld [vmem:[%s9540_s1 + $0xc70] sm:$0xff]  }
 0x153   : > { %v4855_v44 = vadd.f32 %v6700_v39, %v8834_v62  ;;  %v6723_v45 = vpop.f32.mrf.mxu1  ;;  %6993 = vmatpush3.bf16.msra.mxu0 %v7644_v50  ;;  %v7655_v62 = vld [vmem:[%s9540_s1 + $0xad8] sm:$0xff]   ;;  %v7682_v39 = vld [vmem:[%s9540_s1 + $0xb68] sm:$0xff]   ;;  %v7686_v43 = vld [vmem:[%s9540_s1 + $0xb60] sm:$0xff]  }
 0x154   : > { %v6702_v48 = vpop.f32.mrf.mxu0  ;;  %7015 = vmatpush3.bf16.msra.mxu1 %v7645_v52  ;;  %6994 = vmatprep.subr.bf16.mxu0 %v7646_v53  ;;  %v7688_v45 = vld [vmem:[%s9540_s1 + $0xb20] sm:$0xff]   ;;  %v7693_v50 = vld [vmem:[%s9540_s1 + $0xb98] sm:$0xff]   ;;  %v7695_v52 = vld [vmem:[%s9540_s1 + $0xbd0] sm:$0xff]  }
 0x155   : > { %v8938_v49 = vadd.f32 %v6722_v42, %v4855_v44  ;;  %v6724_v51 = vpop.f32.mrf.mxu1  ;;  %7016 = vmatprep.subr.bf16.mxu1 %v7647_v54  ;;  %v7685_v42 = vld [vmem:[%s9540_s1 + $0xba8] sm:$0xff]   ;;  %v7687_v44 = vld [vmem:[%s9540_s1 + $0xbe0] sm:$0xff]   ;;  %v7691_v48 = vld [vmem:[%s9540_s1 + $0xbd8] sm:$0xff]  }
 0x156   : > { %v7694_v51 = vld [vmem:[%s9540_s1 + $0xb50] sm:$0xff]  }
 0x157   : > { %6995 = vmatpush3.bf16.msra.mxu0 %v7648_v55  ;;  %v7696_v53 = vld [vmem:[%s9540_s1 + $0xb10] sm:$0xff]   ;;  %v7698_v55 = vld [vmem:[%s9540_s1 + $0xb48] sm:$0xff]  }
 0x158   : > { %7017 = vmatpush3.bf16.msra.mxu1 %v7649_v56  ;;  %6996 = vmatprep.subr.bf16.mxu0 %v7650_v57  ;;  %v7697_v54 = vld [vmem:[%s9540_s1 + $0xb90] sm:$0xff]   ;;  %v7699_v56 = vld [vmem:[%s9540_s1 + $0xbc8] sm:$0xff]  }
 0x159   : > { %7018 = vmatprep.subr.bf16.mxu1 %v7651_v58  ;;  %v7700_v57 = vld [vmem:[%s9540_s1 + $0xb08] sm:$0xff]   ;;  %v7715_v21 = vld [vmem:[%s9540_s1 + $0xcf0] sm:$0xff]  }
 0x15a   : > { %v7701_v58 = vld [vmem:[%s9540_s1 + $0xb88] sm:$0xff]  }
 0x15b   : > { %6997 = vmatpush3.bf16.msra.mxu0 %v7652_v59  ;;  %v7702_v59 = vld [vmem:[%s9540_s1 + $0xb40] sm:$0xff]  }
 0x15c   : > { %7019 = vmatpush3.bf16.msra.mxu1 %v7653_v60  ;;  %6998 = vmatprep.subr.bf16.mxu0 %v7654_v61  ;;  %v7703_v60 = vld [vmem:[%s9540_s1 + $0xbc0] sm:$0xff]  }
 0x15d   : > { %7020 = vmatprep.subr.bf16.mxu1 %v7655_v62  ;;  %v7704_v61 = vld [vmem:[%s9540_s1 + $0xb00] sm:$0xff]  }
 0x15e   : > { %v7705_v62 = vld [vmem:[%s9540_s1 + $0xb80] sm:$0xff]  }
 0x15f   : > { %6999 = vmatpush3.bf16.msra.mxu0 %v7656_v63  ;;  %v243_v63 = vld [vmem:[%s8016_s6 + $0xb0] sm:$0xff] }
 0x160   : > { %7021 = vmatpush3.bf16.msra.mxu1 %v7657_v0  ;;  %7000 = vmatprep.subr.bf16.mxu0 %v7658_v1  ;;  %v6015_v1 = vcombine.low %v243_v63, %v243_v63 }
 0x161   : > { %7022 = vmatprep.subr.bf16.mxu1 %v7659_v2  ;;  %v6016_v2 = vcombine.high %v243_v63, %v243_v63  ;;  %v7749_v63 = vld [vmem:[%s9540_s1 + $0xdb8] sm:$0xff]  }
 0x163   : > { %7001 = vmatpush3.bf16.msra.mxu0 %v7660_v3  ;;  %v244_v3 = vld [vmem:[%s8016_s6 + $0xb8] sm:$0xff] }
 0x164   : > { %7023 = vmatpush3.bf16.msra.mxu1 %v7661_v4  ;;  %7002 = vmatprep.subr.bf16.mxu0 %v7662_v5  ;;  %v6017_v5 = vcombine.low %v244_v3, %v244_v3 }
 0x165   : > { %7024 = vmatprep.subr.bf16.mxu1 %v7663_v6  ;;  %v6018_v6 = vcombine.high %v244_v3, %v244_v3 }
 0x167   : > { %7003 = vmatpush3.bf16.msra.mxu0 %v7664_v7  ;;  %v7710_v7 = vld [vmem:[%s9540_s1 + $0xc78] sm:$0xff]  }
 0x168   : > { %7025 = vmatpush3.bf16.msra.mxu1 %v7665_v8  ;;  %7004 = vmatprep.subr.bf16.mxu0 %v7666_v9  ;;  %v7711_v9 = vld [vmem:[%s9540_s1 + $0xcf8] sm:$0xff]  }
 0x169   : > { %7026 = vmatprep.subr.bf16.mxu1 %v7667_v10 }
 0x16b   : > { %7005 = vmatpush3.bf16.msra.mxu0 %v7668_v11 }
 0x16c   : > { %7027 = vmatpush3.bf16.msra.mxu1 %v7669_v12  ;;  %7034 = vmatprep.subr.bf16.mxu0 %v7674_v20  ;;  %v7712_v12 = vld [vmem:[%s9540_s1 + $0xc38] sm:$0xff]  }
 0x16d   : > { %7056 = vmatprep.subr.bf16.mxu1 %v7675_v22 }
 0x16e   : > { %v6742_v15 = vpop.f32.mrf.mxu0  ;;  %5413 = vmatmul.mubr.bf16.vlgmr.msra.gmra.mxu0 %v6011_v17 }
 0x16f   : > { %v6764_v16 = vpop.f32.mrf.mxu1  ;;  %5453 = vmatmul.mubr.bf16.vlgmr.msra.gmra.mxu1 %v6013_v19  ;;  %7035 = vmatpush3.bf16.msra.mxu0 %v7676_v25  ;;  %v7718_v25 = vld [vmem:[%s9540_s1 + $0xc68] sm:$0xff]  }
 0x170   : > { %v6743_v23 = vpop.f32.mrf.mxu0  ;;  %7057 = vmatpush3.bf16.msra.mxu1 %v7677_v28  ;;  %7036 = vmatprep.subr.bf16.mxu0 %v7678_v32  ;;  %v7721_v28 = vld [vmem:[%s9540_s1 + $0xca8] sm:$0xff]   ;;  %v7725_v32 = vld [vmem:[%s9540_s1 + $0xca0] sm:$0xff]  }
 0x171   : > { %v6765_v24 = vpop.f32.mrf.mxu1  ;;  %v6744_v26 = vadd.f32 %v6743_v23, %v6742_v15  ;;  %7058 = vmatprep.subr.bf16.mxu1 %v7679_v33  ;;  %5492 = vmatprep.mubr.bf16.mxu0 %v6016_v2  ;;  %v7713_v15 = vld [vmem:[%s9540_s1 + $0xcb8] sm:$0xff]   ;;  %v7716_v23 = vld [vmem:[%s9540_s1 + $0xc30] sm:$0xff]  }
 0x172   : > { %v6766_v27 = vadd.f32 %v6765_v24, %v6764_v16  ;;  %v6745_v29 = vpop.f32.mrf.mxu0  ;;  %5532 = vmatprep.mubr.bf16.mxu1 %v6018_v6  ;;  %v7717_v24 = vld [vmem:[%s9540_s1 + $0xcb0] sm:$0xff]   ;;  %v7726_v33 = vld [vmem:[%s9540_s1 + $0xc58] sm:$0xff]  }
 0x173   : > { %v6767_v30 = vpop.f32.mrf.mxu1  ;;  %v4935_v31 = vadd.f32 %v6744_v26, %v8938_v49  ;;  %7037 = vmatpush3.bf16.msra.mxu0 %v7680_v37  ;;  %v7692_v49 = vld [vmem:[%s9540_s1 + $0xb18] sm:$0xff]   ;;  %v7719_v26 = vld [vmem:[%s9540_s1 + $0xce8] sm:$0xff]   ;;  %v7722_v29 = vld [vmem:[%s9540_s1 + $0xc60] sm:$0xff]  }
 0x174   : > { %v6746_v34 = vpop.f32.mrf.mxu0  ;;  %7059 = vmatpush3.bf16.msra.mxu1 %v7681_v38  ;;  %7038 = vmatprep.subr.bf16.mxu0 %v7682_v39  ;;  %v7723_v30 = vld [vmem:[%s9540_s1 + $0xce0] sm:$0xff]   ;;  %v7730_v37 = vld [vmem:[%s9540_s1 + $0xc50] sm:$0xff]  }
 0x175   : > { %v6768_v35 = vpop.f32.mrf.mxu1  ;;  %v9039_v36 = vadd.f32 %v6766_v27, %v4935_v31  ;;  %7060 = vmatprep.subr.bf16.mxu1 %v7683_v40  ;;  %v7720_v27 = vld [vmem:[%s9540_s1 + $0xc28] sm:$0xff]   ;;  %v7724_v31 = vld [vmem:[%s9540_s1 + $0xc20] sm:$0xff]   ;;  %v7727_v34 = vld [vmem:[%s9540_s1 + $0xcd8] sm:$0xff]  }
 0x176   : > { %v7728_v35 = vld [vmem:[%s9540_s1 + $0xc18] sm:$0xff]   ;;  %v7731_v38 = vld [vmem:[%s9540_s1 + $0xcd0] sm:$0xff]  }
 0x177   : > { %7039 = vmatpush3.bf16.msra.mxu0 %v7684_v41  ;;  %v7732_v39 = vld [vmem:[%s9540_s1 + $0xc10] sm:$0xff]   ;;  %v7734_v41 = vld [vmem:[%s9540_s1 + $0xc48] sm:$0xff]  }
 0x178   : > { %7061 = vmatpush3.bf16.msra.mxu1 %v7685_v42  ;;  %7040 = vmatprep.subr.bf16.mxu0 %v7686_v43  ;;  %v7733_v40 = vld [vmem:[%s9540_s1 + $0xc90] sm:$0xff]   ;;  %v7735_v42 = vld [vmem:[%s9540_s1 + $0xcc8] sm:$0xff]  }
 0x179   : > { %7062 = vmatprep.subr.bf16.mxu1 %v7687_v44  ;;  %v7736_v43 = vld [vmem:[%s9540_s1 + $0xc08] sm:$0xff]  }
 0x17a   : > { %v7737_v44 = vld [vmem:[%s9540_s1 + $0xc88] sm:$0xff]  }
 0x17b   : > { %7041 = vmatpush3.bf16.msra.mxu0 %v7688_v45  ;;  %v7738_v45 = vld [vmem:[%s9540_s1 + $0xc40] sm:$0xff]  }
 0x17c   : > { %7063 = vmatpush3.bf16.msra.mxu1 %v7689_v46  ;;  %7042 = vmatprep.subr.bf16.mxu0 %v7690_v47  ;;  %v7739_v46 = vld [vmem:[%s9540_s1 + $0xcc0] sm:$0xff]  }
 0x17d   : > { %7064 = vmatprep.subr.bf16.mxu1 %v7691_v48  ;;  %v7740_v47 = vld [vmem:[%s9540_s1 + $0xc00] sm:$0xff]  }
 0x17e   : > { %v7741_v48 = vld [vmem:[%s9540_s1 + $0xc80] sm:$0xff]  }
 0x17f   : > { %7043 = vmatpush3.bf16.msra.mxu0 %v7692_v49  ;;  %v245_v49 = vld [vmem:[%s8016_s6 + $0xc0] sm:$0xff] }
 0x180   : > { %7065 = vmatpush3.bf16.msra.mxu1 %v7693_v50  ;;  %7044 = vmatprep.subr.bf16.mxu0 %v7694_v51  ;;  %v246_v50 = vld [vmem:[%s8016_s6 + $0xc8] sm:$0xff] }
 0x181   : > { %7066 = vmatprep.subr.bf16.mxu1 %v7695_v52  ;;  %v6019_v52 = vcombine.low %v245_v49, %v245_v49 }
 0x183   : > { %7045 = vmatpush3.bf16.msra.mxu0 %v7696_v53  ;;  %v6020_v53 = vcombine.high %v245_v49, %v245_v49  ;;  %v7785_v49 = vld [vmem:[%s9540_s1 + $0xeb8] sm:$0xff]  }
 0x184   : > { %7067 = vmatpush3.bf16.msra.mxu1 %v7697_v54  ;;  %7046 = vmatprep.subr.bf16.mxu0 %v7698_v55  ;;  %v6021_v54 = vcombine.low %v246_v50, %v246_v50  ;;  %v6022_v55 = vcombine.high %v246_v50, %v246_v50 }
 0x185   : > { %7068 = vmatprep.subr.bf16.mxu1 %v7699_v56 }
 0x187   : > { %7047 = vmatpush3.bf16.msra.mxu0 %v7700_v57  ;;  %v7746_v57 = vld [vmem:[%s9540_s1 + $0xd78] sm:$0xff]  }
 0x188   : > { %7069 = vmatpush3.bf16.msra.mxu1 %v7701_v58  ;;  %7048 = vmatprep.subr.bf16.mxu0 %v7702_v59  ;;  %v7747_v58 = vld [vmem:[%s9540_s1 + $0xdf8] sm:$0xff]  }
 0x189   : > { %7070 = vmatprep.subr.bf16.mxu1 %v7703_v60  ;;  %v7748_v60 = vld [vmem:[%s9540_s1 + $0xd38] sm:$0xff]  }
 0x18b   : > { %7049 = vmatpush3.bf16.msra.mxu0 %v7704_v61 }
 0x18c   : > { %7071 = vmatpush3.bf16.msra.mxu1 %v7705_v62  ;;  %7078 = vmatprep.subr.bf16.mxu0 %v7710_v7 }
 0x18d   : > { %7100 = vmatprep.subr.bf16.mxu1 %v7711_v9 }
 0x18e   : > { %v6786_v0 = vpop.f32.mrf.mxu0  ;;  %5493 = vmatmul.mubr.bf16.vlgmr.msra.gmra.mxu0 %v6015_v1 }
 0x18f   : > { %v6808_v4 = vpop.f32.mrf.mxu1  ;;  %5533 = vmatmul.mubr.bf16.vlgmr.msra.gmra.mxu1 %v6017_v5  ;;  %7079 = vmatpush3.bf16.msra.mxu0 %v7712_v12  ;;  %v7751_v5 = vld [vmem:[%s9540_s1 + $0xdf0] sm:$0xff]   ;;  %v7755_v12 = vld [vmem:[%s9540_s1 + $0xde8] sm:$0xff]  }
 0x190   : > { %v6787_v8 = vpop.f32.mrf.mxu0  ;;  %7101 = vmatpush3.bf16.msra.mxu1 %v7713_v15  ;;  %7080 = vmatprep.subr.bf16.mxu0 %v7714_v18  ;;  %v7758_v15 = vld [vmem:[%s9540_s1 + $0xd60] sm:$0xff]  }
 0x191   : > { %v6788_v10 = vadd.f32 %v6787_v8, %v6786_v0  ;;  %v6809_v11 = vpop.f32.mrf.mxu1  ;;  %7102 = vmatprep.subr.bf16.mxu1 %v7715_v21  ;;  %5572 = vmatprep.mubr.bf16.mxu0 %v6020_v53  ;;  %v7752_v8 = vld [vmem:[%s9540_s1 + $0xd30] sm:$0xff]   ;;  %v7761_v18 = vld [vmem:[%s9540_s1 + $0xda0] sm:$0xff]   ;;  %v7764_v21 = vld [vmem:[%s9540_s1 + $0xd18] sm:$0xff]  }
 0x192   : > { %v6810_v13 = vadd.f32 %v6809_v11, %v6808_v4  ;;  %v6789_v14 = vpop.f32.mrf.mxu0  ;;  %5612 = vmatprep.mubr.bf16.mxu1 %v6022_v55  ;;  %v7750_v4 = vld [vmem:[%s9540_s1 + $0xd70] sm:$0xff]   ;;  %v7754_v11 = vld [vmem:[%s9540_s1 + $0xd68] sm:$0xff]  }
 0x193   : > { %v5015_v16 = vadd.f32 %v6788_v10, %v9039_v36  ;;  %v6811_v17 = vpop.f32.mrf.mxu1  ;;  %7081 = vmatpush3.bf16.msra.mxu0 %v7716_v23  ;;  %v7729_v36 = vld [vmem:[%s9540_s1 + $0xc98] sm:$0xff]   ;;  %v7753_v10 = vld [vmem:[%s9540_s1 + $0xdb0] sm:$0xff]   ;;  %v7757_v14 = vld [vmem:[%s9540_s1 + $0xda8] sm:$0xff]  }
 0x194   : > { %v6790_v19 = vpop.f32.mrf.mxu0  ;;  %7103 = vmatpush3.bf16.msra.mxu1 %v7717_v24  ;;  %7082 = vmatprep.subr.bf16.mxu0 %v7718_v25  ;;  %v7760_v17 = vld [vmem:[%s9540_s1 + $0xd20] sm:$0xff]   ;;  %v7766_v23 = vld [vmem:[%s9540_s1 + $0xd50] sm:$0xff]  }
 0x195   : > { %v9137_v20 = vadd.f32 %v6810_v13, %v5015_v16  ;;  %v6812_v22 = vpop.f32.mrf.mxu1  ;;  %7104 = vmatprep.subr.bf16.mxu1 %v7719_v26  ;;  %v7756_v13 = vld [vmem:[%s9540_s1 + $0xd28] sm:$0xff]   ;;  %v7759_v16 = vld [vmem:[%s9540_s1 + $0xde0] sm:$0xff]   ;;  %v7762_v19 = vld [vmem:[%s9540_s1 + $0xd58] sm:$0xff]  }
 0x196   : > { %v7765_v22 = vld [vmem:[%s9540_s1 + $0xd98] sm:$0xff]   ;;  %v7767_v24 = vld [vmem:[%s9540_s1 + $0xdd0] sm:$0xff]  }
 0x197   : > { %7083 = vmatpush3.bf16.msra.mxu0 %v7720_v27  ;;  %v7768_v25 = vld [vmem:[%s9540_s1 + $0xd10] sm:$0xff]   ;;  %v7770_v27 = vld [vmem:[%s9540_s1 + $0xd48] sm:$0xff]  }
 0x198   : > { %7105 = vmatpush3.bf16.msra.mxu1 %v7721_v28  ;;  %7084 = vmatprep.subr.bf16.mxu0 %v7722_v29  ;;  %v7769_v26 = vld [vmem:[%s9540_s1 + $0xd90] sm:$0xff]   ;;  %v7771_v28 = vld [vmem:[%s9540_s1 + $0xdc8] sm:$0xff]  }
 0x199   : > { %7106 = vmatprep.subr.bf16.mxu1 %v7723_v30  ;;  %v7772_v29 = vld [vmem:[%s9540_s1 + $0xd08] sm:$0xff]   ;;  %v7787_v55 = vld [vmem:[%s9540_s1 + $0xef0] sm:$0xff]  }
 0x19a   : > { %v7773_v30 = vld [vmem:[%s9540_s1 + $0xd88] sm:$0xff]  }
 0x19b   : > { %7085 = vmatpush3.bf16.msra.mxu0 %v7724_v31  ;;  %v7774_v31 = vld [vmem:[%s9540_s1 + $0xd40] sm:$0xff]  }
 0x19c   : > { %7107 = vmatpush3.bf16.msra.mxu1 %v7725_v32  ;;  %7086 = vmatprep.subr.bf16.mxu0 %v7726_v33  ;;  %v7775_v32 = vld [vmem:[%s9540_s1 + $0xdc0] sm:$0xff]  }
 0x19d   : > { %7108 = vmatprep.subr.bf16.mxu1 %v7727_v34  ;;  %v7776_v33 = vld [vmem:[%s9540_s1 + $0xd00] sm:$0xff]  }
 0x19e   : > { %v7777_v34 = vld [vmem:[%s9540_s1 + $0xd80] sm:$0xff]  }
 0x19f   : > { %7087 = vmatpush3.bf16.msra.mxu0 %v7728_v35  ;;  %v247_v35 = vld [vmem:[%s8016_s6 + $0xd0] sm:$0xff] }
 0x1a0   : > { %7109 = vmatpush3.bf16.msra.mxu1 %v7729_v36  ;;  %7088 = vmatprep.subr.bf16.mxu0 %v7730_v37  ;;  %v248_v36 = vld [vmem:[%s8016_s6 + $0xd8] sm:$0xff] }
 0x1a1   : > { %7110 = vmatprep.subr.bf16.mxu1 %v7731_v38  ;;  %v6023_v38 = vcombine.low %v247_v35, %v247_v35 }
 0x1a3   : > { %7089 = vmatpush3.bf16.msra.mxu0 %v7732_v39  ;;  %v6024_v39 = vcombine.high %v247_v35, %v247_v35 }
 0x1a4   : > { %7111 = vmatpush3.bf16.msra.mxu1 %v7733_v40  ;;  %7090 = vmatprep.subr.bf16.mxu0 %v7734_v41  ;;  %v6025_v40 = vcombine.low %v248_v36, %v248_v36 }
 0x1a5   : > { %7112 = vmatprep.subr.bf16.mxu1 %v7735_v42  ;;  %v7782_v42 = vld [vmem:[%s9540_s1 + $0xe78] sm:$0xff]  }
 0x1a7   : > { %7091 = vmatpush3.bf16.msra.mxu0 %v7736_v43  ;;  %v6026_v43 = vcombine.high %v248_v36, %v248_v36  ;;  %v7821_v36 = vld [vmem:[%s9540_s1 + $0xfb8] sm:$0xff]  }
 0x1a8   : > { %7113 = vmatpush3.bf16.msra.mxu1 %v7737_v44  ;;  %7092 = vmatprep.subr.bf16.mxu0 %v7738_v45  ;;  %v7783_v44 = vld [vmem:[%s9540_s1 + $0xef8] sm:$0xff]  }
 0x1a9   : > { %7114 = vmatprep.subr.bf16.mxu1 %v7739_v46  ;;  %v7784_v46 = vld [vmem:[%s9540_s1 + $0xe38] sm:$0xff]  }
 0x1ab   : > { %7093 = vmatpush3.bf16.msra.mxu0 %v7740_v47 }
 0x1ac   : > { %7115 = vmatpush3.bf16.msra.mxu1 %v7741_v48  ;;  %7122 = vmatprep.subr.bf16.mxu0 %v7746_v57 }
 0x1ad   : > { %7144 = vmatprep.subr.bf16.mxu1 %v7747_v58  ;;  %v7788_v58 = vld [vmem:[%s9540_s1 + $0xe30] sm:$0xff]  }
 0x1ae   : > { %v6830_v51 = vpop.f32.mrf.mxu0  ;;  %5573 = vmatmul.mubr.bf16.vlgmr.msra.gmra.mxu0 %v6019_v52 }
 0x1af   : > { %v6852_v56 = vpop.f32.mrf.mxu1  ;;  %5613 = vmatmul.mubr.bf16.vlgmr.msra.gmra.mxu1 %v6021_v54  ;;  %7123 = vmatpush3.bf16.msra.mxu0 %v7748_v60  ;;  %v7786_v54 = vld [vmem:[%s9540_s1 + $0xe70] sm:$0xff]  }
 0x1b0   : > { %v6831_v59 = vpop.f32.mrf.mxu0  ;;  %7145 = vmatpush3.bf16.msra.mxu1 %v7749_v63  ;;  %7124 = vmatprep.subr.bf16.mxu0 %v7750_v4  ;;  %v7789_v60 = vld [vmem:[%s9540_s1 + $0xeb0] sm:$0xff]   ;;  %v7792_v63 = vld [vmem:[%s9540_s1 + $0xe28] sm:$0xff]   ;;  %v7797_v4 = vld [vmem:[%s9540_s1 + $0xea0] sm:$0xff]  }
 0x1b1   : > { %v6832_v61 = vadd.f32 %v6831_v59, %v6830_v51  ;;  %v6853_v62 = vpop.f32.mrf.mxu1  ;;  %7146 = vmatprep.subr.bf16.mxu1 %v7751_v5  ;;  %5652 = vmatprep.mubr.bf16.mxu0 %v6024_v39  ;;  %v7798_v5 = vld [vmem:[%s9540_s1 + $0xe58] sm:$0xff]  }
 0x1b2   : > { %v6854_v0 = vadd.f32 %v6853_v62, %v6852_v56  ;;  %v6833_v1 = vpop.f32.mrf.mxu0  ;;  %5692 = vmatprep.mubr.bf16.mxu1 %v6026_v43  ;;  %v7791_v62 = vld [vmem:[%s9540_s1 + $0xee8] sm:$0xff]  }
 0x1b3   : > { %v5095_v2 = vadd.f32 %v6832_v61, %v9137_v20  ;;  %v6855_v3 = vpop.f32.mrf.mxu1  ;;  %7125 = vmatpush3.bf16.msra.mxu0 %v7752_v8  ;;  %v7763_v20 = vld [vmem:[%s9540_s1 + $0xdd8] sm:$0xff]   ;;  %v7790_v61 = vld [vmem:[%s9540_s1 + $0xe68] sm:$0xff]   ;;  %v7794_v1 = vld [vmem:[%s9540_s1 + $0xe60] sm:$0xff]  }
 0x1b4   : > { %v6834_v6 = vpop.f32.mrf.mxu0  ;;  %7147 = vmatpush3.bf16.msra.mxu1 %v7753_v10  ;;  %7126 = vmatprep.subr.bf16.mxu0 %v7754_v11  ;;  %v7796_v3 = vld [vmem:[%s9540_s1 + $0xe20] sm:$0xff]   ;;  %v7801_v8 = vld [vmem:[%s9540_s1 + $0xe98] sm:$0xff]   ;;  %v7803_v10 = vld [vmem:[%s9540_s1 + $0xed0] sm:$0xff]  }
 0x1b5   : > { %v9241_v7 = vadd.f32 %v6854_v0, %v5095_v2  ;;  %v6856_v9 = vpop.f32.mrf.mxu1  ;;  %7148 = vmatprep.subr.bf16.mxu1 %v7755_v12  ;;  %v7793_v0 = vld [vmem:[%s9540_s1 + $0xea8] sm:$0xff]   ;;  %v7795_v2 = vld [vmem:[%s9540_s1 + $0xee0] sm:$0xff]   ;;  %v7799_v6 = vld [vmem:[%s9540_s1 + $0xed8] sm:$0xff]  }
 0x1b6   : > { %v7802_v9 = vld [vmem:[%s9540_s1 + $0xe50] sm:$0xff]  }
 0x1b7   : > { %7127 = vmatpush3.bf16.msra.mxu0 %v7756_v13  ;;  %v7804_v11 = vld [vmem:[%s9540_s1 + $0xe10] sm:$0xff]   ;;  %v7806_v13 = vld [vmem:[%s9540_s1 + $0xe48] sm:$0xff]  }
 0x1b8   : > { %7149 = vmatpush3.bf16.msra.mxu1 %v7757_v14  ;;  %7128 = vmatprep.subr.bf16.mxu0 %v7758_v15  ;;  %v7805_v12 = vld [vmem:[%s9540_s1 + $0xe90] sm:$0xff]   ;;  %v7807_v14 = vld [vmem:[%s9540_s1 + $0xec8] sm:$0xff]  }
 0x1b9   : > { %7150 = vmatprep.subr.bf16.mxu1 %v7759_v16  ;;  %v7808_v15 = vld [vmem:[%s9540_s1 + $0xe08] sm:$0xff]  }
 0x1ba   : > { %v7809_v16 = vld [vmem:[%s9540_s1 + $0xe88] sm:$0xff]  }
 0x1bb   : > { %7129 = vmatpush3.bf16.msra.mxu0 %v7760_v17  ;;  %v7810_v17 = vld [vmem:[%s9540_s1 + $0xe40] sm:$0xff]  }
 0x1bc   : > { %7151 = vmatpush3.bf16.msra.mxu1 %v7761_v18  ;;  %7130 = vmatprep.subr.bf16.mxu0 %v7762_v19  ;;  %v7811_v18 = vld [vmem:[%s9540_s1 + $0xec0] sm:$0xff]  }
 0x1bd   : > { %7152 = vmatprep.subr.bf16.mxu1 %v7763_v20  ;;  %v7812_v19 = vld [vmem:[%s9540_s1 + $0xe00] sm:$0xff]  }
 0x1be   : > { %v7813_v20 = vld [vmem:[%s9540_s1 + $0xe80] sm:$0xff]  }
 0x1bf   : > { %7131 = vmatpush3.bf16.msra.mxu0 %v7764_v21  ;;  %v249_v21 = vld [vmem:[%s8016_s6 + $0xe0] sm:$0xff] }
 0x1c0   : > { %7153 = vmatpush3.bf16.msra.mxu1 %v7765_v22  ;;  %7132 = vmatprep.subr.bf16.mxu0 %v7766_v23  ;;  %v6027_v22 = vcombine.low %v249_v21, %v249_v21  ;;  %v6028_v23 = vcombine.high %v249_v21, %v249_v21 }
 0x1c1   : > { %7154 = vmatprep.subr.bf16.mxu1 %v7767_v24  ;;  %v250_v24 = vld [vmem:[%s8016_s6 + $0xe8] sm:$0xff] }
 0x1c3   : > { %7133 = vmatpush3.bf16.msra.mxu0 %v7768_v25 }
 0x1c4   : > { %7155 = vmatpush3.bf16.msra.mxu1 %v7769_v26  ;;  %7134 = vmatprep.subr.bf16.mxu0 %v7770_v27  ;;  %v6029_v27 = vcombine.low %v250_v24, %v250_v24 }
 0x1c5   : > { %7156 = vmatprep.subr.bf16.mxu1 %v7771_v28  ;;  %v6030_v28 = vcombine.high %v250_v24, %v250_v24 }
 0x1c7   : > { %7135 = vmatpush3.bf16.msra.mxu0 %v7772_v29  ;;  %v7818_v29 = vld [vmem:[%s9540_s1 + $0xf78] sm:$0xff]  }
 0x1c8   : > { %7157 = vmatpush3.bf16.msra.mxu1 %v7773_v30  ;;  %7136 = vmatprep.subr.bf16.mxu0 %v7774_v31  ;;  %v7819_v30 = vld [vmem:[%s9540_s1 + $0xff8] sm:$0xff]  }
 0x1c9   : > { %7158 = vmatprep.subr.bf16.mxu1 %v7775_v32 }
 0x1cb   : > { %7137 = vmatpush3.bf16.msra.mxu0 %v7776_v33  ;;  %v7820_v33 = vld [vmem:[%s9540_s1 + $0xf38] sm:$0xff]  }
 0x1cc   : > { %7159 = vmatpush3.bf16.msra.mxu1 %v7777_v34  ;;  %7166 = vmatprep.subr.bf16.mxu0 %v7782_v42 }
 0x1cd   : > { %7188 = vmatprep.subr.bf16.mxu1 %v7783_v44 }
 0x1ce   : > { %v6874_v37 = vpop.f32.mrf.mxu0  ;;  %5653 = vmatmul.mubr.bf16.vlgmr.msra.gmra.mxu0 %v6023_v38 }
 0x1cf   : > { %v6896_v41 = vpop.f32.mrf.mxu1  ;;  %5693 = vmatmul.mubr.bf16.vlgmr.msra.gmra.mxu1 %v6025_v40  ;;  %7167 = vmatpush3.bf16.msra.mxu0 %v7784_v46  ;;  %v7822_v40 = vld [vmem:[%s9540_s1 + $0xf70] sm:$0xff]  }
 0x1d0   : > { %v6875_v45 = vpop.f32.mrf.mxu0  ;;  %7189 = vmatpush3.bf16.msra.mxu1 %v7785_v49  ;;  %7168 = vmatprep.subr.bf16.mxu0 %v7786_v54  ;;  %v7825_v46 = vld [vmem:[%s9540_s1 + $0xfb0] sm:$0xff]   ;;  %v7828_v49 = vld [vmem:[%s9540_s1 + $0xf28] sm:$0xff]   ;;  %v7833_v54 = vld [vmem:[%s9540_s1 + $0xfa0] sm:$0xff]  }
 0x1d1   : > { %v6876_v47 = vadd.f32 %v6875_v45, %v6874_v37  ;;  %v6897_v48 = vpop.f32.mrf.mxu1  ;;  %7190 = vmatprep.subr.bf16.mxu1 %v7787_v55  ;;  %5732 = vmatprep.mubr.bf16.mxu0 %v6028_v23  ;;  %v7824_v45 = vld [vmem:[%s9540_s1 + $0xf30] sm:$0xff]   ;;  %v7834_v55 = vld [vmem:[%s9540_s1 + $0xf58] sm:$0xff]  }
 0x1d2   : > { %v6898_v50 = vadd.f32 %v6897_v48, %v6896_v41  ;;  %v6877_v51 = vpop.f32.mrf.mxu0  ;;  %5772 = vmatprep.mubr.bf16.mxu1 %v6030_v28  ;;  %v7823_v41 = vld [vmem:[%s9540_s1 + $0xff0] sm:$0xff]   ;;  %v7827_v48 = vld [vmem:[%s9540_s1 + $0xfe8] sm:$0xff]  }
 0x1d3   : > { %v5175_v52 = vadd.f32 %v6876_v47, %v9241_v7  ;;  %v6899_v53 = vpop.f32.mrf.mxu1  ;;  %7169 = vmatpush3.bf16.msra.mxu0 %v7788_v58  ;;  %v7800_v7 = vld [vmem:[%s9540_s1 + $0xe18] sm:$0xff]   ;;  %v7826_v47 = vld [vmem:[%s9540_s1 + $0xf68] sm:$0xff]   ;;  %v7830_v51 = vld [vmem:[%s9540_s1 + $0xf60] sm:$0xff]  }
 0x1d4   : > { %v6878_v56 = vpop.f32.mrf.mxu0  ;;  %7191 = vmatpush3.bf16.msra.mxu1 %v7789_v60  ;;  %7170 = vmatprep.subr.bf16.mxu0 %v7790_v61  ;;  %v7832_v53 = vld [vmem:[%s9540_s1 + $0xf20] sm:$0xff]   ;;  %v7837_v58 = vld [vmem:[%s9540_s1 + $0xf98] sm:$0xff]   ;;  %v7839_v60 = vld [vmem:[%s9540_s1 + $0xfd0] sm:$0xff]  }
 0x1d5   : > { %v9342_v57 = vadd.f32 %v6898_v50, %v5175_v52  ;;  %v6900_v59 = vpop.f32.mrf.mxu1  ;;  %7192 = vmatprep.subr.bf16.mxu1 %v7791_v62  ;;  %v7829_v50 = vld [vmem:[%s9540_s1 + $0xfa8] sm:$0xff]   ;;  %v7831_v52 = vld [vmem:[%s9540_s1 + $0xfe0] sm:$0xff]   ;;  %v7835_v56 = vld [vmem:[%s9540_s1 + $0xfd8] sm:$0xff]  }
 0x1d6   : > { %v7838_v59 = vld [vmem:[%s9540_s1 + $0xf50] sm:$0xff]  }
 0x1d7   : > { %7171 = vmatpush3.bf16.msra.mxu0 %v7792_v63  ;;  %v7840_v61 = vld [vmem:[%s9540_s1 + $0xf10] sm:$0xff]   ;;  %v7842_v63 = vld [vmem:[%s9540_s1 + $0xf48] sm:$0xff]  }
 0x1d8   : > { %7193 = vmatpush3.bf16.msra.mxu1 %v7793_v0  ;;  %7172 = vmatprep.subr.bf16.mxu0 %v7794_v1  ;;  %v7841_v62 = vld [vmem:[%s9540_s1 + $0xf90] sm:$0xff]   ;;  %v7843_v0 = vld [vmem:[%s9540_s1 + $0xfc8] sm:$0xff]  }
 0x1d9   : > { %7194 = vmatprep.subr.bf16.mxu1 %v7795_v2  ;;  %v7844_v1 = vld [vmem:[%s9540_s1 + $0xf08] sm:$0xff]  }
 0x1da   : > { %v7845_v2 = vld [vmem:[%s9540_s1 + $0xf88] sm:$0xff]  }
 0x1db   : > { %7173 = vmatpush3.bf16.msra.mxu0 %v7796_v3  ;;  %v7846_v3 = vld [vmem:[%s9540_s1 + $0xf40] sm:$0xff]  }
 0x1dc   : > { %7195 = vmatpush3.bf16.msra.mxu1 %v7797_v4  ;;  %7174 = vmatprep.subr.bf16.mxu0 %v7798_v5  ;;  %v7847_v4 = vld [vmem:[%s9540_s1 + $0xfc0] sm:$0xff]  }
 0x1dd   : > { %7196 = vmatprep.subr.bf16.mxu1 %v7799_v6  ;;  %v7848_v5 = vld [vmem:[%s9540_s1 + $0xf00] sm:$0xff]  }
 0x1de   : > { %v7849_v6 = vld [vmem:[%s9540_s1 + $0xf80] sm:$0xff]  }
 0x1df   : > { %7175 = vmatpush3.bf16.msra.mxu0 %v7800_v7  ;;  %v251_v7 = vld [vmem:[%s8016_s6 + $0xf0] sm:$0xff] }
 0x1e0   : > { %7197 = vmatpush3.bf16.msra.mxu1 %v7801_v8  ;;  %7176 = vmatprep.subr.bf16.mxu0 %v7802_v9  ;;  %v252_v8 = vld [vmem:[%s8016_s6 + $0xf8] sm:$0xff]  ;;  %s5969_s6 = sshll.u32 %s9548_s12, 3 }
 0x1e1   : > { %7198 = vmatprep.subr.bf16.mxu1 %v7803_v10  ;;  %v6031_v10 = vcombine.low %v251_v7, %v251_v7  ;;  %s219_s7 = scalar_lea.vmem %s9542_s3, %s5969_s6 }
 0x1e3   : > { %7177 = vmatpush3.bf16.msra.mxu0 %v7804_v11  ;;  %v6032_v11 = vcombine.high %v251_v7, %v251_v7 }
 0x1e4   : > { %7199 = vmatpush3.bf16.msra.mxu1 %v7805_v12  ;;  %7178 = vmatprep.subr.bf16.mxu0 %v7806_v13  ;;  %v6033_v12 = vcombine.low %v252_v8, %v252_v8  ;;  %v6034_v13 = vcombine.high %v252_v8, %v252_v8 }
 0x1e5   : > { %7200 = vmatprep.subr.bf16.mxu1 %v7807_v14 }
 0x1e7   : > { %7179 = vmatpush3.bf16.msra.mxu0 %v7808_v15 }
 0x1e8   : > { %7201 = vmatpush3.bf16.msra.mxu1 %v7809_v16  ;;  %7180 = vmatprep.subr.bf16.mxu0 %v7810_v17 }
 0x1e9   : > { %7202 = vmatprep.subr.bf16.mxu1 %v7811_v18 }
 0x1eb   : > { %7181 = vmatpush3.bf16.msra.mxu0 %v7812_v19 }
 0x1ec   : > { %7203 = vmatpush3.bf16.msra.mxu1 %v7813_v20  ;;  %7210 = vmatprep.subr.bf16.mxu0 %v7818_v29 }
 0x1ed   : > { %7232 = vmatprep.subr.bf16.mxu1 %v7819_v30 }
 0x1ee   : > { %v6918_v25 = vpop.f32.mrf.mxu0  ;;  %5733 = vmatmul.mubr.bf16.vlgmr.msra.gmra.mxu0 %v6027_v22 }
 0x1ef   : > { %v6940_v26 = vpop.f32.mrf.mxu1  ;;  %5773 = vmatmul.mubr.bf16.vlgmr.msra.gmra.mxu1 %v6029_v27  ;;  %7211 = vmatpush3.bf16.msra.mxu0 %v7820_v33 }
 0x1f0   : > { %v6919_v31 = vpop.f32.mrf.mxu0  ;;  %7233 = vmatpush3.bf16.msra.mxu1 %v7821_v36  ;;  %7212 = vmatprep.subr.bf16.mxu0 %v7822_v40 }
 0x1f1   : > { %v6941_v32 = vpop.f32.mrf.mxu1  ;;  %v6920_v34 = vadd.f32 %v6919_v31, %v6918_v25  ;;  %7234 = vmatprep.subr.bf16.mxu1 %v7823_v41  ;;  %5812 = vmatprep.mubr.bf16.mxu0 %v6032_v11 }
 0x1f2   : > { %v6942_v35 = vadd.f32 %v6941_v32, %v6940_v26  ;;  %v6921_v37 = vpop.f32.mrf.mxu0  ;;  %5852 = vmatprep.mubr.bf16.mxu1 %v6034_v13 }
 0x1f3   : > { %v6943_v38 = vpop.f32.mrf.mxu1  ;;  %v5255_v39 = vadd.f32 %v6920_v34, %v9342_v57  ;;  %7213 = vmatpush3.bf16.msra.mxu0 %v7824_v45  ;;  %v7836_v57 = vld [vmem:[%s9540_s1 + $0xf18] sm:$0xff]  }
 0x1f4   : > { %v6922_v42 = vpop.f32.mrf.mxu0  ;;  %7235 = vmatpush3.bf16.msra.mxu1 %v7825_v46  ;;  %7214 = vmatprep.subr.bf16.mxu0 %v7826_v47 }
 0x1f5   : > { %v6944_v43 = vpop.f32.mrf.mxu1  ;;  %v9443_v44 = vadd.f32 %v6942_v35, %v5255_v39  ;;  %7236 = vmatprep.subr.bf16.mxu1 %v7827_v48 }
 0x1f7   : > { %7215 = vmatpush3.bf16.msra.mxu0 %v7828_v49 }
 0x1f8   : > { %7237 = vmatpush3.bf16.msra.mxu1 %v7829_v50  ;;  %7216 = vmatprep.subr.bf16.mxu0 %v7830_v51 }
 0x1f9   : > { %7238 = vmatprep.subr.bf16.mxu1 %v7831_v52 }
 0x1fb   : > { %7217 = vmatpush3.bf16.msra.mxu0 %v7832_v53 }
 0x1fc   : > { %7239 = vmatpush3.bf16.msra.mxu1 %v7833_v54  ;;  %7218 = vmatprep.subr.bf16.mxu0 %v7834_v55 }
 0x1fd   : > { %7240 = vmatprep.subr.bf16.mxu1 %v7835_v56 }
 0x1ff   : > { %7219 = vmatpush3.bf16.msra.mxu0 %v7836_v57 }
 0x200   : > { %7241 = vmatpush3.bf16.msra.mxu1 %v7837_v58  ;;  %7220 = vmatprep.subr.bf16.mxu0 %v7838_v59 }
 0x201   : > { %7242 = vmatprep.subr.bf16.mxu1 %v7839_v60 }
 0x203   : > { %7221 = vmatpush3.bf16.msra.mxu0 %v7840_v61 }
 0x204   : > { %7243 = vmatpush3.bf16.msra.mxu1 %v7841_v62  ;;  %7222 = vmatprep.subr.bf16.mxu0 %v7842_v63 }
 0x205   : > { %7244 = vmatprep.subr.bf16.mxu1 %v7843_v0 }
 0x207   : > { %7223 = vmatpush3.bf16.msra.mxu0 %v7844_v1 }
 0x208   : > { %7245 = vmatpush3.bf16.msra.mxu1 %v7845_v2  ;;  %7224 = vmatprep.subr.bf16.mxu0 %v7846_v3 }
 0x209   : > { %7246 = vmatprep.subr.bf16.mxu1 %v7847_v4 }
 0x20b   : > { %7225 = vmatpush3.bf16.msra.mxu0 %v7848_v5 }
 0x20c   : > { %7247 = vmatpush3.bf16.msra.mxu1 %v7849_v6 }
 0x20e   : > { %v6962_v9 = vpop.f32.mrf.mxu0  ;;  %5813 = vmatmul.mubr.bf16.vlgmr.msra.gmra.mxu0 %v6031_v10 }
 0x20f   : > { %v6984_v14 = vpop.f32.mrf.mxu1  ;;  %5853 = vmatmul.mubr.bf16.vlgmr.msra.gmra.mxu1 %v6033_v12 }
 0x210   : > { %v6963_v15 = vpop.f32.mrf.mxu0 }
 0x211   : > { %v6964_v16 = vadd.f32 %v6963_v15, %v6962_v9  ;;  %v6985_v17 = vpop.f32.mrf.mxu1 }
 0x212   : > { %v6986_v18 = vadd.f32 %v6985_v17, %v6984_v14  ;;  %v6965_v19 = vpop.f32.mrf.mxu0 }
 0x213   : > { %v5335_v20 = vadd.f32 %v6964_v16, %v9443_v44  ;;  %v6987_v21 = vpop.f32.mrf.mxu1 }
 0x214   : > { %v6966_v22 = vpop.f32.mrf.mxu0 }
 0x215   : > { %v5375_v23 = vadd.f32 %v6986_v18, %v5335_v20  ;;  %v6988_v24 = vpop.f32.mrf.mxu1 }
 0x22e   : > { %v7006_v25 = vpop.f32.mrf.mxu0 }
 0x22f   : > { %v7028_v26 = vpop.f32.mrf.mxu1 }
 0x230   : > { %v7007_v27 = vpop.f32.mrf.mxu0 }
 0x231   : > { %v7008_v28 = vadd.f32 %v7007_v27, %v7006_v25  ;;  %v7029_v29 = vpop.f32.mrf.mxu1 }
 0x232   : > { %v7030_v30 = vadd.f32 %v7029_v29, %v7028_v26  ;;  %v7009_v31 = vpop.f32.mrf.mxu0 }
 0x233   : > { %v5415_v32 = vadd.f32 %v7008_v28, %v5375_v23  ;;  %v7031_v33 = vpop.f32.mrf.mxu1 }
 0x234   : > { %v7010_v34 = vpop.f32.mrf.mxu0 }
 0x235   : > { %v5455_v35 = vadd.f32 %v7030_v30, %v5415_v32  ;;  %v7032_v36 = vpop.f32.mrf.mxu1 }
 0x24e   : > { %v7050_v37 = vpop.f32.mrf.mxu0 }
 0x24f   : > { %v7072_v38 = vpop.f32.mrf.mxu1 }
 0x250   : > { %v7051_v39 = vpop.f32.mrf.mxu0 }
 0x251   : > { %v7073_v40 = vpop.f32.mrf.mxu1  ;;  %v7052_v41 = vadd.f32 %v7051_v39, %v7050_v37 }
 0x252   : > { %v7074_v42 = vadd.f32 %v7073_v40, %v7072_v38  ;;  %v7053_v43 = vpop.f32.mrf.mxu0 }
 0x253   : > { %v7075_v44 = vpop.f32.mrf.mxu1  ;;  %v5495_v45 = vadd.f32 %v7052_v41, %v5455_v35 }
 0x254   : > { %v7054_v46 = vpop.f32.mrf.mxu0 }
 0x255   : > { %v7076_v47 = vpop.f32.mrf.mxu1  ;;  %v5535_v48 = vadd.f32 %v7074_v42, %v5495_v45 }
 0x26e   : > { %v7094_v49 = vpop.f32.mrf.mxu0 }
 0x26f   : > { %v7116_v50 = vpop.f32.mrf.mxu1 }
 0x270   : > { %v7095_v51 = vpop.f32.mrf.mxu0 }
 0x271   : > { %v7096_v52 = vadd.f32 %v7095_v51, %v7094_v49  ;;  %v7117_v53 = vpop.f32.mrf.mxu1 }
 0x272   : > { %v7118_v54 = vadd.f32 %v7117_v53, %v7116_v50  ;;  %v7097_v55 = vpop.f32.mrf.mxu0 }
 0x273   : > { %v5575_v56 = vadd.f32 %v7096_v52, %v5535_v48  ;;  %v7119_v57 = vpop.f32.mrf.mxu1 }
 0x274   : > { %v7098_v58 = vpop.f32.mrf.mxu0 }
 0x275   : > { %v5615_v59 = vadd.f32 %v7118_v54, %v5575_v56  ;;  %v7120_v60 = vpop.f32.mrf.mxu1 }
 0x28e   : > { %v7138_v61 = vpop.f32.mrf.mxu0 }
 0x28f   : > { %v7160_v62 = vpop.f32.mrf.mxu1 }
 0x290   : > { %v7139_v63 = vpop.f32.mrf.mxu0 }
 0x291   : > { %v7161_v0 = vpop.f32.mrf.mxu1  ;;  %v7140_v13 = vadd.f32 %v7139_v63, %v7138_v61 }
 0x292   : > { %v7141_v1 = vpop.f32.mrf.mxu0  ;;  %v7162_v15 = vadd.f32 %v7161_v0, %v7160_v62 }
 0x293   : > { %v7163_v2 = vpop.f32.mrf.mxu1  ;;  %v5655_v14 = vadd.f32 %v7140_v13, %v5615_v59 }
 0x294   : > { %v7142_v3 = vpop.f32.mrf.mxu0 }
 0x295   : > { %v7164_v4 = vpop.f32.mrf.mxu1  ;;  %v5695_v17 = vadd.f32 %v7162_v15, %v5655_v14 }
 0x2ae   : > { %v7182_v5 = vpop.f32.mrf.mxu0 }
 0x2af   : > { %v7204_v6 = vpop.f32.mrf.mxu1 }
 0x2b0   : > { %v7183_v7 = vpop.f32.mrf.mxu0 }
 0x2b1   : > { %v7205_v8 = vpop.f32.mrf.mxu1  ;;  %v7184_v16 = vadd.f32 %v7183_v7, %v7182_v5 }
 0x2b2   : > { %v7185_v9 = vpop.f32.mrf.mxu0  ;;  %v7206_v19 = vadd.f32 %v7205_v8, %v7204_v6 }
 0x2b3   : > { %v7207_v10 = vpop.f32.mrf.mxu1  ;;  %v5735_v18 = vadd.f32 %v7184_v16, %v5695_v17 }
 0x2b4   : > { %v7186_v11 = vpop.f32.mrf.mxu0 }
 0x2b5   : > { %v7208_v12 = vpop.f32.mrf.mxu1  ;;  %v5775_v23 = vadd.f32 %v7206_v19, %v5735_v18 }
 0x2ce   : > { %v7226_v20 = vpop.f32.mrf.mxu0 }
 0x2cf   : > { %v7248_v21 = vpop.f32.mrf.mxu1 }
 0x2d0   : > { %v7227_v22 = vpop.f32.mrf.mxu0 }
 0x2d1   : > { %v7228_v24 = vadd.f32 %v7227_v22, %v7226_v20  ;;  %v7249_v25 = vpop.f32.mrf.mxu1 }
 0x2d2   : > { %v7229_v26 = vpop.f32.mrf.mxu0  ;;  %v7250_v28 = vadd.f32 %v7249_v25, %v7248_v21 }
 0x2d3   : > { %v5815_v27 = vadd.f32 %v7228_v24, %v5775_v23  ;;  %v7251_v29 = vpop.f32.mrf.mxu1 }
 0x2d4   : > { %v7230_v30 = vpop.f32.mrf.mxu0 }
 0x2d5   : > { %v5855_v31 = vadd.f32 %v7250_v28, %v5815_v27  ;;  %v7252_v32 = vpop.f32.mrf.mxu1 }
 0x2d7   : > { %5860 = vst [vmem:[%s219_s7] sm:$0xff] %v5855_v31 }
 0x2d8 PF: > { %s13_s14 = sadd.s32 1, %s7876_s14   ;;  %s9543_s12 = smov %s7872_s13 }
 0x2d9   : > { %p10_p5 = scmp.ge.s32.totalorder %s13_s14, 4   ;;  %s9544_s13 = smov %s9546_s15 }
 0x2db   :  { %12 = sbr.rel (!%p10_p5) target bundleno = 2 (0x2), region = 68 }

</bundles_post_ra>
